<compile_context>
chip_gen: v6e
topology: v6e:2x2x1
jax: 0.10.0
libtpu: 0.0.40
codegen_flags: <defaults>
</compile_context>

<pallas_src>
import functools

import jax
import jax.numpy as jnp
from jax.experimental import pallas as pl
from jax.experimental.pallas import tpu as pltpu


def _round_up(x, m):
    return ((x + m - 1) // m) * m


_TILE_ROWS = 512                    # rows per in-register accumulator tile
_VMEM_LIMIT = 32 * 1024 * 1024


# ---------------------- conv 3x3x3 + bias + GN stats ---------------------- #

def _conv_kernel(x0_ref, x1_ref, x2_ref, w_ref, b_ref, y_ref, st_ref, *,
                 W, Rows, row_offsets, tile_rows):
    """One (n, d) output depth slice of a 'same' 3x3x3 conv.

    x{0,1,2}_ref: (1, 1, PX, CK) bf16 -- halo-padded depth slices d-1, d, d+1
        in flattened layout L (CK = Cin, or 9*Cin when the 9 in-plane taps are
        pre-packed into lanes).
    w_ref: (3*len(row_offsets), CK, Cp) bf16.   b_ref: (1, Cp) f32.
    y_ref: (1, 1, Rows, Cp) bf16, Rows = H*(W+2); garbage columns zeroed.
    st_ref: (1, 1, 2, Cp) f32 -- [sum, sum-of-squares] of this slice, computed
        from the f32 accumulator (not the bf16 store).
    """
    W2 = W + 2
    cp = y_ref.shape[-1]
    n_off = len(row_offsets)
    slabs = (x0_ref, x1_ref, x2_ref)

    s1 = jnp.zeros((1, cp), jnp.float32)
    s2 = jnp.zeros((1, cp), jnp.float32)
    for r0 in range(0, Rows, tile_rows):
        tr = min(tile_rows, Rows - r0)
        acc = jnp.zeros((tr, cp), jnp.float32)
        for kd in range(3):
            for t, off in enumerate(row_offsets):
                a = slabs[kd][0, 0, pl.ds(r0 + off, tr), :]    # (tr, CK) bf16
                acc = acc + jnp.dot(a, w_ref[kd * n_off + t],
                                    preferred_element_type=jnp.float32)
        yv = acc + b_ref[...]
        col = (jax.lax.broadcasted_iota(jnp.int32, (tr, 1), 0) + r0) % W2
        yv = jnp.where(col < W, yv, 0.0)                # zero garbage columns
        y_ref[0, 0, pl.ds(r0, tr), :] = yv.astype(y_ref.dtype)
        s1 = s1 + jnp.sum(yv, axis=0, keepdims=True)
        s2 = s2 + jnp.sum(yv * yv, axis=0, keepdims=True)

    row = jax.lax.broadcasted_iota(jnp.int32, (2, 1), 0)
    st_ref[0, 0] = jnp.where(row == 0, s1, s2)


def _conv3d(x_slabs, wmat, bvec, *, D, Rows, W, Cp, row_offsets):
    N = x_slabs.shape[0]
    PX, CK = x_slabs.shape[2], x_slabs.shape[3]
    T = wmat.shape[0]
    kernel = functools.partial(_conv_kernel, W=W, Rows=Rows,
                               row_offsets=tuple(row_offsets),
                               tile_rows=_TILE_ROWS)
    return pl.pallas_call(
        kernel,
        out_shape=(jax.ShapeDtypeStruct((N, D, Rows, Cp), jnp.bfloat16),
                   jax.ShapeDtypeStruct((N, D, 2, Cp), jnp.float32)),
        grid_spec=pltpu.PrefetchScalarGridSpec(
            num_scalar_prefetch=0,
            grid=(N, D),
            in_specs=[
                # NOTE: a 3-slot VMEM ring (manual make_async_copy) would avoid
                # re-fetching each depth slice up to 3x across d steps.
                pl.BlockSpec((1, 1, PX, CK), lambda n, d: (n, d, 0, 0)),
                pl.BlockSpec((1, 1, PX, CK), lambda n, d: (n, d + 1, 0, 0)),
                pl.BlockSpec((1, 1, PX, CK), lambda n, d: (n, d + 2, 0, 0)),
                pl.BlockSpec((T, CK, Cp), lambda n, d: (0, 0, 0)),
                pl.BlockSpec((1, Cp), lambda n, d: (0, 0)),
            ],
            out_specs=[
                pl.BlockSpec((1, 1, Rows, Cp), lambda n, d: (n, d, 0, 0)),
                pl.BlockSpec((1, 1, 2, Cp), lambda n, d: (n, d, 0, 0)),
            ],
        ),
        compiler_params=pltpu.CompilerParams(
            dimension_semantics=("parallel", "parallel"),
            vmem_limit_bytes=_VMEM_LIMIT),
    )(x_slabs, x_slabs, x_slabs, wmat, bvec)


# --------------------- GroupNorm finalize + GN/ReLU pack ------------------ #

def _gn_scale_shift(stats, gamma, beta, *, num_groups, vox, Cp, eps):
    """Tiny finalization of the fused conv-epilogue stats (plain JAX)."""
    N = stats.shape[0]
    Cout = gamma.shape[0]
    cpg = Cout // num_groups
    s = jnp.sum(stats, axis=1)                                   # (N, 2, Cp)
    s1 = s[:, 0, :Cout].reshape(N, num_groups, cpg).sum(-1)      # (N, G)
    s2 = s[:, 1, :Cout].reshape(N, num_groups, cpg).sum(-1)
    cnt = jnp.float32(vox * cpg)
    mean = s1 / cnt
    var = jnp.maximum(s2 / cnt - mean * mean, 0.0)   # biased var (PyTorch GN)
    inv = jax.lax.rsqrt(var + eps)
    inv_c = jnp.repeat(inv, cpg, axis=1)                         # (N, Cout)
    mean_c = jnp.repeat(mean, cpg, axis=1)
    scale = gamma[None, :] * inv_c
    shift = beta[None, :] - mean_c * scale
    scale = jnp.pad(scale, ((0, 0), (0, Cp - Cout)))   # padded channels -> 0
    shift = jnp.pad(shift, ((0, 0), (0, Cp - Cout)))
    return (scale.astype(jnp.float32)[:, None, :],
            shift.astype(jnp.float32)[:, None, :])


def _gn_pack_kernel(y_ref, sc_ref, sh_ref, o_ref, *, A, W, D, Rows):
    """GN affine + ReLU, emitted directly in the next conv's layout L
    (bf16, halo-padded, flattened).  Grid runs over padded depth 0..D+1;
    halo depth slices are written as zeros."""
    W2 = W + 2
    dp = pl.program_id(1)
    o_ref[0, 0] = jnp.zeros(o_ref.shape[2:], o_ref.dtype)   # halos + tail

    @pl.when(jnp.logical_and(dp >= 1, dp <= D))
    def _():
        z = y_ref[0, 0].astype(jnp.float32) * sc_ref[0] + sh_ref[0]
        z = jnp.maximum(z, 0.0)
        col = jax.lax.broadcasted_iota(jnp.int32, (Rows, 1), 0) % W2
        z = jnp.where(col < W, z, 0.0)
        # interior starts at row A + W2 + 1, 8-aligned by construction of A
        o_ref[0, 0, pl.ds(A + W2 + 1, Rows), :] = z.astype(o_ref.dtype)


def _gn_relu_pack(y, scale, shift, *, D, H, W, A, PL):
    N, _, Rows, Cp = y.shape
    kernel = functools.partial(_gn_pack_kernel, A=A, W=W, D=D, Rows=Rows)
    return pl.pallas_call(
        kernel,
        out_shape=jax.ShapeDtypeStruct((N, D + 2, PL, Cp), jnp.bfloat16),
        grid_spec=pltpu.PrefetchScalarGridSpec(
            num_scalar_prefetch=0,
            grid=(N, D + 2),
            in_specs=[
                pl.BlockSpec((1, 1, Rows, Cp),
                             lambda n, dp: (n, jnp.clip(dp - 1, 0, D - 1), 0, 0)),
                pl.BlockSpec((1, 1, Cp), lambda n, dp: (n, 0, 0)),
                pl.BlockSpec((1, 1, Cp), lambda n, dp: (n, 0, 0)),
            ],
            out_specs=pl.BlockSpec((1, 1, PL, Cp), lambda n, dp: (n, dp, 0, 0)),
        ),
        compiler_params=pltpu.CompilerParams(
            dimension_semantics=("parallel", "parallel"),
            vmem_limit_bytes=_VMEM_LIMIT),
    )(y, scale, shift)


# ------------------------------ layout helpers ---------------------------- #

def _to_layout_l(x_ndhwc, *, A, PL):
    """NDHWC -> zero-halo-padded, (H+2)*(W+2)-flattened bf16 layout L:
    (N, D+2, PL, C) with A leading zero rows (8-alignment) and a zero tail."""
    N, D, H, W, C = x_ndhwc.shape
    W2 = W + 2
    P = (H + 2) * W2
    xp = jnp.pad(x_ndhwc, ((0, 0), (1, 1), (1, 1), (1, 1), (0, 0)))
    xp = xp.reshape(N, D + 2, P, C)
    xp = jnp.pad(xp, ((0, 0), (0, 0), (A, PL - A - P), (0, 0)))
    return xp.astype(jnp.bfloat16)


def _pack_taps(xL, *, W2, Ppk):
    """Pre-pack the 9 in-plane taps into lanes: out[..., q, (kh*3+kw)*C + c] =
    xL[..., q + kh*W2 + kw, c]  (folds the 3x3 in-plane stencil into matmul K
    for small Cin; built in XLA on a tiny tensor)."""
    pieces = [jax.lax.slice_in_dim(xL, kh * W2 + kw, kh * W2 + kw + Ppk, axis=2)
              for kh in range(3) for kw in range(3)]
    return jnp.concatenate(pieces, axis=-1)


def _prep_weights(w, b, *, cin_eff, Cp, fold9):
    cout, cin_l = w.shape[0], w.shape[1]
    wp = jnp.pad(w, ((0, Cp - cout), (0, cin_eff - cin_l),
                     (0, 0), (0, 0), (0, 0)))
    wt = jnp.transpose(wp, (2, 3, 4, 1, 0))        # (kd, kh, kw, cin_eff, Cp)
    wmat = (wt.reshape(3, 9 * cin_eff, Cp) if fold9
            else wt.reshape(27, cin_eff, Cp))
    bvec = jnp.pad(b, (0, Cp - cout)).reshape(1, Cp).astype(jnp.float32)
    return wmat.astype(jnp.bfloat16), bvec


# ------------------------------- DoubleConv -------------------------------- #

def _stage(x_slabs, w, b, gamma, beta, *, D, H, W, Cp, A, PL, row_offsets,
           fold9, cin_eff, num_groups, eps):
    Rows = H * (W + 2)
    wmat, bvec = _prep_weights(w, b, cin_eff=cin_eff, Cp=Cp, fold9=fold9)
    y, stats = _conv3d(x_slabs, wmat, bvec, D=D, Rows=Rows, W=W, Cp=Cp,
                       row_offsets=row_offsets)
    scale, shift = _gn_scale_shift(stats, gamma, beta, num_groups=num_groups,
                                   vox=D * H * W, Cp=Cp, eps=eps)
    return _gn_relu_pack(y, scale, shift, D=D, H=H, W=W, A=A, PL=PL)


def double_conv(x_ncdhw, params, *, num_groups=8, eps=1e-5):
    w1, b1, g1, be1, w2, b2, g2, be2 = params
    N, Cin, D, H, W = x_ncdhw.shape
    Cout = w1.shape[0]
    assert Cout % num_groups == 0, "GroupNorm requires C % num_groups == 0"
    Cp = _round_up(Cout, 128)                 # lane-dense channel dimension
    W2 = W + 2
    Rows = H * W2
    P = (H + 2) * W2
    A = (-(W2 + 1)) % 8                       # makes interior row 8-aligned
    Ppk = _round_up(A + Rows, 8)              # rows of the tap-packed input
    PL = _round_up(max(A + P + 2, Ppk + 2 * W2 + 2), 8)

    x = jnp.transpose(x_ncdhw, (0, 2, 3, 4, 1))          # -> NDHWC
    xL = _to_layout_l(x, A=A, PL=PL)                     # (N, D+2, PL, Cin)

    # Stage 1: small Cin -> pre-pack the 9 in-plane taps into lanes (K=9*Cin).
    fold1 = 9 * Cin <= 128
    if fold1:
        x1 = _pack_taps(xL, W2=W2, Ppk=Ppk)
        offs1 = (A,)
    else:
        x1 = xL
        offs1 = tuple(A + kh * W2 + kw for kh in range(3) for kw in range(3))
    z1 = _stage(x1, w1, b1, g1, be1, D=D, H=H, W=W, Cp=Cp, A=A, PL=PL,
                row_offsets=offs1, fold9=fold1, cin_eff=Cin,
                num_groups=num_groups, eps=eps)

    # Stage 2: input is z1 (layout L, Cp lanes) straight from the GN kernel;
    # per-tap K is already 128 so no folding.
    offs2 = tuple(A + kh * W2 + kw for kh in range(3) for kw in range(3))
    z2 = _stage(z1, w2, b2, g2, be2, D=D, H=H, W=W, Cp=Cp, A=A, PL=PL,
                row_offsets=offs2, fold9=False, cin_eff=Cp,
                num_groups=num_groups, eps=eps)

    # Extract the NCDHW result from layout L.
    out = jax.lax.slice_in_dim(z2, A, A + P, axis=2)
    out = out.reshape(N, D + 2, H + 2, W2, Cp)
    out = out[:, 1:D + 1, 1:H + 1, 1:W + 1, :Cout]
    return jnp.transpose(out, (0, 4, 1, 2, 3)).astype(jnp.float32)


# ---------------------------- pure-JAX reference --------------------------- #

def _ref_double_conv(x, params, *, num_groups=8, eps=1e-5):
    w1, b1, g1, be1, w2, b2, g2, be2 = params

    def conv(x, w, b):
        y = jax.lax.conv_general_dilated(
            x, w, window_strides=(1, 1, 1), padding="SAME",
            dimension_numbers=("NCDHW", "OIDHW", "NCDHW"))
        return y + b.reshape(1, -1, 1, 1, 1)

    def gn_relu(x, g, be):
        N, C, D, H, W = x.shape
        xg = x.reshape(N, num_groups, C // num_groups, D, H, W)
        mean = xg.mean(axis=(2, 3, 4, 5), keepdims=True)
        var = xg.var(axis=(2, 3, 4, 5), keepdims=True)
        xn = ((xg - mean) / jnp.sqrt(var + eps)).reshape(N, C, D, H, W)
        return jnp.maximum(xn * g.reshape(1, -1, 1, 1, 1)
                           + be.reshape(1, -1, 1, 1, 1), 0.0)

    y = gn_relu(conv(x, w1, b1), g1, be1)
    y = gn_relu(conv(y, w2, b2), g2, be2)
    return y


if __name__ == "__main__":
    N, Cin, Cout, D, H, W = 2, 4, 8, 8, 8, 8
    num_groups = 8

    key = jax.random.PRNGKey(0)
    ks = jax.random.split(key, 9)
    x = jax.random.normal(ks[0], (N, Cin, D, H, W), jnp.float32)
    w1 = 0.1 * jax.random.normal(ks[1], (Cout, Cin, 3, 3, 3), jnp.float32)
    b1 = 0.1 * jax.random.normal(ks[2], (Cout,), jnp.float32)
    g1 = 1.0 + 0.1 * jax.random.normal(ks[3], (Cout,), jnp.float32)
    be1 = 0.1 * jax.random.normal(ks[4], (Cout,), jnp.float32)
    w2 = 0.1 * jax.random.normal(ks[5], (Cout, Cout, 3, 3, 3), jnp.float32)
    b2 = 0.1 * jax.random.normal(ks[6], (Cout,), jnp.float32)
    g2 = 1.0 + 0.1 * jax.random.normal(ks[7], (Cout,), jnp.float32)
    be2 = 0.1 * jax.random.normal(ks[8], (Cout,), jnp.float32)
    params = (w1, b1, g1, be1, w2, b2, g2, be2)

    fn = jax.jit(functools.partial(double_conv, num_groups=num_groups))
    out = jax.block_until_ready(fn(x, params))
    ref = jax.block_until_ready(
        _ref_double_conv(x, params, num_groups=num_groups))

    assert out.shape == (N, Cout, D, H, W), out.shape
    err = float(jnp.max(jnp.abs(out - ref)))
    # bf16 MXU operands + bf16 intermediates with f32 accumulation/statistics.
    assert jnp.allclose(out, ref, atol=6e-2, rtol=6e-2), err
    print("KERNEL_OK")
</pallas_src>

<mosaic_0001>
module attributes {stable_mosaic.version = 11 : i64} {
  func.func @_conv_kernel(%arg0: i32, %arg1: i32, %arg2: memref<1x1x88x36xbf16, #tpu.memory_space<vmem>>, %arg3: memref<1x1x88x36xbf16, #tpu.memory_space<vmem>>, %arg4: memref<1x1x88x36xbf16, #tpu.memory_space<vmem>>, %arg5: memref<3x36x128xbf16, #tpu.memory_space<vmem>>, %arg6: memref<1x128xf32, #tpu.memory_space<vmem>>, %arg7: memref<1x1x80x128xbf16, #tpu.memory_space<vmem>>, %arg8: memref<1x1x2x128xf32, #tpu.memory_space<vmem>>) attributes {dimension_semantics = [#tpu.dimension_semantics<parallel>, #tpu.dimension_semantics<parallel>], iteration_bounds = array<i64: 2, 8>, scalar_prefetch = 0 : i64, scratch_operands = 0 : i64, tpu.core_type = #tpu.core_type<tc>, window_params = [{transform_indices = @transform_0, window_bounds = array<i64: 1, 1, 88, 36>}, {transform_indices = @transform_1, window_bounds = array<i64: 1, 1, 88, 36>}, {transform_indices = @transform_2, window_bounds = array<i64: 1, 1, 88, 36>}, {pipeline_mode = #tpu.pipeline_mode<synchronous>, transform_indices = @transform_3, window_bounds = array<i64: 3, 36, 128>}, {pipeline_mode = #tpu.pipeline_mode<synchronous>, transform_indices = @transform_4, window_bounds = array<i64: 1, 128>}, {transform_indices = @transform_5, window_bounds = array<i64: 1, 1, 80, 128>}, {transform_indices = @transform_6, window_bounds = array<i64: 1, 1, 2, 128>}]} {
    %cst = arith.constant 0.000000e+00 : f32
    %0 = vector.broadcast %cst : f32 to vector<1x128xf32>
    %cst_0 = arith.constant 0.000000e+00 : f32
    %1 = vector.broadcast %cst_0 : f32 to vector<1x128xf32>
    %cst_1 = arith.constant 0.000000e+00 : f32
    %2 = vector.broadcast %cst_1 : f32 to vector<80x128xf32>
    %c0 = arith.constant 0 : index
    %c0_2 = arith.constant 0 : index
    %c5 = arith.constant 5 : index
    %c0_3 = arith.constant 0 : index
    %3 = vector.load %arg2[%c0, %c0_2, %c5, %c0_3] : memref<1x1x88x36xbf16, #tpu.memory_space<vmem>>, vector<1x1x80x36xbf16>
    %4 = vector.shape_cast %3 : vector<1x1x80x36xbf16> to vector<80x36xbf16>
    %c0_4 = arith.constant 0 : index
    %c0_5 = arith.constant 0 : index
    %c0_6 = arith.constant 0 : index
    %5 = vector.load %arg5[%c0_4, %c0_5, %c0_6] : memref<3x36x128xbf16, #tpu.memory_space<vmem>>, vector<1x36x128xbf16>
    %6 = vector.shape_cast %5 : vector<1x36x128xbf16> to vector<36x128xbf16>
    %cst_7 = arith.constant dense<0.000000e+00> : vector<80x128xf32>
    %7 = tpu.matmul %4, %6, %cst_7 {dimension_numbers = #tpu.dot_dimension_numbers<[1], [0], [0], [1], [0, 0, 1, 1], [], []>} : vector<80x36xbf16>, vector<36x128xbf16>, vector<80x128xf32> -> vector<80x128xf32>
    %8 = arith.addf %2, %7 : vector<80x128xf32>
    %c0_8 = arith.constant 0 : index
    %c0_9 = arith.constant 0 : index
    %c5_10 = arith.constant 5 : index
    %c0_11 = arith.constant 0 : index
    %9 = vector.load %arg3[%c0_8, %c0_9, %c5_10, %c0_11] : memref<1x1x88x36xbf16, #tpu.memory_space<vmem>>, vector<1x1x80x36xbf16>
    %10 = vector.shape_cast %9 : vector<1x1x80x36xbf16> to vector<80x36xbf16>
    %c1 = arith.constant 1 : index
    %c0_12 = arith.constant 0 : index
    %c0_13 = arith.constant 0 : index
    %11 = vector.load %arg5[%c1, %c0_12, %c0_13] : memref<3x36x128xbf16, #tpu.memory_space<vmem>>, vector<1x36x128xbf16>
    %12 = vector.shape_cast %11 : vector<1x36x128xbf16> to vector<36x128xbf16>
    %cst_14 = arith.constant dense<0.000000e+00> : vector<80x128xf32>
    %13 = tpu.matmul %10, %12, %cst_14 {dimension_numbers = #tpu.dot_dimension_numbers<[1], [0], [0], [1], [0, 0, 1, 1], [], []>} : vector<80x36xbf16>, vector<36x128xbf16>, vector<80x128xf32> -> vector<80x128xf32>
    %14 = arith.addf %8, %13 : vector<80x128xf32>
    %c0_15 = arith.constant 0 : index
    %c0_16 = arith.constant 0 : index
    %c5_17 = arith.constant 5 : index
    %c0_18 = arith.constant 0 : index
    %15 = vector.load %arg4[%c0_15, %c0_16, %c5_17, %c0_18] : memref<1x1x88x36xbf16, #tpu.memory_space<vmem>>, vector<1x1x80x36xbf16>
    %16 = vector.shape_cast %15 : vector<1x1x80x36xbf16> to vector<80x36xbf16>
    %c2 = arith.constant 2 : index
    %c0_19 = arith.constant 0 : index
    %c0_20 = arith.constant 0 : index
    %17 = vector.load %arg5[%c2, %c0_19, %c0_20] : memref<3x36x128xbf16, #tpu.memory_space<vmem>>, vector<1x36x128xbf16>
    %18 = vector.shape_cast %17 : vector<1x36x128xbf16> to vector<36x128xbf16>
    %cst_21 = arith.constant dense<0.000000e+00> : vector<80x128xf32>
    %19 = tpu.matmul %16, %18, %cst_21 {dimension_numbers = #tpu.dot_dimension_numbers<[1], [0], [0], [1], [0, 0, 1, 1], [], []>} : vector<80x36xbf16>, vector<36x128xbf16>, vector<80x128xf32> -> vector<80x128xf32>
    %20 = arith.addf %14, %19 : vector<80x128xf32>
    %c0_22 = arith.constant 0 : index
    %c0_23 = arith.constant 0 : index
    %21 = vector.load %arg6[%c0_22, %c0_23] : memref<1x128xf32, #tpu.memory_space<vmem>>, vector<1x128xf32>
    %22 = vector.broadcast %21 : vector<1x128xf32> to vector<80x128xf32>
    %23 = arith.addf %20, %22 : vector<80x128xf32>
    %24 = tpu.iota {dimensions = array<i32: 0>} : vector<80x1xi32>
    %c0_i32 = arith.constant 0 : i32
    %25 = vector.broadcast %c0_i32 : i32 to vector<80x1xi32>
    %26 = arith.addi %24, %25 : vector<80x1xi32>
    %c10_i32 = arith.constant 10 : i32
    %c0_i32_24 = arith.constant 0 : i32
    %27 = arith.cmpi eq, %c10_i32, %c0_i32_24 : i32
    %c1_i32 = arith.constant 1 : i32
    %28 = arith.select %27, %c1_i32, %c10_i32 : i32
    %29 = vector.broadcast %28 : i32 to vector<80x1xi32>
    %30 = arith.remsi %26, %29 : vector<80x1xi32>
    %c0_i32_25 = arith.constant 0 : i32
    %31 = vector.broadcast %c0_i32_25 : i32 to vector<80x1xi32>
    %32 = arith.cmpi ne, %30, %31 : vector<80x1xi32>
    %c0_i32_26 = arith.constant 0 : i32
    %33 = vector.broadcast %c0_i32_26 : i32 to vector<80x1xi32>
    %34 = arith.cmpi slt, %30, %33 : vector<80x1xi32>
    %c0_i32_27 = arith.constant 0 : i32
    %35 = arith.cmpi slt, %28, %c0_i32_27 : i32
    %36 = vector.broadcast %35 : i1 to vector<80x1xi1>
    %37 = vector.broadcast %36 : vector<80x1xi1> to vector<80x1xi1>
    %38 = arith.xori %34, %37 : vector<80x1xi1>
    %39 = arith.andi %38, %32 : vector<80x1xi1>
    %40 = vector.broadcast %28 : i32 to vector<80x1xi32>
    %41 = arith.addi %30, %40 : vector<80x1xi32>
    %42 = arith.select %39, %41, %30 : vector<80x1xi1>, vector<80x1xi32>
    %c8_i32 = arith.constant 8 : i32
    %43 = vector.broadcast %c8_i32 : i32 to vector<80x1xi32>
    %44 = arith.cmpi slt, %42, %43 : vector<80x1xi32>
    %cst_28 = arith.constant 0.000000e+00 : f32
    %45 = vector.shape_cast %44 : vector<80x1xi1> to vector<80x1xi1>
    %46 = vector.broadcast %45 : vector<80x1xi1> to vector<80x128xi1>
    %47 = vector.broadcast %cst_28 : f32 to vector<80x128xf32>
    %48 = arith.select %46, %23, %47 : vector<80x128xi1>, vector<80x128xf32>
    %49 = arith.truncf %48 : vector<80x128xf32> to vector<80x128xbf16>
    %c0_29 = arith.constant 0 : index
    %c0_30 = arith.constant 0 : index
    %c0_31 = arith.constant 0 : index
    %c0_32 = arith.constant 0 : index
    %50 = vector.load %arg7[%c0_29, %c0_30, %c0_31, %c0_32] : memref<1x1x80x128xbf16, #tpu.memory_space<vmem>>, vector<1x1x80x128xbf16>
    %51 = vector.shape_cast %50 : vector<1x1x80x128xbf16> to vector<80x128xbf16>
    %52 = vector.shape_cast %49 : vector<80x128xbf16> to vector<1x1x80x128xbf16>
    tpu.vector_store %arg7[%c0_29, %c0_30, %c0_31, %c0_32], %52 {strides = array<i32>} : memref<1x1x80x128xbf16, #tpu.memory_space<vmem>>, vector<1x1x80x128xbf16>,
    %cst_33 = arith.constant dense<0.000000e+00> : vector<128xf32>
    %53 = vector.multi_reduction <add>, %48, %cst_33 [0] : vector<80x128xf32> to vector<128xf32>
    %54 = vector.shape_cast %53 : vector<128xf32> to vector<1x128xf32>
    %55 = arith.addf %0, %54 : vector<1x128xf32>
    %56 = arith.mulf %48, %48 : vector<80x128xf32>
    %cst_34 = arith.constant dense<0.000000e+00> : vector<128xf32>
    %57 = vector.multi_reduction <add>, %56, %cst_34 [0] : vector<80x128xf32> to vector<128xf32>
    %58 = vector.shape_cast %57 : vector<128xf32> to vector<1x128xf32>
    %59 = arith.addf %1, %58 : vector<1x128xf32>
    %60 = tpu.iota {dimensions = array<i32: 0>} : vector<2x1xi32>
    %c0_i32_35 = arith.constant 0 : i32
    %61 = vector.broadcast %c0_i32_35 : i32 to vector<2x1xi32>
    %62 = arith.cmpi eq, %60, %61 : vector<2x1xi32>
    %63 = vector.shape_cast %62 : vector<2x1xi1> to vector<2x1xi1>
    %64 = vector.broadcast %63 : vector<2x1xi1> to vector<2x128xi1>
    %65 = vector.shape_cast %55 : vector<1x128xf32> to vector<1x128xf32>
    %66 = vector.broadcast %65 : vector<1x128xf32> to vector<2x128xf32>
    %67 = vector.shape_cast %59 : vector<1x128xf32> to vector<1x128xf32>
    %68 = vector.broadcast %67 : vector<1x128xf32> to vector<2x128xf32>
    %69 = arith.select %64, %66, %68 : vector<2x128xi1>, vector<2x128xf32>
    %c0_36 = arith.constant 0 : index
    %c0_37 = arith.constant 0 : index
    %c0_38 = arith.constant 0 : index
    %c0_39 = arith.constant 0 : index
    %70 = vector.load %arg8[%c0_36, %c0_37, %c0_38, %c0_39] : memref<1x1x2x128xf32, #tpu.memory_space<vmem>>, vector<1x1x2x128xf32>
    %71 = vector.shape_cast %70 : vector<1x1x2x128xf32> to vector<2x128xf32>
    %72 = vector.shape_cast %69 : vector<2x128xf32> to vector<1x1x2x128xf32>
    tpu.vector_store %arg8[%c0_36, %c0_37, %c0_38, %c0_39], %72 {strides = array<i32>} : memref<1x1x2x128xf32, #tpu.memory_space<vmem>>, vector<1x1x2x128xf32>,
    return
  }
  func.func @transform_0(%arg0: i32, %arg1: i32) -> (i32, i32, i32, i32) {
    %c0_i32 = arith.constant 0 : i32
    %c0_i32_0 = arith.constant 0 : i32
    %c0_i32_1 = arith.constant 0 : i32
    return %arg0, %arg1, %c0_i32, %c0_i32_0 : i32, i32, i32, i32
  }
  func.func @transform_1(%arg0: i32, %arg1: i32) -> (i32, i32, i32, i32) {
    %c1_i32 = arith.constant 1 : i32
    %0 = arith.addi %arg1, %c1_i32 : i32
    %c0_i32 = arith.constant 0 : i32
    %c0_i32_0 = arith.constant 0 : i32
    %c0_i32_1 = arith.constant 0 : i32
    return %arg0, %0, %c0_i32, %c0_i32_0 : i32, i32, i32, i32
  }
  func.func @transform_2(%arg0: i32, %arg1: i32) -> (i32, i32, i32, i32) {
    %c2_i32 = arith.constant 2 : i32
    %0 = arith.addi %arg1, %c2_i32 : i32
    %c0_i32 = arith.constant 0 : i32
    %c0_i32_0 = arith.constant 0 : i32
    %c0_i32_1 = arith.constant 0 : i32
    return %arg0, %0, %c0_i32, %c0_i32_0 : i32, i32, i32, i32
  }
  func.func @transform_3(%arg0: i32, %arg1: i32) -> (i32, i32, i32) {
    %c0_i32 = arith.constant 0 : i32
    %c0_i32_0 = arith.constant 0 : i32
    %c0_i32_1 = arith.constant 0 : i32
    %c0_i32_2 = arith.constant 0 : i32
    return %c0_i32, %c0_i32_0, %c0_i32_1 : i32, i32, i32
  }
  func.func @transform_4(%arg0: i32, %arg1: i32) -> (i32, i32) {
    %c0_i32 = arith.constant 0 : i32
    %c0_i32_0 = arith.constant 0 : i32
    %c0_i32_1 = arith.constant 0 : i32
    return %c0_i32, %c0_i32_0 : i32, i32
  }
  func.func @transform_5(%arg0: i32, %arg1: i32) -> (i32, i32, i32, i32) {
    %c0_i32 = arith.constant 0 : i32
    %c0_i32_0 = arith.constant 0 : i32
    %c0_i32_1 = arith.constant 0 : i32
    return %arg0, %arg1, %c0_i32, %c0_i32_0 : i32, i32, i32, i32
  }
  func.func @transform_6(%arg0: i32, %arg1: i32) -> (i32, i32, i32, i32) {
    %c0_i32 = arith.constant 0 : i32
    %c0_i32_0 = arith.constant 0 : i32
    %c0_i32_1 = arith.constant 0 : i32
    return %arg0, %arg1, %c0_i32, %c0_i32_0 : i32, i32, i32, i32
  }
}

module attributes {stable_mosaic.version = 11 : i64} {
  func.func @_gn_pack_kernel(%arg0: i32, %arg1: i32, %arg2: memref<1x1x80x128xbf16, #tpu.memory_space<vmem>>, %arg3: memref<1x1x128xf32, #tpu.memory_space<vmem>>, %arg4: memref<1x1x128xf32, #tpu.memory_space<vmem>>, %arg5: memref<1x1x112x128xbf16, #tpu.memory_space<vmem>>) attributes {dimension_semantics = [#tpu.dimension_semantics<parallel>, #tpu.dimension_semantics<parallel>], iteration_bounds = array<i64: 2, 10>, scalar_prefetch = 0 : i64, scratch_operands = 0 : i64, tpu.core_type = #tpu.core_type<tc>, window_params = [{transform_indices = @transform_0, window_bounds = array<i64: 1, 1, 80, 128>}, {transform_indices = @transform_1, window_bounds = array<i64: 1, 1, 128>}, {transform_indices = @transform_2, window_bounds = array<i64: 1, 1, 128>}, {transform_indices = @transform_3, window_bounds = array<i64: 1, 1, 112, 128>}]} {
    %cst = arith.constant 0.000000e+00 : bf16
    %0 = vector.broadcast %cst : bf16 to vector<112x128xbf16>
    %c0 = arith.constant 0 : index
    %c0_0 = arith.constant 0 : index
    %c0_1 = arith.constant 0 : index
    %c0_2 = arith.constant 0 : index
    %1 = vector.load %arg5[%c0, %c0_0, %c0_1, %c0_2] : memref<1x1x112x128xbf16, #tpu.memory_space<vmem>>, vector<1x1x112x128xbf16>
    %2 = vector.shape_cast %1 : vector<1x1x112x128xbf16> to vector<112x128xbf16>
    %3 = vector.shape_cast %0 : vector<112x128xbf16> to vector<1x1x112x128xbf16>
    tpu.vector_store %arg5[%c0, %c0_0, %c0_1, %c0_2], %3 {strides = array<i32>} : memref<1x1x112x128xbf16, #tpu.memory_space<vmem>>, vector<1x1x112x128xbf16>,
    %c1_i32 = arith.constant 1 : i32
    %4 = arith.cmpi sge, %arg1, %c1_i32 : i32
    %c8_i32 = arith.constant 8 : i32
    %5 = arith.cmpi sle, %arg1, %c8_i32 : i32
    %6 = arith.andi %4, %5 : i1
    %7 = arith.extui %6 : i1 to i32
    %c0_i32 = arith.constant 0 : i32
    %8 = arith.cmpi ne, %7, %c0_i32 : i32
    scf.if %8 {
      %c0_3 = arith.constant 0 : index
      %c0_4 = arith.constant 0 : index
      %c0_5 = arith.constant 0 : index
      %c0_6 = arith.constant 0 : index
      %9 = vector.load %arg2[%c0_3, %c0_4, %c0_5, %c0_6] : memref<1x1x80x128xbf16, #tpu.memory_space<vmem>>, vector<1x1x80x128xbf16>
      %10 = vector.shape_cast %9 : vector<1x1x80x128xbf16> to vector<80x128xbf16>
      %11 = arith.extf %10 : vector<80x128xbf16> to vector<80x128xf32>
      %c0_7 = arith.constant 0 : index
      %c0_8 = arith.constant 0 : index
      %c0_9 = arith.constant 0 : index
      %12 = vector.load %arg3[%c0_7, %c0_8, %c0_9] : memref<1x1x128xf32, #tpu.memory_space<vmem>>, vector<1x1x128xf32>
      %13 = vector.shape_cast %12 : vector<1x1x128xf32> to vector<1x128xf32>
      %14 = vector.broadcast %13 : vector<1x128xf32> to vector<80x128xf32>
      %15 = arith.mulf %11, %14 : vector<80x128xf32>
      %c0_10 = arith.constant 0 : index
      %c0_11 = arith.constant 0 : index
      %c0_12 = arith.constant 0 : index
      %16 = vector.load %arg4[%c0_10, %c0_11, %c0_12] : memref<1x1x128xf32, #tpu.memory_space<vmem>>, vector<1x1x128xf32>
      %17 = vector.shape_cast %16 : vector<1x1x128xf32> to vector<1x128xf32>
      %18 = vector.broadcast %17 : vector<1x128xf32> to vector<80x128xf32>
      %19 = arith.addf %15, %18 : vector<80x128xf32>
      %cst_13 = arith.constant 0.000000e+00 : f32
      %20 = vector.broadcast %cst_13 : f32 to vector<80x128xf32>
      %21 = arith.maximumf %19, %20 : vector<80x128xf32>
      %22 = tpu.iota {dimensions = array<i32: 0>} : vector<80x1xi32>
      %c10_i32 = arith.constant 10 : i32
      %c0_i32_14 = arith.constant 0 : i32
      %23 = arith.cmpi eq, %c10_i32, %c0_i32_14 : i32
      %c1_i32_15 = arith.constant 1 : i32
      %24 = arith.select %23, %c1_i32_15, %c10_i32 : i32
      %25 = vector.broadcast %24 : i32 to vector<80x1xi32>
      %26 = arith.remsi %22, %25 : vector<80x1xi32>
      %c0_i32_16 = arith.constant 0 : i32
      %27 = vector.broadcast %c0_i32_16 : i32 to vector<80x1xi32>
      %28 = arith.cmpi ne, %26, %27 : vector<80x1xi32>
      %c0_i32_17 = arith.constant 0 : i32
      %29 = vector.broadcast %c0_i32_17 : i32 to vector<80x1xi32>
      %30 = arith.cmpi slt, %26, %29 : vector<80x1xi32>
      %c0_i32_18 = arith.constant 0 : i32
      %31 = arith.cmpi slt, %24, %c0_i32_18 : i32
      %32 = vector.broadcast %31 : i1 to vector<80x1xi1>
      %33 = vector.broadcast %32 : vector<80x1xi1> to vector<80x1xi1>
      %34 = arith.xori %30, %33 : vector<80x1xi1>
      %35 = arith.andi %34, %28 : vector<80x1xi1>
      %36 = vector.broadcast %24 : i32 to vector<80x1xi32>
      %37 = arith.addi %26, %36 : vector<80x1xi32>
      %38 = arith.select %35, %37, %26 : vector<80x1xi1>, vector<80x1xi32>
      %c8_i32_19 = arith.constant 8 : i32
      %39 = vector.broadcast %c8_i32_19 : i32 to vector<80x1xi32>
      %40 = arith.cmpi slt, %38, %39 : vector<80x1xi32>
      %cst_20 = arith.constant 0.000000e+00 : f32
      %41 = vector.shape_cast %40 : vector<80x1xi1> to vector<80x1xi1>
      %42 = vector.broadcast %41 : vector<80x1xi1> to vector<80x128xi1>
      %43 = vector.broadcast %cst_20 : f32 to vector<80x128xf32>
      %44 = arith.select %42, %21, %43 : vector<80x128xi1>, vector<80x128xf32>
      %45 = arith.truncf %44 : vector<80x128xf32> to vector<80x128xbf16>
      %c0_21 = arith.constant 0 : index
      %c0_22 = arith.constant 0 : index
      %c16 = arith.constant 16 : index
      %c0_23 = arith.constant 0 : index
      %46 = vector.load %arg5[%c0_21, %c0_22, %c16, %c0_23] : memref<1x1x112x128xbf16, #tpu.memory_space<vmem>>, vector<1x1x80x128xbf16>
      %47 = vector.shape_cast %46 : vector<1x1x80x128xbf16> to vector<80x128xbf16>
      %48 = vector.shape_cast %45 : vector<80x128xbf16> to vector<1x1x80x128xbf16>
      tpu.vector_store %arg5[%c0_21, %c0_22, %c16, %c0_23], %48 {strides = array<i32>} : memref<1x1x112x128xbf16, #tpu.memory_space<vmem>>, vector<1x1x80x128xbf16>,
    } else {
    }
    return
  }
  func.func @transform_0(%arg0: i32, %arg1: i32) -> (i32, i32, i32, i32) {
    %c1_i32 = arith.constant 1 : i32
    %0 = arith.subi %arg1, %c1_i32 : i32
    %c0_i32 = arith.constant 0 : i32
    %c7_i32 = arith.constant 7 : i32
    %1 = arith.maxsi %c0_i32, %0 : i32
    %2 = arith.minsi %c7_i32, %1 : i32
    %c0_i32_0 = arith.constant 0 : i32
    %c0_i32_1 = arith.constant 0 : i32
    %c0_i32_2 = arith.constant 0 : i32
    return %arg0, %2, %c0_i32_0, %c0_i32_1 : i32, i32, i32, i32
  }
  func.func @transform_1(%arg0: i32, %arg1: i32) -> (i32, i32, i32) {
    %c0_i32 = arith.constant 0 : i32
    %c0_i32_0 = arith.constant 0 : i32
    %c0_i32_1 = arith.constant 0 : i32
    return %arg0, %c0_i32, %c0_i32_0 : i32, i32, i32
  }
  func.func @transform_2(%arg0: i32, %arg1: i32) -> (i32, i32, i32) {
    %c0_i32 = arith.constant 0 : i32
    %c0_i32_0 = arith.constant 0 : i32
    %c0_i32_1 = arith.constant 0 : i32
    return %arg0, %c0_i32, %c0_i32_0 : i32, i32, i32
  }
  func.func @transform_3(%arg0: i32, %arg1: i32) -> (i32, i32, i32, i32) {
    %c0_i32 = arith.constant 0 : i32
    %c0_i32_0 = arith.constant 0 : i32
    %c0_i32_1 = arith.constant 0 : i32
    return %arg0, %arg1, %c0_i32, %c0_i32_0 : i32, i32, i32, i32
  }
}

module attributes {stable_mosaic.version = 11 : i64} {
  func.func @_conv_kernel(%arg0: i32, %arg1: i32, %arg2: memref<1x1x112x128xbf16, #tpu.memory_space<vmem>>, %arg3: memref<1x1x112x128xbf16, #tpu.memory_space<vmem>>, %arg4: memref<1x1x112x128xbf16, #tpu.memory_space<vmem>>, %arg5: memref<27x128x128xbf16, #tpu.memory_space<vmem>>, %arg6: memref<1x128xf32, #tpu.memory_space<vmem>>, %arg7: memref<1x1x80x128xbf16, #tpu.memory_space<vmem>>, %arg8: memref<1x1x2x128xf32, #tpu.memory_space<vmem>>) attributes {dimension_semantics = [#tpu.dimension_semantics<parallel>, #tpu.dimension_semantics<parallel>], iteration_bounds = array<i64: 2, 8>, scalar_prefetch = 0 : i64, scratch_operands = 0 : i64, tpu.core_type = #tpu.core_type<tc>, window_params = [{transform_indices = @transform_0, window_bounds = array<i64: 1, 1, 112, 128>}, {transform_indices = @transform_1, window_bounds = array<i64: 1, 1, 112, 128>}, {transform_indices = @transform_2, window_bounds = array<i64: 1, 1, 112, 128>}, {pipeline_mode = #tpu.pipeline_mode<synchronous>, transform_indices = @transform_3, window_bounds = array<i64: 27, 128, 128>}, {pipeline_mode = #tpu.pipeline_mode<synchronous>, transform_indices = @transform_4, window_bounds = array<i64: 1, 128>}, {transform_indices = @transform_5, window_bounds = array<i64: 1, 1, 80, 128>}, {transform_indices = @transform_6, window_bounds = array<i64: 1, 1, 2, 128>}]} {
    %cst = arith.constant 0.000000e+00 : f32
    %0 = vector.broadcast %cst : f32 to vector<1x128xf32>
    %cst_0 = arith.constant 0.000000e+00 : f32
    %1 = vector.broadcast %cst_0 : f32 to vector<1x128xf32>
    %cst_1 = arith.constant 0.000000e+00 : f32
    %2 = vector.broadcast %cst_1 : f32 to vector<80x128xf32>
    %c0 = arith.constant 0 : index
    %c0_2 = arith.constant 0 : index
    %c5 = arith.constant 5 : index
    %c0_3 = arith.constant 0 : index
    %3 = vector.load %arg2[%c0, %c0_2, %c5, %c0_3] : memref<1x1x112x128xbf16, #tpu.memory_space<vmem>>, vector<1x1x80x128xbf16>
    %4 = vector.shape_cast %3 : vector<1x1x80x128xbf16> to vector<80x128xbf16>
    %c0_4 = arith.constant 0 : index
    %c0_5 = arith.constant 0 : index
    %c0_6 = arith.constant 0 : index
    %5 = vector.load %arg5[%c0_4, %c0_5, %c0_6] : memref<27x128x128xbf16, #tpu.memory_space<vmem>>, vector<1x128x128xbf16>
    %6 = vector.shape_cast %5 : vector<1x128x128xbf16> to vector<128x128xbf16>
    %cst_7 = arith.constant dense<0.000000e+00> : vector<80x128xf32>
    %7 = tpu.matmul %4, %6, %cst_7 {dimension_numbers = #tpu.dot_dimension_numbers<[1], [0], [0], [1], [0, 0, 1, 1], [], []>} : vector<80x128xbf16>, vector<128x128xbf16>, vector<80x128xf32> -> vector<80x128xf32>
    %8 = arith.addf %2, %7 : vector<80x128xf32>
    %c0_8 = arith.constant 0 : index
    %c0_9 = arith.constant 0 : index
    %c6 = arith.constant 6 : index
    %c0_10 = arith.constant 0 : index
    %9 = vector.load %arg2[%c0_8, %c0_9, %c6, %c0_10] : memref<1x1x112x128xbf16, #tpu.memory_space<vmem>>, vector<1x1x80x128xbf16>
    %10 = vector.shape_cast %9 : vector<1x1x80x128xbf16> to vector<80x128xbf16>
    %c1 = arith.constant 1 : index
    %c0_11 = arith.constant 0 : index
    %c0_12 = arith.constant 0 : index
    %11 = vector.load %arg5[%c1, %c0_11, %c0_12] : memref<27x128x128xbf16, #tpu.memory_space<vmem>>, vector<1x128x128xbf16>
    %12 = vector.shape_cast %11 : vector<1x128x128xbf16> to vector<128x128xbf16>
    %cst_13 = arith.constant dense<0.000000e+00> : vector<80x128xf32>
    %13 = tpu.matmul %10, %12, %cst_13 {dimension_numbers = #tpu.dot_dimension_numbers<[1], [0], [0], [1], [0, 0, 1, 1], [], []>} : vector<80x128xbf16>, vector<128x128xbf16>, vector<80x128xf32> -> vector<80x128xf32>
    %14 = arith.addf %8, %13 : vector<80x128xf32>
    %c0_14 = arith.constant 0 : index
    %c0_15 = arith.constant 0 : index
    %c7 = arith.constant 7 : index
    %c0_16 = arith.constant 0 : index
    %15 = vector.load %arg2[%c0_14, %c0_15, %c7, %c0_16] : memref<1x1x112x128xbf16, #tpu.memory_space<vmem>>, vector<1x1x80x128xbf16>
    %16 = vector.shape_cast %15 : vector<1x1x80x128xbf16> to vector<80x128xbf16>
    %c2 = arith.constant 2 : index
    %c0_17 = arith.constant 0 : index
    %c0_18 = arith.constant 0 : index
    %17 = vector.load %arg5[%c2, %c0_17, %c0_18] : memref<27x128x128xbf16, #tpu.memory_space<vmem>>, vector<1x128x128xbf16>
    %18 = vector.shape_cast %17 : vector<1x128x128xbf16> to vector<128x128xbf16>
    %cst_19 = arith.constant dense<0.000000e+00> : vector<80x128xf32>
    %19 = tpu.matmul %16, %18, %cst_19 {dimension_numbers = #tpu.dot_dimension_numbers<[1], [0], [0], [1], [0, 0, 1, 1], [], []>} : vector<80x128xbf16>, vector<128x128xbf16>, vector<80x128xf32> -> vector<80x128xf32>
    %20 = arith.addf %14, %19 : vector<80x128xf32>
    %c0_20 = arith.constant 0 : index
    %c0_21 = arith.constant 0 : index
    %c15 = arith.constant 15 : index
    %c0_22 = arith.constant 0 : index
    %21 = vector.load %arg2[%c0_20, %c0_21, %c15, %c0_22] : memref<1x1x112x128xbf16, #tpu.memory_space<vmem>>, vector<1x1x80x128xbf16>
    %22 = vector.shape_cast %21 : vector<1x1x80x128xbf16> to vector<80x128xbf16>
    %c3 = arith.constant 3 : index
    %c0_23 = arith.constant 0 : index
    %c0_24 = arith.constant 0 : index
    %23 = vector.load %arg5[%c3, %c0_23, %c0_24] : memref<27x128x128xbf16, #tpu.memory_space<vmem>>, vector<1x128x128xbf16>
    %24 = vector.shape_cast %23 : vector<1x128x128xbf16> to vector<128x128xbf16>
    %cst_25 = arith.constant dense<0.000000e+00> : vector<80x128xf32>
    %25 = tpu.matmul %22, %24, %cst_25 {dimension_numbers = #tpu.dot_dimension_numbers<[1], [0], [0], [1], [0, 0, 1, 1], [], []>} : vector<80x128xbf16>, vector<128x128xbf16>, vector<80x128xf32> -> vector<80x128xf32>
    %26 = arith.addf %20, %25 : vector<80x128xf32>
    %c0_26 = arith.constant 0 : index
    %c0_27 = arith.constant 0 : index
    %c16 = arith.constant 16 : index
    %c0_28 = arith.constant 0 : index
    %27 = vector.load %arg2[%c0_26, %c0_27, %c16, %c0_28] : memref<1x1x112x128xbf16, #tpu.memory_space<vmem>>, vector<1x1x80x128xbf16>
    %28 = vector.shape_cast %27 : vector<1x1x80x128xbf16> to vector<80x128xbf16>
    %c4 = arith.constant 4 : index
    %c0_29 = arith.constant 0 : index
    %c0_30 = arith.constant 0 : index
    %29 = vector.load %arg5[%c4, %c0_29, %c0_30] : memref<27x128x128xbf16, #tpu.memory_space<vmem>>, vector<1x128x128xbf16>
    %30 = vector.shape_cast %29 : vector<1x128x128xbf16> to vector<128x128xbf16>
    %cst_31 = arith.constant dense<0.000000e+00> : vector<80x128xf32>
    %31 = tpu.matmul %28, %30, %cst_31 {dimension_numbers = #tpu.dot_dimension_numbers<[1], [0], [0], [1], [0, 0, 1, 1], [], []>} : vector<80x128xbf16>, vector<128x128xbf16>, vector<80x128xf32> -> vector<80x128xf32>
    %32 = arith.addf %26, %31 : vector<80x128xf32>
    %c0_32 = arith.constant 0 : index
    %c0_33 = arith.constant 0 : index
    %c17 = arith.constant 17 : index
    %c0_34 = arith.constant 0 : index
    %33 = vector.load %arg2[%c0_32, %c0_33, %c17, %c0_34] : memref<1x1x112x128xbf16, #tpu.memory_space<vmem>>, vector<1x1x80x128xbf16>
    %34 = vector.shape_cast %33 : vector<1x1x80x128xbf16> to vector<80x128xbf16>
    %c5_35 = arith.constant 5 : index
    %c0_36 = arith.constant 0 : index
    %c0_37 = arith.constant 0 : index
    %35 = vector.load %arg5[%c5_35, %c0_36, %c0_37] : memref<27x128x128xbf16, #tpu.memory_space<vmem>>, vector<1x128x128xbf16>
    %36 = vector.shape_cast %35 : vector<1x128x128xbf16> to vector<128x128xbf16>
    %cst_38 = arith.constant dense<0.000000e+00> : vector<80x128xf32>
    %37 = tpu.matmul %34, %36, %cst_38 {dimension_numbers = #tpu.dot_dimension_numbers<[1], [0], [0], [1], [0, 0, 1, 1], [], []>} : vector<80x128xbf16>, vector<128x128xbf16>, vector<80x128xf32> -> vector<80x128xf32>
    %38 = arith.addf %32, %37 : vector<80x128xf32>
    %c0_39 = arith.constant 0 : index
    %c0_40 = arith.constant 0 : index
    %c25 = arith.constant 25 : index
    %c0_41 = arith.constant 0 : index
    %39 = vector.load %arg2[%c0_39, %c0_40, %c25, %c0_41] : memref<1x1x112x128xbf16, #tpu.memory_space<vmem>>, vector<1x1x80x128xbf16>
    %40 = vector.shape_cast %39 : vector<1x1x80x128xbf16> to vector<80x128xbf16>
    %c6_42 = arith.constant 6 : index
    %c0_43 = arith.constant 0 : index
    %c0_44 = arith.constant 0 : index
    %41 = vector.load %arg5[%c6_42, %c0_43, %c0_44] : memref<27x128x128xbf16, #tpu.memory_space<vmem>>, vector<1x128x128xbf16>
    %42 = vector.shape_cast %41 : vector<1x128x128xbf16> to vector<128x128xbf16>
    %cst_45 = arith.constant dense<0.000000e+00> : vector<80x128xf32>
    %43 = tpu.matmul %40, %42, %cst_45 {dimension_numbers = #tpu.dot_dimension_numbers<[1], [0], [0], [1], [0, 0, 1, 1], [], []>} : vector<80x128xbf16>, vector<128x128xbf16>, vector<80x128xf32> -> vector<80x128xf32>
    %44 = arith.addf %38, %43 : vector<80x128xf32>
    %c0_46 = arith.constant 0 : index
    %c0_47 = arith.constant 0 : index
    %c26 = arith.constant 26 : index
    %c0_48 = arith.constant 0 : index
    %45 = vector.load %arg2[%c0_46, %c0_47, %c26, %c0_48] : memref<1x1x112x128xbf16, #tpu.memory_space<vmem>>, vector<1x1x80x128xbf16>
    %46 = vector.shape_cast %45 : vector<1x1x80x128xbf16> to vector<80x128xbf16>
    %c7_49 = arith.constant 7 : index
    %c0_50 = arith.constant 0 : index
    %c0_51 = arith.constant 0 : index
    %47 = vector.load %arg5[%c7_49, %c0_50, %c0_51] : memref<27x128x128xbf16, #tpu.memory_space<vmem>>, vector<1x128x128xbf16>
    %48 = vector.shape_cast %47 : vector<1x128x128xbf16> to vector<128x128xbf16>
    %cst_52 = arith.constant dense<0.000000e+00> : vector<80x128xf32>
    %49 = tpu.matmul %46, %48, %cst_52 {dimension_numbers = #tpu.dot_dimension_numbers<[1], [0], [0], [1], [0, 0, 1, 1], [], []>} : vector<80x128xbf16>, vector<128x128xbf16>, vector<80x128xf32> -> vector<80x128xf32>
    %50 = arith.addf %44, %49 : vector<80x128xf32>
    %c0_53 = arith.constant 0 : index
    %c0_54 = arith.constant 0 : index
    %c27 = arith.constant 27 : index
    %c0_55 = arith.constant 0 : index
    %51 = vector.load %arg2[%c0_53, %c0_54, %c27, %c0_55] : memref<1x1x112x128xbf16, #tpu.memory_space<vmem>>, vector<1x1x80x128xbf16>
    %52 = vector.shape_cast %51 : vector<1x1x80x128xbf16> to vector<80x128xbf16>
    %c8 = arith.constant 8 : index
    %c0_56 = arith.constant 0 : index
    %c0_57 = arith.constant 0 : index
    %53 = vector.load %arg5[%c8, %c0_56, %c0_57] : memref<27x128x128xbf16, #tpu.memory_space<vmem>>, vector<1x128x128xbf16>
    %54 = vector.shape_cast %53 : vector<1x128x128xbf16> to vector<128x128xbf16>
    %cst_58 = arith.constant dense<0.000000e+00> : vector<80x128xf32>
    %55 = tpu.matmul %52, %54, %cst_58 {dimension_numbers = #tpu.dot_dimension_numbers<[1], [0], [0], [1], [0, 0, 1, 1], [], []>} : vector<80x128xbf16>, vector<128x128xbf16>, vector<80x128xf32> -> vector<80x128xf32>
    %56 = arith.addf %50, %55 : vector<80x128xf32>
    %c0_59 = arith.constant 0 : index
    %c0_60 = arith.constant 0 : index
    %c5_61 = arith.constant 5 : index
    %c0_62 = arith.constant 0 : index
    %57 = vector.load %arg3[%c0_59, %c0_60, %c5_61, %c0_62] : memref<1x1x112x128xbf16, #tpu.memory_space<vmem>>, vector<1x1x80x128xbf16>
    %58 = vector.shape_cast %57 : vector<1x1x80x128xbf16> to vector<80x128xbf16>
    %c9 = arith.constant 9 : index
    %c0_63 = arith.constant 0 : index
    %c0_64 = arith.constant 0 : index
    %59 = vector.load %arg5[%c9, %c0_63, %c0_64] : memref<27x128x128xbf16, #tpu.memory_space<vmem>>, vector<1x128x128xbf16>
    %60 = vector.shape_cast %59 : vector<1x128x128xbf16> to vector<128x128xbf16>
    %cst_65 = arith.constant dense<0.000000e+00> : vector<80x128xf32>
    %61 = tpu.matmul %58, %60, %cst_65 {dimension_numbers = #tpu.dot_dimension_numbers<[1], [0], [0], [1], [0, 0, 1, 1], [], []>} : vector<80x128xbf16>, vector<128x128xbf16>, vector<80x128xf32> -> vector<80x128xf32>
    %62 = arith.addf %56, %61 : vector<80x128xf32>
    %c0_66 = arith.constant 0 : index
    %c0_67 = arith.constant 0 : index
    %c6_68 = arith.constant 6 : index
    %c0_69 = arith.constant 0 : index
    %63 = vector.load %arg3[%c0_66, %c0_67, %c6_68, %c0_69] : memref<1x1x112x128xbf16, #tpu.memory_space<vmem>>, vector<1x1x80x128xbf16>
    %64 = vector.shape_cast %63 : vector<1x1x80x128xbf16> to vector<80x128xbf16>
    %c10 = arith.constant 10 : index
    %c0_70 = arith.constant 0 : index
    %c0_71 = arith.constant 0 : index
    %65 = vector.load %arg5[%c10, %c0_70, %c0_71] : memref<27x128x128xbf16, #tpu.memory_space<vmem>>, vector<1x128x128xbf16>
    %66 = vector.shape_cast %65 : vector<1x128x128xbf16> to vector<128x128xbf16>
    %cst_72 = arith.constant dense<0.000000e+00> : vector<80x128xf32>
    %67 = tpu.matmul %64, %66, %cst_72 {dimension_numbers = #tpu.dot_dimension_numbers<[1], [0], [0], [1], [0, 0, 1, 1], [], []>} : vector<80x128xbf16>, vector<128x128xbf16>, vector<80x128xf32> -> vector<80x128xf32>
    %68 = arith.addf %62, %67 : vector<80x128xf32>
    %c0_73 = arith.constant 0 : index
    %c0_74 = arith.constant 0 : index
    %c7_75 = arith.constant 7 : index
    %c0_76 = arith.constant 0 : index
    %69 = vector.load %arg3[%c0_73, %c0_74, %c7_75, %c0_76] : memref<1x1x112x128xbf16, #tpu.memory_space<vmem>>, vector<1x1x80x128xbf16>
    %70 = vector.shape_cast %69 : vector<1x1x80x128xbf16> to vector<80x128xbf16>
    %c11 = arith.constant 11 : index
    %c0_77 = arith.constant 0 : index
    %c0_78 = arith.constant 0 : index
    %71 = vector.load %arg5[%c11, %c0_77, %c0_78] : memref<27x128x128xbf16, #tpu.memory_space<vmem>>, vector<1x128x128xbf16>
    %72 = vector.shape_cast %71 : vector<1x128x128xbf16> to vector<128x128xbf16>
    %cst_79 = arith.constant dense<0.000000e+00> : vector<80x128xf32>
    %73 = tpu.matmul %70, %72, %cst_79 {dimension_numbers = #tpu.dot_dimension_numbers<[1], [0], [0], [1], [0, 0, 1, 1], [], []>} : vector<80x128xbf16>, vector<128x128xbf16>, vector<80x128xf32> -> vector<80x128xf32>
    %74 = arith.addf %68, %73 : vector<80x128xf32>
    %c0_80 = arith.constant 0 : index
    %c0_81 = arith.constant 0 : index
    %c15_82 = arith.constant 15 : index
    %c0_83 = arith.constant 0 : index
    %75 = vector.load %arg3[%c0_80, %c0_81, %c15_82, %c0_83] : memref<1x1x112x128xbf16, #tpu.memory_space<vmem>>, vector<1x1x80x128xbf16>
    %76 = vector.shape_cast %75 : vector<1x1x80x128xbf16> to vector<80x128xbf16>
    %c12 = arith.constant 12 : index
    %c0_84 = arith.constant 0 : index
    %c0_85 = arith.constant 0 : index
    %77 = vector.load %arg5[%c12, %c0_84, %c0_85] : memref<27x128x128xbf16, #tpu.memory_space<vmem>>, vector<1x128x128xbf16>
    %78 = vector.shape_cast %77 : vector<1x128x128xbf16> to vector<128x128xbf16>
    %cst_86 = arith.constant dense<0.000000e+00> : vector<80x128xf32>
    %79 = tpu.matmul %76, %78, %cst_86 {dimension_numbers = #tpu.dot_dimension_numbers<[1], [0], [0], [1], [0, 0, 1, 1], [], []>} : vector<80x128xbf16>, vector<128x128xbf16>, vector<80x128xf32> -> vector<80x128xf32>
    %80 = arith.addf %74, %79 : vector<80x128xf32>
    %c0_87 = arith.constant 0 : index
    %c0_88 = arith.constant 0 : index
    %c16_89 = arith.constant 16 : index
    %c0_90 = arith.constant 0 : index
    %81 = vector.load %arg3[%c0_87, %c0_88, %c16_89, %c0_90] : memref<1x1x112x128xbf16, #tpu.memory_space<vmem>>, vector<1x1x80x128xbf16>
    %82 = vector.shape_cast %81 : vector<1x1x80x128xbf16> to vector<80x128xbf16>
    %c13 = arith.constant 13 : index
    %c0_91 = arith.constant 0 : index
    %c0_92 = arith.constant 0 : index
    %83 = vector.load %arg5[%c13, %c0_91, %c0_92] : memref<27x128x128xbf16, #tpu.memory_space<vmem>>, vector<1x128x128xbf16>
    %84 = vector.shape_cast %83 : vector<1x128x128xbf16> to vector<128x128xbf16>
    %cst_93 = arith.constant dense<0.000000e+00> : vector<80x128xf32>
    %85 = tpu.matmul %82, %84, %cst_93 {dimension_numbers = #tpu.dot_dimension_numbers<[1], [0], [0], [1], [0, 0, 1, 1], [], []>} : vector<80x128xbf16>, vector<128x128xbf16>, vector<80x128xf32> -> vector<80x128xf32>
    %86 = arith.addf %80, %85 : vector<80x128xf32>
    %c0_94 = arith.constant 0 : index
    %c0_95 = arith.constant 0 : index
    %c17_96 = arith.constant 17 : index
    %c0_97 = arith.constant 0 : index
    %87 = vector.load %arg3[%c0_94, %c0_95, %c17_96, %c0_97] : memref<1x1x112x128xbf16, #tpu.memory_space<vmem>>, vector<1x1x80x128xbf16>
    %88 = vector.shape_cast %87 : vector<1x1x80x128xbf16> to vector<80x128xbf16>
    %c14 = arith.constant 14 : index
    %c0_98 = arith.constant 0 : index
    %c0_99 = arith.constant 0 : index
    %89 = vector.load %arg5[%c14, %c0_98, %c0_99] : memref<27x128x128xbf16, #tpu.memory_space<vmem>>, vector<1x128x128xbf16>
    %90 = vector.shape_cast %89 : vector<1x128x128xbf16> to vector<128x128xbf16>
    %cst_100 = arith.constant dense<0.000000e+00> : vector<80x128xf32>
    %91 = tpu.matmul %88, %90, %cst_100 {dimension_numbers = #tpu.dot_dimension_numbers<[1], [0], [0], [1], [0, 0, 1, 1], [], []>} : vector<80x128xbf16>, vector<128x128xbf16>, vector<80x128xf32> -> vector<80x128xf32>
    %92 = arith.addf %86, %91 : vector<80x128xf32>
    %c0_101 = arith.constant 0 : index
    %c0_102 = arith.constant 0 : index
    %c25_103 = arith.constant 25 : index
    %c0_104 = arith.constant 0 : index
    %93 = vector.load %arg3[%c0_101, %c0_102, %c25_103, %c0_104] : memref<1x1x112x128xbf16, #tpu.memory_space<vmem>>, vector<1x1x80x128xbf16>
    %94 = vector.shape_cast %93 : vector<1x1x80x128xbf16> to vector<80x128xbf16>
    %c15_105 = arith.constant 15 : index
    %c0_106 = arith.constant 0 : index
    %c0_107 = arith.constant 0 : index
    %95 = vector.load %arg5[%c15_105, %c0_106, %c0_107] : memref<27x128x128xbf16, #tpu.memory_space<vmem>>, vector<1x128x128xbf16>
    %96 = vector.shape_cast %95 : vector<1x128x128xbf16> to vector<128x128xbf16>
    %cst_108 = arith.constant dense<0.000000e+00> : vector<80x128xf32>
    %97 = tpu.matmul %94, %96, %cst_108 {dimension_numbers = #tpu.dot_dimension_numbers<[1], [0], [0], [1], [0, 0, 1, 1], [], []>} : vector<80x128xbf16>, vector<128x128xbf16>, vector<80x128xf32> -> vector<80x128xf32>
    %98 = arith.addf %92, %97 : vector<80x128xf32>
    %c0_109 = arith.constant 0 : index
    %c0_110 = arith.constant 0 : index
    %c26_111 = arith.constant 26 : index
    %c0_112 = arith.constant 0 : index
    %99 = vector.load %arg3[%c0_109, %c0_110, %c26_111, %c0_112] : memref<1x1x112x128xbf16, #tpu.memory_space<vmem>>, vector<1x1x80x128xbf16>
    %100 = vector.shape_cast %99 : vector<1x1x80x128xbf16> to vector<80x128xbf16>
    %c16_113 = arith.constant 16 : index
    %c0_114 = arith.constant 0 : index
    %c0_115 = arith.constant 0 : index
    %101 = vector.load %arg5[%c16_113, %c0_114, %c0_115] : memref<27x128x128xbf16, #tpu.memory_space<vmem>>, vector<1x128x128xbf16>
    %102 = vector.shape_cast %101 : vector<1x128x128xbf16> to vector<128x128xbf16>
    %cst_116 = arith.constant dense<0.000000e+00> : vector<80x128xf32>
    %103 = tpu.matmul %100, %102, %cst_116 {dimension_numbers = #tpu.dot_dimension_numbers<[1], [0], [0], [1], [0, 0, 1, 1], [], []>} : vector<80x128xbf16>, vector<128x128xbf16>, vector<80x128xf32> -> vector<80x128xf32>
    %104 = arith.addf %98, %103 : vector<80x128xf32>
    %c0_117 = arith.constant 0 : index
    %c0_118 = arith.constant 0 : index
    %c27_119 = arith.constant 27 : index
    %c0_120 = arith.constant 0 : index
    %105 = vector.load %arg3[%c0_117, %c0_118, %c27_119, %c0_120] : memref<1x1x112x128xbf16, #tpu.memory_space<vmem>>, vector<1x1x80x128xbf16>
    %106 = vector.shape_cast %105 : vector<1x1x80x128xbf16> to vector<80x128xbf16>
    %c17_121 = arith.constant 17 : index
    %c0_122 = arith.constant 0 : index
    %c0_123 = arith.constant 0 : index
    %107 = vector.load %arg5[%c17_121, %c0_122, %c0_123] : memref<27x128x128xbf16, #tpu.memory_space<vmem>>, vector<1x128x128xbf16>
    %108 = vector.shape_cast %107 : vector<1x128x128xbf16> to vector<128x128xbf16>
    %cst_124 = arith.constant dense<0.000000e+00> : vector<80x128xf32>
    %109 = tpu.matmul %106, %108, %cst_124 {dimension_numbers = #tpu.dot_dimension_numbers<[1], [0], [0], [1], [0, 0, 1, 1], [], []>} : vector<80x128xbf16>, vector<128x128xbf16>, vector<80x128xf32> -> vector<80x128xf32>
    %110 = arith.addf %104, %109 : vector<80x128xf32>
    %c0_125 = arith.constant 0 : index
    %c0_126 = arith.constant 0 : index
    %c5_127 = arith.constant 5 : index
    %c0_128 = arith.constant 0 : index
    %111 = vector.load %arg4[%c0_125, %c0_126, %c5_127, %c0_128] : memref<1x1x112x128xbf16, #tpu.memory_space<vmem>>, vector<1x1x80x128xbf16>
    %112 = vector.shape_cast %111 : vector<1x1x80x128xbf16> to vector<80x128xbf16>
    %c18 = arith.constant 18 : index
    %c0_129 = arith.constant 0 : index
    %c0_130 = arith.constant 0 : index
    %113 = vector.load %arg5[%c18, %c0_129, %c0_130] : memref<27x128x128xbf16, #tpu.memory_space<vmem>>, vector<1x128x128xbf16>
    %114 = vector.shape_cast %113 : vector<1x128x128xbf16> to vector<128x128xbf16>
    %cst_131 = arith.constant dense<0.000000e+00> : vector<80x128xf32>
    %115 = tpu.matmul %112, %114, %cst_131 {dimension_numbers = #tpu.dot_dimension_numbers<[1], [0], [0], [1], [0, 0, 1, 1], [], []>} : vector<80x128xbf16>, vector<128x128xbf16>, vector<80x128xf32> -> vector<80x128xf32>
    %116 = arith.addf %110, %115 : vector<80x128xf32>
    %c0_132 = arith.constant 0 : index
    %c0_133 = arith.constant 0 : index
    %c6_134 = arith.constant 6 : index
    %c0_135 = arith.constant 0 : index
    %117 = vector.load %arg4[%c0_132, %c0_133, %c6_134, %c0_135] : memref<1x1x112x128xbf16, #tpu.memory_space<vmem>>, vector<1x1x80x128xbf16>
    %118 = vector.shape_cast %117 : vector<1x1x80x128xbf16> to vector<80x128xbf16>
    %c19 = arith.constant 19 : index
    %c0_136 = arith.constant 0 : index
    %c0_137 = arith.constant 0 : index
    %119 = vector.load %arg5[%c19, %c0_136, %c0_137] : memref<27x128x128xbf16, #tpu.memory_space<vmem>>, vector<1x128x128xbf16>
    %120 = vector.shape_cast %119 : vector<1x128x128xbf16> to vector<128x128xbf16>
    %cst_138 = arith.constant dense<0.000000e+00> : vector<80x128xf32>
    %121 = tpu.matmul %118, %120, %cst_138 {dimension_numbers = #tpu.dot_dimension_numbers<[1], [0], [0], [1], [0, 0, 1, 1], [], []>} : vector<80x128xbf16>, vector<128x128xbf16>, vector<80x128xf32> -> vector<80x128xf32>
    %122 = arith.addf %116, %121 : vector<80x128xf32>
    %c0_139 = arith.constant 0 : index
    %c0_140 = arith.constant 0 : index
    %c7_141 = arith.constant 7 : index
    %c0_142 = arith.constant 0 : index
    %123 = vector.load %arg4[%c0_139, %c0_140, %c7_141, %c0_142] : memref<1x1x112x128xbf16, #tpu.memory_space<vmem>>, vector<1x1x80x128xbf16>
    %124 = vector.shape_cast %123 : vector<1x1x80x128xbf16> to vector<80x128xbf16>
    %c20 = arith.constant 20 : index
    %c0_143 = arith.constant 0 : index
    %c0_144 = arith.constant 0 : index
    %125 = vector.load %arg5[%c20, %c0_143, %c0_144] : memref<27x128x128xbf16, #tpu.memory_space<vmem>>, vector<1x128x128xbf16>
    %126 = vector.shape_cast %125 : vector<1x128x128xbf16> to vector<128x128xbf16>
    %cst_145 = arith.constant dense<0.000000e+00> : vector<80x128xf32>
    %127 = tpu.matmul %124, %126, %cst_145 {dimension_numbers = #tpu.dot_dimension_numbers<[1], [0], [0], [1], [0, 0, 1, 1], [], []>} : vector<80x128xbf16>, vector<128x128xbf16>, vector<80x128xf32> -> vector<80x128xf32>
    %128 = arith.addf %122, %127 : vector<80x128xf32>
    %c0_146 = arith.constant 0 : index
    %c0_147 = arith.constant 0 : index
    %c15_148 = arith.constant 15 : index
    %c0_149 = arith.constant 0 : index
    %129 = vector.load %arg4[%c0_146, %c0_147, %c15_148, %c0_149] : memref<1x1x112x128xbf16, #tpu.memory_space<vmem>>, vector<1x1x80x128xbf16>
    %130 = vector.shape_cast %129 : vector<1x1x80x128xbf16> to vector<80x128xbf16>
    %c21 = arith.constant 21 : index
    %c0_150 = arith.constant 0 : index
    %c0_151 = arith.constant 0 : index
    %131 = vector.load %arg5[%c21, %c0_150, %c0_151] : memref<27x128x128xbf16, #tpu.memory_space<vmem>>, vector<1x128x128xbf16>
    %132 = vector.shape_cast %131 : vector<1x128x128xbf16> to vector<128x128xbf16>
    %cst_152 = arith.constant dense<0.000000e+00> : vector<80x128xf32>
    %133 = tpu.matmul %130, %132, %cst_152 {dimension_numbers = #tpu.dot_dimension_numbers<[1], [0], [0], [1], [0, 0, 1, 1], [], []>} : vector<80x128xbf16>, vector<128x128xbf16>, vector<80x128xf32> -> vector<80x128xf32>
    %134 = arith.addf %128, %133 : vector<80x128xf32>
    %c0_153 = arith.constant 0 : index
    %c0_154 = arith.constant 0 : index
    %c16_155 = arith.constant 16 : index
    %c0_156 = arith.constant 0 : index
    %135 = vector.load %arg4[%c0_153, %c0_154, %c16_155, %c0_156] : memref<1x1x112x128xbf16, #tpu.memory_space<vmem>>, vector<1x1x80x128xbf16>
    %136 = vector.shape_cast %135 : vector<1x1x80x128xbf16> to vector<80x128xbf16>
    %c22 = arith.constant 22 : index
    %c0_157 = arith.constant 0 : index
    %c0_158 = arith.constant 0 : index
    %137 = vector.load %arg5[%c22, %c0_157, %c0_158] : memref<27x128x128xbf16, #tpu.memory_space<vmem>>, vector<1x128x128xbf16>
    %138 = vector.shape_cast %137 : vector<1x128x128xbf16> to vector<128x128xbf16>
    %cst_159 = arith.constant dense<0.000000e+00> : vector<80x128xf32>
    %139 = tpu.matmul %136, %138, %cst_159 {dimension_numbers = #tpu.dot_dimension_numbers<[1], [0], [0], [1], [0, 0, 1, 1], [], []>} : vector<80x128xbf16>, vector<128x128xbf16>, vector<80x128xf32> -> vector<80x128xf32>
    %140 = arith.addf %134, %139 : vector<80x128xf32>
    %c0_160 = arith.constant 0 : index
    %c0_161 = arith.constant 0 : index
    %c17_162 = arith.constant 17 : index
    %c0_163 = arith.constant 0 : index
    %141 = vector.load %arg4[%c0_160, %c0_161, %c17_162, %c0_163] : memref<1x1x112x128xbf16, #tpu.memory_space<vmem>>, vector<1x1x80x128xbf16>
    %142 = vector.shape_cast %141 : vector<1x1x80x128xbf16> to vector<80x128xbf16>
    %c23 = arith.constant 23 : index
    %c0_164 = arith.constant 0 : index
    %c0_165 = arith.constant 0 : index
    %143 = vector.load %arg5[%c23, %c0_164, %c0_165] : memref<27x128x128xbf16, #tpu.memory_space<vmem>>, vector<1x128x128xbf16>
    %144 = vector.shape_cast %143 : vector<1x128x128xbf16> to vector<128x128xbf16>
    %cst_166 = arith.constant dense<0.000000e+00> : vector<80x128xf32>
    %145 = tpu.matmul %142, %144, %cst_166 {dimension_numbers = #tpu.dot_dimension_numbers<[1], [0], [0], [1], [0, 0, 1, 1], [], []>} : vector<80x128xbf16>, vector<128x128xbf16>, vector<80x128xf32> -> vector<80x128xf32>
    %146 = arith.addf %140, %145 : vector<80x128xf32>
    %c0_167 = arith.constant 0 : index
    %c0_168 = arith.constant 0 : index
    %c25_169 = arith.constant 25 : index
    %c0_170 = arith.constant 0 : index
    %147 = vector.load %arg4[%c0_167, %c0_168, %c25_169, %c0_170] : memref<1x1x112x128xbf16, #tpu.memory_space<vmem>>, vector<1x1x80x128xbf16>
    %148 = vector.shape_cast %147 : vector<1x1x80x128xbf16> to vector<80x128xbf16>
    %c24 = arith.constant 24 : index
    %c0_171 = arith.constant 0 : index
    %c0_172 = arith.constant 0 : index
    %149 = vector.load %arg5[%c24, %c0_171, %c0_172] : memref<27x128x128xbf16, #tpu.memory_space<vmem>>, vector<1x128x128xbf16>
    %150 = vector.shape_cast %149 : vector<1x128x128xbf16> to vector<128x128xbf16>
    %cst_173 = arith.constant dense<0.000000e+00> : vector<80x128xf32>
    %151 = tpu.matmul %148, %150, %cst_173 {dimension_numbers = #tpu.dot_dimension_numbers<[1], [0], [0], [1], [0, 0, 1, 1], [], []>} : vector<80x128xbf16>, vector<128x128xbf16>, vector<80x128xf32> -> vector<80x128xf32>
    %152 = arith.addf %146, %151 : vector<80x128xf32>
    %c0_174 = arith.constant 0 : index
    %c0_175 = arith.constant 0 : index
    %c26_176 = arith.constant 26 : index
    %c0_177 = arith.constant 0 : index
    %153 = vector.load %arg4[%c0_174, %c0_175, %c26_176, %c0_177] : memref<1x1x112x128xbf16, #tpu.memory_space<vmem>>, vector<1x1x80x128xbf16>
    %154 = vector.shape_cast %153 : vector<1x1x80x128xbf16> to vector<80x128xbf16>
    %c25_178 = arith.constant 25 : index
    %c0_179 = arith.constant 0 : index
    %c0_180 = arith.constant 0 : index
    %155 = vector.load %arg5[%c25_178, %c0_179, %c0_180] : memref<27x128x128xbf16, #tpu.memory_space<vmem>>, vector<1x128x128xbf16>
    %156 = vector.shape_cast %155 : vector<1x128x128xbf16> to vector<128x128xbf16>
    %cst_181 = arith.constant dense<0.000000e+00> : vector<80x128xf32>
    %157 = tpu.matmul %154, %156, %cst_181 {dimension_numbers = #tpu.dot_dimension_numbers<[1], [0], [0], [1], [0, 0, 1, 1], [], []>} : vector<80x128xbf16>, vector<128x128xbf16>, vector<80x128xf32> -> vector<80x128xf32>
    %158 = arith.addf %152, %157 : vector<80x128xf32>
    %c0_182 = arith.constant 0 : index
    %c0_183 = arith.constant 0 : index
    %c27_184 = arith.constant 27 : index
    %c0_185 = arith.constant 0 : index
    %159 = vector.load %arg4[%c0_182, %c0_183, %c27_184, %c0_185] : memref<1x1x112x128xbf16, #tpu.memory_space<vmem>>, vector<1x1x80x128xbf16>
    %160 = vector.shape_cast %159 : vector<1x1x80x128xbf16> to vector<80x128xbf16>
    %c26_186 = arith.constant 26 : index
    %c0_187 = arith.constant 0 : index
    %c0_188 = arith.constant 0 : index
    %161 = vector.load %arg5[%c26_186, %c0_187, %c0_188] : memref<27x128x128xbf16, #tpu.memory_space<vmem>>, vector<1x128x128xbf16>
    %162 = vector.shape_cast %161 : vector<1x128x128xbf16> to vector<128x128xbf16>
    %cst_189 = arith.constant dense<0.000000e+00> : vector<80x128xf32>
    %163 = tpu.matmul %160, %162, %cst_189 {dimension_numbers = #tpu.dot_dimension_numbers<[1], [0], [0], [1], [0, 0, 1, 1], [], []>} : vector<80x128xbf16>, vector<128x128xbf16>, vector<80x128xf32> -> vector<80x128xf32>
    %164 = arith.addf %158, %163 : vector<80x128xf32>
    %c0_190 = arith.constant 0 : index
    %c0_191 = arith.constant 0 : index
    %165 = vector.load %arg6[%c0_190, %c0_191] : memref<1x128xf32, #tpu.memory_space<vmem>>, vector<1x128xf32>
    %166 = vector.broadcast %165 : vector<1x128xf32> to vector<80x128xf32>
    %167 = arith.addf %164, %166 : vector<80x128xf32>
    %168 = tpu.iota {dimensions = array<i32: 0>} : vector<80x1xi32>
    %c0_i32 = arith.constant 0 : i32
    %169 = vector.broadcast %c0_i32 : i32 to vector<80x1xi32>
    %170 = arith.addi %168, %169 : vector<80x1xi32>
    %c10_i32 = arith.constant 10 : i32
    %c0_i32_192 = arith.constant 0 : i32
    %171 = arith.cmpi eq, %c10_i32, %c0_i32_192 : i32
    %c1_i32 = arith.constant 1 : i32
    %172 = arith.select %171, %c1_i32, %c10_i32 : i32
    %173 = vector.broadcast %172 : i32 to vector<80x1xi32>
    %174 = arith.remsi %170, %173 : vector<80x1xi32>
    %c0_i32_193 = arith.constant 0 : i32
    %175 = vector.broadcast %c0_i32_193 : i32 to vector<80x1xi32>
    %176 = arith.cmpi ne, %174, %175 : vector<80x1xi32>
    %c0_i32_194 = arith.constant 0 : i32
    %177 = vector.broadcast %c0_i32_194 : i32 to vector<80x1xi32>
    %178 = arith.cmpi slt, %174, %177 : vector<80x1xi32>
    %c0_i32_195 = arith.constant 0 : i32
    %179 = arith.cmpi slt, %172, %c0_i32_195 : i32
    %180 = vector.broadcast %179 : i1 to vector<80x1xi1>
    %181 = vector.broadcast %180 : vector<80x1xi1> to vector<80x1xi1>
    %182 = arith.xori %178, %181 : vector<80x1xi1>
    %183 = arith.andi %182, %176 : vector<80x1xi1>
    %184 = vector.broadcast %172 : i32 to vector<80x1xi32>
    %185 = arith.addi %174, %184 : vector<80x1xi32>
    %186 = arith.select %183, %185, %174 : vector<80x1xi1>, vector<80x1xi32>
    %c8_i32 = arith.constant 8 : i32
    %187 = vector.broadcast %c8_i32 : i32 to vector<80x1xi32>
    %188 = arith.cmpi slt, %186, %187 : vector<80x1xi32>
    %cst_196 = arith.constant 0.000000e+00 : f32
    %189 = vector.shape_cast %188 : vector<80x1xi1> to vector<80x1xi1>
    %190 = vector.broadcast %189 : vector<80x1xi1> to vector<80x128xi1>
    %191 = vector.broadcast %cst_196 : f32 to vector<80x128xf32>
    %192 = arith.select %190, %167, %191 : vector<80x128xi1>, vector<80x128xf32>
    %193 = arith.truncf %192 : vector<80x128xf32> to vector<80x128xbf16>
    %c0_197 = arith.constant 0 : index
    %c0_198 = arith.constant 0 : index
    %c0_199 = arith.constant 0 : index
    %c0_200 = arith.constant 0 : index
    %194 = vector.load %arg7[%c0_197, %c0_198, %c0_199, %c0_200] : memref<1x1x80x128xbf16, #tpu.memory_space<vmem>>, vector<1x1x80x128xbf16>
    %195 = vector.shape_cast %194 : vector<1x1x80x128xbf16> to vector<80x128xbf16>
    %196 = vector.shape_cast %193 : vector<80x128xbf16> to vector<1x1x80x128xbf16>
    tpu.vector_store %arg7[%c0_197, %c0_198, %c0_199, %c0_200], %196 {strides = array<i32>} : memref<1x1x80x128xbf16, #tpu.memory_space<vmem>>, vector<1x1x80x128xbf16>,
    %cst_201 = arith.constant dense<0.000000e+00> : vector<128xf32>
    %197 = vector.multi_reduction <add>, %192, %cst_201 [0] : vector<80x128xf32> to vector<128xf32>
    %198 = vector.shape_cast %197 : vector<128xf32> to vector<1x128xf32>
    %199 = arith.addf %0, %198 : vector<1x128xf32>
    %200 = arith.mulf %192, %192 : vector<80x128xf32>
    %cst_202 = arith.constant dense<0.000000e+00> : vector<128xf32>
    %201 = vector.multi_reduction <add>, %200, %cst_202 [0] : vector<80x128xf32> to vector<128xf32>
    %202 = vector.shape_cast %201 : vector<128xf32> to vector<1x128xf32>
    %203 = arith.addf %1, %202 : vector<1x128xf32>
    %204 = tpu.iota {dimensions = array<i32: 0>} : vector<2x1xi32>
    %c0_i32_203 = arith.constant 0 : i32
    %205 = vector.broadcast %c0_i32_203 : i32 to vector<2x1xi32>
    %206 = arith.cmpi eq, %204, %205 : vector<2x1xi32>
    %207 = vector.shape_cast %206 : vector<2x1xi1> to vector<2x1xi1>
    %208 = vector.broadcast %207 : vector<2x1xi1> to vector<2x128xi1>
    %209 = vector.shape_cast %199 : vector<1x128xf32> to vector<1x128xf32>
    %210 = vector.broadcast %209 : vector<1x128xf32> to vector<2x128xf32>
    %211 = vector.shape_cast %203 : vector<1x128xf32> to vector<1x128xf32>
    %212 = vector.broadcast %211 : vector<1x128xf32> to vector<2x128xf32>
    %213 = arith.select %208, %210, %212 : vector<2x128xi1>, vector<2x128xf32>
    %c0_204 = arith.constant 0 : index
    %c0_205 = arith.constant 0 : index
    %c0_206 = arith.constant 0 : index
    %c0_207 = arith.constant 0 : index
    %214 = vector.load %arg8[%c0_204, %c0_205, %c0_206, %c0_207] : memref<1x1x2x128xf32, #tpu.memory_space<vmem>>, vector<1x1x2x128xf32>
    %215 = vector.shape_cast %214 : vector<1x1x2x128xf32> to vector<2x128xf32>
    %216 = vector.shape_cast %213 : vector<2x128xf32> to vector<1x1x2x128xf32>
    tpu.vector_store %arg8[%c0_204, %c0_205, %c0_206, %c0_207], %216 {strides = array<i32>} : memref<1x1x2x128xf32, #tpu.memory_space<vmem>>, vector<1x1x2x128xf32>,
    return
  }
  func.func @transform_0(%arg0: i32, %arg1: i32) -> (i32, i32, i32, i32) {
    %c0_i32 = arith.constant 0 : i32
    %c0_i32_0 = arith.constant 0 : i32
    %c0_i32_1 = arith.constant 0 : i32
    return %arg0, %arg1, %c0_i32, %c0_i32_0 : i32, i32, i32, i32
  }
  func.func @transform_1(%arg0: i32, %arg1: i32) -> (i32, i32, i32, i32) {
    %c1_i32 = arith.constant 1 : i32
    %0 = arith.addi %arg1, %c1_i32 : i32
    %c0_i32 = arith.constant 0 : i32
    %c0_i32_0 = arith.constant 0 : i32
    %c0_i32_1 = arith.constant 0 : i32
    return %arg0, %0, %c0_i32, %c0_i32_0 : i32, i32, i32, i32
  }
  func.func @transform_2(%arg0: i32, %arg1: i32) -> (i32, i32, i32, i32) {
    %c2_i32 = arith.constant 2 : i32
    %0 = arith.addi %arg1, %c2_i32 : i32
    %c0_i32 = arith.constant 0 : i32
    %c0_i32_0 = arith.constant 0 : i32
    %c0_i32_1 = arith.constant 0 : i32
    return %arg0, %0, %c0_i32, %c0_i32_0 : i32, i32, i32, i32
  }
  func.func @transform_3(%arg0: i32, %arg1: i32) -> (i32, i32, i32) {
    %c0_i32 = arith.constant 0 : i32
    %c0_i32_0 = arith.constant 0 : i32
    %c0_i32_1 = arith.constant 0 : i32
    %c0_i32_2 = arith.constant 0 : i32
    return %c0_i32, %c0_i32_0, %c0_i32_1 : i32, i32, i32
  }
  func.func @transform_4(%arg0: i32, %arg1: i32) -> (i32, i32) {
    %c0_i32 = arith.constant 0 : i32
    %c0_i32_0 = arith.constant 0 : i32
    %c0_i32_1 = arith.constant 0 : i32
    return %c0_i32, %c0_i32_0 : i32, i32
  }
  func.func @transform_5(%arg0: i32, %arg1: i32) -> (i32, i32, i32, i32) {
    %c0_i32 = arith.constant 0 : i32
    %c0_i32_0 = arith.constant 0 : i32
    %c0_i32_1 = arith.constant 0 : i32
    return %arg0, %arg1, %c0_i32, %c0_i32_0 : i32, i32, i32, i32
  }
  func.func @transform_6(%arg0: i32, %arg1: i32) -> (i32, i32, i32, i32) {
    %c0_i32 = arith.constant 0 : i32
    %c0_i32_0 = arith.constant 0 : i32
    %c0_i32_1 = arith.constant 0 : i32
    return %arg0, %arg1, %c0_i32, %c0_i32_0 : i32, i32, i32, i32
  }
}

</mosaic_0001>

<bundles_post_ra>
// kernel: double_conv.5
= control target key start
LH: loop header
LB: loop body
LE: loop exit
PB: predicated region body
PF: predicated region fallthrough
CT: control target
= control target key end

     0   :  { %s964_s12 = smov 0   ;;  %s966_s13 = smov 0   ;;  %s1166_s0 = inlined_call_operand.vmem [shape: bf16[2,8,80,128], index: 0, kind: input, shape index: {}]   ;;  %s1167_s1 = inlined_call_operand.vmem [shape: f32[2,1,128], index: 1, kind: input, shape index: {}]   ;;  %s1168_s2 = inlined_call_operand.vmem [shape: f32[2,1,128], index: 2, kind: input, shape index: {}]   ;;  %s1169_s3 = inlined_call_operand.vmem [shape: bf16[2,10,112,128], index: 3, kind: output, shape index: {}]  }
   0x1   :  { %s968_s14 = smov 0   ;;  %s970_s15 = smov 0  }
   0x2   :  { %s972_s16 = smov 0  }
   0x3 LB: > { %s22_s17 = sadd.s32 1, %s933_s14  ;;  %s25_s18 = sadd.s32 1, %s937_s15  ;;  %s941_s16 = sphi %s972_s16, %s13_s16   ;;  %s937_s15 = sphi %s970_s15, %s1173_s15   ;;  %s933_s14 = sphi %s968_s14, %s1172_s14   ;;  %s929_s13 = sphi %s966_s13, %s1171_s13   ;;  %s925_s12 = sphi %s964_s12, %s1170_s12  }
   0x4   : > { %p23_p0 = scmp.ge.s32.totalorder %s22_s17, 10  ;;  %p745_p1 = scmp.ge.s32.totalorder %s941_s16, 1 }
   0x5   : > { %p193_p2 = scmp.lt.s32.totalorder %s941_s16, 21 }
   0x6   : > { %s1175_s17 = smov (%p23_p0, %s22_s17), 0  ;;  %s1177_s18 = smov (!%p23_p0, %s25_s18), %s937_s15 }
   0x7   : > { %p194_p3 = pnand %p745_p1, %p193_p2  ;;  %p27_p4 = scmp.ge.s32.totalorder %s1177_s18, 2 }
   0x8   : > { %s746_s19 = sadd.s32 (!%p194_p3), 4294967295, %s925_s12  ;;  %p241_p5 = scmp.lt.s32.totalorder (!%p194_p3), %s929_s13, 1 }
   0x9   : > { %s1179_s18 = smov (%p27_p4, %s1177_s18), 0  ;;  %197 = sbr.rel (%p194_p3) target bundleno = 81 (0x51), region = 32 }
   0xa   : > { %p237_p6 = scmp.gt.s32.totalorder (!%p194_p3), %s746_s19, 0  ;;  %p747_p7 = scmp.lt.s32.totalorder (!%p194_p3), %s746_s19, 7 }
   0xb   : > { %p263_p8 = scmp.lt.s32.totalorder (!%p194_p3), %s925_s12, 9  ;;  %p285_p10 = scmp.ge.s32.totalorder (!%p194_p3), %s925_s12, 1 }
   0xc   : > { %p286_p11 = scmp.le.s32.totalorder (!%p194_p3), %s925_s12, 8 }
   0xe   : > { %s1181_s13 = smov (!%p241_p5, %s929_s13), 1  ;;  %s1183_s19 = smov (!%p237_p6, %s746_s19), 0  ;;  %v943_v0 = vmov 0  }
   0xf   : > { %s839_s20 = smul.u32 80, %s1181_s13  ;;  %s257_s23 = scalar_lea.vmem %s1167_s1, %s1181_s13 }
  0x10   : > { %s1185_s19 = smov (!%p747_p7, %s1183_s19), 7  ;;  %s260_s26 = scalar_lea.vmem %s1168_s2, %s1181_s13 }
  0x11   : > { %p243_p9 = scmp.lt.s32.totalorder %s1185_s19, 7  ;;  %s841_s27 = smul.u32 140, %s1181_s13 }
  0x12   : > { %s264_s28 = scalar_select %p263_p8, %s925_s12, 9 }
  0x13   : > { %s1187_s19 = smov (!%p243_p9, %s1185_s19), 7  ;;  %p287_p12 = pnand %p286_p11, %p285_p10 }
  0x14   : > { %s840_s29 = smul.u32 14, %s264_s28 }
  0x15   : > { %s838_s30 = smul.u32 10, %s1187_s19 }
  0x16   : > { %s267_s4 = sadd.s32 %s841_s27, %s840_s29 }
  0x17   : > { %s247_s5 = sadd.s32 %s839_s20, %s838_s30  ;;  %s753_s6 = sshll.u32 %s267_s4, 2 }
  0x18   : > { %s752_s7 = sshll.u32 %s247_s5, 2  ;;  %s1016_s10 = scalar_lea.vmem %s1169_s3, %s753_s6 }
  0x19   : > { %s1021_s19 = scalar_lea.vmem %s1166_s0, %s752_s7  ;;  %271 = vst [vmem:[%s1016_s10] sm:$0xf] %v943_v0  ;;  %272 = vst [vmem:[%s1016_s10 + $0x4] sm:$0xf] %v943_v0 }
  0x1a   : > { %273 = vst [vmem:[%s1016_s10 + $0x8] sm:$0xf] %v943_v0  ;;  %274 = vst [vmem:[%s1016_s10 + $0xc] sm:$0xf] %v943_v0 }
  0x1b   : > { %275 = vst [vmem:[%s1016_s10 + $0x10] sm:$0xf] %v943_v0  ;;  %276 = vst [vmem:[%s1016_s10 + $0x14] sm:$0xf] %v943_v0  ;;  %290 = sbr.rel (%p287_p12) target bundleno = 81 (0x51), region = 36 }
  0x1c   : > { %277 = vst [vmem:[%s1016_s10 + $0x18] sm:$0xf] %v943_v0  ;;  %278 = vst [vmem:[%s1016_s10 + $0x1c] sm:$0xf] %v943_v0 }
  0x1d   : > { %279 = vst [vmem:[%s1016_s10 + $0x20] sm:$0xf] %v943_v0  ;;  %280 = vst [vmem:[%s1016_s10 + $0x24] sm:$0xf] %v943_v0 }
  0x1e   : > { %281 = vst [vmem:[%s1016_s10 + $0x28] sm:$0xf] %v943_v0  ;;  %282 = vst [vmem:[%s1016_s10 + $0x2c] sm:$0xf] %v943_v0 }
  0x1f   : > { %283 = vst [vmem:[%s1016_s10 + $0x30] sm:$0xf] %v943_v0  ;;  %284 = vst [vmem:[%s1016_s10 + $0x34] sm:$0xf] %v943_v0 }
  0x20   : > { %v785_v1 = vld [vmem:[%s1021_s19] sm:$0xff]   ;;  %v355_v3 = vlaneseq  ;;  %v829_v6 = vld [vmem:[%s1021_s19 + $0x8] sm:$0xff]   ;;  %v830_v17 = vld [vmem:[%s1021_s19 + $0x10] sm:$0xff]  }
  0x21   : > { %v1047_v2 = vld [vmem:[%s257_s23] ss:$0 sm:$0xff]  ;;  %v786_v4 = vunpack.c.l.bf16 %v785_v1  ;;  %v787_v5 = vunpack.c.h.bf16 %v785_v1  ;;  %v790_v8 = vunpack.c.l.bf16 %v829_v6  ;;  %v791_v9 = vunpack.c.h.bf16 %v829_v6  ;;  %v1080_v27 = vld [vmem:[%s1021_s19 + $0x18] sm:$0xff]  }
  0x22   : > { %v1050_v7 = vshrl.u32 %v355_v3, 7  ;;  %v1059_v12 = vld [vmem:[%s260_s26] ss:$0 sm:$0xff]  ;;  %v794_v26 = vunpack.c.l.bf16 %v830_v17  ;;  %v795_v34 = vunpack.c.h.bf16 %v830_v17  ;;  %v798_v38 = vunpack.c.l.bf16 %v1080_v27 }
  0x23   : > { %v318_v10 = vmul.f32 %v786_v4, %v1047_v2  ;;  %v319_v11 = vmul.f32 %v787_v5, %v1047_v2  ;;  %v320_v16 = vmul.f32 %v790_v8, %v1047_v2  ;;  %v321_v18 = vmul.f32 %v791_v9, %v1047_v2 }
  0x24   : > { %v357_v13 = vadd.s32 8, %v1050_v7  ;;  %v1063_v14 = vmul.u32.u64.low 3435973837, %v1050_v7  ;;  %v1064_v15 = vmul.u32.u64.high 3435973837, %v1050_v7, %v1063_v14  ;;  %v358_v19 = vadd.s32 16, %v1050_v7 }
  0x25   : > { %v359_v22 = vadd.s32 24, %v1050_v7  ;;  %v335_v23 = vadd.f32 %v1059_v12, %v318_v10  ;;  %v336_v24 = vadd.f32 %v1059_v12, %v319_v11  ;;  %v1077_v25 = vadd.f32 %v1059_v12, %v320_v16 }
  0x26   : > { %v1070_v20 = vmul.u32.u64.low 3435973837, %v357_v13  ;;  %v1071_v21 = vmul.u32.u64.high 3435973837, %v357_v13, %v1070_v20  ;;  %v372_v28 = vshrl.u32 %v1064_v15, 3  ;;  %v1084_v29 = vadd.f32 %v1059_v12, %v321_v18 }
  0x27   : > { %v1086_v30 = vmul.u32.u64.low 3435973837, %v358_v19  ;;  %v1087_v31 = vmul.u32.u64.high 3435973837, %v358_v19, %v1086_v30  ;;  %v1089_v32 = vmul.u32.u64.low 3435973837, %v359_v22  ;;  %v1090_v33 = vmul.u32.u64.high 3435973837, %v359_v22, %v1089_v32 }
  0x28   : > { %v373_v35 = vmul.u32 10, %v372_v28  ;;  %v383_v36 = vshrl.u32 %v1071_v21, 3  ;;  %v360_v37 = vadd.s32 32, %v1050_v7  ;;  %v345_v39 = vmax.f32 %v335_v23, 0.0 }
  0x29   : > { %v346_v40 = vmax.f32 %v336_v24, 0.0  ;;  %v347_v41 = vmax.f32 %v1077_v25, 0.0  ;;  %v322_v42 = vmul.f32 %v794_v26, %v1047_v2  ;;  %v348_v45 = vmax.f32 %v1084_v29, 0.0 }
  0x2a   : > { %v374_v43 = vsub.s32 %v1050_v7, %v373_v35  ;;  %v384_v44 = vmul.u32 10, %v383_v36  ;;  %v394_v46 = vshrl.u32 %v1087_v31, 3  ;;  %v405_v47 = vshrl.u32 %v1090_v33, 3  ;;  %v832_v33 = vld [vmem:[%s1021_s19 + $0x20] sm:$0xff]  }
  0x2b   : > { %v361_v48 = vadd.s32 40, %v1050_v7  ;;  %v1102_v49 = vmul.u32.u64.low 3435973837, %v360_v37  ;;  %v1103_v50 = vmul.u32.u64.high 3435973837, %v360_v37, %v1102_v49  ;;  %v323_v55 = vmul.f32 %v795_v34, %v1047_v2 }
  0x2c   : > { %v385_v51 = vsub.s32 %v357_v13, %v384_v44  ;;  %vm476_vm0 = vcmp.ne.s32.totalorder %v374_v43, 0  ;;  %vm486_vm1 = vcmp.lt.s32.totalorder %v374_v43, 0  ;;  %v506_v52 = vadd.s32 10, %v374_v43 }
  0x2d   : > { %vm496_vm2 = vmand %vm486_vm1, %vm476_vm0  ;;  %v395_v53 = vmul.u32 10, %v394_v46  ;;  %v406_v54 = vmul.u32 10, %v405_v47  ;;  %v1107_v56 = vadd.f32 %v1059_v12, %v322_v42  ;;  %v416_v61 = vshrl.u32 %v1103_v50, 3 }
  0x2e   : > { %vm477_vm3 = vcmp.ne.s32.totalorder %v385_v51, 0  ;;  %vm487_vm4 = vcmp.lt.s32.totalorder %v385_v51, 0  ;;  %v507_v57 = vadd.s32 10, %v385_v51  ;;  %v516_v58 = vsel %vm496_vm2, %v506_v52, %v374_v43 }
  0x2f   : > { %vm497_vm5 = vmand %vm487_vm4, %vm477_vm3  ;;  %vm526_vm6 = vcmp.lt.s32.totalorder %v516_v58, 8  ;;  %v396_v59 = vsub.s32 %v358_v19, %v395_v53  ;;  %v407_v60 = vsub.s32 %v359_v22, %v406_v54  ;;  %v340_v8 = vadd.f32 %v1059_v12, %v323_v55 }
  0x30   : > { %v517_v62 = vsel %vm497_vm5, %v507_v57, %v385_v51  ;;  %v556_v63 = vsel %vm526_vm6, %v345_v39, 0.0  ;;  %v1110_v0 = vmul.u32.u64.low 3435973837, %v361_v48  ;;  %v1111_v1 = vmul.u32.u64.high 3435973837, %v361_v48, %v1110_v0 }
  0x31   : > { %vm527_vm7 = vcmp.lt.s32.totalorder %v517_v62, 8  ;;  %vm478_vm8 = vcmp.ne.s32.totalorder %v396_v59, 0  ;;  %vm479_vm9 = vcmp.ne.s32.totalorder %v407_v60, 0  ;;  %vm488_vm10 = vcmp.lt.s32.totalorder %v396_v59, 0 }
  0x32   : > { %v557_v3 = vsel %vm527_vm7, %v346_v40, 0.0  ;;  %vm489_vm11 = vcmp.lt.s32.totalorder %v407_v60, 0  ;;  %vm498_vm12 = vmand %vm488_vm10, %vm478_vm8  ;;  %v508_v4 = vadd.s32 10, %v396_v59  ;;  %v509_v5 = vadd.s32 10, %v407_v60 }
  0x33   : > { %v807_v6 = vpack.c.bf16 %v557_v3, %v556_v63  ;;  %vm499_vm13 = vmand %vm489_vm11, %vm479_vm9  ;;  %v417_v9 = vmul.u32 10, %v416_v61  ;;  %v799_v10 = vunpack.c.h.bf16 %v1080_v27  ;;  %v427_v14 = vshrl.u32 %v1111_v1, 3 }
  0x34   : > { %v518_v11 = vsel %vm498_vm12, %v508_v4, %v396_v59  ;;  %v519_v13 = vsel %vm499_vm13, %v509_v5, %v407_v60  ;;  %v362_v15 = vadd.s32 48, %v1050_v7  ;;  %v324_v17 = vmul.f32 %v798_v38, %v1047_v2 }
  0x35   : > { %833 = vst [vmem:[%s1016_s10 + $0x8] sm:$0xff] %v807_v6   ;;  %vm528_vm14 = vcmp.lt.s32.totalorder %v518_v11, 8  ;;  %vm529_vm15 = vcmp.lt.s32.totalorder %v519_v13, 8  ;;  %v418_v16 = vsub.s32 %v360_v37, %v417_v9  ;;  %v428_v20 = vmul.u32 10, %v427_v14 }
  0x36   : > { %v558_v18 = vsel %vm528_vm14, %v347_v41, 0.0  ;;  %v559_v19 = vsel %vm529_vm15, %v348_v45, 0.0  ;;  %v363_v21 = vadd.s32 56, %v1050_v7  ;;  %v349_v24 = vmax.f32 %v1107_v56, 0.0 }
  0x37   : > { %v812_v22 = vpack.c.bf16 %v559_v19, %v558_v18  ;;  %vm480_vm0 = vcmp.ne.s32.totalorder %v418_v16, 0  ;;  %vm490_vm1 = vcmp.lt.s32.totalorder %v418_v16, 0  ;;  %v510_v23 = vadd.s32 10, %v418_v16 }
  0x38   : > { %v429_v25 = vsub.s32 %v361_v48, %v428_v20  ;;  %vm500_vm2 = vmand %vm490_vm1, %vm480_vm0  ;;  %v1121_v26 = vmul.u32.u64.low 3435973837, %v362_v15  ;;  %v1122_v27 = vmul.u32.u64.high 3435973837, %v362_v15, %v1121_v26  ;;  %v350_v28 = vmax.f32 %v340_v8, 0.0 }
  0x39   : > { %834 = vst [vmem:[%s1016_s10 + $0x10] sm:$0xff] %v812_v22   ;;  %v520_v29 = vsel %vm500_vm2, %v510_v23, %v418_v16  ;;  %v1125_v30 = vmul.u32.u64.low 3435973837, %v363_v21  ;;  %v1126_v31 = vmul.u32.u64.high 3435973837, %v363_v21, %v1125_v30  ;;  %v325_v34 = vmul.f32 %v799_v10, %v1047_v2 }
  0x3a   : > { %vm481_vm3 = vcmp.ne.s32.totalorder %v429_v25, 0  ;;  %vm491_vm4 = vcmp.lt.s32.totalorder %v429_v25, 0  ;;  %v511_v32 = vadd.s32 10, %v429_v25  ;;  %vm530_vm5 = vcmp.lt.s32.totalorder %v520_v29, 8 }
  0x3b   : > { %vm501_vm6 = vmand %vm491_vm4, %vm481_vm3  ;;  %v341_v35 = vadd.f32 %v1059_v12, %v324_v17  ;;  %v364_v36 = vadd.s32 64, %v1050_v7  ;;  %v560_v38 = vsel %vm530_vm5, %v349_v24, 0.0  ;;  %v438_v39 = vshrl.u32 %v1122_v27, 3 }
  0x3c   : > { %v521_v37 = vsel %vm501_vm6, %v511_v32, %v429_v25  ;;  %v365_v40 = vadd.s32 72, %v1050_v7  ;;  %v449_v41 = vshrl.u32 %v1126_v31, 3  ;;  %v802_v42 = vunpack.c.l.bf16 %v832_v33 }
  0x3d   : > { %vm531_vm7 = vcmp.lt.s32.totalorder %v521_v37, 8  ;;  %v803_v43 = vunpack.c.h.bf16 %v832_v33  ;;  %v439_v45 = vmul.u32 10, %v438_v39  ;;  %v342_v49 = vadd.f32 %v1059_v12, %v325_v34 }
  0x3e   : > { %v561_v44 = vsel %vm531_vm7, %v350_v28, 0.0  ;;  %v1135_v46 = vmul.u32.u64.low 3435973837, %v364_v36  ;;  %v1136_v47 = vmul.u32.u64.high 3435973837, %v364_v36, %v1135_v46  ;;  %v450_v50 = vmul.u32 10, %v449_v41 }
  0x3f   : > { %v817_v48 = vpack.c.bf16 %v561_v44, %v560_v38  ;;  %v440_v51 = vsub.s32 %v362_v15, %v439_v45  ;;  %v1139_v52 = vmul.u32.u64.low 3435973837, %v365_v40  ;;  %v1140_v53 = vmul.u32.u64.high 3435973837, %v365_v40, %v1139_v52 }
  0x40   : > { %v351_v7 = vmax.f32 %v341_v35, 0.0  ;;  %v451_v54 = vsub.s32 %v363_v21, %v450_v50  ;;  %v326_v55 = vmul.f32 %v802_v42, %v1047_v2  ;;  %v327_v56 = vmul.f32 %v803_v43, %v1047_v2 }
  0x41   : > { %835 = vst [vmem:[%s1016_s10 + $0x18] sm:$0xff] %v817_v48   ;;  %vm482_vm8 = vcmp.ne.s32.totalorder %v440_v51, 0  ;;  %vm492_vm9 = vcmp.lt.s32.totalorder %v440_v51, 0  ;;  %v512_v57 = vadd.s32 10, %v440_v51  ;;  %v460_v58 = vshrl.u32 %v1136_v47, 3 }
  0x42   : > { %v352_v59 = vmax.f32 %v342_v49, 0.0  ;;  %vm483_vm10 = vcmp.ne.s32.totalorder %v451_v54, 0  ;;  %vm493_vm11 = vcmp.lt.s32.totalorder %v451_v54, 0  ;;  %vm502_vm12 = vmand %vm492_vm9, %vm482_vm8  ;;  %v513_v60 = vadd.s32 10, %v451_v54 }
  0x43   : > { %vm503_vm13 = vmand %vm493_vm11, %vm483_vm10  ;;  %v522_v61 = vsel %vm502_vm12, %v512_v57, %v440_v51  ;;  %v461_v62 = vmul.u32 10, %v460_v58  ;;  %v471_v63 = vshrl.u32 %v1140_v53, 3  ;;  %v343_v2 = vadd.f32 %v1059_v12, %v326_v55 }
  0x44   : > { %v523_v0 = vsel %vm503_vm13, %v513_v60, %v451_v54  ;;  %vm532_vm14 = vcmp.lt.s32.totalorder %v522_v61, 8  ;;  %v344_v1 = vadd.f32 %v1059_v12, %v327_v56 }
  0x45   : > { %vm533_vm15 = vcmp.lt.s32.totalorder %v523_v0, 8  ;;  %v562_v3 = vsel %vm532_vm14, %v351_v7, 0.0  ;;  %v462_v4 = vsub.s32 %v364_v36, %v461_v62  ;;  %v472_v5 = vmul.u32 10, %v471_v63 }
  0x46   : > { %v563_v6 = vsel %vm533_vm15, %v352_v59, 0.0  ;;  %v353_v10 = vmax.f32 %v343_v2, 0.0  ;;  %v354_v13 = vmax.f32 %v344_v1, 0.0 }
  0x47   : > { %v822_v8 = vpack.c.bf16 %v563_v6, %v562_v3  ;;  %v473_v9 = vsub.s32 %v365_v40, %v472_v5  ;;  %vm484_vm0 = vcmp.ne.s32.totalorder %v462_v4, 0  ;;  %vm494_vm1 = vcmp.lt.s32.totalorder %v462_v4, 0 }
  0x48   : > { %vm504_vm2 = vmand %vm494_vm1, %vm484_vm0  ;;  %v514_v11 = vadd.s32 10, %v462_v4 }
  0x49   : > { %836 = vst [vmem:[%s1016_s10 + $0x20] sm:$0xff] %v822_v8   ;;  %vm485_vm3 = vcmp.ne.s32.totalorder %v473_v9, 0  ;;  %vm495_vm4 = vcmp.lt.s32.totalorder %v473_v9, 0  ;;  %v515_v14 = vadd.s32 10, %v473_v9 }
  0x4a   : > { %vm505_vm5 = vmand %vm495_vm4, %vm485_vm3  ;;  %v524_v12 = vsel %vm504_vm2, %v514_v11, %v462_v4 }
  0x4b   : > { %v525_v15 = vsel %vm505_vm5, %v515_v14, %v473_v9  ;;  %vm534_vm6 = vcmp.lt.s32.totalorder %v524_v12, 8 }
  0x4c   : > { %vm535_vm7 = vcmp.lt.s32.totalorder %v525_v15, 8  ;;  %v564_v16 = vsel %vm534_vm6, %v353_v10, 0.0 }
  0x4d   : > { %v565_v17 = vsel %vm535_vm7, %v354_v13, 0.0 }
  0x4e   : > { %v827_v18 = vpack.c.bf16 %v565_v17, %v564_v16 }
  0x50   : > { %837 = vst [vmem:[%s1016_s10 + $0x28] sm:$0xff] %v827_v18  }
  0x51 PF: > { %s13_s16 = sadd.s32 1, %s941_s16   ;;  %s1170_s12 = smov %s933_s14 }
  0x52   : > { %p10_p13 = scmp.ge.s32.totalorder %s13_s16, 22   ;;  %s1171_s13 = smov %s937_s15 }
  0x53   : > { %s1172_s14 = smov %s1175_s17  ;;  %s1173_s15 = smov %s1179_s18 }
  0x54   :  { %12 = sbr.rel (!%p10_p13) target bundleno = 3 (0x3), region = 72 }

// kernel: double_conv.4
= control target key start
LH: loop header
LB: loop body
LE: loop exit
PB: predicated region body
PF: predicated region fallthrough
CT: control target
= control target key end

     0   :  { %s1920_s21 = smov 0   ;;  %s1922_s22 = smov 0   ;;  %s2420_s0 = inlined_call_operand.vmem [shape: bf16[2,10,88,36], index: 0, kind: input, shape index: {}, may-alias: {0,1,2}]   ;;  %s2421_s1 = inlined_call_operand.vmem [shape: bf16[2,10,88,36], index: 1, kind: input, shape index: {}, may-alias: {0,1,2}]   ;;  %s2422_s2 = inlined_call_operand.vmem [shape: bf16[2,10,88,36], index: 2, kind: input, shape index: {}, may-alias: {0,1,2}]   ;;  %s2423_s3 = inlined_call_operand.vmem [shape: bf16[3,36,128], index: 3, kind: input, shape index: {}]   ;;  %s2424_s4 = inlined_call_operand.vmem [shape: f32[1,128], index: 4, kind: input, shape index: {}]   ;;  %s2425_s5 = inlined_call_operand.vmem [shape: bf16[2,8,80,128], index: 5, kind: output, shape index: {0}]   ;;  %s2426_s6 = inlined_call_operand.vmem [shape: f32[2,8,2,128], index: 6, kind: output, shape index: {1}]  }
   0x1   :  { %s1924_s23 = smov 0   ;;  %s1926_s24 = smov 0  }
   0x2   :  { %s1928_s25 = smov 0  }
   0x3 LB: > { %s26_s26 = sadd.s32 1, %s1873_s23  ;;  %s29_s27 = sadd.s32 1, %s1877_s24  ;;  %s1881_s25 = sphi %s1928_s25, %s17_s25   ;;  %s1877_s24 = sphi %s1926_s24, %s2460_s24   ;;  %s1873_s23 = sphi %s1924_s23, %s2459_s23   ;;  %s1869_s22 = sphi %s1922_s22, %s2458_s22   ;;  %s1865_s21 = sphi %s1920_s21, %s2457_s21  }
   0x4   : > { %p27_p0 = scmp.ge.s32.totalorder %s26_s26, 8  ;;  %p1529_p1 = scmp.ge.s32.totalorder %s1881_s25, 1 }
   0x5   : > { %p277_p2 = scmp.lt.s32.totalorder %s1881_s25, 17 }
   0x6   : > { %s2462_s26 = smov (%p27_p0, %s26_s26), 0  ;;  %s2464_s27 = smov (!%p27_p0, %s29_s27), %s1877_s24 }
   0x7   : > { %p278_p3 = pnand %p1529_p1, %p277_p2  ;;  %p31_p4 = scmp.ge.s32.totalorder %s2464_s27, 2 }
   0x8   : > { %p343_p5 = scmp.lt.s32.totalorder (!%p278_p3), %s1869_s22, 1  ;;  %s352_s8 = sadd.s32 (!%p278_p3), 1, %s1865_s21 }
   0x9   : > { %s2466_s27 = smov (%p31_p4, %s2464_s27), 0  ;;  %281 = sbr.rel (%p278_p3) target bundleno = 308 (0x134), region = 40 }
   0xa   : > { %p355_p6 = scmp.lt.s32.totalorder (!%p278_p3), %s352_s8, 9  ;;  %s363_s16 = sadd.s32 (!%p278_p3), 2, %s1865_s21 }
   0xb   : > { %p366_p7 = scmp.lt.s32.totalorder (!%p278_p3), %s363_s16, 9  ;;  %p345_p8 = scmp.lt.s32.totalorder (!%p278_p3), %s1865_s21, 9 }
   0xc   : > { %p376_p9 = scmp.lt.s32.totalorder (!%p278_p3), %s1865_s21, 7 }
   0xe   : > { %v1816_v0 = vld [vmem:[%s2423_s3 + $0x24] ss:$0 sps:$4 sm:$0x33]   ;;  %v1883_v1 = vmov 0.0   ;;  %vm538_vm0 = vcmask 1041408   ;;  %v1817_v3 = vld [vmem:[%s2423_s3 + $0x1c] sm:$0xff]  }
   0xf   : > { %1742 = vmatprep.subr.bf16.mxu1 %v1883_v1  ;;  %1664 = vmatprep.subr.bf16.mxu0 %v1883_v1  ;;  %v540_v2 = vsel %vm538_vm0, %v1816_v0, 0  ;;  %vm1884_vm1 = vmmov 0   ;;  %s2468_s22 = smov (!%p343_p5, %s1869_s22), 1  ;;  %s2470_s8 = smov (!%p355_p6, %s352_s8), 9  ;;  %v1818_v4 = vld [vmem:[%s2423_s3 + $0x14] sm:$0xff]   ;;  %vm522_vm3 = vcmask 293888  }
  0x10   : > { %1745 = vmatpush3.bf16.msra.mxu1 %v540_v2  ;;  %1665 = vmatpush3.bf16.msra.mxu0 %v540_v2  ;;  %s1978_s11 = smul.u32 110, %s2468_s22  ;;  %v1821_v5 = vld [vmem:[%s2423_s3 + $0x10] ss:$0 sps:$4 sm:$0x33]   ;;  %vm453_vm2 = vsmask.f32 5376 }
  0x11   : > { %1743 = vmatprep.subr.bf16.mxu1 %v1883_v1  ;;  %1666 = vmatprep.subr.bf16.mxu0 %v1883_v1  ;;  %s1750_s12 = smul.u32 11, %s2470_s8  ;;  %v727_v8 = vsel %vm538_vm0, %v1821_v5, 0  ;;  %s2472_s16 = smov (!%p366_p7, %s363_s16), 9  ;;  %v1826_v19 = vld [vmem:[%s2423_s3 + $0x38] ss:$0 sps:$4 sm:$0x33]  }
  0x12   : > { %1678 = vmatprep.mubr.msk.bf16.mxu1 %vm1884_vm1, %v1883_v1  ;;  %1670 = vmatprep.mubr.msk.bf16.mxu0 %vm1884_vm1, %v1883_v1  ;;  %s1751_s28 = smul.u32 11, %s2472_s16  ;;  %v1825_v35 = vld [vmem:[%s2423_s3 + $0x8] sm:$0xff]   ;;  %v931_v43 = vsel %vm538_vm0, %v1826_v19, 0  ;;  %v1827_v49 = vld [vmem:[%s2423_s3 + $0x30] sm:$0xff]   ;;  %v1829_v55 = vld [vmem:[%s2423_s3] sm:$0xff]  }
  0x13   : > { %s359_s13 = sadd.s32 %s1750_s12, %s1978_s11  ;;  %v1830_v58 = vld [vmem:[%s2423_s3 + $0x28] sm:$0xff]   ;;  %s1753_s10 = smul.u32 80, %s2468_s22 }
  0x14   : > { %1746 = vmatpush3.bf16.msra.mxu1 %v1817_v3  ;;  %1667 = vmatpush3.bf16.msra.mxu0 %v1817_v3  ;;  %s1531_s17 = sshll.u32 %s359_s13, 2  ;;  %s370_s7 = sadd.s32 %s1751_s28, %s1978_s11 }
  0x15   : > { %1744 = vmatprep.subr.bf16.mxu1 %v1883_v1  ;;  %1668 = vmatprep.subr.bf16.mxu0 %v1883_v1  ;;  %s361_s20 = scalar_lea.vmem %s2421_s1, %s1531_s17  ;;  %s1532_s8 = sshll.u32 %s370_s7, 2 }
  0x16   : > { %v1819_v6 = vld [vmem:[%s361_s20 + $0x10] sm:$0xff]   ;;  %v1820_v7 = vld [vmem:[%s361_s20 + $0x18] sm:$0xff]   ;;  %v1822_v13 = vld [vmem:[%s361_s20] sm:$0xfc]   ;;  %s2001_s12 = scalar_lea.vmem %s2422_s2, %s1532_s8 }
  0x17   : > { %v472_v9 = vshrl.u32 %v1819_v6, 16  ;;  %v475_v10 = vshll.u32 %v1819_v6, 16  ;;  %v481_v11 = vshrl.u32 %v1820_v7, 16  ;;  %v484_v12 = vshll.u32 %v1820_v7, 16  ;;  %v1823_v14 = vld [vmem:[%s361_s20 + $0x8] sm:$0xff]   ;;  %v1824_v24 = vld [vmem:[%s361_s20 + $0x20] sm:$0xff]  }
  0x18   : > { %1747 = vmatpush3.bf16.msra.mxu1 %v1818_v4  ;;  %1669 = vmatpush3.bf16.msra.mxu0 %v1818_v4  ;;  %v455_v20 = vshrl.u32 %v1822_v13, 16  ;;  %v458_v21 = vshll.u32 %v1822_v13, 16  ;;  %v463_v22 = vshrl.u32 %v1823_v14, 16  ;;  %v466_v23 = vshll.u32 %v1823_v14, 16  ;;  %v1832_v37 = vld [vmem:[%s2001_s12 + $0x8] sm:$0xff]   ;;  %s346_s15 = scalar_select %p345_p8, %s1865_s21, 9 }
  0x19   : > { %1690 = vmatprep.subr.bf16.mxu1 %v1883_v1  ;;  %1716 = vmatprep.subr.bf16.mxu0 %v1883_v1  ;;  %v474_v15 = vrot.slane %v472_v9, 2  ;;  %v477_v16 = vrot.slane %v475_v10, 3  ;;  %v483_v17 = vrot.slane %v481_v11, 2  ;;  %v486_v18 = vrot.slane %v484_v12, 3  ;;  %v1831_v46 = vld [vmem:[%s2001_s12] sm:$0xfc]  }
  0x1a   : > { %v1828_v27 = vld [vmem:[%s361_s20 + $0x28] ss:$0 sps:$4 sm:$0x77]   ;;  %v457_v28 = vrot.slane %v455_v20, 2  ;;  %v460_v29 = vrot.slane %v458_v21, 3  ;;  %v465_v30 = vrot.slane %v463_v22, 2 }
  0x1b   : > { %v478_v25 = vor.u32 %v477_v16, %v474_v15  ;;  %v487_v26 = vor.u32 %v486_v18, %v483_v17  ;;  %v468_v31 = vrot.slane %v466_v23, 3  ;;  %v490_v33 = vshrl.u32 %v1824_v24, 16  ;;  %s1748_s16 = smul.u32 11, %s346_s15  ;;  %v1835_v57 = vld [vmem:[%s2001_s12 + $0x10] sm:$0xff]   ;;  %v1837_v20 = vld [vmem:[%s2001_s12 + $0x18] sm:$0xff]   ;;  %s2474_s21 = smov (!%p376_p9, %s1865_s21), 7 }
  0x1c   : > { %v493_v34 = vshll.u32 %v1824_v24, 16  ;;  %v499_v36 = vshrl.u32 %v1828_v27, 16  ;;  %v461_v38 = vor.u32 %v460_v29, %v457_v28  ;;  %v502_v40 = vshll.u32 %v1828_v27, 16  ;;  %s1534_s20 = sshll.u32 %s2468_s22, 3 }
  0x1d   : > { %v488_v32 = vsel %vm453_vm2, %v478_v25, %v487_v26  ;;  %v469_v39 = vor.u32 %v468_v31, %v465_v30  ;;  %v492_v41 = vrot.slane %v490_v33, 2  ;;  %v856_v44 = vshrl.u32 %v1832_v37, 16  ;;  %s349_s19 = sadd.s32 %s1978_s11, %s1748_s16  ;;  %s388_s28 = sadd.s32 %s1534_s20, %s2474_s21 }
  0x1e   : > { %1679 = vmatmul.mubr.msk.bf16.vlgmr.msra.gmra.mxu1 %vm522_vm3, %v488_v32  ;;  %v495_v42 = vrot.slane %v493_v34, 3  ;;  %v859_v47 = vshll.u32 %v1832_v37, 16  ;;  %v501_v50 = vrot.slane %v499_v36, 2  ;;  %v504_v51 = vrot.slane %v502_v40, 3  ;;  %s1530_s29 = sshll.u32 %s349_s19, 2 }
  0x1f   : > { %1691 = vmatpush3.bf16.msra.mxu1 %v727_v8  ;;  %1682 = vmatprep.mubr.msk.bf16.mxu1 %vm1884_vm1, %v1883_v1  ;;  %v470_v45 = vsel %vm453_vm2, %v461_v38, %v469_v39  ;;  %v848_v52 = vshrl.u32 %v1831_v46, 16  ;;  %v851_v53 = vshll.u32 %v1831_v46, 16  ;;  %v858_v56 = vrot.slane %v856_v44, 2  ;;  %s2038_s9 = scalar_lea.vmem %s2420_s0, %s1530_s29  ;;  %s1535_s29 = sshll.u32 %s388_s28, 1 }
  0x20   : > { %1692 = vmatprep.subr.bf16.mxu1 %v1883_v1  ;;  %1671 = vmatmul.mubr.msk.bf16.vlgmr.msra.gmra.mxu0 %vm522_vm3, %v470_v45  ;;  %v496_v48 = vor.u32 %v495_v42, %v492_v41  ;;  %v861_v60 = vrot.slane %v859_v47, 3  ;;  %v479_v61 = vsel %vm453_vm2, %v469_v39, %v478_v25  ;;  %v505_v62 = vor.u32 %v504_v51, %v501_v50  ;;  %v1833_v0 = vld [vmem:[%s2038_s9] sm:$0xfc]   ;;  %v1834_v2 = vld [vmem:[%s2038_s9 + $0x8] sm:$0xff]   ;;  %v1836_v12 = vld [vmem:[%s2038_s9 + $0x10] sm:$0xff]   ;;  %s390_s11 = scalar_lea.vmem %s2426_s6, %s1535_s29 }
  0x21   : > { %1717 = vmatpush3.bf16.msra.mxu0 %v931_v43  ;;  %1674 = vmatprep.mubr.msk.bf16.mxu0 %vm1884_vm1, %v1883_v1  ;;  %v850_v59 = vrot.slane %v848_v52, 2  ;;  %v853_v63 = vrot.slane %v851_v53, 3  ;;  %v644_v3 = vshrl.u32 %v1833_v0, 16  ;;  %v647_v4 = vshll.u32 %v1833_v0, 16  ;;  %v1838_v31 = vld [vmem:[%s2038_s9 + $0x18] sm:$0xff]   ;;  %v1840_v45 = vld [vmem:[%s2038_s9 + $0x20] sm:$0xff]  }
  0x22   : > { %v497_v54 = vsel %vm453_vm2, %v487_v26, %v496_v48  ;;  %1718 = vmatprep.subr.bf16.mxu0 %v1883_v1  ;;  %v652_v5 = vshrl.u32 %v1834_v2, 16  ;;  %v655_v6 = vshll.u32 %v1834_v2, 16  ;;  %v865_v7 = vshrl.u32 %v1835_v57, 16 }
  0x23   : > { %1693 = vmatpush3.bf16.msra.mxu1 %v1825_v35  ;;  %v506_v8 = vsel %vm453_vm2, %v496_v48, %v505_v62  ;;  %v854_v9 = vor.u32 %v853_v63, %v850_v59  ;;  %v862_v10 = vor.u32 %v861_v60, %v858_v56  ;;  %v868_v11 = vshll.u32 %v1835_v57, 16  ;;  %v1839_v35 = vld [vmem:[%s2001_s12 + $0x20] sm:$0xff]   ;;  %v1842_v59 = vld [vmem:[%s2038_s9 + $0x28] ss:$0 sps:$4 sm:$0x77]  }
  0x24   : > { %1694 = vmatprep.subr.bf16.mxu1 %v1883_v1  ;;  %v646_v13 = vrot.slane %v644_v3, 2  ;;  %v649_v14 = vrot.slane %v647_v4, 3  ;;  %v654_v15 = vrot.slane %v652_v5, 2  ;;  %v657_v16 = vrot.slane %v655_v6, 3 }
  0x25   : > { %1719 = vmatpush3.bf16.msra.mxu0 %v1827_v49  ;;  %v863_v17 = vsel %vm453_vm2, %v854_v9, %v862_v10  ;;  %v867_v18 = vrot.slane %v865_v7, 2  ;;  %v870_v19 = vrot.slane %v868_v11, 3  ;;  %v661_v23 = vshrl.u32 %v1836_v12, 16  ;;  %v1841_v49 = vld [vmem:[%s2001_s12 + $0x28] ss:$0 sps:$4 sm:$0x77]  }
  0x26   : > { %1683 = vmatmul.mubr.msk.bf16.gmra.mxu1 %vm522_vm3, %v497_v54  ;;  %1720 = vmatprep.subr.bf16.mxu0 %v1883_v1  ;;  %v650_v21 = vor.u32 %v649_v14, %v646_v13  ;;  %v658_v22 = vor.u32 %v657_v16, %v654_v15  ;;  %v664_v24 = vshll.u32 %v1836_v12, 16  ;;  %v874_v26 = vshrl.u32 %v1837_v20, 16  ;;  %s1752_s12 = smul.u32 10, %s2474_s21 }
  0x27   : > { %1686 = vmatprep.mubr.msk.bf16.mxu1 %vm1884_vm1, %v1883_v1  ;;  %1695 = vmatpush3.bf16.msra.mxu1 %v1829_v55  ;;  %v871_v25 = vor.u32 %v870_v19, %v867_v18  ;;  %v877_v27 = vshll.u32 %v1837_v20, 16  ;;  %v663_v29 = vrot.slane %v661_v23, 2  ;;  %v670_v37 = vshrl.u32 %v1838_v31, 16 }
  0x28   : > { %1675 = vmatmul.mubr.msk.bf16.gmra.mxu0 %vm522_vm3, %v479_v61  ;;  %v659_v28 = vsel %vm453_vm2, %v650_v21, %v658_v22  ;;  %v666_v30 = vrot.slane %v664_v24, 3  ;;  %v876_v33 = vrot.slane %v874_v26, 2  ;;  %v673_v38 = vshll.u32 %v1838_v31, 16  ;;  %s2210_s15 = sadd.s32 %s1753_s10, %s1752_s12 }
  0x29   : > { %1721 = vmatpush3.bf16.msra.mxu0 %v1830_v58  ;;  %1722 = vmatprep.mubr.msk.bf16.mxu0 %vm1884_vm1, %v1883_v1  ;;  %v872_v32 = vsel %vm453_vm2, %v862_v10, %v871_v25  ;;  %v879_v34 = vrot.slane %v877_v27, 3  ;;  %v883_v40 = vshrl.u32 %v1839_v35, 16  ;;  %v886_v41 = vshll.u32 %v1839_v35, 16  ;;  %s1533_s16 = sshll.u32 %s2210_s15, 2 }
  0x2a   : > { %v667_v36 = vor.u32 %v666_v30, %v663_v29  ;;  %v672_v43 = vrot.slane %v670_v37, 2  ;;  %v675_v44 = vrot.slane %v673_v38, 3  ;;  %v679_v51 = vshrl.u32 %v1840_v45, 16  ;;  %s2266_s19 = scalar_lea.vmem %s2425_s5, %s1533_s16 }
  0x2b   : > { %v880_v39 = vor.u32 %v879_v34, %v876_v33  ;;  %v885_v47 = vrot.slane %v883_v40, 2  ;;  %v888_v48 = vrot.slane %v886_v41, 3  ;;  %v682_v52 = vshll.u32 %v1840_v45, 16 }
  0x2c   : > { %v668_v42 = vsel %vm453_vm2, %v658_v22, %v667_v36  ;;  %v676_v50 = vor.u32 %v675_v44, %v672_v43  ;;  %v892_v54 = vshrl.u32 %v1841_v49, 16  ;;  %v895_v55 = vshll.u32 %v1841_v49, 16 }
  0x2d   : > { %v881_v46 = vsel %vm453_vm2, %v871_v25, %v880_v39  ;;  %v889_v53 = vor.u32 %v888_v48, %v885_v47  ;;  %v681_v57 = vrot.slane %v679_v51, 2  ;;  %v684_v58 = vrot.slane %v682_v52, 3 }
  0x2e   : > { %1687 = vmatmul.mubr.msk.bf16.gmra.mxu1 %vm522_vm3, %v506_v8  ;;  %v677_v56 = vsel %vm453_vm2, %v667_v36, %v676_v50  ;;  %v894_v61 = vrot.slane %v892_v54, 2  ;;  %v897_v62 = vrot.slane %v895_v55, 3  ;;  %v688_v0 = vshrl.u32 %v1842_v59, 16 }
  0x2f   : > { %1696 = vmatprep.mubr.msk.bf16.mxu1 %vm1884_vm1, %v1883_v1  ;;  %v890_v60 = vsel %vm453_vm2, %v880_v39, %v889_v53  ;;  %v685_v63 = vor.u32 %v684_v58, %v681_v57  ;;  %v691_v2 = vshll.u32 %v1842_v59, 16  ;;  %v1033_v10 = vlaneseq }
  0x30   : > { %1723 = vmatmul.mubr.msk.bf16.vlgmr.msra.gmra.mxu0 %vm522_vm3, %v863_v17  ;;  %v898_v3 = vor.u32 %v897_v62, %v894_v61  ;;  %v690_v5 = vrot.slane %v688_v0, 2 }
  0x31   : > { %1726 = vmatprep.mubr.msk.bf16.mxu0 %vm1884_vm1, %v1883_v1  ;;  %v686_v4 = vsel %vm453_vm2, %v676_v50, %v685_v63  ;;  %v693_v6 = vrot.slane %v691_v2, 3  ;;  %v2097_v11 = vshrl.u32 %v1033_v10, 7 }
  0x32   : > { %v899_v7 = vsel %vm453_vm2, %v889_v53, %v898_v3 }
  0x33   : > { %v694_v8 = vor.u32 %v693_v6, %v690_v5  ;;  %v1035_v12 = vadd.s32 8, %v2097_v11  ;;  %v2103_v14 = vmul.u32.u64.low 3435973837, %v2097_v11  ;;  %v2104_v15 = vmul.u32.u64.high 3435973837, %v2097_v11, %v2103_v14 }
  0x34   : > { %v1036_v20 = vadd.s32 16, %v2097_v11  ;;  %v1037_v22 = vadd.s32 24, %v2097_v11  ;;  %v2130_v38 = vadd.s32 32, %v2097_v11  ;;  %v2150_v50 = vadd.s32 48, %v2097_v11 }
  0x35   : > { %v695_v9 = vsel %vm453_vm2, %v685_v63, %v694_v8  ;;  %v1050_v26 = vshrl.u32 %v2104_v15, 3  ;;  %v2153_v53 = vadd.s32 56, %v2097_v11 }
  0x36   : > { %1697 = vmatmul.mubr.msk.bf16.vlgmr.msra.gmra.mxu1 %vm522_vm3, %v659_v28  ;;  %v2118_v27 = vmul.u32.u64.low 3435973837, %v1036_v20  ;;  %v2119_v28 = vmul.u32.u64.high 3435973837, %v1036_v20, %v2118_v27  ;;  %v2121_v30 = vmul.u32.u64.low 3435973837, %v1037_v22  ;;  %v2122_v31 = vmul.u32.u64.high 3435973837, %v1037_v22, %v2121_v30 }
  0x37   : > { %1700 = vmatprep.mubr.msk.bf16.mxu1 %vm1884_vm1, %v1883_v1  ;;  %v1051_v36 = vmul.u32 10, %v1050_v26  ;;  %v2146_v48 = vmul.u32.u64.low 3435973837, %v2130_v38  ;;  %v2147_v49 = vmul.u32.u64.high 3435973837, %v2130_v38, %v2146_v48 }
  0x38   : > { %1727 = vmatmul.mubr.msk.bf16.gmra.mxu0 %vm522_vm3, %v872_v32  ;;  %v1072_v45 = vshrl.u32 %v2119_v28, 3  ;;  %v1083_v47 = vshrl.u32 %v2122_v31, 3  ;;  %v2169_v61 = vmul.u32.u64.low 3435973837, %v2150_v50  ;;  %v2170_v62 = vmul.u32.u64.high 3435973837, %v2150_v50, %v2169_v61 }
  0x39   : > { %1730 = vmatprep.mubr.msk.bf16.mxu0 %vm1884_vm1, %v1883_v1  ;;  %v2140_v44 = vsub.s32 %v2097_v11, %v1051_v36  ;;  %v2173_v0 = vmul.u32.u64.low 3435973837, %v2153_v53  ;;  %v2174_v2 = vmul.u32.u64.high 3435973837, %v2153_v53, %v2173_v0  ;;  %v1094_v15 = vshrl.u32 %v2147_v49, 3 }
  0x3a   : > { %v1073_v58 = vmul.u32 10, %v1072_v45  ;;  %v1116_v30 = vshrl.u32 %v2170_v62, 3 }
  0x3b   : > { %vm1154_vm4 = vcmp.ne.s32.totalorder %v2140_v44, 0  ;;  %vm1164_vm5 = vcmp.lt.s32.totalorder %v2140_v44, 0  ;;  %v1184_v6 = vadd.s32 10, %v2140_v44 }
  0x3c   : > { %vm2178_vm8 = vmand %vm1164_vm5, %vm1154_vm4  ;;  %v2184_v8 = vsub.s32 %v1036_v20, %v1073_v58 }
  0x3e   : > { %1701 = vmatmul.mubr.msk.bf16.gmra.mxu1 %vm522_vm3, %v668_v42  ;;  %v2135_v42 = vadd.s32 40, %v2097_v11  ;;  %vm1156_vm10 = vcmp.ne.s32.totalorder %v2184_v8, 0  ;;  %vm1166_vm11 = vcmp.lt.s32.totalorder %v2184_v8, 0  ;;  %v1186_v48 = vadd.s32 10, %v2184_v8 }
  0x3f   : > { %1704 = vmatprep.mubr.msk.bf16.mxu1 %vm1884_vm1, %v1883_v1  ;;  %vm2241_vm0 = vmand %vm1166_vm11, %vm1156_vm10 }
  0x40   : > { %1731 = vmatmul.mubr.msk.bf16.gmra.mxu0 %vm522_vm3, %v881_v46 }
  0x41   : > { %1734 = vmatprep.mubr.msk.bf16.mxu0 %vm1884_vm1, %v1883_v1 }
  0x46   : > { %1705 = vmatmul.mubr.msk.bf16.gmra.mxu1 %vm522_vm3, %v677_v56  ;;  %v2156_v55 = vmul.u32.u64.low 3435973837, %v2135_v42  ;;  %v2157_v56 = vmul.u32.u64.high 3435973837, %v2135_v42, %v2156_v55 }
  0x47   : > { %1708 = vmatprep.mubr.msk.bf16.mxu1 %vm1884_vm1, %v1883_v1 }
  0x48   : > { %1735 = vmatmul.mubr.msk.bf16.gmra.mxu0 %vm522_vm3, %v890_v60  ;;  %v1084_v60 = vmul.u32 10, %v1083_v47  ;;  %v1105_v20 = vshrl.u32 %v2157_v56, 3  ;;  %v1117_v56 = vmul.u32 10, %v1116_v30 }
  0x49   : > { %1738 = vmatprep.mubr.msk.bf16.mxu0 %vm1884_vm1, %v1883_v1 }
  0x4a   : > { %v2191_v14 = vsub.s32 %v1037_v22, %v1084_v60  ;;  %v1194_v22 = vsel %vm2178_vm8, %v1184_v6, %v2140_v44  ;;  %v1106_v44 = vmul.u32 10, %v1105_v20  ;;  %v1196_v6 = vsel %vm2241_vm0, %v1186_v48, %v2184_v8 }
  0x4b   : > { %vm2225_vm14 = vcmp.lt.s32.totalorder %v1194_v22, 8 }
  0x4c   : > { %vm1157_vm12 = vcmp.ne.s32.totalorder %v2191_v14, 0  ;;  %vm1167_vm13 = vcmp.lt.s32.totalorder %v2191_v14, 0  ;;  %v1187_v55 = vadd.s32 10, %v2191_v14 }
  0x4e   : > { %1709 = vmatmul.mubr.msk.bf16.gmra.mxu1 %vm522_vm3, %v686_v4 }
  0x4f   : > { %1712 = vmatprep.mubr.msk.bf16.mxu1 %vm1884_vm1, %v1883_v1  ;;  %v2106_v1 = vmul.u32.u64.low 3435973837, %v1035_v12  ;;  %v2107_v17 = vmul.u32.u64.high 3435973837, %v1035_v12, %v2106_v1  ;;  %vm2248_vm1 = vmand %vm1167_vm13, %vm1157_vm12 }
  0x50   : > { %1739 = vmatmul.mubr.msk.bf16.gmra.mxu0 %vm522_vm3, %v899_v7  ;;  %v2195_v1 = vadd.s32 64, %v2097_v11 }
  0x51   : > { %v1061_v33 = vshrl.u32 %v2107_v17, 3 }
  0x53   : > { %v1062_v40 = vmul.u32 10, %v1061_v33  ;;  %v2217_v33 = vmul.u32.u64.low 3435973837, %v2195_v1  ;;  %v2218_v36 = vmul.u32.u64.high 3435973837, %v2195_v1, %v2217_v33 }
  0x55   : > { %v1063_v52 = vsub.s32 %v1035_v12, %v1062_v40  ;;  %v2283_v12 = vsub.s32 %v2150_v50, %v1117_v56  ;;  %v1138_v8 = vshrl.u32 %v2218_v36, 3 }
  0x56   : > { %1713 = vmatmul.mubr.msk.bf16.gmra.mxu1 %vm522_vm3, %v695_v9 }
  0x57   : > { %vm1155_vm6 = vcmp.ne.s32.totalorder %v1063_v52, 0  ;;  %vm1165_vm7 = vcmp.lt.s32.totalorder %v1063_v52, 0  ;;  %v1185_v7 = vadd.s32 10, %v1063_v52  ;;  %vm1170_vm11 = vcmp.lt.s32.totalorder %v2283_v12, 0 }
  0x58   : > { %vm2187_vm9 = vmand %vm1165_vm7, %vm1155_vm6  ;;  %vm2293_vm6 = vcmp.lt.s32.totalorder %v1196_v6, 8  ;;  %v1190_v48 = vadd.s32 10, %v2283_v12 }
  0x59   : > { %v1195_v26 = vsel %vm2187_vm9, %v1185_v7, %v1063_v52  ;;  %vm1160_vm9 = vcmp.ne.s32.totalorder %v2283_v12, 0 }
  0x5a   : > { %vm2230_vm15 = vcmp.lt.s32.totalorder %v1195_v26, 8 }
  0xde   : > { %v2100_v13 = vpop.f32.mrf.mxu1 }
  0xe0   : > { %v1680_v16 = vpop.f32.mrf.mxu1  ;;  %v576_v18 = vpop.f32.mrf.mxu0 }
  0xe2   : > { %v2109_v19 = vpop.f32.mrf.mxu1  ;;  %v1672_v21 = vpop.f32.mrf.mxu0 }
  0xe4   : > { %v1681_v23 = vpop.f32.mrf.mxu1  ;;  %v2113_v24 = vpop.f32.mrf.mxu0 }
  0xe6   : > { %v2115_v25 = vpop.f32.mrf.mxu1  ;;  %v1673_v29 = vpop.f32.mrf.mxu0 }
  0xe7   : > { %v1095_v29 = vmul.u32 10, %v1094_v15 }
  0xe8   : > { %v1684_v32 = vpop.f32.mrf.mxu1  ;;  %v2125_v34 = vpop.f32.mrf.mxu0 }
  0xe9   : > { %v1127_v32 = vshrl.u32 %v2174_v2, 3 }
  0xea   : > { %v2127_v35 = vpop.f32.mrf.mxu1  ;;  %v1676_v37 = vpop.f32.mrf.mxu0 }
  0xeb   : > { %v2221_v37 = vadd.s32 72, %v2097_v11  ;;  %v1128_v60 = vmul.u32 10, %v1127_v32 }
  0xec   : > { %v1685_v39 = vpop.f32.mrf.mxu1  ;;  %v2132_v41 = vpop.f32.mrf.mxu0 }
  0xed   : > { %v2256_v61 = vmul.u32.u64.low 3435973837, %v2221_v37  ;;  %v2257_v62 = vmul.u32.u64.high 3435973837, %v2221_v37, %v2256_v61  ;;  %v2289_v15 = vsub.s32 %v2153_v53, %v1128_v60 }
  0xee   : > { %v2137_v43 = vpop.f32.mrf.mxu1  ;;  %v1677_v46 = vpop.f32.mrf.mxu0 }
  0xef   : > { %vm1161_vm12 = vcmp.ne.s32.totalorder %v2289_v15, 0  ;;  %vm1171_vm13 = vcmp.lt.s32.totalorder %v2289_v15, 0  ;;  %v1149_v36 = vshrl.u32 %v2257_v62, 3 }
  0xf0   : > { %v1688_v51 = vpop.f32.mrf.mxu1  ;;  %v967_v54 = vpop.f32.mrf.mxu0 }
  0xf2   : > { %v2159_v57 = vpop.f32.mrf.mxu1  ;;  %v1724_v59 = vpop.f32.mrf.mxu0 }
  0xf4   : > { %v1689_v63 = vpop.f32.mrf.mxu1  ;;  %v970_v3 = vpop.f32.mrf.mxu0 }
  0xf6   : > { %v763_v4 = vpop.f32.mrf.mxu1  ;;  %v1725_v10 = vpop.f32.mrf.mxu0 }
  0xf7   : > { %v764_v9 = vadd.f32 %v763_v4, %v576_v18  ;;  %v2201_v18 = vld [vmem:[%s2424_s4] ss:$0 sm:$0xff] }
  0xf8   : > { %v1698_v16 = vpop.f32.mrf.mxu1  ;;  %v975_v21 = vpop.f32.mrf.mxu0 }
  0xf9   : > { %v1006_v17 = vadd.f32 %v967_v54, %v764_v9  ;;  %v1197_v9 = vsel %vm2248_vm1, %v1187_v55, %v2191_v14 }
  0xfa   : > { %v766_v23 = vpop.f32.mrf.mxu1  ;;  %v1728_v28 = vpop.f32.mrf.mxu0  ;;  %vm2297_vm7 = vcmp.lt.s32.totalorder %v1197_v9, 8 }
  0xfb   : > { %v767_v27 = vadd.f32 %v766_v23, %v2113_v24  ;;  %v1023_v39 = vadd.f32 %v2201_v18, %v1006_v17 }
  0xfc   : > { %v1699_v31 = vpop.f32.mrf.mxu1  ;;  %v978_v24 = vpop.f32.mrf.mxu0 }
  0xfd   : > { %v1007_v40 = vadd.f32 %v970_v3, %v767_v27  ;;  %v2261_v63 = vsel %vm2225_vm14, %v1023_v39, 0.0  ;;  %v1107_v3 = vsub.s32 %v2135_v42, %v1106_v44  ;;  %vm2335_vm14 = vmand %vm1170_vm11, %vm1160_vm9 }
  0xfe   : > { %v771_v47 = vpop.f32.mrf.mxu1  ;;  %v1729_v54 = vpop.f32.mrf.mxu0  ;;  %v1200_v61 = vsel %vm2335_vm14, %v1190_v48, %v2283_v12  ;;  %v1310_v9 = vmul.f32 %v2261_v63, %v2261_v63 }
  0xff   : > { %v1024_v49 = vadd.f32 %v2201_v18, %v1007_v40  ;;  %v772_v51 = vadd.f32 %v771_v47, %v2125_v34  ;;  %v2253_v34 = vsub.s32 %v2130_v38, %v1095_v29  ;;  %vm1159_vm4 = vcmp.ne.s32.totalorder %v1107_v3, 0 }
 0x100   : > { %v1702_v58 = vpop.f32.mrf.mxu1  ;;  %v983_v2 = vpop.f32.mrf.mxu0  ;;  %vm1169_vm5 = vcmp.lt.s32.totalorder %v1107_v3, 0  ;;  %v1189_v27 = vadd.s32 10, %v1107_v3 }
 0x101   : > { %v2270_v0 = vsel %vm2230_vm15, %v1024_v49, 0.0  ;;  %v1008_v38 = vadd.f32 %v975_v21, %v772_v51  ;;  %vm1158_vm2 = vcmp.ne.s32.totalorder %v2253_v34, 0  ;;  %vm1168_vm3 = vcmp.lt.s32.totalorder %v2253_v34, 0  ;;  %vm2313_vm10 = vmand %vm1169_vm5, %vm1159_vm4 }
 0x102   : > { %v1614_v4 = vpack.c.bf16 %v2270_v0, %v2261_v63  ;;  %v774_v5 = vpop.f32.mrf.mxu1  ;;  %v1732_v10 = vpop.f32.mrf.mxu0  ;;  %v1188_v53 = vadd.s32 10, %v2253_v34  ;;  %vm2308_vm8 = vmand %vm1168_vm3, %vm1158_vm2  ;;  %v1199_v45 = vsel %vm2313_vm10, %v1189_v27, %v1107_v3  ;;  %v1191_v49 = vadd.s32 10, %v2289_v15 }
 0x103   : > { %v775_v7 = vadd.f32 %v774_v5, %v2132_v41  ;;  %v1025_v41 = vadd.f32 %v2201_v18, %v1008_v38  ;;  %vm2346_vm15 = vmand %vm1171_vm13, %vm1161_vm12  ;;  %v1150_v58 = vmul.u32 10, %v1149_v36  ;;  %vm1209_vm1 = vcmp.lt.s32.totalorder %v1199_v45, 8 }
 0x104   : > { %1615 = vst [vmem:[%s2266_s19] sm:$0xff] %v1614_v4   ;;  %v1703_v42 = vpop.f32.mrf.mxu1  ;;  %v986_v17 = vpop.f32.mrf.mxu0  ;;  %v1198_v40 = vsel %vm2308_vm8, %v1188_v53, %v2253_v34  ;;  %v1311_v38 = vmul.f32 %v2270_v0, %v2270_v0  ;;  %v1294_v10 = vadd.f32 %v2270_v0, %v2261_v63  ;;  %vm1210_vm5 = vcmp.lt.s32.totalorder %v1200_v61, 8 }
 0x105   : > { %v1009_v16 = vadd.f32 %v978_v24, %v775_v7  ;;  %v1236_v30 = vsel %vm2293_vm6, %v1025_v41, 0.0  ;;  %vm1208_vm0 = vcmp.lt.s32.totalorder %v1198_v40, 8  ;;  %v1151_v7 = vsub.s32 %v2221_v37, %v1150_v58 }
 0x106   : > { %v779_v21 = vpop.f32.mrf.mxu1  ;;  %v1733_v26 = vpop.f32.mrf.mxu0  ;;  %v1312_v12 = vmul.f32 %v1236_v30, %v1236_v30  ;;  %v1320_v37 = vadd.f32 %v1311_v38, %v1310_v9  ;;  %v1295_v50 = vadd.f32 %v1294_v10, %v1236_v30  ;;  %vm1336_vm12 = vcmp.eq.s32.totalorder %v2097_v11, 0 }
 0x107   : > { %v1026_v20 = vadd.f32 %v2201_v18, %v1009_v16  ;;  %v780_v22 = vadd.f32 %v779_v21, %v2100_v13  ;;  %v1139_v13 = vmul.u32 10, %v1138_v8  ;;  %vm1173_vm8 = vcmp.lt.s32.totalorder %v1151_v7, 0 }
 0x108   : > { %v1706_v28 = vpop.f32.mrf.mxu1  ;;  %v991_v33 = vpop.f32.mrf.mxu0 }
 0x109   : > { %v1237_v31 = vsel %vm2297_vm7, %v1026_v20, 0.0  ;;  %v1010_v32 = vadd.f32 %v983_v2, %v780_v22  ;;  %v1140_v52 = vsub.s32 %v2195_v1, %v1139_v13  ;;  %v1201_v1 = vsel %vm2346_vm15, %v1191_v49, %v2289_v15 }
 0x10a   : > { %v1619_v39 = vpack.c.bf16 %v1237_v31, %v1236_v30  ;;  %v782_v24 = vpop.f32.mrf.mxu1  ;;  %v1736_v46 = vpop.f32.mrf.mxu0  ;;  %v1313_v14 = vmul.f32 %v1237_v31, %v1237_v31  ;;  %vm2376_vm6 = vcmp.lt.s32.totalorder %v1201_v1, 8  ;;  %vm1163_vm7 = vcmp.ne.s32.totalorder %v1151_v7, 0 }
 0x10b   : > { %v783_v44 = vadd.f32 %v782_v24, %v2109_v19  ;;  %v1027_v54 = vadd.f32 %v2201_v18, %v1010_v32  ;;  %vm1162_vm2 = vcmp.ne.s32.totalorder %v1140_v52, 0  ;;  %vm1172_vm3 = vcmp.lt.s32.totalorder %v1140_v52, 0  ;;  %vm2386_vm9 = vmand %vm1173_vm8, %vm1163_vm7 }
 0x10c   : > { %1636 = vst [vmem:[%s2266_s19 + $0x8] sm:$0xff] %v1619_v39   ;;  %v1707_v51 = vpop.f32.mrf.mxu1  ;;  %v994_v56 = vpop.f32.mrf.mxu0  ;;  %v1192_v3 = vadd.s32 10, %v1140_v52  ;;  %vm2371_vm4 = vmand %vm1172_vm3, %vm1162_vm2  ;;  %v1296_v20 = vadd.f32 %v1295_v50, %v1237_v31  ;;  %v1193_v30 = vadd.s32 10, %v1151_v7 }
 0x10d   : > { %v1011_v55 = vadd.f32 %v986_v17, %v783_v44  ;;  %v1238_v4 = vsel %vm1208_vm0, %v1027_v54, 0.0 }
 0x10e   : > { %v787_v59 = vpop.f32.mrf.mxu1  ;;  %v1737_v62 = vpop.f32.mrf.mxu0  ;;  %v1314_v22 = vmul.f32 %v1238_v4, %v1238_v4  ;;  %v1202_v26 = vsel %vm2371_vm4, %v1192_v3, %v1140_v52  ;;  %v1203_v51 = vsel %vm2386_vm9, %v1193_v30, %v1151_v7 }
 0x10f   : > { %v1028_v34 = vadd.f32 %v2201_v18, %v1011_v55  ;;  %v788_v60 = vadd.f32 %v787_v59, %v2115_v25  ;;  %vm1212_vm10 = vcmp.lt.s32.totalorder %v1202_v26, 8  ;;  %vm1213_vm11 = vcmp.lt.s32.totalorder %v1203_v51, 8 }
 0x110   : > { %v1710_v2 = vpop.f32.mrf.mxu1  ;;  %v999_v6 = vpop.f32.mrf.mxu0 }
 0x111   : > { %v1239_v5 = vsel %vm1209_vm1, %v1028_v34, 0.0  ;;  %v1012_v25 = vadd.f32 %v991_v33, %v788_v60  ;;  %v1297_v33 = vadd.f32 %v1296_v20, %v1238_v4 }
 0x112   : > { %v1624_v42 = vpack.c.bf16 %v1239_v5, %v1238_v4  ;;  %v790_v15 = vpop.f32.mrf.mxu1  ;;  %v1740_v16 = vpop.f32.mrf.mxu0  ;;  %v1315_v36 = vmul.f32 %v1239_v5, %v1239_v5 }
 0x113   : > { %v1029_v8 = vadd.f32 %v2201_v18, %v1012_v25  ;;  %v791_v41 = vadd.f32 %v790_v15, %v2127_v35  ;;  %v1321_v35 = vadd.f32 %v1320_v37, %v1312_v12 }
 0x114   : > { %1637 = vst [vmem:[%s2266_s19 + $0x10] sm:$0xff] %v1624_v42   ;;  %v1711_v63 = vpop.f32.mrf.mxu1  ;;  %v1002_v53 = vpop.f32.mrf.mxu0 }
 0x115   : > { %v1013_v0 = vadd.f32 %v994_v56, %v791_v41  ;;  %v1240_v27 = vsel %vm1210_vm5, %v1029_v8, 0.0  ;;  %v1322_v32 = vadd.f32 %v1321_v35, %v1313_v14 }
 0x116   : > { %v795_v23 = vpop.f32.mrf.mxu1  ;;  %v1741_v13 = vpop.f32.mrf.mxu0  ;;  %v1316_v45 = vmul.f32 %v1240_v27, %v1240_v27 }
 0x117   : > { %v1030_v28 = vadd.f32 %v2201_v18, %v1013_v0  ;;  %v796_v29 = vadd.f32 %v795_v23, %v2137_v43  ;;  %v1323_v44 = vadd.f32 %v1322_v32, %v1314_v22  ;;  %v1298_v43 = vadd.f32 %v1297_v33, %v1239_v5 }
 0x118   : > { %v1714_v39 = vpop.f32.mrf.mxu1 }
 0x119   : > { %v1241_v40 = vsel %vm2376_vm6, %v1030_v28, 0.0  ;;  %v1014_v24 = vadd.f32 %v999_v6, %v796_v29  ;;  %v1324_v19 = vadd.f32 %v1323_v44, %v1315_v36  ;;  %v1299_v52 = vadd.f32 %v1298_v43, %v1240_v27 }
 0x11a   : > { %v1629_v46 = vpack.c.bf16 %v1241_v40, %v1240_v27  ;;  %v798_v47 = vpop.f32.mrf.mxu1  ;;  %v1317_v54 = vmul.f32 %v1241_v40, %v1241_v40 }
 0x11b   : > { %v1031_v48 = vadd.f32 %v2201_v18, %v1014_v24  ;;  %v799_v49 = vadd.f32 %v798_v47, %v2159_v57  ;;  %v1325_v59 = vadd.f32 %v1324_v19, %v1316_v45  ;;  %v1300_v34 = vadd.f32 %v1299_v52, %v1241_v40 }
 0x11c   : > { %1638 = vst [vmem:[%s2266_s19 + $0x18] sm:$0xff] %v1629_v46   ;;  %v1715_v55 = vpop.f32.mrf.mxu1 }
 0x11d   : > { %v1242_v56 = vsel %vm1212_vm10, %v1031_v48, 0.0  ;;  %v1015_v58 = vadd.f32 %v1002_v53, %v799_v49  ;;  %v1326_v57 = vadd.f32 %v1325_v59, %v1317_v54 }
 0x11e   : > { %v1318_v60 = vmul.f32 %v1242_v56, %v1242_v56  ;;  %v1301_v62 = vadd.f32 %v1300_v34, %v1242_v56 }
 0x11f   : > { %v1032_v61 = vadd.f32 %v2201_v18, %v1015_v58 }
 0x120   : > { %v1327_v38 = vadd.f32 %v1326_v57, %v1318_v60 }
 0x121   : > { %v1243_v1 = vsel %vm1213_vm11, %v1032_v61, 0.0 }
 0x122   : > { %v1634_v2 = vpack.c.bf16 %v1243_v1, %v1242_v56  ;;  %v1302_v3 = vadd.f32 %v1301_v62, %v1243_v1  ;;  %v1319_v4 = vmul.f32 %v1243_v1, %v1243_v1 }
 0x124   : > { %1639 = vst [vmem:[%s2266_s19 + $0x20] sm:$0xff] %v1634_v2   ;;  %v1303_v5 = vrot.slane %v1302_v3, 4  ;;  %v1328_v25 = vadd.f32 %v1327_v38, %v1319_v4 }
 0x126   : > { %v1304_v6 = vadd.f32 %v1303_v5, %v1302_v3  ;;  %v1329_v7 = vrot.slane %v1328_v25, 4 }
 0x128   : > { %v1305_v9 = vrot.slane %v1304_v6, 2  ;;  %v1330_v10 = vadd.f32 %v1329_v7, %v1328_v25 }
 0x12a   : > { %v1306_v12 = vadd.f32 %v1305_v9, %v1304_v6  ;;  %v1331_v42 = vrot.slane %v1330_v10, 2 }
 0x12c   : > { %v1307_v18 = vrot.slane %v1306_v12, 1  ;;  %v1332_v15 = vadd.f32 %v1331_v42, %v1330_v10 }
 0x12e   : > { %v1333_v8 = vrot.slane %v1332_v15, 1  ;;  %v1308_v41 = vadd.f32 %v1307_v18, %v1306_v12 }
 0x130   : > { %v1334_v16 = vadd.f32 %v1333_v8, %v1332_v15 }
 0x132   : > { %v1339_v17 = vsel %vm1336_vm12, %v1308_v41, %v1334_v16 }
 0x133   : > { %1340 = vst [vmem:[%s390_s11] sm:$0x3] %v1339_v17 }
 0x134 PF: > { %s17_s25 = sadd.s32 1, %s1881_s25   ;;  %s2457_s21 = smov %s1873_s23 }
 0x135   : > { %p14_p10 = scmp.ge.s32.totalorder %s17_s25, 18   ;;  %s2458_s22 = smov %s1877_s24 }
 0x136   : > { %s2459_s23 = smov %s2462_s26  ;;  %s2460_s24 = smov %s2466_s27 }
 0x137   :  { %16 = sbr.rel (!%p14_p10) target bundleno = 3 (0x3), region = 90 }

// kernel: double_conv.6
= control target key start
LH: loop header
LB: loop body
LE: loop exit
PB: predicated region body
PF: predicated region fallthrough
CT: control target
= control target key end

     0   :  { %s8987_s21 = smov 0   ;;  %s8989_s22 = smov 0   ;;  %s11671_s0 = inlined_call_operand.vmem [shape: bf16[2,10,112,128], index: 0, kind: input, shape index: {}, may-alias: {0,1,2}]   ;;  %s11672_s1 = inlined_call_operand.vmem [shape: bf16[2,10,112,128], index: 1, kind: input, shape index: {}, may-alias: {0,1,2}]   ;;  %s11673_s2 = inlined_call_operand.vmem [shape: bf16[2,10,112,128], index: 2, kind: input, shape index: {}, may-alias: {0,1,2}]   ;;  %s11674_s3 = inlined_call_operand.vmem [shape: bf16[27,128,128], index: 3, kind: input, shape index: {}]   ;;  %s11675_s4 = inlined_call_operand.vmem [shape: f32[1,128], index: 4, kind: input, shape index: {}]   ;;  %s11676_s5 = inlined_call_operand.vmem [shape: bf16[2,8,80,128], index: 5, kind: output, shape index: {0}]   ;;  %s11677_s6 = inlined_call_operand.vmem [shape: f32[2,8,2,128], index: 6, kind: output, shape index: {1}]  }
   0x1   :  { %s8991_s23 = smov 0   ;;  %s8993_s24 = smov 0  }
   0x2   :  { %s8995_s25 = smov 0  }
   0x3 LB: > { %s26_s26 = sadd.s32 1, %s8940_s23  ;;  %s29_s27 = sadd.s32 1, %s8944_s24  ;;  %s8948_s25 = sphi %s8995_s25, %s17_s25   ;;  %s8944_s24 = sphi %s8993_s24, %s11718_s24   ;;  %s8940_s23 = sphi %s8991_s23, %s11717_s23   ;;  %s8936_s22 = sphi %s8989_s22, %s11716_s22   ;;  %s8932_s21 = sphi %s8987_s21, %s11715_s21  }
   0x4   : > { %p27_p0 = scmp.ge.s32.totalorder %s26_s26, 8  ;;  %p6398_p1 = scmp.ge.s32.totalorder %s8948_s25, 1 }
   0x5   : > { %p277_p2 = scmp.lt.s32.totalorder %s8948_s25, 17 }
   0x6   : > { %s11720_s26 = smov (%p27_p0, %s26_s26), 0  ;;  %s11722_s27 = smov (!%p27_p0, %s29_s27), %s8944_s24 }
   0x7   : > { %p278_p3 = pnand %p6398_p1, %p277_p2  ;;  %p31_p4 = scmp.ge.s32.totalorder %s11722_s27, 2 }
   0x8   : > { %p343_p5 = scmp.lt.s32.totalorder (!%p278_p3), %s8936_s22, 1  ;;  %p345_p6 = scmp.lt.s32.totalorder (!%p278_p3), %s8932_s21, 9 }
   0x9   : > { %s11724_s27 = smov (%p31_p4, %s11722_s27), 0  ;;  %281 = sbr.rel (%p278_p3) target bundleno = 811 (0x32b), region = 40 }
   0xa   : > { %s352_s20 = sadd.s32 (!%p278_p3), 1, %s8932_s21  ;;  %s363_s8 = sadd.s32 (!%p278_p3), 2, %s8932_s21 }
   0xb   : > { %p9373_p7 = scmp.lt.s32.totalorder (!%p278_p3), %s352_s20, 9  ;;  %p366_p8 = scmp.lt.s32.totalorder (!%p278_p3), %s363_s8, 9 }
   0xc   : > { %p376_p9 = scmp.lt.s32.totalorder (!%p278_p3), %s8932_s21, 7 }
   0xe   : > { %v8595_v0 = vld [vmem:[%s11674_s3 + $0x78] sm:$0xff]   ;;  %v8950_v1 = vmov 0.0   ;;  %v8597_v3 = vld [vmem:[%s11674_s3 + $0x70] sm:$0xff]   ;;  %vm8951_vm0 = vmmov 0   ;;  %s11726_s22 = smov (!%p343_p5, %s8936_s22), 1  ;;  %v8599_v5 = vld [vmem:[%s11674_s3 + $0x68] sm:$0xff]  }
   0xf   : > { %7539 = vmatprep.subr.bf16.mxu0 %v8950_v1  ;;  %7575 = vmatprep.subr.bf16.mxu1 %v8950_v1  ;;  %v8596_v2 = vld [vmem:[%s11674_s3 + $0x38] sm:$0xff]   ;;  %v8598_v4 = vld [vmem:[%s11674_s3 + $0x30] sm:$0xff]   ;;  %s346_s12 = scalar_select %p345_p6, %s8932_s21, 9  ;;  %v8600_v6 = vld [vmem:[%s11674_s3 + $0x28] sm:$0xff]   ;;  %vm465_vm1 = vcmask 1044480   ;;  %vm1874_vm5 = vcmask 1046528  }
  0x10   : > { %7540 = vmatpush3.bf16.msra.mxu0 %v8595_v0  ;;  %7555 = vmatprep.mubr.msk.bf16.mxu0 %vm8951_vm0, %v8950_v1  ;;  %s9051_s15 = smul.u32 140, %s11726_s22  ;;  %v8601_v7 = vld [vmem:[%s11674_s3 + $0x60] sm:$0xff]   ;;  %v8603_v9 = vld [vmem:[%s11674_s3 + $0x58] sm:$0xff]   ;;  %v8605_v12 = vld [vmem:[%s11674_s3 + $0x50] sm:$0xff]   ;;  %vm606_vm2 = vsmask.f32 5376 }
  0x11   : > { %7576 = vmatpush3.bf16.msra.mxu1 %v8596_v2  ;;  %7541 = vmatprep.subr.bf16.mxu0 %v8950_v1  ;;  %s8527_s18 = smul.u32 14, %s346_s12  ;;  %v8602_v8 = vld [vmem:[%s11674_s3 + $0x20] sm:$0xff]   ;;  %v8604_v10 = vld [vmem:[%s11674_s3 + $0x18] sm:$0xff]   ;;  %v8606_v15 = vld [vmem:[%s11674_s3 + $0x10] sm:$0xff]   ;;  %vm807_vm3 = vsmask.f32 4352 }
  0x12   : > { %7577 = vmatprep.subr.bf16.mxu1 %v8950_v1  ;;  %7591 = vmatprep.mubr.msk.bf16.mxu1 %vm8951_vm0, %v8950_v1  ;;  %v8607_v20 = vld [vmem:[%s11674_s3 + $0x48] sm:$0xff]   ;;  %v8609_v30 = vld [vmem:[%s11674_s3 + $0x40] sm:$0xff]   ;;  %v8614_v39 = vld [vmem:[%s11674_s3 + $0xb8] sm:$0xff]   ;;  %s11728_s20 = smov (!%p9373_p7, %s352_s20), 9  ;;  %vm1436_vm4 = vsmask.f32 7424 }
  0x13   : > { %s349_s19 = sadd.s32 %s9051_s15, %s8527_s18  ;;  %v8608_v23 = vld [vmem:[%s11674_s3 + $0x8] sm:$0xff]   ;;  %v8610_v31 = vld [vmem:[%s11674_s3] sm:$0xff]   ;;  %v8617_v44 = vld [vmem:[%s11674_s3 + $0xf8] sm:$0xff]   ;;  %vm2043_vm6 = vsmask.f32 6400  ;;  %s11730_s8 = smov (!%p366_p8, %s363_s8), 9 }
  0x14   : > { %7542 = vmatpush3.bf16.msra.mxu0 %v8597_v3  ;;  %s6399_s29 = sshll.u32 %s349_s19, 2  ;;  %v8615_v45 = vld [vmem:[%s11674_s3 + $0xb0] sm:$0xff]   ;;  %v8618_v51 = vld [vmem:[%s11674_s3 + $0xa8] sm:$0xff]   ;;  %v8621_v59 = vld [vmem:[%s11674_s3 + $0xa0] sm:$0xff]   ;;  %s8529_s19 = smul.u32 14, %s11728_s20 }
  0x15   : > { %7578 = vmatpush3.bf16.msra.mxu1 %v8598_v4  ;;  %7543 = vmatprep.subr.bf16.mxu0 %v8950_v1  ;;  %s9070_s10 = scalar_lea.vmem %s11671_s0, %s6399_s29  ;;  %v8619_v50 = vld [vmem:[%s11674_s3 + $0xf0] sm:$0xff]   ;;  %v8622_v57 = vld [vmem:[%s11674_s3 + $0xe8] sm:$0xff]   ;;  %v8624_v63 = vld [vmem:[%s11674_s3 + $0xe0] sm:$0xff]   ;;  %s8530_s13 = smul.u32 14, %s11730_s8 }
  0x16   : > { %7579 = vmatprep.subr.bf16.mxu1 %v8950_v1  ;;  %v393_v11 = vld [vmem:[%s9070_s10 + $0x4] sm:$0xf]  ;;  %v9085_v13 = vld [vmem:[%s9070_s10 + $0x8] sm:$0xff]   ;;  %v392_v14 = vld [vmem:[%s9070_s10] sm:$0xc]  ;;  %s359_s28 = sadd.s32 %s8529_s19, %s9051_s15  ;;  %s11732_s21 = smov (!%p376_p9, %s8932_s21), 7 }
  0x17   : > { %v6435_v16 = vcombine.low %v392_v14, %v393_v11  ;;  %v419_v17 = vld [vmem:[%s9070_s10] sm:$0x8]  ;;  %v616_v18 = vshrl.u32 %v9085_v13, 16  ;;  %v619_v19 = vshll.u32 %v9085_v13, 16  ;;  %v9109_v29 = vld [vmem:[%s9070_s10 + $0x10] sm:$0xff]   ;;  %v467_v33 = vrot.slane %v9085_v13, 3  ;;  %s370_s19 = sadd.s32 %s8530_s13, %s9051_s15 }
  0x18   : > { %7544 = vmatpush3.bf16.msra.mxu0 %v8599_v5  ;;  %v9104_v25 = vcombine.low %v419_v17, %v393_v11  ;;  %v625_v34 = vshrl.u32 %v9109_v29, 16  ;;  %v628_v35 = vshll.u32 %v9109_v29, 16  ;;  %v9136_v43 = vld [vmem:[%s9070_s10 + $0x18] sm:$0xff]   ;;  %v469_v46 = vrot.slane %v9109_v29, 3  ;;  %v9168_v56 = vld [vmem:[%s9070_s10 + $0x20] sm:$0xff]   ;;  %s6400_s20 = sshll.u32 %s359_s28, 2 }
  0x19   : > { %7580 = vmatpush3.bf16.msra.mxu1 %v8600_v6  ;;  %7545 = vmatprep.subr.bf16.mxu0 %v8950_v1  ;;  %v608_v21 = vshrl.u32 %v6435_v16, 16  ;;  %v611_v22 = vshll.u32 %v6435_v16, 16  ;;  %v618_v24 = vrot.slane %v616_v18, 2  ;;  %v621_v28 = vrot.slane %v619_v19, 3  ;;  %v8623_v3 = vld [vmem:[%s11674_s3 + $0x98] sm:$0xff]   ;;  %s9427_s9 = scalar_lea.vmem %s11672_s1, %s6400_s20  ;;  %s6401_s28 = sshll.u32 %s370_s19, 2 }
  0x1a   : > { %7581 = vmatprep.subr.bf16.mxu1 %v8950_v1  ;;  %v466_v32 = vrot.slane %v9104_v25, 3  ;;  %v627_v40 = vrot.slane %v625_v34, 2  ;;  %v630_v42 = vrot.slane %v628_v35, 3  ;;  %v634_v48 = vshrl.u32 %v9136_v43, 16  ;;  %v9214_v14 = vld [vmem:[%s9070_s10 + $0x8] sm:$0xf] }
  0x1b   : > { %v610_v26 = vrot.slane %v608_v21, 2  ;;  %v613_v27 = vrot.slane %v611_v22, 3  ;;  %v622_v37 = vor.u32 %v621_v28, %v618_v24  ;;  %v637_v49 = vshll.u32 %v9136_v43, 16  ;;  %v9190_v0 = vld [vmem:[%s9070_s10 + $0x28] ss:$0 sps:$4 sm:$0x77]  }
  0x1c   : > { %7546 = vmatpush3.bf16.msra.mxu0 %v8601_v7  ;;  %v468_v38 = vsel %vm465_vm1, %v466_v32, %v467_v33  ;;  %v631_v47 = vor.u32 %v630_v42, %v627_v40  ;;  %v470_v52 = vsel %vm465_vm1, %v467_v33, %v469_v46  ;;  %v636_v54 = vrot.slane %v634_v48, 2  ;;  %v8626_v7 = vld [vmem:[%s11674_s3 + $0xd8] sm:$0xff]   ;;  %v9220_v16 = vld [vmem:[%s9070_s10 + $0x10] sm:$0xf]  ;;  %v8629_v28 = vld [vmem:[%s11674_s3 + $0x88] sm:$0xff]   ;;  %s8531_s19 = smul.u32 10, %s11732_s21 }
  0x1d   : > { %7582 = vmatpush3.bf16.msra.mxu1 %v8602_v8  ;;  %7547 = vmatprep.subr.bf16.mxu0 %v8950_v1  ;;  %v614_v36 = vor.u32 %v613_v27, %v610_v26  ;;  %v639_v55 = vrot.slane %v637_v49, 3  ;;  %v471_v58 = vrot.slane %v9136_v43, 3  ;;  %v643_v61 = vshrl.u32 %v9168_v56, 16  ;;  %v8643_v43 = vld [vmem:[%s11674_s3 + $0x120] sm:$0xff]   ;;  %s6403_s8 = sshll.u32 %s11726_s22, 3 }
  0x1e   : > { %7583 = vmatprep.subr.bf16.mxu1 %v8950_v1  ;;  %v632_v53 = vsel %vm606_vm2, %v622_v37, %v631_v47  ;;  %v646_v62 = vshll.u32 %v9168_v56, 16  ;;  %v473_v8 = vrot.slane %v9168_v56, 3  ;;  %v655_v11 = vshll.u32 %v9190_v0, 16  ;;  %s388_s11 = sadd.s32 %s6403_s8, %s11732_s21 }
  0x1f   : > { %v623_v41 = vsel %vm606_vm2, %v614_v36, %v622_v37  ;;  %v640_v60 = vor.u32 %v639_v55, %v636_v54  ;;  %v472_v2 = vsel %vm465_vm1, %v469_v46, %v471_v58  ;;  %v645_v5 = vrot.slane %v643_v61, 2  ;;  %v8632_v37 = vld [vmem:[%s11674_s3 + $0x80] sm:$0xff]   ;;  %s6404_s12 = sshll.u32 %s388_s11, 1 }
  0x20   : > { %7548 = vmatpush3.bf16.msra.mxu0 %v8603_v9  ;;  %v648_v6 = vrot.slane %v646_v62, 3  ;;  %v8627_v9 = vld [vmem:[%s11674_s3 + $0x90] sm:$0xff]   ;;  %v657_v22 = vrot.slane %v655_v11, 3  ;;  %v812_v32 = vshll.u32 %v9104_v25, 16  ;;  %v475_v33 = vrot.slane %v9190_v0, 3  ;;  %s390_s16 = scalar_lea.vmem %s11677_s6, %s6404_s12 }
  0x21   : > { %7584 = vmatpush3.bf16.msra.mxu1 %v8604_v10  ;;  %7549 = vmatprep.subr.bf16.mxu0 %v8950_v1  ;;  %v641_v4 = vsel %vm606_vm2, %v631_v47, %v640_v60  ;;  %v652_v10 = vshrl.u32 %v9190_v0, 16  ;;  %v816_v47 = vrot.slane %v616_v18, 3  ;;  %v8637_v11 = vld [vmem:[%s11674_s3 + $0x130] sm:$0xff]  }
  0x22   : > { %7585 = vmatprep.subr.bf16.mxu1 %v8950_v1  ;;  %v649_v17 = vor.u32 %v648_v6, %v645_v5  ;;  %v814_v46 = vrot.slane %v812_v32, 4  ;;  %v8636_v5 = vld [vmem:[%s11674_s3 + $0x138] sm:$0xff]   ;;  %v820_v6 = vrot.slane %v625_v34, 3  ;;  %v9303_v34 = vld [vmem:[%s9070_s10 + $0x24] sm:$0xf] }
  0x23   : > { %v654_v21 = vrot.slane %v652_v10, 2 }
  0x24   : > { %7550 = vmatpush3.bf16.msra.mxu0 %v8605_v12  ;;  %v977_v12 = vld [vmem:[%s9070_s10 + $0x4] sm:$0x8]  ;;  %v650_v27 = vsel %vm606_vm2, %v640_v60, %v649_v17 }
  0x25   : > { %7586 = vmatpush3.bf16.msra.mxu1 %v8606_v15  ;;  %7551 = vmatprep.subr.bf16.mxu0 %v8950_v1  ;;  %v9217_v15 = vld [vmem:[%s9070_s10 + $0xc] sm:$0xf]  ;;  %v6485_v24 = vcombine.low %v977_v12, %v9214_v14  ;;  %v658_v36 = vor.u32 %v657_v22, %v654_v21  ;;  %v8639_v12 = vld [vmem:[%s11674_s3 + $0x178] sm:$0xff]   ;;  %v9309_v21 = vld [vmem:[%s9070_s10 + $0x28] sm:$0xf] }
  0x26   : > { %7587 = vmatprep.subr.bf16.mxu1 %v8950_v1  ;;  %v6486_v26 = vcombine.low %v9217_v15, %v9220_v16  ;;  %v8641_v22 = vld [vmem:[%s11674_s3 + $0x170] sm:$0xff]  }
  0x28   : > { %7552 = vmatpush3.bf16.msra.mxu0 %v8607_v20  ;;  %v8628_v20 = vld [vmem:[%s11674_s3 + $0xd0] sm:$0xff]   ;;  %v1045_v40 = vshll.u32 %v6486_v26, 16 }
  0x29   : > { %7588 = vmatpush3.bf16.msra.mxu1 %v8608_v23  ;;  %7553 = vmatprep.subr.bf16.mxu0 %v8950_v1  ;;  %v474_v23 = vsel %vm465_vm1, %v471_v58, %v473_v8 }
  0x2a   : > { %7589 = vmatprep.subr.bf16.mxu1 %v8950_v1 }
  0x2c   : > { %7554 = vmatpush3.bf16.msra.mxu0 %v8609_v30  ;;  %v8631_v30 = vld [vmem:[%s11674_s3 + $0xc8] sm:$0xff]  }
  0x2d   : > { %7590 = vmatpush3.bf16.msra.mxu1 %v8610_v31  ;;  %7611 = vmatprep.subr.bf16.mxu0 %v8950_v1  ;;  %v809_v31 = vshrl.u32 %v9104_v25, 16  ;;  %v1042_v25 = vshrl.u32 %v6486_v26, 16  ;;  %v824_v26 = vrot.slane %v634_v48, 3 }
  0x2e   : > { %7647 = vmatprep.subr.bf16.mxu1 %v8950_v1 }
  0x2f   : > { %7556 = vmatmul.mubr.bf16.vlgmr.msra.gmra.mxu0 %v468_v38  ;;  %v1034_v38 = vshrl.u32 %v6485_v24, 16  ;;  %v811_v42 = vrot.slane %v809_v31, 3  ;;  %v1044_v55 = vrot.slane %v1042_v25, 3  ;;  %v828_v25 = vrot.slane %v643_v61, 3 }
  0x30   : > { %7592 = vmatmul.mubr.bf16.vlgmr.msra.gmra.mxu1 %v623_v41  ;;  %7612 = vmatpush3.bf16.msra.mxu0 %v8614_v39  ;;  %v1037_v39 = vshll.u32 %v6485_v24, 16  ;;  %v8633_v41 = vld [vmem:[%s11674_s3 + $0xc0] sm:$0xff]  }
  0x31   : > { %7613 = vmatprep.subr.bf16.mxu0 %v8950_v1  ;;  %7559 = vmatprep.mubr.msk.bf16.mxu0 %vm8951_vm0, %v8950_v1  ;;  %v815_v13 = vor.u32 %v814_v46, %v811_v42  ;;  %v8645_v42 = vld [vmem:[%s11674_s3 + $0x118] sm:$0xff]   ;;  %v829_v46 = vrot.slane %v646_v62, 4 }
  0x32   : > { %7595 = vmatprep.mubr.msk.bf16.mxu1 %vm8951_vm0, %v8950_v1  ;;  %7648 = vmatpush3.bf16.msra.mxu1 %v8617_v44  ;;  %v9259_v44 = vld [vmem:[%s9070_s10 + $0x14] sm:$0xf]  ;;  %v1039_v54 = vrot.slane %v1037_v39, 4  ;;  %v8646_v39 = vld [vmem:[%s11674_s3 + $0x160] sm:$0xff]  }
  0x33   : > { %7649 = vmatprep.subr.bf16.mxu1 %v8950_v1 }
  0x34   : > { %7614 = vmatpush3.bf16.msra.mxu0 %v8615_v45  ;;  %v9262_v45 = vld [vmem:[%s9070_s10 + $0x18] sm:$0xf] }
  0x35   : > { %7615 = vmatprep.subr.bf16.mxu0 %v8950_v1  ;;  %v6487_v58 = vcombine.low %v9259_v44, %v9262_v45 }
  0x36   : > { %7650 = vmatpush3.bf16.msra.mxu1 %v8619_v50  ;;  %v476_v50 = vsel %vm465_vm1, %v473_v8, %v475_v33  ;;  %v8644_v33 = vld [vmem:[%s11674_s3 + $0x168] sm:$0xff]  }
  0x37   : > { %7560 = vmatmul.mubr.bf16.gmra.mxu0 %v470_v52  ;;  %7651 = vmatprep.subr.bf16.mxu1 %v8950_v1  ;;  %v817_v52 = vrot.slane %v619_v19, 4  ;;  %v9278_v19 = vld [vmem:[%s9070_s10 + $0x1c] sm:$0xf]  ;;  %v1051_v0 = vshrl.u32 %v6487_v58, 16 }
  0x38   : > { %7596 = vmatmul.mubr.bf16.gmra.mxu1 %v632_v53  ;;  %7616 = vmatpush3.bf16.msra.mxu0 %v8618_v51  ;;  %v659_v51 = vsel %vm606_vm2, %v649_v17, %v658_v36  ;;  %v1036_v53 = vrot.slane %v1034_v38, 3  ;;  %v9341_v38 = vld [vmem:[%s9070_s10 + $0x2c] sm:$0xf] }
  0x39   : > { %7563 = vmatprep.mubr.msk.bf16.mxu0 %vm8951_vm0, %v8950_v1  ;;  %7599 = vmatprep.mubr.msk.bf16.mxu1 %vm8951_vm0, %v8950_v1  ;;  %v818_v18 = vor.u32 %v817_v52, %v816_v47  ;;  %v6490_v47 = vcombine.low %v9341_v38, %v9341_v38  ;;  %v8648_v52 = vld [vmem:[%s11674_s3 + $0x158] sm:$0xff]  }
  0x3a   : > { %7617 = vmatprep.subr.bf16.mxu0 %v8950_v1  ;;  %7652 = vmatpush3.bf16.msra.mxu1 %v8622_v57  ;;  %v1047_v57 = vrot.slane %v1045_v40, 4  ;;  %v1040_v60 = vor.u32 %v1039_v54, %v1036_v53  ;;  %v8652_v40 = vld [vmem:[%s9070_s10 + $0x28] ss:$0 sps:$4 sm:$0xff]   ;;  %v830_v53 = vor.u32 %v829_v46, %v828_v25  ;;  %v8649_v54 = vld [vmem:[%s11674_s3 + $0x110] sm:$0xff]   ;;  %v8672_v46 = vld [vmem:[%s11674_s3 + $0x1e0] sm:$0xff]  }
  0x3b   : > { %7653 = vmatprep.subr.bf16.mxu1 %v8950_v1  ;;  %v833_v56 = vshrl.u32 %v8652_v40, 16  ;;  %v836_v62 = vshll.u32 %v8652_v40, 16 }
  0x3c   : > { %7618 = vmatpush3.bf16.msra.mxu0 %v8621_v59  ;;  %v9281_v59 = vld [vmem:[%s9070_s10 + $0x20] sm:$0xf] }
  0x3d   : > { %7619 = vmatprep.subr.bf16.mxu0 %v8950_v1 }
  0x3e   : > { %7654 = vmatpush3.bf16.msra.mxu1 %v8624_v63  ;;  %v1048_v63 = vor.u32 %v1047_v57, %v1044_v55  ;;  %v1078_v55 = vshrl.u32 %v6490_v47, 16  ;;  %v1081_v57 = vshll.u32 %v6490_v47, 16  ;;  %v8674_v47 = vld [vmem:[%s9070_s10 + $0x28] sm:$0xff]  }
  0x3f   : > { %7564 = vmatmul.mubr.bf16.gmra.mxu0 %v472_v2  ;;  %7655 = vmatprep.subr.bf16.mxu1 %v8950_v1  ;;  %v1054_v2 = vshll.u32 %v6487_v58, 16 }
  0x40   : > { %7600 = vmatmul.mubr.bf16.gmra.mxu1 %v641_v4  ;;  %7620 = vmatpush3.bf16.msra.mxu0 %v8623_v3  ;;  %v6488_v3 = vcombine.low %v9278_v19, %v9281_v59  ;;  %v819_v4 = vsel %vm807_vm3, %v815_v13, %v818_v18  ;;  %v1049_v8 = vsel %vm807_vm3, %v1040_v60, %v1048_v63  ;;  %v8650_v13 = vld [vmem:[%s11674_s3 + $0x150] sm:$0xff]   ;;  %v835_v60 = vrot.slane %v833_v56, 3 }
  0x41   : > { %7567 = vmatprep.mubr.msk.bf16.mxu0 %vm8951_vm0, %v8950_v1  ;;  %7603 = vmatprep.mubr.msk.bf16.mxu1 %vm8951_vm0, %v8950_v1  ;;  %v1056_v10 = vrot.slane %v1054_v2, 4  ;;  %v1080_v2 = vrot.slane %v1078_v55, 3  ;;  %v1469_v56 = vshll.u32 %v8674_v47, 16  ;;  %v1617_v55 = vld [vmem:[%s9070_s10 + $0xc] sm:$0xf] }
  0x42   : > { %7621 = vmatprep.subr.bf16.mxu0 %v8950_v1  ;;  %7656 = vmatpush3.bf16.msra.mxu1 %v8626_v7  ;;  %v821_v7 = vrot.slane %v628_v35, 4  ;;  %v1060_v17 = vshrl.u32 %v6488_v3, 16 }
  0x43   : > { %7657 = vmatprep.subr.bf16.mxu1 %v8950_v1 }
  0x44   : > { %7622 = vmatpush3.bf16.msra.mxu0 %v8627_v9  ;;  %v1053_v9 = vrot.slane %v1051_v0, 3  ;;  %v822_v29 = vor.u32 %v821_v7, %v820_v6  ;;  %v1062_v31 = vrot.slane %v1060_v17, 3  ;;  %v8654_v6 = vld [vmem:[%s11674_s3 + $0x148] sm:$0xff]  }
  0x45   : > { %7623 = vmatprep.subr.bf16.mxu0 %v8950_v1 }
  0x46   : > { %7658 = vmatpush3.bf16.msra.mxu1 %v8628_v20  ;;  %v1063_v20 = vshll.u32 %v6488_v3, 16  ;;  %v1057_v35 = vor.u32 %v1056_v10, %v1053_v9  ;;  %v823_v24 = vsel %vm807_vm3, %v818_v18, %v822_v29  ;;  %v8651_v18 = vld [vmem:[%s11674_s3 + $0x108] sm:$0xff]   ;;  %v1083_v3 = vrot.slane %v1081_v57, 4  ;;  %v8656_v10 = vld [vmem:[%s11674_s3 + $0x140] sm:$0xff]   ;;  %v1618_v57 = vld [vmem:[%s9070_s10 + $0x10] sm:$0xf] }
  0x47   : > { %7568 = vmatmul.mubr.bf16.gmra.mxu0 %v474_v23  ;;  %7659 = vmatprep.subr.bf16.mxu1 %v8950_v1  ;;  %v8640_v23 = vld [vmem:[%s11674_s3 + $0x128] sm:$0xff]  }
  0x48   : > { %7604 = vmatmul.mubr.bf16.gmra.mxu1 %v650_v27  ;;  %7571 = vmatprep.mubr.msk.bf16.mxu0 %vm8951_vm0, %v8950_v1  ;;  %v825_v27 = vrot.slane %v637_v49, 4  ;;  %v1065_v32 = vrot.slane %v1063_v20, 4  ;;  %v1084_v9 = vor.u32 %v1083_v3, %v1080_v2  ;;  %v9512_v3 = vld [vmem:[%s9070_s10 + $0x14] sm:$0xff]  }
  0x49   : > { %7607 = vmatprep.mubr.msk.bf16.mxu1 %vm8951_vm0, %v8950_v1  ;;  %7624 = vmatpush3.bf16.msra.mxu0 %v8629_v28  ;;  %v6489_v28 = vcombine.low %v9303_v34, %v9309_v21 }
  0x4a   : > { %7660 = vmatpush3.bf16.msra.mxu1 %v8631_v30  ;;  %7625 = vmatprep.subr.bf16.mxu0 %v8950_v1  ;;  %v1058_v30 = vsel %vm807_vm3, %v1048_v63, %v1057_v35  ;;  %v826_v48 = vor.u32 %v825_v27, %v824_v26  ;;  %v838_v63 = vrot.slane %v836_v62, 4  ;;  %v8663_v26 = vld [vmem:[%s9070_s10 + $0x18] sm:$0xff]   ;;  %v6515_v27 = vcombine.low %v9214_v14, %v9217_v15  ;;  %v8661_v14 = vld [vmem:[%s11674_s3 + $0x1b0] sm:$0xff]  }
  0x4b   : > { %7661 = vmatprep.subr.bf16.mxu1 %v8950_v1  ;;  %v1069_v49 = vshrl.u32 %v6489_v28, 16  ;;  %v1072_v36 = vshll.u32 %v6489_v28, 16  ;;  %v8660_v28 = vld [vmem:[%s11674_s3 + $0x1b8] sm:$0xff]   ;;  %v1457_v25 = vshrl.u32 %v8663_v26, 16 }
  0x4c   : > { %v831_v0 = vsel %vm807_vm3, %v826_v48, %v830_v53  ;;  %v839_v7 = vor.u32 %v838_v63, %v835_v60  ;;  %v8675_v62 = vld [vmem:[%s11674_s3 + $0x1d8] sm:$0xff]   ;;  %v8678_v63 = vld [vmem:[%s11674_s3 + $0x188] sm:$0xff]  }
  0x4d   : > { %7626 = vmatpush3.bf16.msra.mxu0 %v8632_v37  ;;  %v1066_v37 = vor.u32 %v1065_v32, %v1062_v31  ;;  %v1071_v61 = vrot.slane %v1069_v49, 3  ;;  %v1453_v32 = vshll.u32 %v8663_v26, 16  ;;  %v8666_v49 = vld [vmem:[%s11674_s3 + $0x1f0] sm:$0xff]   ;;  %v1685_v26 = vshrl.u32 %v9512_v3, 16 }
  0x4e   : > { %7662 = vmatpush3.bf16.msra.mxu1 %v8633_v41  ;;  %7683 = vmatprep.subr.bf16.mxu0 %v8950_v1  ;;  %v827_v41 = vsel %vm807_vm3, %v822_v29, %v826_v48  ;;  %v840_v17 = vsel %vm807_vm3, %v830_v53, %v839_v7  ;;  %v8668_v48 = vld [vmem:[%s9070_s10 + $0x20] sm:$0xff]  }
  0x4f   : > { %7572 = vmatmul.mubr.bf16.gmra.mxu0 %v476_v50  ;;  %7719 = vmatprep.subr.bf16.mxu1 %v8950_v1  ;;  %v1067_v50 = vsel %vm807_vm3, %v1057_v35, %v1066_v37  ;;  %v1461_v40 = vshll.u32 %v8668_v48, 16  ;;  %v8683_v7 = vld [vmem:[%s11674_s3 + $0x1c0] sm:$0xff]  }
  0x50   : > { %7608 = vmatmul.mubr.bf16.gmra.mxu1 %v659_v51  ;;  %7627 = vmatprep.mubr.msk.bf16.mxu0 %vm8951_vm0, %v8950_v1  ;;  %v1074_v51 = vrot.slane %v1072_v36, 4  ;;  %v6516_v36 = vcombine.low %v9220_v16, %v9259_v44  ;;  %v8669_v16 = vld [vmem:[%s11674_s3 + $0x1a0] sm:$0xff]  }
  0x51   : > { %7663 = vmatprep.mubr.msk.bf16.mxu1 %vm8951_vm0, %v8950_v1 }
  0x52   : > { %v1075_v58 = vor.u32 %v1074_v51, %v1071_v61  ;;  %v8671_v61 = vld [vmem:[%s11674_s3 + $0x198] sm:$0xff]  }
  0x54   : > { %v1085_v29 = vsel %vm807_vm3, %v1075_v58, %v1084_v9  ;;  %v6519_v9 = vcombine.low %v9309_v21, %v9341_v38 }
  0x57   : > { %7628 = vmatmul.mubr.bf16.vlgmr.msra.gmra.mxu0 %v819_v4  ;;  %v1076_v4 = vsel %vm807_vm3, %v1066_v37, %v1075_v58  ;;  %v8665_v37 = vld [vmem:[%s11674_s3 + $0x1a8] sm:$0xff]   ;;  %v8677_v58 = vld [vmem:[%s11674_s3 + $0x1d0] sm:$0xff]  }
  0x58   : > { %7664 = vmatmul.mubr.bf16.vlgmr.msra.gmra.mxu1 %v1049_v8  ;;  %7684 = vmatpush3.bf16.msra.mxu0 %v8636_v5  ;;  %v8658_v5 = vld [vmem:[%s9070_s10 + $0x8] sm:$0xff]   ;;  %v8655_v8 = vld [vmem:[%s11674_s3 + $0x100] sm:$0xff]  }
  0x59   : > { %7685 = vmatprep.subr.bf16.mxu0 %v8950_v1  ;;  %7631 = vmatprep.mubr.msk.bf16.mxu0 %vm8951_vm0, %v8950_v1  ;;  %v1438_v20 = vshrl.u32 %v8658_v5, 16 }
  0x5a   : > { %7667 = vmatprep.mubr.msk.bf16.mxu1 %vm8951_vm0, %v8950_v1  ;;  %7720 = vmatpush3.bf16.msra.mxu1 %v8639_v12  ;;  %v1440_v12 = vshll.u32 %v8658_v5, 16 }
  0x5b   : > { %7721 = vmatprep.subr.bf16.mxu1 %v8950_v1 }
  0x5c   : > { %7686 = vmatpush3.bf16.msra.mxu0 %v8637_v11  ;;  %v8659_v11 = vld [vmem:[%s9070_s10 + $0x10] sm:$0xff]   ;;  %v1442_v35 = vrot.slane %v1440_v12, 1  ;;  %v1681_v12 = vshll.u32 %v9512_v3, 16 }
  0x5d   : > { %7687 = vmatprep.subr.bf16.mxu0 %v8950_v1  ;;  %v1449_v31 = vshrl.u32 %v8659_v11, 16 }
  0x5e   : > { %7722 = vmatpush3.bf16.msra.mxu1 %v8641_v22  ;;  %v1445_v22 = vshll.u32 %v8659_v11, 16  ;;  %v1683_v38 = vrot.slane %v1681_v12, 1 }
  0x5f   : > { %7632 = vmatmul.mubr.bf16.gmra.mxu0 %v823_v24  ;;  %7723 = vmatprep.subr.bf16.mxu1 %v8950_v1 }
  0x60   : > { %7668 = vmatmul.mubr.bf16.gmra.mxu1 %v1058_v30  ;;  %7688 = vmatpush3.bf16.msra.mxu0 %v8640_v23  ;;  %v1443_v23 = vor.u32 %v1442_v35, %v1438_v20  ;;  %v1447_v24 = vrot.slane %v1445_v22, 1  ;;  %v1876_v22 = vrot.slane %v9512_v3, 1 }
  0x61   : > { %7635 = vmatprep.mubr.msk.bf16.mxu0 %vm8951_vm0, %v8950_v1  ;;  %7671 = vmatprep.mubr.msk.bf16.mxu1 %vm8951_vm0, %v8950_v1 }
  0x62   : > { %7689 = vmatprep.subr.bf16.mxu0 %v8950_v1  ;;  %7724 = vmatpush3.bf16.msra.mxu1 %v8644_v33  ;;  %v1448_v30 = vsel %vm1436_vm4, %v1443_v23, %v1447_v24  ;;  %v8664_v33 = vld [vmem:[%s11674_s3 + $0x1f8] sm:$0xff]   ;;  %v1451_v15 = vor.u32 %v1449_v31, %v1447_v24  ;;  %v8688_v31 = vld [vmem:[%s11674_s3 + $0x230] sm:$0xff]  }
  0x63   : > { %7725 = vmatprep.subr.bf16.mxu1 %v8950_v1  ;;  %v8687_v23 = vld [vmem:[%s11674_s3 + $0x238] sm:$0xff]  }
  0x64   : > { %7690 = vmatpush3.bf16.msra.mxu0 %v8643_v43  ;;  %v1455_v43 = vrot.slane %v1453_v32, 1  ;;  %v1687_v32 = vor.u32 %v1685_v26, %v1683_v38 }
  0x65   : > { %7691 = vmatprep.subr.bf16.mxu0 %v8950_v1 }
  0x66   : > { %7726 = vmatpush3.bf16.msra.mxu1 %v8646_v39  ;;  %v1456_v39 = vsel %vm1436_vm4, %v1451_v15, %v1455_v43  ;;  %v1459_v44 = vor.u32 %v1457_v25, %v1455_v43  ;;  %v8692_v43 = vld [vmem:[%s11674_s3 + $0x270] sm:$0xff]   ;;  %v8695_v25 = vld [vmem:[%s11674_s3 + $0x268] sm:$0xff]  }
  0x67   : > { %7636 = vmatmul.mubr.bf16.gmra.mxu0 %v827_v41  ;;  %7727 = vmatprep.subr.bf16.mxu1 %v8950_v1  ;;  %v8670_v41 = vld [vmem:[%s11674_s3 + $0x1e8] sm:$0xff]  }
  0x68   : > { %7672 = vmatmul.mubr.bf16.gmra.mxu1 %v1067_v50  ;;  %7692 = vmatpush3.bf16.msra.mxu0 %v8645_v42  ;;  %v1463_v42 = vrot.slane %v1461_v40, 1  ;;  %v6517_v50 = vcombine.low %v9262_v45, %v9278_v19  ;;  %v8676_v45 = vld [vmem:[%s11674_s3 + $0x190] sm:$0xff]  }
  0x69   : > { %7639 = vmatprep.mubr.msk.bf16.mxu0 %vm8951_vm0, %v8950_v1  ;;  %7675 = vmatprep.mubr.msk.bf16.mxu1 %vm8951_vm0, %v8950_v1  ;;  %v8680_v19 = vld [vmem:[%s9070_s10 + $0x30] ss:$0 sps:$4 sm:$0x11]  }
  0x6a   : > { %7693 = vmatprep.subr.bf16.mxu0 %v8950_v1  ;;  %7728 = vmatpush3.bf16.msra.mxu1 %v8648_v52  ;;  %v1464_v51 = vsel %vm1436_vm4, %v1459_v44, %v1463_v42  ;;  %v1465_v52 = vshrl.u32 %v8668_v48, 16  ;;  %v1477_v2 = vshll.u32 %v8680_v19, 16  ;;  %v9583_v40 = vld [vmem:[%s9070_s10 + $0x2c] sm:$0xff]   ;;  %v8694_v44 = vld [vmem:[%s11674_s3 + $0x220] sm:$0xff]  }
  0x6b   : > { %7729 = vmatprep.subr.bf16.mxu1 %v8950_v1  ;;  %v8700_v19 = vld [vmem:[%s11674_s3 + $0x210] sm:$0xff]  }
  0x6c   : > { %7694 = vmatpush3.bf16.msra.mxu0 %v8649_v54  ;;  %v1467_v53 = vor.u32 %v1465_v52, %v1463_v42  ;;  %v1471_v54 = vrot.slane %v1469_v56, 1  ;;  %v8699_v56 = vld [vmem:[%s11674_s3 + $0x258] sm:$0xff]  }
  0x6d   : > { %7695 = vmatprep.subr.bf16.mxu0 %v8950_v1 }
  0x6e   : > { %7730 = vmatpush3.bf16.msra.mxu1 %v8650_v13  ;;  %v6518_v13 = vcombine.low %v9281_v59, %v9303_v34  ;;  %v1472_v60 = vsel %vm1436_vm4, %v1467_v53, %v1471_v54  ;;  %v8681_v59 = vld [vmem:[%s11674_s3 + $0x1c8] sm:$0xff]   ;;  %v8682_v34 = vld [vmem:[%s11674_s3 + $0x180] sm:$0xff]  }
  0x6f   : > { %7640 = vmatmul.mubr.bf16.gmra.mxu0 %v831_v0  ;;  %7731 = vmatprep.subr.bf16.mxu1 %v8950_v1  ;;  %v1473_v0 = vshrl.u32 %v8674_v47, 16  ;;  %v1705_v47 = vshll.u32 %v9583_v40, 16 }
  0x70   : > { %7676 = vmatmul.mubr.bf16.gmra.mxu1 %v1076_v4  ;;  %7643 = vmatprep.mubr.msk.bf16.mxu0 %vm8951_vm0, %v8950_v1 }
  0x71   : > { %7679 = vmatprep.mubr.msk.bf16.mxu1 %vm8951_vm0, %v8950_v1  ;;  %7696 = vmatpush3.bf16.msra.mxu0 %v8651_v18  ;;  %v6574_v18 = vcombine.low %v1617_v55, %v1618_v57  ;;  %v1475_v5 = vor.u32 %v1473_v0, %v1471_v54  ;;  %v1882_v54 = vrot.slane %v9583_v40, 1  ;;  %v8701_v55 = vld [vmem:[%s11674_s3 + $0x250] sm:$0xff]  }
  0x72   : > { %7732 = vmatpush3.bf16.msra.mxu1 %v8654_v6  ;;  %7697 = vmatprep.subr.bf16.mxu0 %v8950_v1  ;;  %v1479_v6 = vrot.slane %v1477_v2, 1  ;;  %v8702_v2 = vld [vmem:[%s11674_s3 + $0x208] sm:$0xff]  }
  0x73   : > { %7733 = vmatprep.subr.bf16.mxu1 %v8950_v1  ;;  %v1676_v4 = vshll.u32 %v6574_v18, 16 }
  0x75   : > { %7698 = vmatpush3.bf16.msra.mxu0 %v8655_v8  ;;  %v1853_v8 = vld [vmem:[%s9070_s10 + $0xc] sm:$0xe]  ;;  %v1678_v11 = vrot.slane %v1676_v4, 1 }
  0x76   : > { %7734 = vmatpush3.bf16.msra.mxu1 %v8656_v10  ;;  %7755 = vmatprep.subr.bf16.mxu0 %v8950_v1  ;;  %v1674_v10 = vshrl.u32 %v6574_v18, 16  ;;  %v9526_v20 = vcombine.low %v1853_v8, %v1618_v57  ;;  %v2213_v57 = vld [vmem:[%s9427_s9] sm:$0xc] }
  0x77   : > { %7644 = vmatmul.mubr.bf16.gmra.mxu0 %v840_v17  ;;  %7791 = vmatprep.subr.bf16.mxu1 %v8950_v1  ;;  %v1480_v17 = vsel %vm1436_vm4, %v1475_v5, %v1479_v6  ;;  %v8705_v6 = vld [vmem:[%s11674_s3 + $0x200] sm:$0xff]  }
  0x78   : > { %7680 = vmatmul.mubr.bf16.gmra.mxu1 %v1085_v29  ;;  %7699 = vmatprep.mubr.msk.bf16.mxu0 %vm8951_vm0, %v8950_v1  ;;  %v1679_v21 = vor.u32 %v1678_v11, %v1674_v10  ;;  %v9535_v29 = vld [vmem:[%s9070_s10 + $0x1c] sm:$0xff]   ;;  %v1875_v35 = vrot.slane %v9526_v20, 1 }
  0x79   : > { %7735 = vmatprep.mubr.msk.bf16.mxu1 %vm8951_vm0, %v8950_v1  ;;  %v1878_v15 = vrot.slane %v9535_v29, 1 }
  0x7a   : > { %v1684_v24 = vsel %vm1436_vm4, %v1679_v21, %v1683_v38  ;;  %v8706_v38 = vld [vmem:[%s11674_s3 + $0x240] sm:$0xff]  }
  0x7f   : > { %7700 = vmatmul.mubr.bf16.vlgmr.msra.gmra.mxu0 %v6515_v27  ;;  %v1689_v27 = vshll.u32 %v9535_v29, 16 }
  0x80   : > { %7736 = vmatmul.mubr.bf16.vlgmr.msra.gmra.mxu1 %v1448_v30  ;;  %7756 = vmatpush3.bf16.msra.mxu0 %v8660_v28  ;;  %v1877_v28 = vsel %vm1874_vm5, %v1875_v35, %v1876_v22  ;;  %v8690_v30 = vld [vmem:[%s11674_s3 + $0x278] sm:$0xff]  }
  0x81   : > { %7757 = vmatprep.subr.bf16.mxu0 %v8950_v1  ;;  %7703 = vmatprep.mubr.msk.bf16.mxu0 %vm8951_vm0, %v8950_v1 }
  0x82   : > { %7739 = vmatprep.mubr.msk.bf16.mxu1 %vm8951_vm0, %v8950_v1  ;;  %7792 = vmatpush3.bf16.msra.mxu1 %v8664_v33  ;;  %v1691_v33 = vrot.slane %v1689_v27, 1 }
  0x83   : > { %7793 = vmatprep.subr.bf16.mxu1 %v8950_v1 }
  0x84   : > { %7758 = vmatpush3.bf16.msra.mxu0 %v8661_v14  ;;  %v9559_v14 = vld [vmem:[%s9070_s10 + $0x24] sm:$0xff]   ;;  %v1692_v48 = vsel %vm1436_vm4, %v1687_v32, %v1691_v33 }
  0x85   : > { %7759 = vmatprep.subr.bf16.mxu0 %v8950_v1  ;;  %v1880_v42 = vrot.slane %v9559_v14, 1 }
  0x86   : > { %7794 = vmatpush3.bf16.msra.mxu1 %v8666_v49  ;;  %v8691_v49 = vld [vmem:[%s11674_s3 + $0x228] sm:$0xff]  }
  0x87   : > { %7704 = vmatmul.mubr.bf16.gmra.mxu0 %v6516_v36  ;;  %7795 = vmatprep.subr.bf16.mxu1 %v8950_v1  ;;  %v1693_v36 = vshrl.u32 %v9535_v29, 16  ;;  %v1881_v52 = vsel %vm1874_vm5, %v1878_v15, %v1880_v42  ;;  %v1883_v0 = vsel %vm1874_vm5, %v1880_v42, %v1882_v54  ;;  %v8710_v29 = vld [vmem:[%s11674_s3 + $0x2b0] sm:$0xff]  }
  0x88   : > { %7740 = vmatmul.mubr.bf16.gmra.mxu1 %v1456_v39  ;;  %7760 = vmatpush3.bf16.msra.mxu0 %v8665_v37  ;;  %v1697_v37 = vshll.u32 %v9559_v14, 16  ;;  %v1879_v39 = vsel %vm1874_vm5, %v1876_v22, %v1878_v15  ;;  %v2053_v22 = vrot.slane %v1681_v12, 2 }
  0x89   : > { %7707 = vmatprep.mubr.msk.bf16.mxu0 %vm8951_vm0, %v8950_v1  ;;  %7743 = vmatprep.mubr.msk.bf16.mxu1 %vm8951_vm0, %v8950_v1 }
  0x8a   : > { %7761 = vmatprep.subr.bf16.mxu0 %v8950_v1  ;;  %7796 = vmatpush3.bf16.msra.mxu1 %v8670_v41  ;;  %v1695_v41 = vor.u32 %v1693_v36, %v1691_v33 }
  0x8b   : > { %7797 = vmatprep.subr.bf16.mxu1 %v8950_v1 }
  0x8c   : > { %7762 = vmatpush3.bf16.msra.mxu0 %v8669_v16  ;;  %v1699_v16 = vrot.slane %v1697_v37, 1 }
  0x8d   : > { %7763 = vmatprep.subr.bf16.mxu0 %v8950_v1 }
  0x8e   : > { %7798 = vmatpush3.bf16.msra.mxu1 %v8672_v46  ;;  %v8697_v46 = vld [vmem:[%s11674_s3 + $0x260] sm:$0xff]  }
  0x8f   : > { %7708 = vmatmul.mubr.bf16.gmra.mxu0 %v6517_v50  ;;  %7799 = vmatprep.subr.bf16.mxu1 %v8950_v1  ;;  %v1700_v50 = vsel %vm1436_vm4, %v1695_v41, %v1699_v16  ;;  %v2057_v41 = vrot.slane %v1689_v27, 2 }
  0x90   : > { %7744 = vmatmul.mubr.bf16.gmra.mxu1 %v1464_v51  ;;  %7764 = vmatpush3.bf16.msra.mxu0 %v8671_v61  ;;  %v8696_v61 = vld [vmem:[%s11674_s3 + $0x218] sm:$0xff]   ;;  %v1701_v51 = vshrl.u32 %v9559_v14, 16  ;;  %v8716_v14 = vld [vmem:[%s11674_s3 + $0x2a0] sm:$0xff]  }
  0x91   : > { %7711 = vmatprep.mubr.msk.bf16.mxu0 %vm8951_vm0, %v8950_v1  ;;  %7747 = vmatprep.mubr.msk.bf16.mxu1 %vm8951_vm0, %v8950_v1 }
  0x92   : > { %7765 = vmatprep.subr.bf16.mxu0 %v8950_v1  ;;  %7800 = vmatpush3.bf16.msra.mxu1 %v8675_v62  ;;  %v8703_v62 = vld [vmem:[%s9070_s10 + $0x34] ss:$0 sps:$4 sm:$0x11]   ;;  %v1703_v53 = vor.u32 %v1701_v51, %v1699_v16  ;;  %v9699_v16 = vld [vmem:[%s9427_s9 + $0x18] sm:$0xff]  }
  0x93   : > { %7801 = vmatprep.subr.bf16.mxu1 %v8950_v1  ;;  %v1713_v18 = vshll.u32 %v8703_v62, 16  ;;  %v1884_v5 = vrot.slane %v8703_v62, 1  ;;  %v2296_v27 = vshrl.u32 %v9699_v16, 16  ;;  %v8714_v62 = vld [vmem:[%s11674_s3 + $0x2f0] sm:$0xff]  }
  0x94   : > { %7766 = vmatpush3.bf16.msra.mxu0 %v8676_v45  ;;  %v1707_v45 = vrot.slane %v1705_v47, 1 }
  0x95   : > { %7767 = vmatprep.subr.bf16.mxu0 %v8950_v1  ;;  %v1715_v8 = vrot.slane %v1713_v18, 1  ;;  %v1885_v32 = vsel %vm1874_vm5, %v1882_v54, %v1884_v5  ;;  %v2298_v54 = vrot.slane %v2296_v27, 2  ;;  %v8719_v5 = vld [vmem:[%s11674_s3 + $0x2e0] sm:$0xff]  }
  0x96   : > { %7802 = vmatpush3.bf16.msra.mxu1 %v8677_v58  ;;  %v9634_v58 = vld [vmem:[%s9427_s9 + $0x4] sm:$0xf] }
  0x97   : > { %7712 = vmatmul.mubr.bf16.gmra.mxu0 %v6518_v13  ;;  %7803 = vmatprep.subr.bf16.mxu1 %v8950_v1  ;;  %v1709_v13 = vshrl.u32 %v9583_v40, 16 }
  0x98   : > { %7748 = vmatmul.mubr.bf16.gmra.mxu1 %v1472_v60  ;;  %7715 = vmatprep.mubr.msk.bf16.mxu0 %vm8951_vm0, %v8950_v1  ;;  %v9639_v60 = vld [vmem:[%s9427_s9 + $0x8] sm:$0xff]  }
  0x99   : > { %7751 = vmatprep.mubr.msk.bf16.mxu1 %vm8951_vm0, %v8950_v1  ;;  %7768 = vmatpush3.bf16.msra.mxu0 %v8678_v63  ;;  %v1708_v63 = vsel %vm1436_vm4, %v1703_v53, %v1707_v45  ;;  %v1711_v4 = vor.u32 %v1709_v13, %v1707_v45  ;;  %v2278_v10 = vshrl.u32 %v9639_v60, 16  ;;  %v2281_v11 = vshll.u32 %v9639_v60, 16  ;;  %v8713_v45 = vld [vmem:[%s11674_s3 + $0x2a8] sm:$0xff]  }
  0x9a   : > { %7804 = vmatpush3.bf16.msra.mxu1 %v8681_v59  ;;  %7769 = vmatprep.subr.bf16.mxu0 %v8950_v1  ;;  %v6654_v59 = vcombine.low %v2213_v57, %v9634_v58  ;;  %v2061_v53 = vrot.slane %v1697_v37, 2  ;;  %v8717_v57 = vld [vmem:[%s11674_s3 + $0x2e8] sm:$0xff]  }
  0x9b   : > { %7805 = vmatprep.subr.bf16.mxu1 %v8950_v1 }
  0x9c   : > { %v2273_v21 = vshll.u32 %v6654_v59, 16 }
  0x9d   : > { %7770 = vmatpush3.bf16.msra.mxu0 %v8682_v34  ;;  %v8704_v34 = vld [vmem:[%s11674_s3 + $0x248] sm:$0xff]  }
  0x9e   : > { %7806 = vmatpush3.bf16.msra.mxu1 %v8683_v7  ;;  %7827 = vmatprep.subr.bf16.mxu0 %v8950_v1  ;;  %v2045_v7 = vshrl.u32 %v9526_v20, 16  ;;  %v2275_v33 = vrot.slane %v2273_v21, 3  ;;  %v8722_v21 = vld [vmem:[%s11674_s3 + $0x290] sm:$0xff]  }
  0x9f   : > { %7716 = vmatmul.mubr.bf16.gmra.mxu0 %v6519_v9  ;;  %7863 = vmatprep.subr.bf16.mxu1 %v8950_v1  ;;  %v2048_v9 = vshll.u32 %v9526_v20, 16  ;;  %v2052_v20 = vrot.slane %v1685_v26, 1 }
  0xa0   : > { %7752 = vmatmul.mubr.bf16.gmra.mxu1 %v1480_v17  ;;  %7771 = vmatprep.mubr.msk.bf16.mxu0 %vm8951_vm0, %v8950_v1  ;;  %v2270_v17 = vshrl.u32 %v6654_v59, 16  ;;  %v2047_v35 = vrot.slane %v2045_v7, 1  ;;  %v9768_v7 = vld [vmem:[%s9427_s9 + $0x28] ss:$0 sps:$4 sm:$0x77]  }
  0xa1   : > { %7807 = vmatprep.mubr.msk.bf16.mxu1 %vm8951_vm0, %v8950_v1  ;;  %v2054_v12 = vor.u32 %v2053_v22, %v2052_v20 }
  0xa2   : > { %v2272_v26 = vrot.slane %v2270_v17, 2 }
  0xa4   : > { %v2276_v15 = vor.u32 %v2275_v33, %v2272_v26 }
  0xa7   : > { %7772 = vmatmul.mubr.bf16.vlgmr.msra.gmra.mxu0 %v1684_v24  ;;  %v2050_v24 = vrot.slane %v2048_v9, 2  ;;  %v8721_v9 = vld [vmem:[%s11674_s3 + $0x2d8] sm:$0xff]  }
  0xa8   : > { %7808 = vmatmul.mubr.bf16.vlgmr.msra.gmra.mxu1 %v1877_v28  ;;  %7828 = vmatpush3.bf16.msra.mxu0 %v8687_v23  ;;  %v1716_v23 = vsel %vm1436_vm4, %v1711_v4, %v1715_v8  ;;  %v2280_v28 = vrot.slane %v2278_v10, 2  ;;  %v8718_v4 = vld [vmem:[%s11674_s3 + $0x298] sm:$0xff]  }
  0xa9   : > { %7829 = vmatprep.subr.bf16.mxu0 %v8950_v1  ;;  %7775 = vmatprep.mubr.msk.bf16.mxu0 %vm8951_vm0, %v8950_v1  ;;  %v2051_v3 = vor.u32 %v2050_v24, %v2047_v35  ;;  %v2314_v24 = vshrl.u32 %v9768_v7, 16 }
  0xaa   : > { %7811 = vmatprep.mubr.msk.bf16.mxu1 %vm8951_vm0, %v8950_v1  ;;  %7864 = vmatpush3.bf16.msra.mxu1 %v8690_v30  ;;  %v2283_v30 = vrot.slane %v2281_v11, 3 }
  0xab   : > { %7865 = vmatprep.subr.bf16.mxu1 %v8950_v1 }
  0xac   : > { %7830 = vmatpush3.bf16.msra.mxu0 %v8688_v31  ;;  %v9680_v31 = vld [vmem:[%s9427_s9 + $0x10] sm:$0xff]  }
  0xad   : > { %7831 = vmatprep.subr.bf16.mxu0 %v8950_v1 }
  0xae   : > { %7866 = vmatpush3.bf16.msra.mxu1 %v8692_v43  ;;  %v2284_v43 = vor.u32 %v2283_v30, %v2280_v28  ;;  %v2317_v28 = vshll.u32 %v9768_v7, 16  ;;  %v2458_v30 = vld [vmem:[%s9427_s9] sm:$0x8] }
  0xaf   : > { %7776 = vmatmul.mubr.bf16.gmra.mxu0 %v1692_v48  ;;  %7867 = vmatprep.subr.bf16.mxu1 %v8950_v1  ;;  %v2287_v48 = vshrl.u32 %v9680_v31, 16 }
  0xb0   : > { %7812 = vmatmul.mubr.bf16.gmra.mxu1 %v1879_v39  ;;  %7832 = vmatpush3.bf16.msra.mxu0 %v8691_v49  ;;  %v2290_v49 = vshll.u32 %v9680_v31, 16  ;;  %v8709_v39 = vld [vmem:[%s11674_s3 + $0x2b8] sm:$0xff]   ;;  %v2285_v42 = vsel %vm606_vm2, %v2276_v15, %v2284_v43  ;;  %v2316_v15 = vrot.slane %v2314_v24, 2  ;;  %v2663_v24 = vrot.slane %v2296_v27, 3 }
  0xb1   : > { %7779 = vmatprep.mubr.msk.bf16.mxu0 %vm8951_vm0, %v8950_v1  ;;  %7815 = vmatprep.mubr.msk.bf16.mxu1 %vm8951_vm0, %v8950_v1 }
  0xb2   : > { %7833 = vmatprep.subr.bf16.mxu0 %v8950_v1  ;;  %7868 = vmatpush3.bf16.msra.mxu1 %v8695_v25  ;;  %v2056_v25 = vrot.slane %v1693_v36, 1 }
  0xb3   : > { %7869 = vmatprep.subr.bf16.mxu1 %v8950_v1 }
  0xb4   : > { %7834 = vmatpush3.bf16.msra.mxu0 %v8694_v44  ;;  %v2055_v44 = vsel %vm2043_vm6, %v2051_v3, %v2054_v12  ;;  %v2058_v36 = vor.u32 %v2057_v41, %v2056_v25  ;;  %v8727_v25 = vld [vmem:[%s11674_s3 + $0x2c8] sm:$0xff]   ;;  %v8728_v41 = vld [vmem:[%s11674_s3 + $0x280] sm:$0xff]  }
  0xb5   : > { %7835 = vmatprep.subr.bf16.mxu0 %v8950_v1 }
  0xb6   : > { %7870 = vmatpush3.bf16.msra.mxu1 %v8697_v46  ;;  %v2289_v46 = vrot.slane %v2287_v48, 2 }
  0xb7   : > { %7780 = vmatmul.mubr.bf16.gmra.mxu0 %v1700_v50  ;;  %7871 = vmatprep.subr.bf16.mxu1 %v8950_v1  ;;  %v2292_v50 = vrot.slane %v2290_v49, 3 }
  0xb8   : > { %7816 = vmatmul.mubr.bf16.gmra.mxu1 %v1881_v52  ;;  %7836 = vmatpush3.bf16.msra.mxu0 %v8696_v61  ;;  %v8712_v61 = vld [vmem:[%s11674_s3 + $0x2f8] sm:$0xff]  }
  0xb9   : > { %7783 = vmatprep.mubr.msk.bf16.mxu0 %vm8951_vm0, %v8950_v1  ;;  %7819 = vmatprep.mubr.msk.bf16.mxu1 %vm8951_vm0, %v8950_v1  ;;  %v2293_v52 = vor.u32 %v2292_v50, %v2289_v46 }
  0xba   : > { %7837 = vmatprep.subr.bf16.mxu0 %v8950_v1  ;;  %7872 = vmatpush3.bf16.msra.mxu1 %v8699_v56  ;;  %v2299_v56 = vshll.u32 %v9699_v16, 16 }
  0xbb   : > { %7873 = vmatprep.subr.bf16.mxu1 %v8950_v1  ;;  %v2294_v18 = vsel %vm606_vm2, %v2284_v43, %v2293_v52  ;;  %v2319_v43 = vrot.slane %v2317_v28, 3 }
  0xbc   : > { %7838 = vmatpush3.bf16.msra.mxu0 %v8700_v19  ;;  %v2060_v19 = vrot.slane %v1701_v51, 1  ;;  %v2301_v51 = vrot.slane %v2299_v56, 3 }
  0xbd   : > { %7839 = vmatprep.subr.bf16.mxu0 %v8950_v1 }
  0xbe   : > { %7874 = vmatpush3.bf16.msra.mxu1 %v8701_v55  ;;  %v2059_v55 = vsel %vm2043_vm6, %v2054_v12, %v2058_v36  ;;  %v2062_v37 = vor.u32 %v2061_v53, %v2060_v19 }
  0xbf   : > { %7784 = vmatmul.mubr.bf16.gmra.mxu0 %v1708_v63  ;;  %7875 = vmatprep.subr.bf16.mxu1 %v8950_v1  ;;  %v9742_v63 = vld [vmem:[%s9427_s9 + $0x20] sm:$0xff]  }
  0xc0   : > { %7820 = vmatmul.mubr.bf16.gmra.mxu1 %v1883_v0  ;;  %7787 = vmatprep.mubr.msk.bf16.mxu0 %vm8951_vm0, %v8950_v1  ;;  %v2302_v0 = vor.u32 %v2301_v51, %v2298_v54  ;;  %v2305_v59 = vshrl.u32 %v9742_v63, 16  ;;  %v2063_v8 = vsel %vm2043_vm6, %v2058_v36, %v2062_v37  ;;  %v2655_v36 = vrot.slane %v2278_v10, 3 }
  0xc1   : > { %7823 = vmatprep.mubr.msk.bf16.mxu1 %vm8951_vm0, %v8950_v1  ;;  %7840 = vmatpush3.bf16.msra.mxu0 %v8702_v2  ;;  %v2064_v2 = vrot.slane %v1709_v13, 1  ;;  %v8725_v13 = vld [vmem:[%s9070_s10 + $0x34] ss:$0 sps:$4 sm:$0x33]   ;;  %s9978_s10 = scalar_lea.vmem %s11673_s2, %s6401_s28 }
  0xc2   : > { %7876 = vmatpush3.bf16.msra.mxu1 %v8704_v34  ;;  %7841 = vmatprep.subr.bf16.mxu0 %v8950_v1  ;;  %v2308_v34 = vshll.u32 %v9742_v63, 16  ;;  %v2303_v17 = vsel %vm606_vm2, %v2293_v52, %v2302_v0  ;;  %v2307_v40 = vrot.slane %v2305_v59, 2  ;;  %v2072_v20 = vshll.u32 %v8725_v13, 16 }
  0xc3   : > { %7877 = vmatprep.subr.bf16.mxu1 %v8950_v1  ;;  %v2656_v52 = vrot.slane %v2281_v11, 4 }
  0xc4   : > { %v2074_v33 = vrot.slane %v2072_v20, 2 }
  0xc5   : > { %7842 = vmatpush3.bf16.msra.mxu0 %v8705_v6  ;;  %v2065_v6 = vrot.slane %v1705_v47, 2  ;;  %v2310_v47 = vrot.slane %v2308_v34, 3 }
  0xc6   : > { %7878 = vmatpush3.bf16.msra.mxu1 %v8706_v38  ;;  %7899 = vmatprep.subr.bf16.mxu0 %v8950_v1  ;;  %v2069_v38 = vshrl.u32 %v8725_v13, 16  ;;  %v2660_v13 = vrot.slane %v2290_v49, 4 }
  0xc7   : > { %7788 = vmatmul.mubr.bf16.gmra.mxu0 %v1716_v23  ;;  %7935 = vmatprep.subr.bf16.mxu1 %v8950_v1  ;;  %v2066_v35 = vor.u32 %v2065_v6, %v2064_v2  ;;  %v2311_v22 = vor.u32 %v2310_v47, %v2307_v40  ;;  %v8723_v23 = vld [vmem:[%s11674_s3 + $0x2d0] sm:$0xff]   ;;  %v2659_v6 = vrot.slane %v2287_v48, 3  ;;  %v2482_v47 = vrot.slane %v9680_v31, 3 }
  0xc8   : > { %7824 = vmatmul.mubr.bf16.gmra.mxu1 %v1885_v32  ;;  %7843 = vmatprep.mubr.msk.bf16.mxu0 %vm8951_vm0, %v8950_v1  ;;  %v8724_v32 = vld [vmem:[%s11674_s3 + $0x288] sm:$0xff]   ;;  %v2071_v26 = vrot.slane %v2069_v38, 1  ;;  %v8732_v40 = vld [vmem:[%s11674_s3 + $0x330] sm:$0xff]  }
  0xc9   : > { %7879 = vmatprep.mubr.msk.bf16.mxu1 %vm8951_vm0, %v8950_v1  ;;  %v2067_v3 = vsel %vm2043_vm6, %v2062_v37, %v2066_v35  ;;  %v2312_v12 = vsel %vm606_vm2, %v2302_v0, %v2311_v22  ;;  %v2661_v49 = vor.u32 %v2660_v13, %v2659_v6  ;;  %v8735_v31 = vld [vmem:[%s11674_s3 + $0x370] sm:$0xff]  }
  0xca   : > { %v8742_v13 = vld [vmem:[%s11674_s3 + $0x350] sm:$0xff]  }
  0xcf   : > { %7844 = vmatmul.mubr.bf16.vlgmr.msra.gmra.mxu0 %v2055_v44  ;;  %v2075_v44 = vor.u32 %v2074_v33, %v2071_v26 }
  0xd0   : > { %7880 = vmatmul.mubr.bf16.vlgmr.msra.gmra.mxu1 %v2285_v42  ;;  %7900 = vmatpush3.bf16.msra.mxu0 %v8709_v39  ;;  %v6684_v39 = vcombine.low %v2458_v30, %v9634_v58  ;;  %v8729_v58 = vld [vmem:[%s11674_s3 + $0x2c0] sm:$0xff]   ;;  %v2320_v42 = vor.u32 %v2319_v43, %v2316_v15 }
  0xd1   : > { %7901 = vmatprep.subr.bf16.mxu0 %v8950_v1  ;;  %7847 = vmatprep.mubr.msk.bf16.mxu0 %vm8951_vm0, %v8950_v1  ;;  %v8736_v15 = vld [vmem:[%s11674_s3 + $0x320] sm:$0xff]  }
  0xd2   : > { %7883 = vmatprep.mubr.msk.bf16.mxu1 %vm8951_vm0, %v8950_v1  ;;  %7936 = vmatpush3.bf16.msra.mxu1 %v8712_v61  ;;  %v2648_v46 = vshrl.u32 %v6684_v39, 16  ;;  %v2651_v50 = vshll.u32 %v6684_v39, 16  ;;  %v2479_v61 = vrot.slane %v6684_v39, 3  ;;  %v9884_v39 = vld [vmem:[%s9427_s9 + $0x28] ss:$0 sps:$4 sm:$0xff]  }
  0xd3   : > { %7937 = vmatprep.subr.bf16.mxu1 %v8950_v1 }
  0xd4   : > { %7902 = vmatpush3.bf16.msra.mxu0 %v8710_v29  ;;  %v2480_v29 = vrot.slane %v9639_v60, 3  ;;  %v2650_v19 = vrot.slane %v2648_v46, 3  ;;  %v2653_v53 = vrot.slane %v2651_v50, 4  ;;  %v8738_v50 = vld [vmem:[%s11674_s3 + $0x318] sm:$0xff]  }
  0xd5   : > { %7903 = vmatprep.subr.bf16.mxu0 %v8950_v1 }
  0xd6   : > { %7938 = vmatpush3.bf16.msra.mxu1 %v8714_v62  ;;  %v2076_v62 = vsel %vm2043_vm6, %v2066_v35, %v2075_v44  ;;  %v2654_v11 = vor.u32 %v2653_v53, %v2650_v19  ;;  %v2481_v0 = vsel %vm465_vm1, %v2479_v61, %v2480_v29  ;;  %v2483_v30 = vsel %vm465_vm1, %v2480_v29, %v2482_v47 }
  0xd7   : > { %7848 = vmatmul.mubr.bf16.gmra.mxu0 %v2059_v55  ;;  %7939 = vmatprep.subr.bf16.mxu1 %v8950_v1  ;;  %v2486_v61 = vrot.slane %v9742_v63, 3  ;;  %v2667_v29 = vrot.slane %v2305_v59, 3  ;;  %v2672_v53 = vshrl.u32 %v9884_v39, 16  ;;  %v10011_v63 = vld [vmem:[%s9427_s9 + $0x20] sm:$0xf] }
  0xd8   : > { %7884 = vmatmul.mubr.bf16.gmra.mxu1 %v2294_v18  ;;  %7904 = vmatpush3.bf16.msra.mxu0 %v8713_v45  ;;  %v2321_v45 = vsel %vm606_vm2, %v2311_v22, %v2320_v42  ;;  %v8734_v22 = vld [vmem:[%s11674_s3 + $0x328] sm:$0xff]   ;;  %v8739_v42 = vld [vmem:[%s11674_s3 + $0x360] sm:$0xff]  }
  0xd9   : > { %7851 = vmatprep.mubr.msk.bf16.mxu0 %vm8951_vm0, %v8950_v1  ;;  %7887 = vmatprep.mubr.msk.bf16.mxu1 %vm8951_vm0, %v8950_v1 }
  0xda   : > { %7905 = vmatprep.subr.bf16.mxu0 %v8950_v1  ;;  %7940 = vmatpush3.bf16.msra.mxu1 %v8717_v57  ;;  %v2657_v57 = vor.u32 %v2656_v52, %v2655_v36  ;;  %v2668_v36 = vrot.slane %v2308_v34, 4 }
  0xdb   : > { %7941 = vmatprep.subr.bf16.mxu1 %v8950_v1 }
  0xdc   : > { %7906 = vmatpush3.bf16.msra.mxu0 %v8716_v14  ;;  %v8731_v14 = vld [vmem:[%s11674_s3 + $0x338] sm:$0xff]   ;;  %v2662_v33 = vsel %vm807_vm3, %v2657_v57, %v2661_v49 }
  0xdd   : > { %7907 = vmatprep.subr.bf16.mxu0 %v8950_v1 }
  0xde   : > { %7942 = vmatpush3.bf16.msra.mxu1 %v8719_v5  ;;  %v2658_v5 = vsel %vm807_vm3, %v2654_v11, %v2657_v57  ;;  %v9925_v11 = vld [vmem:[%s9427_s9 + $0x8] sm:$0xf] }
  0xdf   : > { %7852 = vmatmul.mubr.bf16.gmra.mxu0 %v2063_v8  ;;  %7943 = vmatprep.subr.bf16.mxu1 %v8950_v1 }
  0xe0   : > { %7888 = vmatmul.mubr.bf16.gmra.mxu1 %v2303_v17  ;;  %7908 = vmatpush3.bf16.msra.mxu0 %v8718_v4 }
  0xe1   : > { %7855 = vmatprep.mubr.msk.bf16.mxu0 %vm8951_vm0, %v8950_v1  ;;  %7891 = vmatprep.mubr.msk.bf16.mxu1 %vm8951_vm0, %v8950_v1 }
  0xe2   : > { %7909 = vmatprep.subr.bf16.mxu0 %v8950_v1  ;;  %7944 = vmatpush3.bf16.msra.mxu1 %v8721_v9  ;;  %v8733_v9 = vld [vmem:[%s11674_s3 + $0x378] sm:$0xff]  }
  0xe3   : > { %7945 = vmatprep.subr.bf16.mxu1 %v8950_v1 }
  0xe4   : > { %7910 = vmatpush3.bf16.msra.mxu0 %v8722_v21 }
  0xe5   : > { %7911 = vmatprep.subr.bf16.mxu0 %v8950_v1 }
  0xe6   : > { %7946 = vmatpush3.bf16.msra.mxu1 %v8723_v23  ;;  %v2484_v23 = vrot.slane %v9699_v16, 3  ;;  %v8745_v16 = vld [vmem:[%s11674_s3 + $0x348] sm:$0xff]  }
  0xe7   : > { %7856 = vmatmul.mubr.bf16.gmra.mxu0 %v2067_v3  ;;  %7947 = vmatprep.subr.bf16.mxu1 %v8950_v1  ;;  %v2664_v3 = vrot.slane %v2299_v56, 4 }
  0xe8   : > { %7892 = vmatmul.mubr.bf16.gmra.mxu1 %v2312_v12  ;;  %7859 = vmatprep.mubr.msk.bf16.mxu0 %vm8951_vm0, %v8950_v1  ;;  %v8737_v12 = vld [vmem:[%s11674_s3 + $0x368] sm:$0xff]  }
  0xe9   : > { %7895 = vmatprep.mubr.msk.bf16.mxu1 %vm8951_vm0, %v8950_v1  ;;  %7912 = vmatpush3.bf16.msra.mxu0 %v8724_v32  ;;  %v9892_v44 = vor.u32 %v2664_v3, %v2663_v24  ;;  %v9970_v24 = vld [vmem:[%s9427_s9 + $0x18] sm:$0xf] }
  0xea   : > { %7948 = vmatpush3.bf16.msra.mxu1 %v8727_v25  ;;  %7913 = vmatprep.subr.bf16.mxu0 %v8950_v1 }
  0xeb   : > { %7949 = vmatprep.subr.bf16.mxu1 %v8950_v1  ;;  %v2666_v34 = vsel %vm807_vm3, %v2661_v49, %v9892_v44  ;;  %v2487_v49 = vsel %vm465_vm1, %v2484_v23, %v2486_v61 }
  0xed   : > { %7914 = vmatpush3.bf16.msra.mxu0 %v8728_v41 }
  0xee   : > { %7950 = vmatpush3.bf16.msra.mxu1 %v8729_v58  ;;  %7971 = vmatprep.subr.bf16.mxu0 %v8950_v1 }
  0xef   : > { %v564_v54 = vpop.f32.mrf.mxu0  ;;  %7860 = vmatmul.mubr.bf16.gmra.mxu0 %v2076_v62  ;;  %8007 = vmatprep.subr.bf16.mxu1 %v8950_v1  ;;  %v2485_v62 = vsel %vm465_vm1, %v2482_v47, %v2484_v23 }
  0xf0   : > { %v747_v55 = vpop.f32.mrf.mxu1  ;;  %7896 = vmatmul.mubr.bf16.gmra.mxu1 %v2321_v45  ;;  %7915 = vmatprep.mubr.msk.bf16.mxu0 %vm8951_vm0, %v8950_v1  ;;  %v8740_v45 = vld [vmem:[%s11674_s3 + $0x358] sm:$0xff]  }
  0xf1   : > { %v9830_v60 = vadd.f32 %v747_v55, %v564_v54  ;;  %v7557_v10 = vpop.f32.mrf.mxu0  ;;  %7951 = vmatprep.mubr.msk.bf16.mxu1 %vm8951_vm0, %v8950_v1  ;;  %v2816_v54 = vld [vmem:[%s9427_s9 + $0x4] sm:$0x8] }
  0xf2   : > { %v7593_v18 = vpop.f32.mrf.mxu1  ;;  %v8741_v10 = vld [vmem:[%s11674_s3 + $0x310] sm:$0xff]  }
  0xf3   : > { %v567_v51 = vpop.f32.mrf.mxu0  ;;  %v2675_v18 = vshll.u32 %v9884_v39, 16 }
  0xf4   : > { %v750_v37 = vpop.f32.mrf.mxu1 }
  0xf5   : > { %v9838_v2 = vadd.f32 %v750_v37, %v567_v51  ;;  %v7558_v4 = vpop.f32.mrf.mxu0  ;;  %v9930_v51 = vld [vmem:[%s9427_s9 + $0xc] sm:$0xf] }
  0xf6   : > { %v7594_v8 = vpop.f32.mrf.mxu1 }
  0xf7   : > { %v572_v17 = vpop.f32.mrf.mxu0  ;;  %7916 = vmatmul.mubr.bf16.vlgmr.msra.gmra.mxu0 %v2481_v0  ;;  %v6734_v8 = vcombine.low %v2816_v54, %v9925_v11  ;;  %v10006_v54 = vld [vmem:[%s9427_s9 + $0x1c] sm:$0xf] }
  0xf8   : > { %v755_v21 = vpop.f32.mrf.mxu1  ;;  %7952 = vmatmul.mubr.bf16.vlgmr.msra.gmra.mxu1 %v2658_v5  ;;  %7972 = vmatpush3.bf16.msra.mxu0 %v8731_v14  ;;  %v9933_v14 = vld [vmem:[%s9427_s9 + $0x10] sm:$0xf]  ;;  %v9941_v5 = vor.u32 %v2668_v36, %v2667_v29 }
  0xf9   : > { %v9852_v48 = vadd.f32 %v755_v21, %v572_v17  ;;  %v7561_v38 = vpop.f32.mrf.mxu0  ;;  %7973 = vmatprep.subr.bf16.mxu0 %v8950_v1  ;;  %7919 = vmatprep.mubr.msk.bf16.mxu0 %vm8951_vm0, %v8950_v1  ;;  %v8743_v17 = vld [vmem:[%s11674_s3 + $0x308] sm:$0xff]   ;;  %v6735_v47 = vcombine.low %v9930_v51, %v9933_v14  ;;  %v9955_v21 = vld [vmem:[%s9427_s9 + $0x14] sm:$0xf]  ;;  %v2873_v23 = vshrl.u32 %v6734_v8, 16 }
  0xfa   : > { %v7597_v20 = vpop.f32.mrf.mxu1  ;;  %7955 = vmatprep.mubr.msk.bf16.mxu1 %vm8951_vm0, %v8950_v1  ;;  %8008 = vmatpush3.bf16.msra.mxu1 %v8733_v9 }
  0xfb   : > { %v575_v35 = vpop.f32.mrf.mxu0  ;;  %8009 = vmatprep.subr.bf16.mxu1 %v8950_v1  ;;  %v2677_v20 = vrot.slane %v2675_v18, 4  ;;  %v2884_v3 = vshll.u32 %v6735_v47, 16 }
  0xfc   : > { %v758_v28 = vpop.f32.mrf.mxu1  ;;  %7974 = vmatpush3.bf16.msra.mxu0 %v8732_v40  ;;  %v2674_v40 = vrot.slane %v2672_v53, 3 }
  0xfd   : > { %v9870_v32 = vadd.f32 %v758_v28, %v575_v35  ;;  %v7562_v26 = vpop.f32.mrf.mxu0  ;;  %7975 = vmatprep.subr.bf16.mxu0 %v8950_v1  ;;  %v2886_v29 = vrot.slane %v2884_v3, 4 }
  0xfe   : > { %v7598_v27 = vpop.f32.mrf.mxu1  ;;  %8010 = vmatpush3.bf16.msra.mxu1 %v8735_v31 }
  0xff   : > { %v580_v43 = vpop.f32.mrf.mxu0  ;;  %7920 = vmatmul.mubr.bf16.gmra.mxu0 %v2483_v30  ;;  %8011 = vmatprep.subr.bf16.mxu1 %v8950_v1  ;;  %v2876_v30 = vshll.u32 %v6734_v8, 16  ;;  %v2488_v27 = vrot.slane %v9768_v7, 3  ;;  %v8747_v7 = vld [vmem:[%s11674_s3 + $0x340] sm:$0xff]  }
 0x100   : > { %v763_v25 = vpop.f32.mrf.mxu1  ;;  %7956 = vmatmul.mubr.bf16.gmra.mxu1 %v2662_v33  ;;  %7976 = vmatpush3.bf16.msra.mxu0 %v8734_v22  ;;  %v2670_v22 = vsel %vm807_vm3, %v9892_v44, %v9941_v5  ;;  %v2881_v33 = vshrl.u32 %v6735_v47, 16 }
 0x101   : > { %v9886_v56 = vadd.f32 %v763_v25, %v580_v43  ;;  %v7565_v41 = vpop.f32.mrf.mxu0  ;;  %7923 = vmatprep.mubr.msk.bf16.mxu0 %vm8951_vm0, %v8950_v1  ;;  %7959 = vmatprep.mubr.msk.bf16.mxu1 %vm8951_vm0, %v8950_v1  ;;  %v2678_v25 = vor.u32 %v2677_v20, %v2674_v40 }
 0x102   : > { %v7601_v58 = vpop.f32.mrf.mxu1  ;;  %7977 = vmatprep.subr.bf16.mxu0 %v8950_v1  ;;  %8012 = vmatpush3.bf16.msra.mxu1 %v8737_v12  ;;  %v8746_v41 = vld [vmem:[%s11674_s3 + $0x300] sm:$0xff]  }
 0x103   : > { %v583_v46 = vpop.f32.mrf.mxu0  ;;  %8013 = vmatprep.subr.bf16.mxu1 %v8950_v1  ;;  %v2679_v53 = vsel %vm807_vm3, %v9941_v5, %v2678_v25  ;;  %v8756_v25 = vld [vmem:[%s11674_s3 + $0x3a8] sm:$0xff]  }
 0x104   : > { %v766_v52 = vpop.f32.mrf.mxu1  ;;  %7978 = vmatpush3.bf16.msra.mxu0 %v8736_v15  ;;  %v6736_v15 = vcombine.low %v9955_v21, %v9970_v24 }
 0x105   : > { %v9914_v19 = vadd.f32 %v766_v52, %v583_v46  ;;  %v7566_v59 = vpop.f32.mrf.mxu0  ;;  %7979 = vmatprep.subr.bf16.mxu0 %v8950_v1  ;;  %v2878_v46 = vrot.slane %v2876_v30, 4  ;;  %v2489_v52 = vsel %vm465_vm1, %v2486_v61, %v2488_v27 }
 0x106   : > { %v7602_v55 = vpop.f32.mrf.mxu1  ;;  %8014 = vmatpush3.bf16.msra.mxu1 %v8739_v42  ;;  %v2875_v42 = vrot.slane %v2873_v23, 3 }
 0x107   : > { %v588_v57 = vpop.f32.mrf.mxu0  ;;  %7924 = vmatmul.mubr.bf16.gmra.mxu0 %v2485_v62  ;;  %8015 = vmatprep.subr.bf16.mxu1 %v8950_v1  ;;  %v2890_v62 = vshrl.u32 %v6736_v15, 16 }
 0x108   : > { %v771_v37 = vpop.f32.mrf.mxu1  ;;  %7960 = vmatmul.mubr.bf16.gmra.mxu1 %v2666_v34  ;;  %7980 = vmatpush3.bf16.msra.mxu0 %v8738_v50  ;;  %v2883_v50 = vrot.slane %v2881_v33, 3  ;;  %v2879_v18 = vor.u32 %v2878_v46, %v2875_v42  ;;  %v10041_v33 = vld [vmem:[%s9427_s9 + $0x28] sm:$0xf] }
 0x109   : > { %v9935_v0 = vadd.f32 %v771_v37, %v588_v57  ;;  %v7569_v4 = vpop.f32.mrf.mxu0  ;;  %7927 = vmatprep.mubr.msk.bf16.mxu0 %vm8951_vm0, %v8950_v1  ;;  %7963 = vmatprep.mubr.msk.bf16.mxu1 %vm8951_vm0, %v8950_v1 }
 0x10a   : > { %v7605_v6 = vpop.f32.mrf.mxu1  ;;  %7981 = vmatprep.subr.bf16.mxu0 %v8950_v1  ;;  %8016 = vmatpush3.bf16.msra.mxu1 %v8740_v45  ;;  %v2893_v45 = vshll.u32 %v6736_v15, 16  ;;  %v2887_v37 = vor.u32 %v2886_v29, %v2883_v50  ;;  %v6765_v50 = vcombine.low %v9933_v14, %v9955_v21 }
 0x10b   : > { %v591_v9 = vpop.f32.mrf.mxu0  ;;  %8017 = vmatprep.subr.bf16.mxu1 %v8950_v1 }
 0x10c   : > { %v774_v38 = vpop.f32.mrf.mxu1  ;;  %7982 = vmatpush3.bf16.msra.mxu0 %v8741_v10 }
 0x10d   : > { %v9963_v31 = vadd.f32 %v774_v38, %v591_v9  ;;  %v7570_v35 = vpop.f32.mrf.mxu0  ;;  %7983 = vmatprep.subr.bf16.mxu0 %v8950_v1  ;;  %v2892_v9 = vrot.slane %v2890_v62, 3  ;;  %v2888_v38 = vsel %vm807_vm3, %v2879_v18, %v2887_v37 }
 0x10e   : > { %v7606_v28 = vpop.f32.mrf.mxu1  ;;  %8018 = vmatpush3.bf16.msra.mxu1 %v8742_v13  ;;  %v8751_v13 = vld [vmem:[%s11674_s3 + $0x3b8] sm:$0xff]  }
 0x10f   : > { %v596_v26 = vpop.f32.mrf.mxu0  ;;  %7928 = vmatmul.mubr.bf16.gmra.mxu0 %v2487_v49  ;;  %8019 = vmatprep.subr.bf16.mxu1 %v8950_v1  ;;  %v6764_v49 = vcombine.low %v9925_v11, %v9930_v51  ;;  %v8755_v35 = vld [vmem:[%s11674_s3 + $0x3f8] sm:$0xff]  }
 0x110   : > { %v779_v12 = vpop.f32.mrf.mxu1  ;;  %7964 = vmatmul.mubr.bf16.gmra.mxu1 %v2670_v22  ;;  %7931 = vmatprep.mubr.msk.bf16.mxu0 %vm8951_vm0, %v8950_v1 }
 0x111   : > { %v9986_v43 = vadd.f32 %v779_v12, %v596_v26  ;;  %v7573_v39 = vpop.f32.mrf.mxu0  ;;  %7967 = vmatprep.mubr.msk.bf16.mxu1 %vm8951_vm0, %v8950_v1  ;;  %7984 = vmatpush3.bf16.msra.mxu0 %v8743_v17  ;;  %v2895_v17 = vrot.slane %v2893_v45, 4  ;;  %v10038_v26 = vld [vmem:[%s9427_s9 + $0x24] sm:$0xf] }
 0x112   : > { %v7609_v44 = vpop.f32.mrf.mxu1  ;;  %8020 = vmatpush3.bf16.msra.mxu1 %v8745_v16  ;;  %7985 = vmatprep.subr.bf16.mxu0 %v8950_v1  ;;  %v8752_v16 = vld [vmem:[%s11674_s3 + $0x3b0] sm:$0xff]  }
 0x113   : > { %v599_v58 = vpop.f32.mrf.mxu0  ;;  %8021 = vmatprep.subr.bf16.mxu1 %v8950_v1  ;;  %v2896_v3 = vor.u32 %v2895_v17, %v2892_v9 }
 0x114   : > { %v782_v36 = vpop.f32.mrf.mxu1 }
 0x115   : > { %v10001_v59 = vadd.f32 %v782_v36, %v599_v58  ;;  %v7574_v34 = vpop.f32.mrf.mxu0  ;;  %7986 = vmatpush3.bf16.msra.mxu0 %v8746_v41  ;;  %v2897_v46 = vsel %vm807_vm3, %v2887_v37, %v2896_v3  ;;  %v8761_v36 = vld [vmem:[%s11674_s3 + $0x3e8] sm:$0xff]  }
 0x116   : > { %v7610_v55 = vpop.f32.mrf.mxu1  ;;  %8022 = vmatpush3.bf16.msra.mxu1 %v8747_v7  ;;  %8043 = vmatprep.subr.bf16.mxu0 %v8950_v1  ;;  %v6738_v7 = vcombine.low %v10038_v26, %v10041_v33  ;;  %v10075_v34 = vld [vmem:[%s9427_s9 + $0x2c] sm:$0xf] }
 0x117   : > { %v928_v10 = vpop.f32.mrf.mxu0  ;;  %7932 = vmatmul.mubr.bf16.gmra.mxu0 %v2489_v52  ;;  %8079 = vmatprep.subr.bf16.mxu1 %v8950_v1 }
 0x118   : > { %v967_v61 = vadd.f32 %v928_v10, %v9830_v60  ;;  %v1173_v57 = vpop.f32.mrf.mxu1  ;;  %7968 = vmatmul.mubr.bf16.gmra.mxu1 %v2679_v53  ;;  %7987 = vmatprep.mubr.msk.bf16.mxu0 %vm8951_vm0, %v8950_v1  ;;  %v6737_v60 = vcombine.low %v10006_v54, %v10011_v63  ;;  %v2908_v14 = vshrl.u32 %v6738_v7, 16  ;;  %v2911_v21 = vshll.u32 %v6738_v7, 16  ;;  %v8775_v7 = vld [vmem:[%s9427_s9 + $0x8] sm:$0xff]  }
 0x119   : > { %v7629_v4 = vpop.f32.mrf.mxu0  ;;  %8023 = vmatprep.mubr.msk.bf16.mxu1 %vm8951_vm0, %v8950_v1 }
 0x11a   : > { %v10018_v5 = vadd.f32 %v1173_v57, %v967_v61  ;;  %v7665_v6 = vpop.f32.mrf.mxu1  ;;  %v2899_v23 = vshrl.u32 %v6737_v60, 16  ;;  %v8762_v4 = vld [vmem:[%s11674_s3 + $0x398] sm:$0xff]  }
 0x11b   : > { %v931_v8 = vpop.f32.mrf.mxu0  ;;  %v2910_v6 = vrot.slane %v2908_v14, 3 }
 0x11c   : > { %v968_v40 = vadd.f32 %v931_v8, %v9838_v2  ;;  %v1176_v47 = vpop.f32.mrf.mxu1  ;;  %v2902_v2 = vshll.u32 %v6737_v60, 16  ;;  %v2901_v41 = vrot.slane %v2899_v23, 3  ;;  %v6739_v60 = vcombine.low %v10075_v34, %v10075_v34  ;;  %v8767_v23 = vld [vmem:[%s11674_s3 + $0x390] sm:$0xff]  }
 0x11d   : > { %v7630_v20 = vpop.f32.mrf.mxu0 }
 0x11e   : > { %v10032_v22 = vadd.f32 %v1176_v47, %v968_v40  ;;  %v7666_v28 = vpop.f32.mrf.mxu1  ;;  %v2904_v44 = vrot.slane %v2902_v2, 4  ;;  %v6766_v40 = vcombine.low %v9970_v24, %v10006_v54  ;;  %v8766_v20 = vld [vmem:[%s11674_s3 + $0x3d8] sm:$0xff]  }
 0x11f   : > { %v936_v30 = vpop.f32.mrf.mxu0  ;;  %7988 = vmatmul.mubr.bf16.vlgmr.msra.gmra.mxu0 %v2888_v38  ;;  %v2920_v28 = vshll.u32 %v6739_v60, 16 }
 0x120   : > { %v969_v11 = vadd.f32 %v936_v30, %v9852_v48  ;;  %v1181_v51 = vpop.f32.mrf.mxu1  ;;  %8024 = vmatmul.mubr.bf16.vlgmr.msra.gmra.mxu1 %v6764_v49  ;;  %8044 = vmatpush3.bf16.msra.mxu0 %v8751_v13  ;;  %v8757_v48 = vld [vmem:[%s11674_s3 + $0x3f0] sm:$0xff]   ;;  %v2905_v10 = vor.u32 %v2904_v44, %v2901_v41  ;;  %v2913_v13 = vrot.slane %v2911_v21, 4  ;;  %v6767_v44 = vcombine.low %v10011_v63, %v10038_v26  ;;  %v8772_v63 = vld [vmem:[%s11674_s3 + $0x3c8] sm:$0xff]   ;;  %v8773_v21 = vld [vmem:[%s11674_s3 + $0x380] sm:$0xff]  }
 0x121   : > { %v7633_v12 = vpop.f32.mrf.mxu0  ;;  %8045 = vmatprep.subr.bf16.mxu0 %v8950_v1  ;;  %7991 = vmatprep.mubr.msk.bf16.mxu0 %vm8951_vm0, %v8950_v1 }
 0x122   : > { %v10047_v27 = vadd.f32 %v1181_v51, %v969_v11  ;;  %v7669_v15 = vpop.f32.mrf.mxu1  ;;  %8027 = vmatprep.mubr.msk.bf16.mxu1 %vm8951_vm0, %v8950_v1  ;;  %8080 = vmatpush3.bf16.msra.mxu1 %v8755_v35  ;;  %v2906_v17 = vsel %vm807_vm3, %v2896_v3, %v2905_v10  ;;  %v3455_v51 = vld [vmem:[%s9427_s9 + $0xc] sm:$0xf]  ;;  %v10121_v3 = vld [vmem:[%s9427_s9 + $0x10] sm:$0xf] }
 0x123   : > { %v939_v39 = vpop.f32.mrf.mxu0  ;;  %8081 = vmatprep.subr.bf16.mxu1 %v8950_v1 }
 0x124   : > { %v970_v58 = vadd.f32 %v939_v39, %v9870_v32  ;;  %v1184_v42 = vpop.f32.mrf.mxu1  ;;  %8046 = vmatpush3.bf16.msra.mxu0 %v8752_v16  ;;  %v8760_v32 = vld [vmem:[%s11674_s3 + $0x3a0] sm:$0xff]   ;;  %v2914_v16 = vor.u32 %v2913_v13, %v2910_v6  ;;  %v3276_v13 = vshrl.u32 %v8775_v7, 16 }
 0x125   : > { %v7634_v29 = vpop.f32.mrf.mxu0  ;;  %8047 = vmatprep.subr.bf16.mxu0 %v8950_v1 }
 0x126   : > { %v10068_v52 = vadd.f32 %v1184_v42, %v970_v58  ;;  %v7670_v62 = vpop.f32.mrf.mxu1  ;;  %8082 = vmatpush3.bf16.msra.mxu1 %v8757_v48  ;;  %v2922_v48 = vrot.slane %v2920_v28, 4  ;;  %v2915_v41 = vsel %vm807_vm3, %v2905_v10, %v2914_v16  ;;  %v8769_v42 = vld [vmem:[%s11674_s3 + $0x388] sm:$0xff]   ;;  %v10175_v28 = vld [vmem:[%s9427_s9 + $0x18] sm:$0xff]  }
 0x127   : > { %v944_v45 = vpop.f32.mrf.mxu0  ;;  %7992 = vmatmul.mubr.bf16.gmra.mxu0 %v2897_v46  ;;  %8083 = vmatprep.subr.bf16.mxu1 %v8950_v1  ;;  %v6823_v46 = vcombine.low %v3455_v51, %v10121_v3 }
 0x128   : > { %v971_v53 = vadd.f32 %v944_v45, %v9886_v56  ;;  %v1189_v55 = vpop.f32.mrf.mxu1  ;;  %8028 = vmatmul.mubr.bf16.gmra.mxu1 %v6765_v50  ;;  %8048 = vmatpush3.bf16.msra.mxu0 %v8756_v25  ;;  %v8763_v56 = vld [vmem:[%s11674_s3 + $0x3e0] sm:$0xff]   ;;  %v3278_v45 = vshll.u32 %v8775_v7, 16 }
 0x129   : > { %v7637_v61 = vpop.f32.mrf.mxu0  ;;  %7995 = vmatprep.mubr.msk.bf16.mxu0 %vm8951_vm0, %v8950_v1  ;;  %8031 = vmatprep.mubr.msk.bf16.mxu1 %vm8951_vm0, %v8950_v1 }
 0x12a   : > { %v10082_v57 = vadd.f32 %v1189_v55, %v971_v53  ;;  %v7673_v18 = vpop.f32.mrf.mxu1  ;;  %8049 = vmatprep.subr.bf16.mxu0 %v8950_v1  ;;  %8084 = vmatpush3.bf16.msra.mxu1 %v8761_v36  ;;  %v10152_v53 = vld [vmem:[%s9427_s9 + $0x14] sm:$0xff]   ;;  %v8774_v61 = vld [vmem:[%s11674_s3 + $0x3c0] sm:$0xff]  }
 0x12b   : > { %v947_v37 = vpop.f32.mrf.mxu0  ;;  %8085 = vmatprep.subr.bf16.mxu1 %v8950_v1 }
 0x12c   : > { %v972_v8 = vadd.f32 %v947_v37, %v9914_v19  ;;  %v1192_v9 = vpop.f32.mrf.mxu1  ;;  %8050 = vmatpush3.bf16.msra.mxu0 %v8760_v32  ;;  %v2917_v19 = vshrl.u32 %v6739_v60, 16  ;;  %v10144_v32 = vld [vmem:[%s9427_s9 + $0x10] sm:$0xff]   ;;  %v6768_v37 = vcombine.low %v10041_v33, %v10075_v34  ;;  %v3280_v60 = vrot.slane %v3278_v45, 1 }
 0x12d   : > { %v7638_v47 = vpop.f32.mrf.mxu0  ;;  %8051 = vmatprep.subr.bf16.mxu0 %v8950_v1 }
 0x12e   : > { %v10099_v38 = vadd.f32 %v1192_v9, %v972_v8  ;;  %v7674_v49 = vpop.f32.mrf.mxu1  ;;  %8086 = vmatpush3.bf16.msra.mxu1 %v8763_v56  ;;  %v2919_v15 = vrot.slane %v2917_v19, 3  ;;  %v3283_v8 = vshll.u32 %v10144_v32, 16  ;;  %v3519_v47 = vshll.u32 %v10152_v53, 16 }
 0x12f   : > { %v952_v35 = vpop.f32.mrf.mxu0  ;;  %7996 = vmatmul.mubr.bf16.gmra.mxu0 %v2906_v17  ;;  %8087 = vmatprep.subr.bf16.mxu1 %v8950_v1  ;;  %v3512_v17 = vshrl.u32 %v6823_v46, 16 }
 0x130   : > { %v973_v24 = vadd.f32 %v952_v35, %v9935_v0  ;;  %v1197_v54 = vpop.f32.mrf.mxu1  ;;  %8032 = vmatmul.mubr.bf16.gmra.mxu1 %v6766_v40  ;;  %8052 = vmatpush3.bf16.msra.mxu0 %v8762_v4  ;;  %v8768_v0 = vld [vmem:[%s11674_s3 + $0x3d0] sm:$0xff]   ;;  %v2923_v29 = vor.u32 %v2922_v48, %v2919_v15  ;;  %v3281_v35 = vor.u32 %v3280_v60, %v3276_v13  ;;  %v3285_v19 = vrot.slane %v3283_v8, 1  ;;  %v8779_v15 = vld [vmem:[%s11674_s3 + $0x438] sm:$0xff]  }
 0x131   : > { %v7641_v2 = vpop.f32.mrf.mxu0  ;;  %7999 = vmatprep.mubr.msk.bf16.mxu0 %vm8951_vm0, %v8950_v1  ;;  %8035 = vmatprep.mubr.msk.bf16.mxu1 %vm8951_vm0, %v8950_v1  ;;  %v3287_v48 = vshrl.u32 %v10144_v32, 16 }
 0x132   : > { %v10113_v30 = vadd.f32 %v1197_v54, %v973_v24  ;;  %v7677_v11 = vpop.f32.mrf.mxu1  ;;  %8053 = vmatprep.subr.bf16.mxu0 %v8950_v1  ;;  %8088 = vmatpush3.bf16.msra.mxu1 %v8766_v20  ;;  %v2924_v56 = vsel %vm807_vm3, %v2914_v16, %v2923_v29  ;;  %v3521_v16 = vrot.slane %v3519_v47, 1 }
 0x133   : > { %v955_v12 = vpop.f32.mrf.mxu0  ;;  %8089 = vmatprep.subr.bf16.mxu1 %v8950_v1  ;;  %v3289_v29 = vor.u32 %v3287_v48, %v3285_v19 }
 0x134   : > { %v974_v39 = vadd.f32 %v955_v12, %v9963_v31  ;;  %v1200_v25 = vpop.f32.mrf.mxu1  ;;  %8054 = vmatpush3.bf16.msra.mxu0 %v8767_v23  ;;  %v10182_v23 = vld [vmem:[%s9427_s9 + $0x1c] sm:$0xff]   ;;  %v3286_v12 = vsel %vm1436_vm4, %v3281_v35, %v3285_v19 }
 0x135   : > { %v7642_v58 = vpop.f32.mrf.mxu0  ;;  %8055 = vmatprep.subr.bf16.mxu0 %v8950_v1  ;;  %v3527_v7 = vshll.u32 %v10182_v23, 16 }
 0x136   : > { %v10134_v50 = vadd.f32 %v1200_v25, %v974_v39  ;;  %v7678_v31 = vpop.f32.mrf.mxu1  ;;  %8090 = vmatpush3.bf16.msra.mxu1 %v8768_v0  ;;  %v3291_v39 = vshll.u32 %v10175_v28, 16 }
 0x137   : > { %v960_v26 = vpop.f32.mrf.mxu0  ;;  %8000 = vmatmul.mubr.bf16.gmra.mxu0 %v2915_v41  ;;  %8091 = vmatprep.subr.bf16.mxu1 %v8950_v1  ;;  %v3529_v45 = vrot.slane %v3527_v7, 1 }
 0x138   : > { %v975_v36 = vadd.f32 %v960_v26, %v9986_v43  ;;  %v1205_v62 = vpop.f32.mrf.mxu1  ;;  %8036 = vmatmul.mubr.bf16.gmra.mxu1 %v6767_v44  ;;  %8003 = vmatprep.mubr.msk.bf16.mxu0 %vm8951_vm0, %v8950_v1  ;;  %v3514_v43 = vshll.u32 %v6823_v46, 16  ;;  %v3523_v44 = vshrl.u32 %v10152_v53, 16  ;;  %v8780_v26 = vld [vmem:[%s11674_s3 + $0x430] sm:$0xff]  }
 0x139   : > { %v7645_v14 = vpop.f32.mrf.mxu0  ;;  %8039 = vmatprep.mubr.msk.bf16.mxu1 %vm8951_vm0, %v8950_v1  ;;  %8056 = vmatpush3.bf16.msra.mxu0 %v8769_v42  ;;  %v8783_v42 = vld [vmem:[%s11674_s3 + $0x478] sm:$0xff]  }
 0x13a   : > { %v10154_v55 = vadd.f32 %v1205_v62, %v975_v36  ;;  %v7681_v10 = vpop.f32.mrf.mxu1  ;;  %8092 = vmatpush3.bf16.msra.mxu1 %v8772_v63  ;;  %8057 = vmatprep.subr.bf16.mxu0 %v8950_v1  ;;  %v3516_v40 = vrot.slane %v3514_v43, 1  ;;  %v3293_v36 = vrot.slane %v3291_v39, 1  ;;  %v10206_v62 = vld [vmem:[%s9427_s9 + $0x20] sm:$0xff]  }
 0x13b   : > { %v963_v18 = vpop.f32.mrf.mxu0  ;;  %8093 = vmatprep.subr.bf16.mxu1 %v8950_v1  ;;  %v10216_v14 = vld [vmem:[%s9427_s9 + $0x24] sm:$0xff]   ;;  %v8785_v10 = vld [vmem:[%s11674_s3 + $0x470] sm:$0xff]   ;;  %v3299_v13 = vshll.u32 %v10206_v62, 16 }
 0x13c   : > { %v976_v4 = vadd.f32 %v963_v18, %v10001_v59  ;;  %v1208_v6 = vpop.f32.mrf.mxu1  ;;  %v3517_v54 = vor.u32 %v3516_v40, %v3512_v17 }
 0x13d   : > { %v7646_v9 = vpop.f32.mrf.mxu0  ;;  %8058 = vmatpush3.bf16.msra.mxu0 %v8773_v21  ;;  %v3301_v19 = vrot.slane %v3299_v13, 1  ;;  %v3691_v13 = vld [vmem:[%s9427_s9 + $0xc] sm:$0xe] }
 0x13e   : > { %v10167_v49 = vadd.f32 %v1208_v6, %v976_v4  ;;  %v7682_v20 = vpop.f32.mrf.mxu1  ;;  %8094 = vmatpush3.bf16.msra.mxu1 %v8774_v61  ;;  %8115 = vmatprep.subr.bf16.mxu0 %v8950_v1  ;;  %v3522_v41 = vsel %vm1436_vm4, %v3517_v54, %v3521_v16  ;;  %v8784_v4 = vld [vmem:[%s11674_s3 + $0x428] sm:$0xff]   ;;  %v3295_v6 = vshrl.u32 %v10175_v28, 16  ;;  %v3531_v9 = vshrl.u32 %v10182_v23, 16  ;;  %v8788_v28 = vld [vmem:[%s11674_s3 + $0x420] sm:$0xff]  }
 0x13f   : > { %v1331_v59 = vpop.f32.mrf.mxu0  ;;  %8004 = vmatmul.mubr.bf16.gmra.mxu0 %v2924_v56  ;;  %8151 = vmatprep.subr.bf16.mxu1 %v8950_v1  ;;  %v8789_v20 = vld [vmem:[%s11674_s3 + $0x468] sm:$0xff]  }
 0x140   : > { %v1370_v33 = vadd.f32 %v1331_v59, %v10018_v5  ;;  %v1568_v34 = vpop.f32.mrf.mxu1  ;;  %8040 = vmatmul.mubr.bf16.gmra.mxu1 %v6768_v37  ;;  %8059 = vmatprep.mubr.msk.bf16.mxu0 %vm8951_vm0, %v8950_v1  ;;  %v3294_v37 = vsel %vm1436_vm4, %v3289_v29, %v3293_v36  ;;  %v3297_v35 = vor.u32 %v3295_v6, %v3293_v36  ;;  %v8794_v29 = vld [vmem:[%s11674_s3 + $0x458] sm:$0xff]   ;;  %v8796_v6 = vld [vmem:[%s11674_s3 + $0x450] sm:$0xff]  }
 0x141   : > { %v7701_v24 = vpop.f32.mrf.mxu0  ;;  %8095 = vmatprep.mubr.msk.bf16.mxu1 %vm8951_vm0, %v8950_v1 }
 0x142   : > { %v10184_v5 = vadd.f32 %v1568_v34, %v1370_v33  ;;  %v7737_v2 = vpop.f32.mrf.mxu1  ;;  %v10248_v24 = vld [vmem:[%s9427_s9 + $0x28] sm:$0xff]   ;;  %v3302_v39 = vsel %vm1436_vm4, %v3297_v35, %v3301_v19 }
 0x143   : > { %v1334_v11 = vpop.f32.mrf.mxu0  ;;  %v10259_v2 = vld [vmem:[%s9427_s9 + $0x2c] sm:$0xff]  }
 0x144   : > { %v1371_v0 = vadd.f32 %v1334_v11, %v10032_v22  ;;  %v1571_v51 = vpop.f32.mrf.mxu1 }
 0x145   : > { %v7702_v25 = vpop.f32.mrf.mxu0 }
 0x146   : > { %v10196_v22 = vadd.f32 %v1571_v51, %v1371_v0  ;;  %v7738_v58 = vpop.f32.mrf.mxu1  ;;  %v8791_v51 = vld [vmem:[%s11674_s3 + $0x460] sm:$0xff]   ;;  %v8790_v25 = vld [vmem:[%s11674_s3 + $0x418] sm:$0xff]  }
 0x147   : > { %v1339_v46 = vpop.f32.mrf.mxu0  ;;  %8060 = vmatmul.mubr.bf16.vlgmr.msra.gmra.mxu0 %v3286_v12  ;;  %v3307_v58 = vshll.u32 %v10248_v24, 16 }
 0x148   : > { %v1372_v31 = vadd.f32 %v1339_v46, %v10047_v27  ;;  %v1576_v63 = vpop.f32.mrf.mxu1  ;;  %8096 = vmatmul.mubr.bf16.vlgmr.msra.gmra.mxu1 %v3522_v41  ;;  %8116 = vmatpush3.bf16.msra.mxu0 %v8779_v15  ;;  %v3525_v27 = vor.u32 %v3523_v44, %v3521_v16  ;;  %v3303_v41 = vshrl.u32 %v10206_v62, 16 }
 0x149   : > { %v7705_v32 = vpop.f32.mrf.mxu0  ;;  %8117 = vmatprep.subr.bf16.mxu0 %v8950_v1  ;;  %8063 = vmatprep.mubr.msk.bf16.mxu0 %vm8951_vm0, %v8950_v1 }
 0x14a   : > { %v10218_v21 = vadd.f32 %v1576_v63, %v1372_v31  ;;  %v7741_v43 = vpop.f32.mrf.mxu1  ;;  %8099 = vmatprep.mubr.msk.bf16.mxu1 %vm8951_vm0, %v8950_v1  ;;  %8152 = vmatpush3.bf16.msra.mxu1 %v8783_v42  ;;  %v3530_v8 = vsel %vm1436_vm4, %v3525_v27, %v3529_v45  ;;  %v3539_v31 = vshrl.u32 %v10216_v14, 16  ;;  %v3305_v27 = vor.u32 %v3303_v41, %v3301_v19  ;;  %v8797_v19 = vld [vmem:[%s11674_s3 + $0x408] sm:$0xff]  }
 0x14b   : > { %v1342_v61 = vpop.f32.mrf.mxu0  ;;  %8153 = vmatprep.subr.bf16.mxu1 %v8950_v1  ;;  %v8795_v43 = vld [vmem:[%s11674_s3 + $0x410] sm:$0xff]  }
 0x14c   : > { %v1373_v18 = vadd.f32 %v1342_v61, %v10068_v52  ;;  %v1579_v56 = vpop.f32.mrf.mxu1  ;;  %8118 = vmatpush3.bf16.msra.mxu0 %v8780_v26  ;;  %v3535_v52 = vshll.u32 %v10216_v14, 16 }
 0x14d   : > { %v7706_v60 = vpop.f32.mrf.mxu0  ;;  %8119 = vmatprep.subr.bf16.mxu0 %v8950_v1 }
 0x14e   : > { %v10237_v17 = vadd.f32 %v1579_v56, %v1373_v18  ;;  %v7742_v40 = vpop.f32.mrf.mxu1  ;;  %8154 = vmatpush3.bf16.msra.mxu1 %v8785_v10  ;;  %v3537_v16 = vrot.slane %v3535_v52, 1  ;;  %v8798_v10 = vld [vmem:[%s9427_s9 + $0x30] ss:$0 sps:$4 sm:$0x11]  }
 0x14f   : > { %v1347_v59 = vpop.f32.mrf.mxu0  ;;  %8064 = vmatmul.mubr.bf16.gmra.mxu0 %v3294_v37  ;;  %8155 = vmatprep.subr.bf16.mxu1 %v8950_v1  ;;  %v10299_v56 = vld [vmem:[%s9427_s9 + $0x34] ss:$0 sps:$4 sm:$0x11]  }
 0x150   : > { %v1374_v33 = vadd.f32 %v1347_v59, %v10082_v57  ;;  %v1584_v34 = vpop.f32.mrf.mxu1  ;;  %8100 = vmatmul.mubr.bf16.gmra.mxu1 %v3530_v8  ;;  %8120 = vmatpush3.bf16.msra.mxu0 %v8784_v4  ;;  %v3533_v57 = vor.u32 %v3531_v9, %v3529_v45  ;;  %v3309_v45 = vrot.slane %v3307_v58, 1  ;;  %v3311_v59 = vshrl.u32 %v10248_v24, 16 }
 0x151   : > { %v7709_v54 = vpop.f32.mrf.mxu0  ;;  %8067 = vmatprep.mubr.msk.bf16.mxu0 %vm8951_vm0, %v8950_v1  ;;  %8103 = vmatprep.mubr.msk.bf16.mxu1 %vm8951_vm0, %v8950_v1 }
 0x152   : > { %v10261_v11 = vadd.f32 %v1584_v34, %v1374_v33  ;;  %v7745_v0 = vpop.f32.mrf.mxu1  ;;  %8121 = vmatprep.subr.bf16.mxu0 %v8950_v1  ;;  %8156 = vmatpush3.bf16.msra.mxu1 %v8789_v20  ;;  %v3538_v46 = vsel %vm1436_vm4, %v3533_v57, %v3537_v16  ;;  %v3310_v20 = vsel %vm1436_vm4, %v3305_v27, %v3309_v45  ;;  %v3315_v33 = vshll.u32 %v8798_v10, 16 }
 0x153   : > { %v1350_v12 = vpop.f32.mrf.mxu0  ;;  %8157 = vmatprep.subr.bf16.mxu1 %v8950_v1  ;;  %v10320_v54 = vcombine.low %v3691_v13, %v10121_v3  ;;  %v3313_v3 = vor.u32 %v3311_v59, %v3309_v45 }
 0x154   : > { %v1375_v15 = vadd.f32 %v1350_v12, %v10099_v38  ;;  %v1587_v48 = vpop.f32.mrf.mxu1  ;;  %8122 = vmatpush3.bf16.msra.mxu0 %v8788_v28  ;;  %v3543_v38 = vshll.u32 %v10259_v2, 16  ;;  %v3547_v28 = vshrl.u32 %v10259_v2, 16 }
 0x155   : > { %v7710_v42 = vpop.f32.mrf.mxu0  ;;  %8123 = vmatprep.subr.bf16.mxu0 %v8950_v1  ;;  %v3881_v41 = vshrl.u32 %v10320_v54, 16  ;;  %v3884_v58 = vshll.u32 %v10320_v54, 16  ;;  %v3712_v13 = vrot.slane %v10320_v54, 1  ;;  %v3892_v54 = vrot.slane %v3531_v9, 1  ;;  %v8805_v9 = vld [vmem:[%s11674_s3 + $0x4b0] sm:$0xff]  }
 0x156   : > { %v10279_v63 = vadd.f32 %v1587_v48, %v1375_v15  ;;  %v7746_v26 = vpop.f32.mrf.mxu1  ;;  %8158 = vmatpush3.bf16.msra.mxu1 %v8791_v51  ;;  %v3545_v18 = vrot.slane %v3543_v38, 1  ;;  %v3317_v15 = vrot.slane %v3315_v33, 1 }
 0x157   : > { %v1355_v36 = vpop.f32.mrf.mxu0  ;;  %8068 = vmatmul.mubr.bf16.gmra.mxu0 %v3302_v39  ;;  %8159 = vmatprep.subr.bf16.mxu1 %v8950_v1  ;;  %v8802_v26 = vld [vmem:[%s11674_s3 + $0x440] sm:$0xff]   ;;  %v3883_v10 = vrot.slane %v3881_v41, 1 }
 0x158   : > { %v1376_v62 = vadd.f32 %v1355_v36, %v10113_v30  ;;  %v1592_v32 = vpop.f32.mrf.mxu1  ;;  %8104 = vmatmul.mubr.bf16.gmra.mxu1 %v3538_v46  ;;  %8124 = vmatpush3.bf16.msra.mxu0 %v8790_v25  ;;  %v3541_v30 = vor.u32 %v3539_v31, %v3537_v16  ;;  %v8800_v16 = vld [vmem:[%s11674_s3 + $0x448] sm:$0xff]   ;;  %v3549_v39 = vor.u32 %v3547_v28, %v3545_v18  ;;  %v3888_v36 = vrot.slane %v3523_v44, 1 }
 0x159   : > { %v7713_v61 = vpop.f32.mrf.mxu0  ;;  %8071 = vmatprep.mubr.msk.bf16.mxu0 %vm8951_vm0, %v8950_v1  ;;  %8107 = vmatprep.mubr.msk.bf16.mxu1 %vm8951_vm0, %v8950_v1  ;;  %v3318_v27 = vsel %vm1436_vm4, %v3313_v3, %v3317_v15 }
 0x15a   : > { %v10301_v37 = vadd.f32 %v1592_v32, %v1376_v62  ;;  %v7749_v4 = vpop.f32.mrf.mxu1  ;;  %8125 = vmatprep.subr.bf16.mxu0 %v8950_v1  ;;  %8160 = vmatpush3.bf16.msra.mxu1 %v8794_v29  ;;  %v3546_v35 = vsel %vm1436_vm4, %v3541_v30, %v3545_v18  ;;  %v3886_v61 = vrot.slane %v3884_v58, 2  ;;  %v3889_v30 = vrot.slane %v3519_v47, 2 }
 0x15b   : > { %v1358_v60 = vpop.f32.mrf.mxu0  ;;  %8161 = vmatprep.subr.bf16.mxu1 %v8950_v1  ;;  %v3713_v47 = vrot.slane %v10152_v53, 1 }
 0x15c   : > { %v1377_v8 = vadd.f32 %v1358_v60, %v10134_v50  ;;  %v1595_v40 = vpop.f32.mrf.mxu1  ;;  %8126 = vmatpush3.bf16.msra.mxu0 %v8795_v43  ;;  %v3551_v50 = vshll.u32 %v10299_v56, 16 }
 0x15d   : > { %v7714_v34 = vpop.f32.mrf.mxu0  ;;  %8127 = vmatprep.subr.bf16.mxu0 %v8950_v1 }
 0x15e   : > { %v10322_v57 = vadd.f32 %v1595_v40, %v1377_v8  ;;  %v7750_v24 = vpop.f32.mrf.mxu1  ;;  %8162 = vmatpush3.bf16.msra.mxu1 %v8796_v6  ;;  %v3553_v25 = vrot.slane %v3551_v50, 1  ;;  %v3887_v8 = vor.u32 %v3886_v61, %v3883_v10  ;;  %v3890_v40 = vor.u32 %v3889_v30, %v3888_v36 }
 0x15f   : > { %v1363_v0 = vpop.f32.mrf.mxu0  ;;  %8072 = vmatmul.mubr.bf16.gmra.mxu0 %v3310_v20  ;;  %8163 = vmatprep.subr.bf16.mxu1 %v8950_v1  ;;  %v3893_v24 = vrot.slane %v3527_v7, 2  ;;  %v3715_v7 = vrot.slane %v10182_v23, 1  ;;  %v3896_v36 = vrot.slane %v3539_v31, 1  ;;  %v3717_v31 = vrot.slane %v10216_v14, 1  ;;  %v8812_v14 = vld [vmem:[%s11674_s3 + $0x4e0] sm:$0xff]  }
 0x160   : > { %v1378_v51 = vadd.f32 %v1363_v0, %v10154_v55  ;;  %v1600_v12 = vpop.f32.mrf.mxu1  ;;  %8108 = vmatmul.mubr.bf16.gmra.mxu1 %v3546_v35  ;;  %8075 = vmatprep.mubr.msk.bf16.mxu0 %vm8951_vm0, %v8950_v1  ;;  %v8801_v55 = vld [vmem:[%s11674_s3 + $0x400] sm:$0xff]   ;;  %v3554_v43 = vsel %vm1436_vm4, %v3549_v39, %v3553_v25  ;;  %v3714_v35 = vsel %vm1874_vm5, %v3712_v13, %v3713_v47 }
 0x161   : > { %v7717_v48 = vpop.f32.mrf.mxu0  ;;  %8111 = vmatprep.mubr.msk.bf16.mxu1 %vm8951_vm0, %v8950_v1  ;;  %8128 = vmatpush3.bf16.msra.mxu0 %v8797_v19  ;;  %v8804_v19 = vld [vmem:[%s11674_s3 + $0x4b8] sm:$0xff]   ;;  %v3891_v50 = vsel %vm2043_vm6, %v3887_v8, %v3890_v40  ;;  %v3716_v58 = vsel %vm1874_vm5, %v3713_v47, %v3715_v7  ;;  %v3718_v13 = vsel %vm1874_vm5, %v3715_v7, %v3717_v31 }
 0x162   : > { %v10340_v42 = vadd.f32 %v1600_v12, %v1378_v51  ;;  %v7753_v46 = vpop.f32.mrf.mxu1  ;;  %8164 = vmatpush3.bf16.msra.mxu1 %v8800_v16  ;;  %8129 = vmatprep.subr.bf16.mxu0 %v8950_v1  ;;  %v3894_v48 = vor.u32 %v3893_v24, %v3892_v54  ;;  %v8811_v47 = vld [vmem:[%s11674_s3 + $0x498] sm:$0xff]   ;;  %v10456_v54 = vld [vmem:[%s9978_s10 + $0x4] sm:$0xf] }
 0x163   : > { %v1366_v29 = vpop.f32.mrf.mxu0  ;;  %8165 = vmatprep.subr.bf16.mxu1 %v8950_v1  ;;  %v8807_v46 = vld [vmem:[%s11674_s3 + $0x4a8] sm:$0xff]  }
 0x164   : > { %v1379_v62 = vadd.f32 %v1366_v29, %v10167_v49  ;;  %v1603_v32 = vpop.f32.mrf.mxu1  ;;  %v3895_v29 = vsel %vm2043_vm6, %v3890_v40, %v3894_v48  ;;  %v3900_v40 = vrot.slane %v3547_v28, 1 }
 0x165   : > { %v7718_v45 = vpop.f32.mrf.mxu0  ;;  %8130 = vmatpush3.bf16.msra.mxu0 %v8801_v55 }
 0x166   : > { %v10354_v18 = vadd.f32 %v1603_v32, %v1379_v62  ;;  %v7754_v4 = vpop.f32.mrf.mxu1  ;;  %8166 = vmatpush3.bf16.msra.mxu1 %v8802_v26  ;;  %8187 = vmatprep.subr.bf16.mxu0 %v8950_v1  ;;  %v3897_v62 = vrot.slane %v3535_v52, 2  ;;  %v8809_v52 = vld [vmem:[%s11674_s3 + $0x4a0] sm:$0xff]  }
 0x167   : > { %v1804_v44 = vpop.f32.mrf.mxu0  ;;  %8076 = vmatmul.mubr.bf16.gmra.mxu0 %v3318_v27  ;;  %8223 = vmatprep.subr.bf16.mxu1 %v8950_v1  ;;  %v8810_v27 = vld [vmem:[%s11674_s3 + $0x4e8] sm:$0xff]  }
 0x168   : > { %v1843_v49 = vadd.f32 %v1804_v44, %v10184_v5  ;;  %v1973_v6 = vpop.f32.mrf.mxu1  ;;  %8112 = vmatmul.mubr.bf16.gmra.mxu1 %v3554_v43  ;;  %8131 = vmatprep.mubr.msk.bf16.mxu0 %vm8951_vm0, %v8950_v1  ;;  %v3898_v30 = vor.u32 %v3897_v62, %v3896_v36 }
 0x169   : > { %v7773_v60 = vpop.f32.mrf.mxu0  ;;  %8167 = vmatprep.mubr.msk.bf16.mxu1 %vm8951_vm0, %v8950_v1 }
 0x16a   : > { %v10365_v20 = vadd.f32 %v1973_v6, %v1843_v49  ;;  %v7809_v59 = vpop.f32.mrf.mxu1  ;;  %v3899_v8 = vsel %vm2043_vm6, %v3894_v48, %v3898_v30 }
 0x16b   : > { %v1807_v33 = vpop.f32.mrf.mxu0  ;;  %v8817_v59 = vld [vmem:[%s9427_s9 + $0x34] ss:$0 sps:$4 sm:$0x33]  }
 0x16c   : > { %v1844_v5 = vadd.f32 %v1807_v33, %v10196_v22  ;;  %v1976_v34 = vpop.f32.mrf.mxu1  ;;  %v8806_v22 = vld [vmem:[%s11674_s3 + $0x4f8] sm:$0xff]  }
 0x16d   : > { %v7774_v53 = vpop.f32.mrf.mxu0 }
 0x16e   : > { %v10377_v16 = vadd.f32 %v1976_v34, %v1844_v5  ;;  %v7810_v0 = vpop.f32.mrf.mxu1  ;;  %v8813_v34 = vld [vmem:[%s11674_s3 + $0x4d8] sm:$0xff]   ;;  %v8814_v53 = vld [vmem:[%s11674_s3 + $0x490] sm:$0xff]  }
 0x16f   : > { %v1812_v51 = vpop.f32.mrf.mxu0  ;;  %8132 = vmatmul.mubr.bf16.vlgmr.msra.gmra.mxu0 %v3714_v35  ;;  %v3905_v0 = vshrl.u32 %v8817_v59, 16 }
 0x170   : > { %v1845_v12 = vadd.f32 %v1812_v51, %v10218_v21  ;;  %v1981_v3 = vpop.f32.mrf.mxu1  ;;  %8168 = vmatmul.mubr.bf16.vlgmr.msra.gmra.mxu1 %v3891_v50  ;;  %8188 = vmatpush3.bf16.msra.mxu0 %v8804_v19  ;;  %v8808_v21 = vld [vmem:[%s11674_s3 + $0x4f0] sm:$0xff]   ;;  %v4049_v50 = vld [vmem:[%s9978_s10] sm:$0xc] }
 0x171   : > { %v7777_v15 = vpop.f32.mrf.mxu0  ;;  %8189 = vmatprep.subr.bf16.mxu0 %v8950_v1  ;;  %8135 = vmatprep.mubr.msk.bf16.mxu0 %vm8951_vm0, %v8950_v1  ;;  %v6903_v7 = vcombine.low %v4049_v50, %v10456_v54 }
 0x172   : > { %v10390_v39 = vadd.f32 %v1981_v3, %v1845_v12  ;;  %v7813_v25 = vpop.f32.mrf.mxu1  ;;  %8171 = vmatprep.mubr.msk.bf16.mxu1 %vm8951_vm0, %v8950_v1  ;;  %8224 = vmatpush3.bf16.msra.mxu1 %v8806_v22  ;;  %v3908_v22 = vshll.u32 %v8817_v59, 16  ;;  %v8815_v3 = vld [vmem:[%s11674_s3 + $0x4d0] sm:$0xff]  }
 0x173   : > { %v1815_v55 = vpop.f32.mrf.mxu0  ;;  %8225 = vmatprep.subr.bf16.mxu1 %v8950_v1  ;;  %v4106_v62 = vshrl.u32 %v6903_v7, 16 }
 0x174   : > { %v1846_v23 = vadd.f32 %v1815_v55, %v10237_v17  ;;  %v1984_v41 = vpop.f32.mrf.mxu1  ;;  %8190 = vmatpush3.bf16.msra.mxu0 %v8805_v9 }
 0x175   : > { %v7778_v26 = vpop.f32.mrf.mxu0  ;;  %8191 = vmatprep.subr.bf16.mxu0 %v8950_v1 }
 0x176   : > { %v10409_v17 = vadd.f32 %v1984_v41, %v1846_v23  ;;  %v7814_v32 = vpop.f32.mrf.mxu1  ;;  %8226 = vmatpush3.bf16.msra.mxu1 %v8808_v21  ;;  %v10475_v21 = vld [vmem:[%s9978_s10 + $0x8] sm:$0xff]  }
 0x177   : > { %v1820_v45 = vpop.f32.mrf.mxu0  ;;  %8136 = vmatmul.mubr.bf16.gmra.mxu0 %v3716_v58  ;;  %8227 = vmatprep.subr.bf16.mxu1 %v8950_v1  ;;  %v8816_v41 = vld [vmem:[%s11674_s3 + $0x488] sm:$0xff]   ;;  %v3907_v58 = vrot.slane %v3905_v0, 1  ;;  %v4109_v32 = vshll.u32 %v6903_v7, 16  ;;  %v4316_v0 = vrot.slane %v10475_v21, 3 }
 0x178   : > { %v1847_v43 = vadd.f32 %v1820_v45, %v10261_v11  ;;  %v1989_v10 = vpop.f32.mrf.mxu1  ;;  %8172 = vmatmul.mubr.bf16.gmra.mxu1 %v3895_v29  ;;  %8192 = vmatpush3.bf16.msra.mxu0 %v8807_v46  ;;  %v3910_v46 = vrot.slane %v3908_v22, 2  ;;  %v8818_v29 = vld [vmem:[%s11674_s3 + $0x4c8] sm:$0xff]  }
 0x179   : > { %v7781_v61 = vpop.f32.mrf.mxu0  ;;  %8139 = vmatprep.mubr.msk.bf16.mxu0 %vm8951_vm0, %v8950_v1  ;;  %8175 = vmatprep.mubr.msk.bf16.mxu1 %vm8951_vm0, %v8950_v1 }
 0x17a   : > { %v10424_v4 = vadd.f32 %v1989_v10, %v1847_v43  ;;  %v7817_v11 = vpop.f32.mrf.mxu1  ;;  %8193 = vmatprep.subr.bf16.mxu0 %v8950_v1  ;;  %8228 = vmatpush3.bf16.msra.mxu1 %v8810_v27  ;;  %v3721_v43 = vrot.slane %v10299_v56, 1  ;;  %v4114_v10 = vshrl.u32 %v10475_v21, 16  ;;  %v3911_v61 = vor.u32 %v3910_v46, %v3907_v58  ;;  %v8820_v56 = vld [vmem:[%s11674_s3 + $0x4c0] sm:$0xff]   ;;  %v8827_v46 = vld [vmem:[%s11674_s3 + $0x578] sm:$0xff]  }
 0x17b   : > { %v1823_v44 = vpop.f32.mrf.mxu0  ;;  %8229 = vmatprep.subr.bf16.mxu1 %v8950_v1 }
 0x17c   : > { %v1848_v49 = vadd.f32 %v1823_v44, %v10279_v63  ;;  %v1992_v6 = vpop.f32.mrf.mxu1  ;;  %8194 = vmatpush3.bf16.msra.mxu0 %v8809_v52  ;;  %v3901_v63 = vrot.slane %v3543_v38, 2  ;;  %v3719_v38 = vrot.slane %v10259_v2, 1 }
 0x17d   : > { %v7782_v60 = vpop.f32.mrf.mxu0  ;;  %8195 = vmatprep.subr.bf16.mxu0 %v8950_v1 }
 0x17e   : > { %v10443_v33 = vadd.f32 %v1992_v6, %v1848_v49  ;;  %v7818_v5 = vpop.f32.mrf.mxu1  ;;  %8230 = vmatpush3.bf16.msra.mxu1 %v8812_v14  ;;  %v3720_v25 = vsel %vm1874_vm5, %v3717_v31, %v3719_v38  ;;  %v4117_v31 = vshll.u32 %v10475_v21, 16  ;;  %v4294_v14 = vld [vmem:[%s9978_s10] sm:$0x8]  ;;  %v4108_v49 = vrot.slane %v4106_v62, 2  ;;  %v8825_v62 = vld [vmem:[%s11674_s3 + $0x530] sm:$0xff]  }
 0x17f   : > { %v1828_v35 = vpop.f32.mrf.mxu0  ;;  %8140 = vmatmul.mubr.bf16.gmra.mxu0 %v3718_v13  ;;  %8231 = vmatprep.subr.bf16.mxu1 %v8950_v1  ;;  %v4111_v6 = vrot.slane %v4109_v32, 3  ;;  %v3722_v60 = vsel %vm1874_vm5, %v3719_v38, %v3721_v43 }
 0x180   : > { %v1849_v28 = vadd.f32 %v1828_v35, %v10301_v37  ;;  %v1997_v19 = vpop.f32.mrf.mxu1  ;;  %8176 = vmatmul.mubr.bf16.gmra.mxu1 %v3899_v8  ;;  %8196 = vmatpush3.bf16.msra.mxu0 %v8811_v47  ;;  %v3902_v37 = vor.u32 %v3901_v63, %v3900_v40  ;;  %v4116_v8 = vrot.slane %v4114_v10, 2  ;;  %v4119_v40 = vrot.slane %v4117_v31, 3  ;;  %v10516_v63 = vld [vmem:[%s9978_s10 + $0x10] sm:$0xff]  }
 0x181   : > { %v7785_v24 = vpop.f32.mrf.mxu0  ;;  %8143 = vmatprep.mubr.msk.bf16.mxu0 %vm8951_vm0, %v8950_v1  ;;  %8179 = vmatprep.mubr.msk.bf16.mxu1 %vm8951_vm0, %v8950_v1  ;;  %v4123_v50 = vshrl.u32 %v10516_v63, 16 }
 0x182   : > { %v10462_v51 = vadd.f32 %v1997_v19, %v1849_v28  ;;  %v7821_v12 = vpop.f32.mrf.mxu1  ;;  %8197 = vmatprep.subr.bf16.mxu0 %v8950_v1  ;;  %8232 = vmatpush3.bf16.msra.mxu1 %v8813_v34  ;;  %v3903_v23 = vsel %vm2043_vm6, %v3898_v30, %v3902_v37  ;;  %v3912_v5 = vsel %vm2043_vm6, %v3902_v37, %v3911_v61 }
 0x183   : > { %v1831_v9 = vpop.f32.mrf.mxu0  ;;  %8233 = vmatprep.subr.bf16.mxu1 %v8950_v1  ;;  %v10520_v34 = vcombine.low %v4294_v14, %v10456_v54  ;;  %v4112_v28 = vor.u32 %v4111_v6, %v4108_v49  ;;  %v4126_v54 = vshll.u32 %v10516_v63, 16  ;;  %v8828_v49 = vld [vmem:[%s11674_s3 + $0x528] sm:$0xff]  }
 0x184   : > { %v1850_v15 = vadd.f32 %v1831_v9, %v10322_v57  ;;  %v2000_v48 = vpop.f32.mrf.mxu1  ;;  %8198 = vmatpush3.bf16.msra.mxu0 %v8814_v53  ;;  %v4120_v53 = vor.u32 %v4119_v40, %v4116_v8 }
 0x185   : > { %v7786_v55 = vpop.f32.mrf.mxu0  ;;  %8199 = vmatprep.subr.bf16.mxu0 %v8950_v1  ;;  %v4315_v37 = vrot.slane %v10520_v34, 3 }
 0x186   : > { %v10482_v57 = vadd.f32 %v2000_v48, %v1850_v15  ;;  %v7822_v26 = vpop.f32.mrf.mxu1  ;;  %8234 = vmatpush3.bf16.msra.mxu1 %v8815_v3  ;;  %v4121_v7 = vsel %vm606_vm2, %v4112_v28, %v4120_v53  ;;  %v8824_v15 = vld [vmem:[%s11674_s3 + $0x538] sm:$0xff]   ;;  %v4125_v48 = vrot.slane %v4123_v50, 2 }
 0x187   : > { %v1836_v36 = vpop.f32.mrf.mxu0  ;;  %8144 = vmatmul.mubr.bf16.gmra.mxu0 %v3720_v25  ;;  %8235 = vmatprep.subr.bf16.mxu1 %v8950_v1  ;;  %v4128_v25 = vrot.slane %v4126_v54, 3  ;;  %v10547_v55 = vld [vmem:[%s9978_s10 + $0x18] sm:$0xff]  }
 0x188   : > { %v1851_v27 = vadd.f32 %v1836_v36, %v10340_v42  ;;  %v2005_v45 = vpop.f32.mrf.mxu1  ;;  %8180 = vmatmul.mubr.bf16.gmra.mxu1 %v3903_v23  ;;  %8147 = vmatprep.mubr.msk.bf16.mxu0 %vm8951_vm0, %v8950_v1  ;;  %v8819_v42 = vld [vmem:[%s11674_s3 + $0x480] sm:$0xff]  }
 0x189   : > { %v7789_v52 = vpop.f32.mrf.mxu0  ;;  %8183 = vmatprep.mubr.msk.bf16.mxu1 %vm8951_vm0, %v8950_v1  ;;  %8200 = vmatpush3.bf16.msra.mxu0 %v8816_v41  ;;  %v4317_v41 = vsel %vm465_vm1, %v4315_v37, %v4316_v0  ;;  %v4129_v32 = vor.u32 %v4128_v25, %v4125_v48  ;;  %v8833_v48 = vld [vmem:[%s11674_s3 + $0x518] sm:$0xff]  }
 0x18a   : > { %v10499_v30 = vadd.f32 %v2005_v45, %v1851_v27  ;;  %v7825_v11 = vpop.f32.mrf.mxu1  ;;  %8236 = vmatpush3.bf16.msra.mxu1 %v8818_v29  ;;  %8201 = vmatprep.subr.bf16.mxu0 %v8950_v1  ;;  %v4132_v27 = vshrl.u32 %v10547_v55, 16  ;;  %v4135_v45 = vshll.u32 %v10547_v55, 16 }
 0x18b   : > { %v1839_v44 = vpop.f32.mrf.mxu0  ;;  %8237 = vmatprep.subr.bf16.mxu1 %v8950_v1 }
 0x18c   : > { %v1852_v13 = vadd.f32 %v1839_v44, %v10354_v18  ;;  %v2008_v47 = vpop.f32.mrf.mxu1  ;;  %v4130_v44 = vsel %vm606_vm2, %v4120_v53, %v4129_v32  ;;  %v4134_v6 = vrot.slane %v4132_v27, 2 }
 0x18d   : > { %v7790_v59 = vpop.f32.mrf.mxu0  ;;  %8202 = vmatpush3.bf16.msra.mxu0 %v8819_v42  ;;  %v8829_v42 = vld [vmem:[%s11674_s3 + $0x570] sm:$0xff]  }
 0x18e   : > { %v10522_v18 = vadd.f32 %v2008_v47, %v1852_v13  ;;  %v7826_v2 = vpop.f32.mrf.mxu1  ;;  %8238 = vmatpush3.bf16.msra.mxu1 %v8820_v56  ;;  %8259 = vmatprep.subr.bf16.mxu0 %v8950_v1  ;;  %v4137_v13 = vrot.slane %v4135_v45, 3  ;;  %v10583_v47 = vld [vmem:[%s9978_s10 + $0x20] sm:$0xff]   ;;  %v8832_v59 = vld [vmem:[%s11674_s3 + $0x568] sm:$0xff]  }
 0x18f   : > { %v2164_v35 = vpop.f32.mrf.mxu0  ;;  %8148 = vmatmul.mubr.bf16.gmra.mxu0 %v3722_v60  ;;  %8295 = vmatprep.subr.bf16.mxu1 %v8950_v1  ;;  %v4144_v53 = vshll.u32 %v10583_v47, 16 }
 0x190   : > { %v2203_v19 = vadd.f32 %v2164_v35, %v10365_v20  ;;  %v2409_v38 = vpop.f32.mrf.mxu1  ;;  %8184 = vmatmul.mubr.bf16.gmra.mxu1 %v3912_v5  ;;  %8203 = vmatprep.mubr.msk.bf16.mxu0 %vm8951_vm0, %v8950_v1  ;;  %v4138_v28 = vor.u32 %v4137_v13, %v4134_v6  ;;  %v10653_v6 = vld [vmem:[%s9978_s10 + $0xc] sm:$0xf]  ;;  %v10656_v13 = vld [vmem:[%s9978_s10 + $0x10] sm:$0xf] }
 0x191   : > { %v7845_v24 = vpop.f32.mrf.mxu0  ;;  %8239 = vmatprep.mubr.msk.bf16.mxu1 %vm8951_vm0, %v8950_v1 }
 0x192   : > { %v10535_v20 = vadd.f32 %v2409_v38, %v2203_v19  ;;  %v7881_v22 = vpop.f32.mrf.mxu1  ;;  %v8831_v19 = vld [vmem:[%s11674_s3 + $0x520] sm:$0xff]   ;;  %v4141_v38 = vshrl.u32 %v10583_v47, 16 }
 0x193   : > { %v2167_v12 = vpop.f32.mrf.mxu0  ;;  %v8834_v22 = vld [vmem:[%s11674_s3 + $0x560] sm:$0xff]  }
 0x194   : > { %v2204_v3 = vadd.f32 %v2167_v12, %v10377_v16  ;;  %v2412_v9 = vpop.f32.mrf.mxu1  ;;  %v4143_v25 = vrot.slane %v4141_v38, 2 }
 0x195   : > { %v7846_v23 = vpop.f32.mrf.mxu0 }
 0x196   : > { %v10550_v58 = vadd.f32 %v2412_v9, %v2204_v3  ;;  %v7882_v16 = vpop.f32.mrf.mxu1  ;;  %v10612_v3 = vld [vmem:[%s9978_s10 + $0x28] ss:$0 sps:$4 sm:$0x77]   ;;  %v4146_v23 = vrot.slane %v4144_v53, 3 }
 0x197   : > { %v2172_v26 = vpop.f32.mrf.mxu0  ;;  %8204 = vmatmul.mubr.bf16.vlgmr.msra.gmra.mxu0 %v4121_v7 }
 0x198   : > { %v2205_v29 = vadd.f32 %v2172_v26, %v10390_v39  ;;  %v2417_v36 = vpop.f32.mrf.mxu1  ;;  %8240 = vmatmul.mubr.bf16.vlgmr.msra.gmra.mxu1 %v4317_v41  ;;  %8260 = vmatpush3.bf16.msra.mxu0 %v8824_v15  ;;  %v4318_v39 = vrot.slane %v10516_v63, 3  ;;  %v4139_v15 = vsel %vm606_vm2, %v4129_v32, %v4138_v28  ;;  %v8836_v26 = vld [vmem:[%s11674_s3 + $0x558] sm:$0xff]  }
 0x199   : > { %v7849_v43 = vpop.f32.mrf.mxu0  ;;  %8261 = vmatprep.subr.bf16.mxu0 %v8950_v1  ;;  %8207 = vmatprep.mubr.msk.bf16.mxu0 %vm8951_vm0, %v8950_v1 }
 0x19a   : > { %v10565_v52 = vadd.f32 %v2417_v36, %v2205_v29  ;;  %v7885_v61 = vpop.f32.mrf.mxu1  ;;  %8243 = vmatprep.mubr.msk.bf16.mxu1 %vm8951_vm0, %v8950_v1  ;;  %8296 = vmatpush3.bf16.msra.mxu1 %v8827_v46  ;;  %v4319_v8 = vsel %vm465_vm1, %v4316_v0, %v4318_v39  ;;  %v4150_v36 = vshrl.u32 %v10612_v3, 16 }
 0x19b   : > { %v2175_v11 = vpop.f32.mrf.mxu0  ;;  %8297 = vmatprep.subr.bf16.mxu1 %v8950_v1  ;;  %v8837_v61 = vld [vmem:[%s11674_s3 + $0x510] sm:$0xff]  }
 0x19c   : > { %v2206_v56 = vadd.f32 %v2175_v11, %v10409_v17  ;;  %v2420_v14 = vpop.f32.mrf.mxu1  ;;  %8262 = vmatpush3.bf16.msra.mxu0 %v8825_v62  ;;  %v4153_v62 = vshll.u32 %v10612_v3, 16  ;;  %v4322_v11 = vrot.slane %v10583_v47, 3  ;;  %v8858_v47 = vld [vmem:[%s11674_s3 + $0x5d8] sm:$0xff]  }
 0x19d   : > { %v7850_v60 = vpop.f32.mrf.mxu0  ;;  %8263 = vmatprep.subr.bf16.mxu0 %v8950_v1 }
 0x19e   : > { %v10587_v17 = vadd.f32 %v2420_v14, %v2206_v56  ;;  %v7886_v40 = vpop.f32.mrf.mxu1  ;;  %8298 = vmatpush3.bf16.msra.mxu1 %v8829_v42  ;;  %v10644_v56 = vld [vmem:[%s9978_s10 + $0x8] sm:$0xf] }
 0x19f   : > { %v2180_v5 = vpop.f32.mrf.mxu0  ;;  %8208 = vmatmul.mubr.bf16.gmra.mxu0 %v4130_v44  ;;  %8299 = vmatprep.subr.bf16.mxu1 %v8950_v1  ;;  %v4155_v40 = vrot.slane %v4153_v62, 3  ;;  %v10693_v62 = vld [vmem:[%s9978_s10 + $0x14] sm:$0xf] }
 0x1a0   : > { %v2207_v2 = vadd.f32 %v2180_v5, %v10424_v4  ;;  %v2425_v35 = vpop.f32.mrf.mxu1  ;;  %8244 = vmatmul.mubr.bf16.gmra.mxu1 %v4319_v8  ;;  %8264 = vmatpush3.bf16.msra.mxu0 %v8828_v49  ;;  %v4320_v4 = vrot.slane %v10547_v55, 3  ;;  %v8838_v49 = vld [vmem:[%s11674_s3 + $0x550] sm:$0xff]   ;;  %v4152_v8 = vrot.slane %v4150_v36, 2  ;;  %v8843_v36 = vld [vmem:[%s11674_s3 + $0x540] sm:$0xff]  }
 0x1a1   : > { %v7853_v24 = vpop.f32.mrf.mxu0  ;;  %8211 = vmatprep.mubr.msk.bf16.mxu0 %vm8951_vm0, %v8950_v1  ;;  %8247 = vmatprep.mubr.msk.bf16.mxu1 %vm8951_vm0, %v8950_v1 }
 0x1a2   : > { %v10604_v37 = vadd.f32 %v2425_v35, %v2207_v2  ;;  %v7889_v0 = vpop.f32.mrf.mxu1  ;;  %8265 = vmatprep.subr.bf16.mxu0 %v8950_v1  ;;  %8300 = vmatpush3.bf16.msra.mxu1 %v8832_v59  ;;  %v4321_v16 = vsel %vm465_vm1, %v4318_v39, %v4320_v4  ;;  %v4147_v39 = vor.u32 %v4146_v23, %v4143_v25 }
 0x1a3   : > { %v2183_v12 = vpop.f32.mrf.mxu0  ;;  %8301 = vmatprep.subr.bf16.mxu1 %v8950_v1  ;;  %v4323_v24 = vsel %vm465_vm1, %v4320_v4, %v4322_v11  ;;  %v8839_v0 = vld [vmem:[%s11674_s3 + $0x508] sm:$0xff]   ;;  %v4156_v4 = vor.u32 %v4155_v40, %v4152_v8  ;;  %v4491_v8 = vrot.slane %v4114_v10, 3  ;;  %v4492_v40 = vrot.slane %v4117_v31, 4 }
 0x1a4   : > { %v2208_v9 = vadd.f32 %v2183_v12, %v10443_v33  ;;  %v2428_v7 = vpop.f32.mrf.mxu1  ;;  %8266 = vmatpush3.bf16.msra.mxu0 %v8831_v19  ;;  %v4148_v2 = vsel %vm606_vm2, %v4138_v28, %v4147_v39  ;;  %v8841_v28 = vld [vmem:[%s11674_s3 + $0x548] sm:$0xff]  }
 0x1a5   : > { %v7854_v41 = vpop.f32.mrf.mxu0  ;;  %8267 = vmatprep.subr.bf16.mxu0 %v8950_v1 }
 0x1a6   : > { %v10625_v33 = vadd.f32 %v2428_v7, %v2208_v9  ;;  %v7890_v46 = vpop.f32.mrf.mxu1  ;;  %8302 = vmatpush3.bf16.msra.mxu1 %v8834_v22  ;;  %v6984_v22 = vcombine.low %v10653_v6, %v10656_v13  ;;  %v4324_v7 = vrot.slane %v10612_v3, 3  ;;  %v8842_v3 = vld [vmem:[%s11674_s3 + $0x500] sm:$0xff]  }
 0x1a7   : > { %v2188_v29 = vpop.f32.mrf.mxu0  ;;  %8212 = vmatmul.mubr.bf16.gmra.mxu0 %v4139_v15  ;;  %8303 = vmatprep.subr.bf16.mxu1 %v8950_v1  ;;  %v4484_v15 = vshrl.u32 %v10520_v34, 16 }
 0x1a8   : > { %v2209_v32 = vadd.f32 %v2188_v29, %v10462_v51  ;;  %v2433_v43 = vpop.f32.mrf.mxu1  ;;  %8248 = vmatmul.mubr.bf16.gmra.mxu1 %v4321_v16  ;;  %8268 = vmatpush3.bf16.msra.mxu0 %v8833_v48  ;;  %v4652_v51 = vld [vmem:[%s9978_s10 + $0x4] sm:$0x8]  ;;  %v4487_v48 = vshll.u32 %v10520_v34, 16  ;;  %v4717_v46 = vshrl.u32 %v6984_v22, 16 }
 0x1a9   : > { %v7857_v42 = vpop.f32.mrf.mxu0  ;;  %8215 = vmatprep.mubr.msk.bf16.mxu0 %vm8951_vm0, %v8950_v1  ;;  %8251 = vmatprep.mubr.msk.bf16.mxu1 %vm8951_vm0, %v8950_v1  ;;  %v6983_v35 = vcombine.low %v4652_v51, %v10644_v56  ;;  %v4486_v51 = vrot.slane %v4484_v15, 3 }
 0x1aa   : > { %v10646_v14 = vadd.f32 %v2433_v43, %v2209_v32  ;;  %v7893_v44 = vpop.f32.mrf.mxu1  ;;  %8269 = vmatprep.subr.bf16.mxu0 %v8950_v1  ;;  %8304 = vmatpush3.bf16.msra.mxu1 %v8836_v26  ;;  %v10696_v32 = vld [vmem:[%s9978_s10 + $0x18] sm:$0xf]  ;;  %v4325_v42 = vsel %vm465_vm1, %v4322_v11, %v4324_v7 }
 0x1ab   : > { %v2191_v60 = vpop.f32.mrf.mxu0  ;;  %8305 = vmatprep.subr.bf16.mxu1 %v8950_v1  ;;  %v4709_v41 = vshrl.u32 %v6983_v35, 16  ;;  %v4712_v34 = vshll.u32 %v6983_v35, 16  ;;  %v4489_v44 = vrot.slane %v4487_v48, 4  ;;  %v6985_v11 = vcombine.low %v10693_v62, %v10696_v32  ;;  %v10720_v48 = vld [vmem:[%s9978_s10 + $0x1c] sm:$0xf] }
 0x1ac   : > { %v2210_v59 = vadd.f32 %v2191_v60, %v10482_v57  ;;  %v2436_v5 = vpop.f32.mrf.mxu1  ;;  %8270 = vmatpush3.bf16.msra.mxu0 %v8837_v61  ;;  %v4157_v61 = vsel %vm606_vm2, %v4147_v39, %v4156_v4  ;;  %v4719_v39 = vrot.slane %v4717_v46, 3  ;;  %v4496_v46 = vrot.slane %v4126_v54, 4  ;;  %v8847_v54 = vld [vmem:[%s11674_s3 + $0x5b0] sm:$0xff]  }
 0x1ad   : > { %v7858_v19 = vpop.f32.mrf.mxu0  ;;  %8271 = vmatprep.subr.bf16.mxu0 %v8950_v1  ;;  %v4490_v31 = vor.u32 %v4489_v44, %v4486_v51  ;;  %v4729_v4 = vshll.u32 %v6985_v11, 16  ;;  %v8849_v51 = vld [vmem:[%s11674_s3 + $0x5f8] sm:$0xff]  }
 0x1ae   : > { %v10669_v12 = vadd.f32 %v2436_v5, %v2210_v59  ;;  %v7894_v57 = vpop.f32.mrf.mxu1  ;;  %8306 = vmatpush3.bf16.msra.mxu1 %v8838_v49  ;;  %v4711_v59 = vrot.slane %v4709_v41, 3 }
 0x1af   : > { %v2196_v9 = vpop.f32.mrf.mxu0  ;;  %8216 = vmatmul.mubr.bf16.gmra.mxu0 %v4148_v2  ;;  %8307 = vmatprep.subr.bf16.mxu1 %v8950_v1  ;;  %v4714_v2 = vrot.slane %v4712_v34, 4  ;;  %v4495_v34 = vrot.slane %v4123_v50, 3 }
 0x1b0   : > { %v2211_v25 = vadd.f32 %v2196_v9, %v10499_v30  ;;  %v2441_v23 = vpop.f32.mrf.mxu1  ;;  %8252 = vmatmul.mubr.bf16.gmra.mxu1 %v4323_v24  ;;  %8219 = vmatprep.mubr.msk.bf16.mxu0 %vm8951_vm0, %v8950_v1  ;;  %v4720_v30 = vshll.u32 %v6984_v22, 16  ;;  %v4726_v9 = vshrl.u32 %v6985_v11, 16 }
 0x1b1   : > { %v7861_v16 = vpop.f32.mrf.mxu0  ;;  %8255 = vmatprep.mubr.msk.bf16.mxu1 %vm8951_vm0, %v8950_v1  ;;  %8272 = vmatpush3.bf16.msra.mxu0 %v8839_v0  ;;  %v4493_v0 = vor.u32 %v4492_v40, %v4491_v8  ;;  %v4715_v57 = vor.u32 %v4714_v2, %v4711_v59  ;;  %v8851_v2 = vld [vmem:[%s11674_s3 + $0x5f0] sm:$0xff]  }
 0x1b2   : > { %v10686_v26 = vadd.f32 %v2441_v23, %v2211_v25  ;;  %v7897_v29 = vpop.f32.mrf.mxu1  ;;  %8308 = vmatpush3.bf16.msra.mxu1 %v8841_v28  ;;  %8273 = vmatprep.subr.bf16.mxu0 %v8950_v1  ;;  %v4722_v35 = vrot.slane %v4720_v30, 4 }
 0x1b3   : > { %v2199_v43 = vpop.f32.mrf.mxu0  ;;  %8309 = vmatprep.subr.bf16.mxu1 %v8950_v1  ;;  %v4494_v16 = vsel %vm807_vm3, %v4490_v31, %v4493_v0  ;;  %v4499_v31 = vrot.slane %v4132_v27, 3  ;;  %v8854_v27 = vld [vmem:[%s11674_s3 + $0x5e8] sm:$0xff]  }
 0x1b4   : > { %v2212_v49 = vadd.f32 %v2199_v43, %v10522_v18  ;;  %v2444_v60 = vpop.f32.mrf.mxu1  ;;  %v4723_v28 = vor.u32 %v4722_v35, %v4719_v39  ;;  %v4731_v43 = vrot.slane %v4729_v4, 4  ;;  %v10757_v39 = vld [vmem:[%s9978_s10 + $0x24] sm:$0xf]  ;;  %v10760_v35 = vld [vmem:[%s9978_s10 + $0x28] sm:$0xf] }
 0x1b5   : > { %v7862_v5 = vpop.f32.mrf.mxu0  ;;  %8274 = vmatpush3.bf16.msra.mxu0 %v8842_v3  ;;  %v8846_v3 = vld [vmem:[%s11674_s3 + $0x5b8] sm:$0xff]  }
 0x1b6   : > { %v10708_v19 = vadd.f32 %v2444_v60, %v2212_v49  ;;  %v7898_v24 = vpop.f32.mrf.mxu1  ;;  %8310 = vmatpush3.bf16.msra.mxu1 %v8843_v36  ;;  %8331 = vmatprep.subr.bf16.mxu0 %v8950_v1  ;;  %v4724_v29 = vsel %vm807_vm3, %v4715_v57, %v4723_v28  ;;  %v4728_v36 = vrot.slane %v4726_v9, 3  ;;  %v4497_v49 = vor.u32 %v4496_v46, %v4495_v34 }
 0x1b7   : > { %v2577_v18 = vpop.f32.mrf.mxu0  ;;  %8220 = vmatmul.mubr.bf16.gmra.mxu0 %v4157_v61  ;;  %8367 = vmatprep.subr.bf16.mxu1 %v8950_v1 }
 0x1b8   : > { %v2616_v21 = vadd.f32 %v2577_v18, %v10535_v20  ;;  %v2767_v10 = vpop.f32.mrf.mxu1  ;;  %8256 = vmatmul.mubr.bf16.gmra.mxu1 %v4325_v42  ;;  %8275 = vmatprep.mubr.msk.bf16.mxu0 %vm8951_vm0, %v8950_v1  ;;  %v10723_v20 = vld [vmem:[%s9978_s10 + $0x20] sm:$0xf]  ;;  %v4732_v8 = vor.u32 %v4731_v43, %v4728_v36  ;;  %v10797_v36 = vld [vmem:[%s9978_s10 + $0x2c] sm:$0xf] }
 0x1b9   : > { %v7917_v22 = vpop.f32.mrf.mxu0  ;;  %8311 = vmatprep.mubr.msk.bf16.mxu1 %vm8951_vm0, %v8950_v1 }
 0x1ba   : > { %v10717_v7 = vadd.f32 %v2767_v10, %v2616_v21  ;;  %v7953_v15 = vpop.f32.mrf.mxu1  ;;  %v4498_v21 = vsel %vm807_vm3, %v4493_v0, %v4497_v49  ;;  %v8850_v10 = vld [vmem:[%s11674_s3 + $0x5a8] sm:$0xff]   ;;  %v4500_v22 = vrot.slane %v4135_v45, 4  ;;  %v4733_v9 = vsel %vm807_vm3, %v4723_v28, %v4732_v8 }
 0x1bb   : > { %v2580_v25 = vpop.f32.mrf.mxu0  ;;  %v6987_v0 = vcombine.low %v10757_v39, %v10760_v35 }
 0x1bc   : > { %v2617_v23 = vadd.f32 %v2580_v25, %v10550_v58  ;;  %v2770_v41 = vpop.f32.mrf.mxu1  ;;  %v6986_v58 = vcombine.low %v10720_v48, %v10723_v20 }
 0x1bd   : > { %v7918_v30 = vpop.f32.mrf.mxu0  ;;  %v4744_v34 = vshrl.u32 %v6987_v0, 16  ;;  %v4747_v46 = vshll.u32 %v6987_v0, 16 }
 0x1be   : > { %v10737_v61 = vadd.f32 %v2770_v41, %v2617_v23  ;;  %v7954_v42 = vpop.f32.mrf.mxu1  ;;  %v4735_v40 = vshrl.u32 %v6986_v58, 16  ;;  %v4738_v59 = vshll.u32 %v6986_v58, 16  ;;  %v4501_v23 = vor.u32 %v4500_v22, %v4499_v31  ;;  %v8853_v41 = vld [vmem:[%s11674_s3 + $0x5a0] sm:$0xff]  }
 0x1bf   : > { %v2585_v44 = vpop.f32.mrf.mxu0  ;;  %8276 = vmatmul.mubr.bf16.vlgmr.msra.gmra.mxu0 %v4494_v16 }
 0x1c0   : > { %v2618_v63 = vadd.f32 %v2585_v44, %v10565_v52  ;;  %v2775_v50 = vpop.f32.mrf.mxu1  ;;  %8312 = vmatmul.mubr.bf16.vlgmr.msra.gmra.mxu1 %v4724_v29  ;;  %8332 = vmatpush3.bf16.msra.mxu0 %v8846_v3  ;;  %v4740_v4 = vrot.slane %v4738_v59, 4  ;;  %v8856_v29 = vld [vmem:[%s11674_s3 + $0x5e0] sm:$0xff]   ;;  %v8855_v44 = vld [vmem:[%s11674_s3 + $0x598] sm:$0xff]   ;;  %v4749_v59 = vrot.slane %v4747_v46, 4 }
 0x1c1   : > { %v7921_v60 = vpop.f32.mrf.mxu0  ;;  %8333 = vmatprep.subr.bf16.mxu0 %v8950_v1  ;;  %8279 = vmatprep.mubr.msk.bf16.mxu0 %vm8951_vm0, %v8950_v1 }
 0x1c2   : > { %v10749_v52 = vadd.f32 %v2775_v50, %v2618_v63  ;;  %v7957_v5 = vpop.f32.mrf.mxu1  ;;  %8315 = vmatprep.mubr.msk.bf16.mxu1 %vm8951_vm0, %v8950_v1  ;;  %8368 = vmatpush3.bf16.msra.mxu1 %v8849_v51  ;;  %v4502_v51 = vsel %vm807_vm3, %v4497_v49, %v4501_v23  ;;  %v4503_v63 = vrot.slane %v4141_v38, 3  ;;  %v4504_v50 = vrot.slane %v4144_v53, 4 }
 0x1c3   : > { %v2588_v11 = vpop.f32.mrf.mxu0  ;;  %8369 = vmatprep.subr.bf16.mxu1 %v8950_v1  ;;  %v6988_v49 = vcombine.low %v10797_v36, %v10797_v36 }
 0x1c4   : > { %v2619_v24 = vadd.f32 %v2588_v11, %v10587_v17  ;;  %v2778_v18 = vpop.f32.mrf.mxu1  ;;  %8334 = vmatpush3.bf16.msra.mxu0 %v8847_v54  ;;  %v4737_v17 = vrot.slane %v4735_v40, 3  ;;  %v8862_v54 = vld [vmem:[%s9978_s10 + $0x28] ss:$0 sps:$4 sm:$0xff]   ;;  %v4505_v11 = vor.u32 %v4504_v50, %v4503_v63  ;;  %v8865_v63 = vld [vmem:[%s11674_s3 + $0x580] sm:$0xff]   ;;  %v8869_v50 = vld [vmem:[%s9978_s10 + $0x10] sm:$0xff]  }
 0x1c5   : > { %v7922_v57 = vpop.f32.mrf.mxu0  ;;  %8335 = vmatprep.subr.bf16.mxu0 %v8950_v1  ;;  %v4753_v22 = vshrl.u32 %v6988_v49, 16 }
 0x1c6   : > { %v10776_v15 = vadd.f32 %v2778_v18, %v2619_v24  ;;  %v7958_v25 = vpop.f32.mrf.mxu1  ;;  %8370 = vmatpush3.bf16.msra.mxu1 %v8851_v2  ;;  %v4741_v3 = vor.u32 %v4740_v4, %v4737_v17  ;;  %v8859_v24 = vld [vmem:[%s11674_s3 + $0x590] sm:$0xff]   ;;  %v4508_v18 = vshrl.u32 %v8862_v54, 16 }
 0x1c7   : > { %v2593_v55 = vpop.f32.mrf.mxu0  ;;  %8280 = vmatmul.mubr.bf16.gmra.mxu0 %v4498_v21  ;;  %8371 = vmatprep.subr.bf16.mxu1 %v8950_v1  ;;  %v4511_v21 = vshll.u32 %v8862_v54, 16  ;;  %v8860_v17 = vld [vmem:[%s11674_s3 + $0x5d0] sm:$0xff]  }
 0x1c8   : > { %v2620_v45 = vadd.f32 %v2593_v55, %v10604_v37  ;;  %v2783_v28 = vpop.f32.mrf.mxu1  ;;  %8316 = vmatmul.mubr.bf16.gmra.mxu1 %v4733_v9  ;;  %8336 = vmatpush3.bf16.msra.mxu0 %v8850_v10  ;;  %v4742_v40 = vsel %vm807_vm3, %v4732_v8, %v4741_v3  ;;  %v4510_v55 = vrot.slane %v4508_v18, 3 }
 0x1c9   : > { %v7925_v16 = vpop.f32.mrf.mxu0  ;;  %8283 = vmatprep.mubr.msk.bf16.mxu0 %vm8951_vm0, %v8950_v1  ;;  %8319 = vmatprep.mubr.msk.bf16.mxu1 %vm8951_vm0, %v8950_v1 }
 0x1ca   : > { %v10790_v37 = vadd.f32 %v2783_v28, %v2620_v45  ;;  %v7961_v30 = vpop.f32.mrf.mxu1  ;;  %8337 = vmatprep.subr.bf16.mxu0 %v8950_v1  ;;  %8372 = vmatpush3.bf16.msra.mxu1 %v8854_v27  ;;  %v4506_v27 = vsel %vm807_vm3, %v4501_v23, %v4505_v11  ;;  %v4513_v45 = vrot.slane %v4511_v21, 4  ;;  %v8861_v16 = vld [vmem:[%s11674_s3 + $0x588] sm:$0xff]  }
 0x1cb   : > { %v2596_v43 = vpop.f32.mrf.mxu0  ;;  %8373 = vmatprep.subr.bf16.mxu1 %v8950_v1  ;;  %v8868_v30 = vld [vmem:[%s9978_s10 + $0x8] sm:$0xff]  }
 0x1cc   : > { %v2621_v58 = vadd.f32 %v2596_v43, %v10625_v33  ;;  %v2786_v42 = vpop.f32.mrf.mxu1  ;;  %8338 = vmatpush3.bf16.msra.mxu0 %v8853_v41  ;;  %v4746_v33 = vrot.slane %v4744_v34, 3  ;;  %v4755_v34 = vrot.slane %v4753_v22, 3  ;;  %v8864_v23 = vld [vmem:[%s11674_s3 + $0x5c8] sm:$0xff]   ;;  %v5114_v54 = vshll.u32 %v8868_v30, 16 }
 0x1cd   : > { %v7926_v60 = vpop.f32.mrf.mxu0  ;;  %8339 = vmatprep.subr.bf16.mxu0 %v8950_v1 }
 0x1ce   : > { %v10814_v5 = vadd.f32 %v2786_v42, %v2621_v58  ;;  %v7962_v2 = vpop.f32.mrf.mxu1  ;;  %8374 = vmatpush3.bf16.msra.mxu1 %v8856_v29  ;;  %v4750_v31 = vor.u32 %v4749_v59, %v4746_v33  ;;  %v4514_v42 = vor.u32 %v4513_v45, %v4510_v55  ;;  %v8870_v55 = vld [vmem:[%s11674_s3 + $0x638] sm:$0xff]  }
 0x1cf   : > { %v2601_v38 = vpop.f32.mrf.mxu0  ;;  %8284 = vmatmul.mubr.bf16.gmra.mxu0 %v4502_v51  ;;  %8375 = vmatprep.subr.bf16.mxu1 %v8950_v1 }
 0x1d0   : > { %v2622_v53 = vadd.f32 %v2601_v38, %v10646_v14  ;;  %v2791_v8 = vpop.f32.mrf.mxu1  ;;  %8320 = vmatmul.mubr.bf16.gmra.mxu1 %v4742_v40  ;;  %8340 = vmatpush3.bf16.msra.mxu0 %v8855_v44  ;;  %v4756_v14 = vshll.u32 %v6988_v49, 16  ;;  %v4751_v41 = vsel %vm807_vm3, %v4741_v3, %v4750_v31  ;;  %v8866_v40 = vld [vmem:[%s11674_s3 + $0x5c0] sm:$0xff]   ;;  %v4515_v2 = vsel %vm807_vm3, %v4505_v11, %v4514_v42 }
 0x1d1   : > { %v7929_v10 = vpop.f32.mrf.mxu0  ;;  %8287 = vmatprep.mubr.msk.bf16.mxu0 %vm8951_vm0, %v8950_v1  ;;  %8323 = vmatprep.mubr.msk.bf16.mxu1 %vm8951_vm0, %v8950_v1 }
 0x1d2   : > { %v10828_v57 = vadd.f32 %v2791_v8, %v2622_v53  ;;  %v7965_v9 = vpop.f32.mrf.mxu1  ;;  %8341 = vmatprep.subr.bf16.mxu0 %v8950_v1  ;;  %8376 = vmatpush3.bf16.msra.mxu1 %v8858_v47  ;;  %v4758_v46 = vrot.slane %v4756_v14, 4  ;;  %v5112_v53 = vshrl.u32 %v8868_v30, 16  ;;  %v5116_v8 = vrot.slane %v5114_v54, 1 }
 0x1d3   : > { %v2604_v4 = vpop.f32.mrf.mxu0  ;;  %8377 = vmatprep.subr.bf16.mxu1 %v8950_v1  ;;  %v8873_v9 = vld [vmem:[%s9978_s10 + $0x18] sm:$0xff]  }
 0x1d4   : > { %v2623_v0 = vadd.f32 %v2604_v4, %v10669_v12  ;;  %v2794_v25 = vpop.f32.mrf.mxu1  ;;  %8342 = vmatpush3.bf16.msra.mxu0 %v8859_v24  ;;  %v4759_v44 = vor.u32 %v4758_v46, %v4755_v34  ;;  %v5119_v24 = vshll.u32 %v8869_v50, 16  ;;  %v5117_v22 = vor.u32 %v5116_v8, %v5112_v53  ;;  %v8879_v53 = vld [vmem:[%s11674_s3 + $0x620] sm:$0xff]  }
 0x1d5   : > { %v7930_v28 = vpop.f32.mrf.mxu0  ;;  %8343 = vmatprep.subr.bf16.mxu0 %v8950_v1 }
 0x1d6   : > { %v10843_v29 = vadd.f32 %v2794_v25, %v2623_v0  ;;  %v7966_v12 = vpop.f32.mrf.mxu1  ;;  %8378 = vmatpush3.bf16.msra.mxu1 %v8860_v17  ;;  %v4760_v38 = vsel %vm807_vm3, %v4750_v31, %v4759_v44  ;;  %v5121_v14 = vrot.slane %v5119_v24, 1  ;;  %v7013_v25 = vcombine.low %v10644_v56, %v10653_v6  ;;  %v8874_v56 = vld [vmem:[%s11674_s3 + $0x678] sm:$0xff]  }
 0x1d7   : > { %v2609_v43 = vpop.f32.mrf.mxu0  ;;  %8288 = vmatmul.mubr.bf16.gmra.mxu0 %v4506_v27  ;;  %8379 = vmatprep.subr.bf16.mxu1 %v8950_v1  ;;  %v8871_v12 = vld [vmem:[%s11674_s3 + $0x630] sm:$0xff]  }
 0x1d8   : > { %v2624_v3 = vadd.f32 %v2609_v43, %v10686_v26  ;;  %v2799_v58 = vpop.f32.mrf.mxu1  ;;  %8324 = vmatmul.mubr.bf16.gmra.mxu1 %v4751_v41  ;;  %8291 = vmatprep.mubr.msk.bf16.mxu0 %vm8951_vm0, %v8950_v1  ;;  %v5122_v28 = vsel %vm1436_vm4, %v5117_v22, %v5121_v14  ;;  %v5123_v41 = vshrl.u32 %v8869_v50, 16  ;;  %v7015_v22 = vcombine.low %v10696_v32, %v10720_v48 }
 0x1d9   : > { %v7933_v51 = vpop.f32.mrf.mxu0  ;;  %8327 = vmatprep.mubr.msk.bf16.mxu1 %vm8951_vm0, %v8950_v1  ;;  %8344 = vmatpush3.bf16.msra.mxu0 %v8861_v16  ;;  %v5127_v16 = vshll.u32 %v8873_v9, 16 }
 0x1da   : > { %v10858_v60 = vadd.f32 %v2799_v58, %v2624_v3  ;;  %v7969_v26 = vpop.f32.mrf.mxu1  ;;  %8380 = vmatpush3.bf16.msra.mxu1 %v8864_v23  ;;  %8345 = vmatprep.subr.bf16.mxu0 %v8950_v1  ;;  %v5125_v43 = vor.u32 %v5123_v41, %v5121_v14  ;;  %v10900_v58 = vld [vmem:[%s9978_s10 + $0x20] sm:$0xff]   ;;  %v8876_v51 = vld [vmem:[%s11674_s3 + $0x670] sm:$0xff]  }
 0x1db   : > { %v2612_v33 = vpop.f32.mrf.mxu0  ;;  %8381 = vmatprep.subr.bf16.mxu1 %v8950_v1  ;;  %v5129_v3 = vrot.slane %v5127_v16, 1  ;;  %v8875_v26 = vld [vmem:[%s11674_s3 + $0x628] sm:$0xff]   ;;  %v8886_v41 = vld [vmem:[%s11674_s3 + $0x610] sm:$0xff]  }
 0x1dc   : > { %v2625_v59 = vadd.f32 %v2612_v33, %v10708_v19  ;;  %v2802_v49 = vpop.f32.mrf.mxu1  ;;  %v8890_v16 = vld [vmem:[%s9978_s10 + $0x30] ss:$0 sps:$4 sm:$0x11]  }
 0x1dd   : > { %v7934_v47 = vpop.f32.mrf.mxu0  ;;  %8346 = vmatpush3.bf16.msra.mxu0 %v8865_v63  ;;  %v7014_v63 = vcombine.low %v10656_v13, %v10693_v62  ;;  %v5130_v33 = vsel %vm1436_vm4, %v5125_v43, %v5129_v3  ;;  %v8880_v62 = vld [vmem:[%s11674_s3 + $0x668] sm:$0xff]  }
 0x1de   : > { %v10868_v18 = vadd.f32 %v2802_v49, %v2625_v59  ;;  %v7970_v21 = vpop.f32.mrf.mxu1  ;;  %8382 = vmatpush3.bf16.msra.mxu1 %v8866_v40  ;;  %8403 = vmatprep.subr.bf16.mxu0 %v8950_v1  ;;  %v5131_v59 = vshrl.u32 %v8873_v9, 16  ;;  %v5135_v49 = vshll.u32 %v10900_v58, 16 }
 0x1df   : > { %v3012_v10 = vpop.f32.mrf.mxu0  ;;  %8292 = vmatmul.mubr.bf16.gmra.mxu0 %v4515_v2  ;;  %8439 = vmatprep.subr.bf16.mxu1 %v8950_v1 }
 0x1e0   : > { %v3051_v19 = vadd.f32 %v3012_v10, %v10717_v7  ;;  %v3170_v11 = vpop.f32.mrf.mxu1  ;;  %8328 = vmatmul.mubr.bf16.gmra.mxu1 %v4760_v38  ;;  %8347 = vmatprep.mubr.msk.bf16.mxu0 %vm8951_vm0, %v8950_v1  ;;  %v5133_v24 = vor.u32 %v5131_v59, %v5129_v3  ;;  %v5137_v21 = vrot.slane %v5135_v49, 1  ;;  %v10934_v10 = vld [vmem:[%s9978_s10 + $0x28] sm:$0xff]   ;;  %v7016_v3 = vcombine.low %v10723_v20, %v10757_v39  ;;  %v10996_v49 = vld [vmem:[%s9978_s10 + $0x14] sm:$0xff]  }
 0x1e1   : > { %v7989_v31 = vpop.f32.mrf.mxu0  ;;  %8383 = vmatprep.mubr.msk.bf16.mxu1 %vm8951_vm0, %v8950_v1  ;;  %v5143_v32 = vshll.u32 %v10934_v10, 16  ;;  %v5151_v20 = vshll.u32 %v8890_v16, 16 }
 0x1e2   : > { %v10878_v17 = vadd.f32 %v3170_v11, %v3051_v19  ;;  %v8025_v4 = vpop.f32.mrf.mxu1  ;;  %v8882_v11 = vld [vmem:[%s11674_s3 + $0x660] sm:$0xff]  }
 0x1e3   : > { %v3015_v0 = vpop.f32.mrf.mxu0  ;;  %v8881_v4 = vld [vmem:[%s11674_s3 + $0x618] sm:$0xff]  }
 0x1e4   : > { %v3052_v7 = vadd.f32 %v3015_v0, %v10737_v61  ;;  %v3173_v27 = vpop.f32.mrf.mxu1 }
 0x1e5   : > { %v7990_v45 = vpop.f32.mrf.mxu0 }
 0x1e6   : > { %v10887_v34 = vadd.f32 %v3173_v27, %v3052_v7  ;;  %v8026_v46 = vpop.f32.mrf.mxu1  ;;  %v5139_v7 = vshrl.u32 %v10900_v58, 16 }
 0x1e7   : > { %v3020_v6 = vpop.f32.mrf.mxu0  ;;  %8348 = vmatmul.mubr.bf16.vlgmr.msra.gmra.mxu0 %v7013_v25  ;;  %v5138_v25 = vsel %vm1436_vm4, %v5133_v24, %v5137_v21  ;;  %v5527_v24 = vld [vmem:[%s9978_s10 + $0xc] sm:$0xe] }
 0x1e8   : > { %v3053_v61 = vadd.f32 %v3020_v6, %v10749_v52  ;;  %v3178_v30 = vpop.f32.mrf.mxu1  ;;  %8384 = vmatmul.mubr.bf16.vlgmr.msra.gmra.mxu1 %v5122_v28  ;;  %8404 = vmatpush3.bf16.msra.mxu0 %v8870_v55  ;;  %v5145_v6 = vrot.slane %v5143_v32, 1 }
 0x1e9   : > { %v7993_v23 = vpop.f32.mrf.mxu0  ;;  %8405 = vmatprep.subr.bf16.mxu0 %v8950_v1  ;;  %8351 = vmatprep.mubr.msk.bf16.mxu0 %vm8951_vm0, %v8950_v1 }
 0x1ea   : > { %v10902_v42 = vadd.f32 %v3178_v30, %v3053_v61  ;;  %v8029_v52 = vpop.f32.mrf.mxu1  ;;  %8387 = vmatprep.mubr.msk.bf16.mxu1 %vm8951_vm0, %v8950_v1  ;;  %8440 = vmatpush3.bf16.msra.mxu1 %v8874_v56  ;;  %v5141_v56 = vor.u32 %v5139_v7, %v5137_v21  ;;  %v5291_v61 = vld [vmem:[%s9978_s10 + $0xc] sm:$0xf]  ;;  %v5292_v30 = vld [vmem:[%s9978_s10 + $0x10] sm:$0xf] }
 0x1eb   : > { %v3023_v44 = vpop.f32.mrf.mxu0  ;;  %8441 = vmatprep.subr.bf16.mxu1 %v8950_v1  ;;  %v8887_v23 = vld [vmem:[%s11674_s3 + $0x650] sm:$0xff]  }
 0x1ec   : > { %v3054_v50 = vadd.f32 %v3023_v44, %v10776_v15  ;;  %v3181_v54 = vpop.f32.mrf.mxu1  ;;  %8406 = vmatpush3.bf16.msra.mxu0 %v8871_v12 }
 0x1ed   : > { %v7994_v40 = vpop.f32.mrf.mxu0  ;;  %8407 = vmatprep.subr.bf16.mxu0 %v8950_v1 }
 0x1ee   : > { %v10919_v2 = vadd.f32 %v3181_v54, %v3054_v50  ;;  %v8030_v13 = vpop.f32.mrf.mxu1  ;;  %8442 = vmatpush3.bf16.msra.mxu1 %v8876_v51  ;;  %v7072_v51 = vcombine.low %v5291_v61, %v5292_v30  ;;  %v8888_v50 = vld [vmem:[%s11674_s3 + $0x608] sm:$0xff]   ;;  %v5147_v54 = vshrl.u32 %v10934_v10, 16  ;;  %v7017_v10 = vcombine.low %v10760_v35, %v10797_v36  ;;  %v8897_v61 = vld [vmem:[%s11674_s3 + $0x6b8] sm:$0xff]  }
 0x1ef   : > { %v3028_v15 = vpop.f32.mrf.mxu0  ;;  %8352 = vmatmul.mubr.bf16.gmra.mxu0 %v7014_v63  ;;  %8443 = vmatprep.subr.bf16.mxu1 %v8950_v1  ;;  %v5146_v63 = vsel %vm1436_vm4, %v5141_v56, %v5145_v6 }
 0x1f0   : > { %v3055_v47 = vadd.f32 %v3028_v15, %v10790_v37  ;;  %v3186_v38 = vpop.f32.mrf.mxu1  ;;  %8388 = vmatmul.mubr.bf16.gmra.mxu1 %v5130_v33  ;;  %8408 = vmatpush3.bf16.msra.mxu0 %v8875_v26  ;;  %v5350_v13 = vshll.u32 %v7072_v51, 16  ;;  %v5149_v15 = vor.u32 %v5147_v54, %v5145_v6  ;;  %v11055_v54 = vld [vmem:[%s9978_s10 + $0x24] sm:$0xff]  }
 0x1f1   : > { %v7997_v8 = vpop.f32.mrf.mxu0  ;;  %8355 = vmatprep.mubr.msk.bf16.mxu0 %vm8951_vm0, %v8950_v1  ;;  %8391 = vmatprep.mubr.msk.bf16.mxu1 %vm8951_vm0, %v8950_v1 }
 0x1f2   : > { %v10936_v19 = vadd.f32 %v3186_v38, %v3055_v47  ;;  %v8033_v37 = vpop.f32.mrf.mxu1  ;;  %8409 = vmatprep.subr.bf16.mxu0 %v8950_v1  ;;  %8444 = vmatpush3.bf16.msra.mxu1 %v8880_v62  ;;  %v5153_v47 = vrot.slane %v5151_v20, 1  ;;  %v8893_v8 = vld [vmem:[%s11674_s3 + $0x640] sm:$0xff]  }
 0x1f3   : > { %v3031_v31 = vpop.f32.mrf.mxu0  ;;  %8445 = vmatprep.subr.bf16.mxu1 %v8950_v1 }
 0x1f4   : > { %v3056_v14 = vadd.f32 %v3031_v31, %v10814_v5  ;;  %v3189_v9 = vpop.f32.mrf.mxu1  ;;  %8410 = vmatpush3.bf16.msra.mxu0 %v8879_v53  ;;  %v8885_v5 = vld [vmem:[%s11674_s3 + $0x658] sm:$0xff]   ;;  %v5348_v31 = vshrl.u32 %v7072_v51, 16 }
 0x1f5   : > { %v7998_v0 = vpop.f32.mrf.mxu0  ;;  %8411 = vmatprep.subr.bf16.mxu0 %v8950_v1 }
 0x1f6   : > { %v10953_v48 = vadd.f32 %v3189_v9, %v3056_v14  ;;  %v8034_v27 = vpop.f32.mrf.mxu1  ;;  %8446 = vmatpush3.bf16.msra.mxu1 %v8882_v11  ;;  %v5355_v14 = vshll.u32 %v10996_v49, 16  ;;  %v11016_v0 = vcombine.low %v5527_v24, %v5292_v30  ;;  %v5359_v30 = vshrl.u32 %v10996_v49, 16 }
 0x1f7   : > { %v3036_v55 = vpop.f32.mrf.mxu0  ;;  %8356 = vmatmul.mubr.bf16.gmra.mxu0 %v7015_v22  ;;  %8447 = vmatprep.subr.bf16.mxu1 %v8950_v1  ;;  %v5352_v22 = vrot.slane %v5350_v13, 1 }
 0x1f8   : > { %v3057_v45 = vadd.f32 %v3036_v55, %v10828_v57  ;;  %v3194_v28 = vpop.f32.mrf.mxu1  ;;  %8392 = vmatmul.mubr.bf16.gmra.mxu1 %v5138_v25  ;;  %8412 = vmatpush3.bf16.msra.mxu0 %v8881_v4  ;;  %v5154_v4 = vsel %vm1436_vm4, %v5149_v15, %v5153_v47  ;;  %v5357_v27 = vrot.slane %v5355_v14, 1  ;;  %v5371_v47 = vshll.u32 %v11055_v54, 16 }
 0x1f9   : > { %v8001_v46 = vpop.f32.mrf.mxu0  ;;  %8359 = vmatprep.mubr.msk.bf16.mxu0 %vm8951_vm0, %v8950_v1  ;;  %8395 = vmatprep.mubr.msk.bf16.mxu1 %vm8951_vm0, %v8950_v1  ;;  %v5353_v32 = vor.u32 %v5352_v22, %v5348_v31  ;;  %v8902_v31 = vld [vmem:[%s11674_s3 + $0x6a0] sm:$0xff]   ;;  %v11087_v22 = vld [vmem:[%s9978_s10 + $0x2c] sm:$0xff]  }
 0x1fa   : > { %v10970_v57 = vadd.f32 %v3194_v28, %v3057_v45  ;;  %v8037_v12 = vpop.f32.mrf.mxu1  ;;  %8413 = vmatprep.subr.bf16.mxu0 %v8950_v1  ;;  %8448 = vmatpush3.bf16.msra.mxu1 %v8885_v5  ;;  %v11028_v5 = vld [vmem:[%s9978_s10 + $0x1c] sm:$0xff]   ;;  %v5548_v45 = vrot.slane %v11016_v0, 1  ;;  %v5549_v28 = vrot.slane %v10996_v49, 1 }
 0x1fb   : > { %v3039_v43 = vpop.f32.mrf.mxu0  ;;  %8449 = vmatprep.subr.bf16.mxu1 %v8950_v1  ;;  %v5358_v6 = vsel %vm1436_vm4, %v5353_v32, %v5357_v27  ;;  %v5363_v12 = vshll.u32 %v11028_v5, 16  ;;  %v5367_v15 = vshrl.u32 %v11028_v5, 16 }
 0x1fc   : > { %v3058_v58 = vadd.f32 %v3039_v43, %v10843_v29  ;;  %v3197_v52 = vpop.f32.mrf.mxu1  ;;  %8414 = vmatpush3.bf16.msra.mxu0 %v8886_v41  ;;  %v8891_v29 = vld [vmem:[%s11674_s3 + $0x648] sm:$0xff]   ;;  %v5550_v43 = vsel %vm1874_vm5, %v5548_v45, %v5549_v28  ;;  %v5379_v45 = vshll.u32 %v11087_v22, 16 }
 0x1fd   : > { %v8002_v44 = vpop.f32.mrf.mxu0  ;;  %8415 = vmatprep.subr.bf16.mxu0 %v8950_v1 }
 0x1fe   : > { %v10986_v39 = vadd.f32 %v3197_v52, %v3058_v58  ;;  %v8038_v26 = vpop.f32.mrf.mxu1  ;;  %8450 = vmatpush3.bf16.msra.mxu1 %v8887_v23  ;;  %v8898_v44 = vld [vmem:[%s11674_s3 + $0x6b0] sm:$0xff]  }
 0x1ff   : > { %v3044_v40 = vpop.f32.mrf.mxu0  ;;  %8360 = vmatmul.mubr.bf16.gmra.mxu0 %v7016_v3  ;;  %8451 = vmatprep.subr.bf16.mxu1 %v8950_v1 }
 0x200   : > { %v3059_v33 = vadd.f32 %v3044_v40, %v10858_v60  ;;  %v3202_v59 = vpop.f32.mrf.mxu1  ;;  %8396 = vmatmul.mubr.bf16.gmra.mxu1 %v5146_v63  ;;  %8363 = vmatprep.mubr.msk.bf16.mxu0 %vm8951_vm0, %v8950_v1  ;;  %v8892_v60 = vld [vmem:[%s11674_s3 + $0x600] sm:$0xff]   ;;  %v5361_v63 = vor.u32 %v5359_v30, %v5357_v27  ;;  %v8903_v27 = vld [vmem:[%s11674_s3 + $0x698] sm:$0xff]  }
 0x201   : > { %v8005_v62 = vpop.f32.mrf.mxu0  ;;  %8399 = vmatprep.mubr.msk.bf16.mxu1 %vm8951_vm0, %v8950_v1  ;;  %8416 = vmatpush3.bf16.msra.mxu0 %v8888_v50  ;;  %v5365_v50 = vrot.slane %v5363_v12, 1 }
 0x202   : > { %v11003_v38 = vadd.f32 %v3202_v59, %v3059_v33  ;;  %v8041_v53 = vpop.f32.mrf.mxu1  ;;  %8452 = vmatpush3.bf16.msra.mxu1 %v8891_v29  ;;  %8417 = vmatprep.subr.bf16.mxu0 %v8950_v1  ;;  %v8900_v62 = vld [vmem:[%s11674_s3 + $0x6a8] sm:$0xff]  }
 0x203   : > { %v3047_v21 = vpop.f32.mrf.mxu0  ;;  %8453 = vmatprep.subr.bf16.mxu1 %v8950_v1  ;;  %v5366_v13 = vsel %vm1436_vm4, %v5361_v63, %v5365_v50  ;;  %v5383_v63 = vshrl.u32 %v11087_v22, 16 }
 0x204   : > { %v3060_v37 = vadd.f32 %v3047_v21, %v10868_v18  ;;  %v3205_v11 = vpop.f32.mrf.mxu1 }
 0x205   : > { %v8006_v9 = vpop.f32.mrf.mxu0  ;;  %8418 = vmatpush3.bf16.msra.mxu0 %v8892_v60 }
 0x206   : > { %v11018_v25 = vadd.f32 %v3205_v11, %v3060_v37  ;;  %v8042_v7 = vpop.f32.mrf.mxu1  ;;  %8454 = vmatpush3.bf16.msra.mxu1 %v8893_v8  ;;  %8475 = vmatprep.subr.bf16.mxu0 %v8950_v1  ;;  %v5369_v37 = vor.u32 %v5367_v15, %v5365_v50  ;;  %v5373_v11 = vrot.slane %v5371_v47, 1 }
 0x207   : > { %v3406_v35 = vpop.f32.mrf.mxu0  ;;  %8364 = vmatmul.mubr.bf16.gmra.mxu0 %v7017_v10  ;;  %8511 = vmatprep.subr.bf16.mxu1 %v8950_v1 }
 0x208   : > { %v3445_v36 = vadd.f32 %v3406_v35, %v10878_v17  ;;  %v3642_v18 = vpop.f32.mrf.mxu1  ;;  %8400 = vmatmul.mubr.bf16.gmra.mxu1 %v5154_v4  ;;  %8419 = vmatprep.mubr.msk.bf16.mxu0 %vm8951_vm0, %v8950_v1  ;;  %v5374_v32 = vsel %vm1436_vm4, %v5369_v37, %v5373_v11 }
 0x209   : > { %v8061_v55 = vpop.f32.mrf.mxu0  ;;  %8455 = vmatprep.mubr.msk.bf16.mxu1 %vm8951_vm0, %v8950_v1 }
 0x20a   : > { %v11034_v17 = vadd.f32 %v3642_v18, %v3445_v36  ;;  %v8097_v41 = vpop.f32.mrf.mxu1  ;;  %v5375_v55 = vshrl.u32 %v11055_v54, 16 }
 0x20b   : > { %v3409_v16 = vpop.f32.mrf.mxu0 }
 0x20c   : > { %v3446_v46 = vadd.f32 %v3409_v16, %v10887_v34  ;;  %v3645_v56 = vpop.f32.mrf.mxu1 }
 0x20d   : > { %v8062_v23 = vpop.f32.mrf.mxu0 }
 0x20e   : > { %v11044_v3 = vadd.f32 %v3645_v56, %v3446_v46  ;;  %v8098_v58 = vpop.f32.mrf.mxu1  ;;  %v11111_v56 = vld [vmem:[%s9978_s10 + $0x34] ss:$0 sps:$4 sm:$0x11]   ;;  %v5377_v23 = vor.u32 %v5375_v55, %v5373_v11 }
 0x20f   : > { %v3414_v52 = vpop.f32.mrf.mxu0  ;;  %8420 = vmatmul.mubr.bf16.vlgmr.msra.gmra.mxu0 %v5358_v6  ;;  %v8905_v58 = vld [vmem:[%s11674_s3 + $0x690] sm:$0xff]   ;;  %v5387_v50 = vshll.u32 %v11111_v56, 16  ;;  %v5557_v11 = vrot.slane %v11111_v56, 1 }
 0x210   : > { %v3447_v34 = vadd.f32 %v3414_v52, %v10902_v42  ;;  %v3650_v51 = vpop.f32.mrf.mxu1  ;;  %8456 = vmatmul.mubr.bf16.vlgmr.msra.gmra.mxu1 %v5550_v43  ;;  %8476 = vmatpush3.bf16.msra.mxu0 %v8897_v61  ;;  %v5551_v42 = vrot.slane %v11028_v5, 1  ;;  %v5381_v43 = vrot.slane %v5379_v45, 1  ;;  %v8909_v56 = vld [vmem:[%s9978_s10 + $0x34] ss:$0 sps:$4 sm:$0x33]   ;;  %s8532_s10 = smul.u32 80, %s11726_s22 }
 0x211   : > { %v8065_v20 = vpop.f32.mrf.mxu0  ;;  %8477 = vmatprep.subr.bf16.mxu0 %v8950_v1  ;;  %8423 = vmatprep.mubr.msk.bf16.mxu0 %vm8951_vm0, %v8950_v1 }
 0x212   : > { %v11061_v26 = vadd.f32 %v3650_v51, %v3447_v34  ;;  %v8101_v29 = vpop.f32.mrf.mxu1  ;;  %8459 = vmatprep.mubr.msk.bf16.mxu1 %vm8951_vm0, %v8950_v1  ;;  %8519 = vmatpush3.bf16.msra.mxu1 %v8897_v61  ;;  %v5552_v53 = vsel %vm1874_vm5, %v5549_v28, %v5551_v42  ;;  %s11535_s20 = sadd.s32 %s8532_s10, %s8531_s19 }
 0x213   : > { %v3417_v40 = vpop.f32.mrf.mxu0  ;;  %8512 = vmatprep.subr.bf16.mxu1 %v8950_v1  ;;  %v5382_v29 = vsel %vm1436_vm4, %v5377_v23, %v5381_v43  ;;  %s6402_s9 = sshll.u32 %s11535_s20, 2 }
 0x214   : > { %v3448_v33 = vadd.f32 %v3417_v40, %v10919_v2  ;;  %v3653_v59 = vpop.f32.mrf.mxu1  ;;  %8478 = vmatpush3.bf16.msra.mxu0 %v8898_v44  ;;  %s11581_s7 = scalar_lea.vmem %s11676_s5, %s6402_s9 }
 0x215   : > { %v8066_v60 = vpop.f32.mrf.mxu0  ;;  %8479 = vmatprep.subr.bf16.mxu0 %v8950_v1 }
 0x216   : > { %v11075_v8 = vadd.f32 %v3653_v59, %v3448_v33  ;;  %v8102_v2 = vpop.f32.mrf.mxu1  ;;  %8520 = vmatpush3.bf16.msra.mxu1 %v8898_v44  ;;  %v8906_v59 = vld [vmem:[%s11674_s3 + $0x688] sm:$0xff]  }
 0x217   : > { %v3422_v24 = vpop.f32.mrf.mxu0  ;;  %8424 = vmatmul.mubr.bf16.gmra.mxu0 %v5366_v13  ;;  %8513 = vmatprep.subr.bf16.mxu1 %v8950_v1 }
 0x218   : > { %v3449_v21 = vadd.f32 %v3422_v24, %v10936_v19  ;;  %v3658_v10 = vpop.f32.mrf.mxu1  ;;  %8460 = vmatmul.mubr.bf16.gmra.mxu1 %v5552_v53  ;;  %8480 = vmatpush3.bf16.msra.mxu0 %v8900_v62  ;;  %v5553_v19 = vrot.slane %v11055_v54, 1  ;;  %v5389_v53 = vrot.slane %v5387_v50, 1  ;;  %v5728_v50 = vrot.slane %v5367_v15, 1 }
 0x219   : > { %v8069_v9 = vpop.f32.mrf.mxu0  ;;  %8427 = vmatprep.mubr.msk.bf16.mxu0 %vm8951_vm0, %v8950_v1  ;;  %8463 = vmatprep.mubr.msk.bf16.mxu1 %vm8951_vm0, %v8950_v1 }
 0x21a   : > { %v11094_v4 = vadd.f32 %v3658_v10, %v3449_v21  ;;  %v8105_v7 = vpop.f32.mrf.mxu1  ;;  %8481 = vmatprep.subr.bf16.mxu0 %v8950_v1  ;;  %8521 = vmatpush3.bf16.msra.mxu1 %v8900_v62  ;;  %v5554_v41 = vsel %vm1874_vm5, %v5551_v42, %v5553_v19  ;;  %v5717_v21 = vshrl.u32 %v11016_v0, 16  ;;  %v5720_v10 = vshll.u32 %v11016_v0, 16 }
 0x21b   : > { %v3425_v35 = vpop.f32.mrf.mxu0  ;;  %8514 = vmatprep.subr.bf16.mxu1 %v8950_v1  ;;  %v5724_v0 = vrot.slane %v5359_v30, 1  ;;  %v5732_v30 = vrot.slane %v5375_v55, 1 }
 0x21c   : > { %v3450_v36 = vadd.f32 %v3425_v35, %v10953_v48  ;;  %v3661_v18 = vpop.f32.mrf.mxu1  ;;  %8482 = vmatpush3.bf16.msra.mxu0 %v8902_v31 }
 0x21d   : > { %v8070_v28 = vpop.f32.mrf.mxu0  ;;  %8483 = vmatprep.subr.bf16.mxu0 %v8950_v1 }
 0x21e   : > { %v11107_v16 = vadd.f32 %v3661_v18, %v3450_v36  ;;  %v8106_v48 = vpop.f32.mrf.mxu1  ;;  %8522 = vmatpush3.bf16.msra.mxu1 %v8902_v31  ;;  %v5725_v28 = vrot.slane %v5355_v14, 2 }
 0x21f   : > { %v3430_v46 = vpop.f32.mrf.mxu0  ;;  %8428 = vmatmul.mubr.bf16.gmra.mxu0 %v5374_v32  ;;  %8515 = vmatprep.subr.bf16.mxu1 %v8950_v1  ;;  %v5719_v32 = vrot.slane %v5717_v21, 1  ;;  %v5736_v48 = vrot.slane %v5383_v63, 1 }
 0x220   : > { %v3451_v6 = vadd.f32 %v3430_v46, %v10970_v57  ;;  %v3666_v61 = vpop.f32.mrf.mxu1  ;;  %8464 = vmatmul.mubr.bf16.gmra.mxu1 %v5554_v41  ;;  %8484 = vmatpush3.bf16.msra.mxu0 %v8903_v27  ;;  %v5555_v57 = vrot.slane %v11087_v22, 1  ;;  %v5737_v41 = vrot.slane %v5379_v45, 2  ;;  %v5726_v22 = vor.u32 %v5725_v28, %v5724_v0 }
 0x221   : > { %v8073_v52 = vpop.f32.mrf.mxu0  ;;  %8431 = vmatprep.mubr.msk.bf16.mxu0 %vm8951_vm0, %v8950_v1  ;;  %8467 = vmatprep.mubr.msk.bf16.mxu1 %vm8951_vm0, %v8950_v1 }
 0x222   : > { %v11126_v34 = vadd.f32 %v3666_v61, %v3451_v6  ;;  %v8109_v51 = vpop.f32.mrf.mxu1  ;;  %8523 = vmatpush3.bf16.msra.mxu1 %v8903_v27  ;;  %8485 = vmatprep.subr.bf16.mxu0 %v8950_v1  ;;  %v5556_v33 = vsel %vm1874_vm5, %v5553_v19, %v5555_v57  ;;  %v5733_v19 = vrot.slane %v5371_v47, 2  ;;  %v5722_v27 = vrot.slane %v5720_v10, 2 }
 0x223   : > { %v3433_v44 = vpop.f32.mrf.mxu0  ;;  %8516 = vmatprep.subr.bf16.mxu1 %v8950_v1  ;;  %v5558_v46 = vsel %vm1874_vm5, %v5555_v57, %v5557_v11  ;;  %v5738_v23 = vor.u32 %v5737_v41, %v5736_v48 }
 0x224   : > { %v3452_v20 = vadd.f32 %v3433_v44, %v10986_v39  ;;  %v3669_v42 = vpop.f32.mrf.mxu1  ;;  %8486 = vmatpush3.bf16.msra.mxu0 %v8905_v58  ;;  %v5385_v39 = vor.u32 %v5383_v63, %v5381_v43  ;;  %v5723_v54 = vor.u32 %v5722_v27, %v5719_v32  ;;  %v5734_v45 = vor.u32 %v5733_v19, %v5732_v30 }
 0x225   : > { %v8074_v40 = vpop.f32.mrf.mxu0  ;;  %8487 = vmatprep.subr.bf16.mxu0 %v8950_v1  ;;  %v5741_v43 = vshrl.u32 %v8909_v56, 16 }
 0x226   : > { %v11139_v13 = vadd.f32 %v3669_v42, %v3452_v20  ;;  %v8110_v62 = vpop.f32.mrf.mxu1  ;;  %8524 = vmatpush3.bf16.msra.mxu1 %v8905_v58  ;;  %v5390_v35 = vsel %vm1436_vm4, %v5385_v39, %v5389_v53  ;;  %v5744_v58 = vshll.u32 %v8909_v56, 16  ;;  %v5727_v63 = vsel %vm2043_vm6, %v5723_v54, %v5726_v22 }
 0x227   : > { %v3438_v60 = vpop.f32.mrf.mxu0  ;;  %8432 = vmatmul.mubr.bf16.gmra.mxu0 %v5382_v29  ;;  %8517 = vmatprep.subr.bf16.mxu1 %v8950_v1  ;;  %v5729_v20 = vrot.slane %v5363_v12, 2  ;;  %v5739_v29 = vsel %vm2043_vm6, %v5734_v45, %v5738_v23  ;;  %v5743_v40 = vrot.slane %v5741_v43, 1 }
 0x228   : > { %v3453_v2 = vadd.f32 %v3438_v60, %v11003_v38  ;;  %v3674_v24 = vpop.f32.mrf.mxu1  ;;  %8468 = vmatmul.mubr.bf16.gmra.mxu1 %v5556_v33  ;;  %8435 = vmatprep.mubr.msk.bf16.mxu0 %vm8951_vm0, %v8950_v1  ;;  %v8908_v38 = vld [vmem:[%s11674_s3 + $0x680] sm:$0xff]   ;;  %v5746_v33 = vrot.slane %v5744_v58, 2 }
 0x229   : > { %v8077_v37 = vpop.f32.mrf.mxu0  ;;  %8471 = vmatprep.mubr.msk.bf16.mxu1 %vm8951_vm0, %v8950_v1  ;;  %8488 = vmatpush3.bf16.msra.mxu0 %v8906_v59  ;;  %v5730_v15 = vor.u32 %v5729_v20, %v5728_v50 }
 0x22a   : > { %v11153_v31 = vadd.f32 %v3674_v24, %v3453_v2  ;;  %v8113_v9 = vpop.f32.mrf.mxu1  ;;  %8525 = vmatpush3.bf16.msra.mxu1 %v8906_v59  ;;  %8489 = vmatprep.subr.bf16.mxu0 %v8950_v1  ;;  %v5747_v12 = vor.u32 %v5746_v33, %v5743_v40 }
 0x22b   : > { %v3441_v7 = vpop.f32.mrf.mxu0  ;;  %8518 = vmatprep.subr.bf16.mxu1 %v8950_v1  ;;  %v5735_v28 = vsel %vm2043_vm6, %v5730_v15, %v5734_v45 }
 0x22c   : > { %v3454_v36 = vadd.f32 %v3441_v7, %v11018_v25  ;;  %v3677_v18 = vpop.f32.mrf.mxu1  ;;  %v5748_v11 = vsel %vm2043_vm6, %v5738_v23, %v5747_v12 }
 0x22d   : > { %v8078_v47 = vpop.f32.mrf.mxu0  ;;  %8490 = vmatpush3.bf16.msra.mxu0 %v8908_v38 }
 0x22e   : > { %v11171_v6 = vadd.f32 %v3677_v18, %v3454_v36  ;;  %v8114_v25 = vpop.f32.mrf.mxu1  ;;  %8526 = vmatpush3.bf16.msra.mxu1 %v8908_v38 }
 0x22f   : > { %v3810_v61 = vpop.f32.mrf.mxu0  ;;  %8436 = vmatmul.mubr.bf16.gmra.mxu0 %v5390_v35 }
 0x230   : > { %v3849_v49 = vadd.f32 %v3810_v61, %v11034_v17  ;;  %v4000_v14 = vpop.f32.mrf.mxu1  ;;  %8472 = vmatmul.mubr.bf16.gmra.mxu1 %v5558_v46  ;;  %8491 = vmatprep.mubr.msk.bf16.mxu0 %vm8951_vm0, %v8950_v1 }
 0x231   : > { %v8133_v55 = vpop.f32.mrf.mxu0  ;;  %8503 = vmatprep.mubr.msk.bf16.mxu1 %vm8951_vm0, %v8950_v1 }
 0x232   : > { %v11178_v52 = vadd.f32 %v4000_v14, %v3849_v49  ;;  %v8169_v57 = vpop.f32.mrf.mxu1 }
 0x233   : > { %v3813_v51 = vpop.f32.mrf.mxu0 }
 0x234   : > { %v3850_v17 = vadd.f32 %v3813_v51, %v11044_v3  ;;  %v4003_v44 = vpop.f32.mrf.mxu1 }
 0x235   : > { %v8134_v42 = vpop.f32.mrf.mxu0 }
 0x236   : > { %v11187_v59 = vadd.f32 %v4003_v44, %v3850_v17  ;;  %v8170_v62 = vpop.f32.mrf.mxu1 }
 0x237   : > { %v3818_v60 = vpop.f32.mrf.mxu0  ;;  %8492 = vmatmul.mubr.bf16.vlgmr.msra.gmra.mxu0 %v5727_v63 }
 0x238   : > { %v3851_v3 = vadd.f32 %v3818_v60, %v11061_v26  ;;  %v4008_v39 = vpop.f32.mrf.mxu1  ;;  %8504 = vmatmul.mubr.bf16.vlgmr.msra.gmra.mxu1 %v5739_v29  ;;  %8495 = vmatprep.mubr.msk.bf16.mxu0 %vm8951_vm0, %v8950_v1  ;;  %v5731_v26 = vsel %vm2043_vm6, %v5726_v22, %v5730_v15 }
 0x239   : > { %v8137_v5 = vpop.f32.mrf.mxu0  ;;  %8507 = vmatprep.mubr.msk.bf16.mxu1 %vm8951_vm0, %v8950_v1 }
 0x23a   : > { %v11194_v53 = vadd.f32 %v4008_v39, %v3851_v3  ;;  %v8173_v2 = vpop.f32.mrf.mxu1 }
 0x23b   : > { %v3821_v24 = vpop.f32.mrf.mxu0 }
 0x23c   : > { %v3852_v21 = vadd.f32 %v3821_v24, %v11075_v8  ;;  %v4011_v10 = vpop.f32.mrf.mxu1 }
 0x23d   : > { %v8138_v37 = vpop.f32.mrf.mxu0 }
 0x23e   : > { %v4042_v38 = vadd.f32 %v4011_v10, %v3852_v21  ;;  %v8174_v9 = vpop.f32.mrf.mxu1 }
 0x23f   : > { %v3826_v0 = vpop.f32.mrf.mxu0  ;;  %8496 = vmatmul.mubr.bf16.gmra.mxu0 %v5731_v26 }
 0x240   : > { %v3853_v19 = vadd.f32 %v3826_v0, %v11094_v4  ;;  %v4016_v7 = vpop.f32.mrf.mxu1  ;;  %8508 = vmatmul.mubr.bf16.gmra.mxu1 %v5748_v11  ;;  %8499 = vmatprep.mubr.msk.bf16.mxu0 %vm8951_vm0, %v8950_v1 }
 0x241   : > { %v8141_v35 = vpop.f32.mrf.mxu0 }
 0x242   : > { %v4043_v36 = vadd.f32 %v4016_v7, %v3853_v19  ;;  %v8177_v8 = vpop.f32.mrf.mxu1 }
 0x243   : > { %v3829_v18 = vpop.f32.mrf.mxu0 }
 0x244   : > { %v3854_v32 = vadd.f32 %v3829_v18, %v11107_v16  ;;  %v4019_v27 = vpop.f32.mrf.mxu1 }
 0x245   : > { %v8142_v30 = vpop.f32.mrf.mxu0 }
 0x246   : > { %v4044_v41 = vadd.f32 %v4019_v27, %v3854_v32  ;;  %v8178_v47 = vpop.f32.mrf.mxu1 }
 0x247   : > { %v3834_v48 = vpop.f32.mrf.mxu0  ;;  %8500 = vmatmul.mubr.bf16.gmra.mxu0 %v5735_v28 }
 0x248   : > { %v3855_v4 = vadd.f32 %v3834_v48, %v11126_v34  ;;  %v4024_v46 = vpop.f32.mrf.mxu1 }
 0x249   : > { %v8145_v56 = vpop.f32.mrf.mxu0 }
 0x24a   : > { %v4045_v25 = vadd.f32 %v4024_v46, %v3855_v4  ;;  %v8181_v1 = vpop.f32.mrf.mxu1 }
 0x24b   : > { %v3837_v61 = vpop.f32.mrf.mxu0 }
 0x24c   : > { %v3856_v49 = vadd.f32 %v3837_v61, %v11139_v13  ;;  %v4027_v14 = vpop.f32.mrf.mxu1 }
 0x24d   : > { %v8146_v54 = vpop.f32.mrf.mxu0 }
 0x24e   : > { %v4046_v16 = vadd.f32 %v4027_v14, %v3856_v49  ;;  %v8182_v22 = vpop.f32.mrf.mxu1 }
 0x24f   : > { %v3842_v55 = vpop.f32.mrf.mxu0 }
 0x250   : > { %v3857_v45 = vadd.f32 %v3842_v55, %v11153_v31  ;;  %v4032_v23 = vpop.f32.mrf.mxu1 }
 0x251   : > { %v8149_v43 = vpop.f32.mrf.mxu0 }
 0x252   : > { %v4047_v58 = vadd.f32 %v4032_v23, %v3857_v45  ;;  %v8185_v57 = vpop.f32.mrf.mxu1 }
 0x253   : > { %v3845_v51 = vpop.f32.mrf.mxu0 }
 0x254   : > { %v3858_v34 = vadd.f32 %v3845_v51, %v11171_v6  ;;  %v4035_v17 = vpop.f32.mrf.mxu1 }
 0x255   : > { %v8150_v44 = vpop.f32.mrf.mxu0 }
 0x256   : > { %v4048_v63 = vadd.f32 %v4035_v17, %v3858_v34  ;;  %v8186_v50 = vpop.f32.mrf.mxu1 }
 0x257   : > { %v4245_v20 = vpop.f32.mrf.mxu0 }
 0x258   : > { %v4284_v13 = vadd.f32 %v4245_v20, %v11178_v52  ;;  %v4413_v42 = vpop.f32.mrf.mxu1 }
 0x259   : > { %v8205_v29 = vpop.f32.mrf.mxu0 }
 0x25a   : > { %v4452_v40 = vadd.f32 %v4413_v42, %v4284_v13  ;;  %v8241_v33 = vpop.f32.mrf.mxu1 }
 0x25b   : > { %v4248_v62 = vpop.f32.mrf.mxu0 }
 0x25c   : > { %v4285_v31 = vadd.f32 %v4248_v62, %v11187_v59  ;;  %v4416_v60 = vpop.f32.mrf.mxu1 }
 0x25d   : > { %v8206_v3 = vpop.f32.mrf.mxu0 }
 0x25e   : > { %v4453_v39 = vadd.f32 %v4416_v60, %v4285_v31  ;;  %v8242_v15 = vpop.f32.mrf.mxu1 }
 0x25f   : > { %v4253_v5 = vpop.f32.mrf.mxu0 }
 0x260   : > { %v4286_v6 = vadd.f32 %v4253_v5, %v11194_v53  ;;  %v4421_v12 = vpop.f32.mrf.mxu1 }
 0x261   : > { %v8209_v2 = vpop.f32.mrf.mxu0 }
 0x262   : > { %v4454_v24 = vadd.f32 %v4421_v12, %v4286_v6  ;;  %v8245_v21 = vpop.f32.mrf.mxu1 }
 0x263   : > { %v4256_v10 = vpop.f32.mrf.mxu0 }
 0x264   : > { %v4287_v52 = vadd.f32 %v4256_v10, %v4042_v38  ;;  %v4424_v26 = vpop.f32.mrf.mxu1 }
 0x265   : > { %v8210_v37 = vpop.f32.mrf.mxu0 }
 0x266   : > { %v4455_v11 = vadd.f32 %v4424_v26, %v4287_v52  ;;  %v8246_v9 = vpop.f32.mrf.mxu1 }
 0x267   : > { %v4261_v0 = vpop.f32.mrf.mxu0 }
 0x268   : > { %v4288_v19 = vadd.f32 %v4261_v0, %v4043_v36  ;;  %v4429_v59 = vpop.f32.mrf.mxu1 }
 0x269   : > { %v8213_v7 = vpop.f32.mrf.mxu0 }
 0x26a   : > { %v4456_v35 = vadd.f32 %v4429_v59, %v4288_v19  ;;  %v8249_v8 = vpop.f32.mrf.mxu1 }
 0x26b   : > { %v4264_v18 = vpop.f32.mrf.mxu0 }
 0x26c   : > { %v4289_v32 = vadd.f32 %v4264_v18, %v4044_v41  ;;  %v4432_v27 = vpop.f32.mrf.mxu1 }
 0x26d   : > { %v8214_v53 = vpop.f32.mrf.mxu0 }
 0x26e   : > { %v4457_v28 = vadd.f32 %v4432_v27, %v4289_v32  ;;  %v8250_v30 = vpop.f32.mrf.mxu1 }
 0x26f   : > { %v4269_v47 = vpop.f32.mrf.mxu0 }
 0x270   : > { %v4290_v48 = vadd.f32 %v4269_v47, %v4045_v25  ;;  %v4437_v4 = vpop.f32.mrf.mxu1 }
 0x271   : > { %v8217_v38 = vpop.f32.mrf.mxu0 }
 0x272   : > { %v4458_v46 = vadd.f32 %v4437_v4, %v4290_v48  ;;  %v8253_v56 = vpop.f32.mrf.mxu1 }
 0x273   : > { %v4272_v1 = vpop.f32.mrf.mxu0 }
 0x274   : > { %v4291_v61 = vadd.f32 %v4272_v1, %v4046_v16  ;;  %v4440_v49 = vpop.f32.mrf.mxu1 }
 0x275   : > { %v8218_v36 = vpop.f32.mrf.mxu0 }
 0x276   : > { %v4459_v14 = vadd.f32 %v4440_v49, %v4291_v61  ;;  %v8254_v54 = vpop.f32.mrf.mxu1 }
 0x277   : > { %v4277_v22 = vpop.f32.mrf.mxu0 }
 0x278   : > { %v4292_v55 = vadd.f32 %v4277_v22, %v4047_v58  ;;  %v4445_v45 = vpop.f32.mrf.mxu1 }
 0x279   : > { %v8221_v41 = vpop.f32.mrf.mxu0 }
 0x27a   : > { %v4460_v23 = vadd.f32 %v4445_v45, %v4292_v55  ;;  %v8257_v43 = vpop.f32.mrf.mxu1 }
 0x27b   : > { %v4280_v57 = vpop.f32.mrf.mxu0 }
 0x27c   : > { %v4293_v51 = vadd.f32 %v4280_v57, %v4048_v63  ;;  %v4448_v34 = vpop.f32.mrf.mxu1 }
 0x27d   : > { %v8222_v25 = vpop.f32.mrf.mxu0 }
 0x27e   : > { %v4461_v17 = vadd.f32 %v4448_v34, %v4293_v51  ;;  %v8258_v44 = vpop.f32.mrf.mxu1 }
 0x27f   : > { %v4603_v50 = vpop.f32.mrf.mxu0 }
 0x280   : > { %v4642_v20 = vadd.f32 %v4603_v50, %v4452_v40  ;;  %v4848_v13 = vpop.f32.mrf.mxu1 }
 0x281   : > { %v8277_v16 = vpop.f32.mrf.mxu0 }
 0x282   : > { %v4887_v42 = vadd.f32 %v4848_v13, %v4642_v20  ;;  %v8313_v29 = vpop.f32.mrf.mxu1 }
 0x283   : > { %v4606_v33 = vpop.f32.mrf.mxu0 }
 0x284   : > { %v4643_v62 = vadd.f32 %v4606_v33, %v4453_v39  ;;  %v4851_v31 = vpop.f32.mrf.mxu1 }
 0x285   : > { %v8278_v58 = vpop.f32.mrf.mxu0 }
 0x286   : > { %v4888_v60 = vadd.f32 %v4851_v31, %v4643_v62  ;;  %v8314_v3 = vpop.f32.mrf.mxu1 }
 0x287   : > { %v4611_v15 = vpop.f32.mrf.mxu0 }
 0x288   : > { %v4644_v5 = vadd.f32 %v4611_v15, %v4454_v24  ;;  %v4856_v6 = vpop.f32.mrf.mxu1 }
 0x289   : > { %v8281_v63 = vpop.f32.mrf.mxu0 }
 0x28a   : > { %v4889_v12 = vadd.f32 %v4856_v6, %v4644_v5  ;;  %v8317_v2 = vpop.f32.mrf.mxu1 }
 0x28b   : > { %v4614_v21 = vpop.f32.mrf.mxu0 }
 0x28c   : > { %v4645_v10 = vadd.f32 %v4614_v21, %v4455_v11  ;;  %v4859_v52 = vpop.f32.mrf.mxu1 }
 0x28d   : > { %v8282_v40 = vpop.f32.mrf.mxu0 }
 0x28e   : > { %v4890_v26 = vadd.f32 %v4859_v52, %v4645_v10  ;;  %v8318_v37 = vpop.f32.mrf.mxu1 }
 0x28f   : > { %v4619_v9 = vpop.f32.mrf.mxu0 }
 0x290   : > { %v4646_v0 = vadd.f32 %v4619_v9, %v4456_v35  ;;  %v4864_v19 = vpop.f32.mrf.mxu1 }
 0x291   : > { %v8285_v39 = vpop.f32.mrf.mxu0 }
 0x292   : > { %v4891_v59 = vadd.f32 %v4864_v19, %v4646_v0  ;;  %v8321_v7 = vpop.f32.mrf.mxu1 }
 0x293   : > { %v4622_v8 = vpop.f32.mrf.mxu0 }
 0x294   : > { %v4647_v18 = vadd.f32 %v4622_v8, %v4457_v28  ;;  %v4867_v32 = vpop.f32.mrf.mxu1 }
 0x295   : > { %v8286_v24 = vpop.f32.mrf.mxu0 }
 0x296   : > { %v4892_v27 = vadd.f32 %v4867_v32, %v4647_v18  ;;  %v8322_v53 = vpop.f32.mrf.mxu1 }
 0x297   : > { %v4627_v30 = vpop.f32.mrf.mxu0 }
 0x298   : > { %v4648_v47 = vadd.f32 %v4627_v30, %v4458_v46  ;;  %v4872_v48 = vpop.f32.mrf.mxu1 }
 0x299   : > { %v8289_v11 = vpop.f32.mrf.mxu0 }
 0x29a   : > { %v11211_v4 = vadd.f32 %v4872_v48, %v4648_v47  ;;  %v8325_v38 = vpop.f32.mrf.mxu1 }
 0x29b   : > { %v4630_v56 = vpop.f32.mrf.mxu0 }
 0x29c   : > { %v4649_v1 = vadd.f32 %v4630_v56, %v4459_v14  ;;  %v4875_v35 = vpop.f32.mrf.mxu1 }
 0x29d   : > { %v8290_v61 = vpop.f32.mrf.mxu0 }
 0x29e   : > { %v11213_v49 = vadd.f32 %v4875_v35, %v4649_v1  ;;  %v8326_v36 = vpop.f32.mrf.mxu1  ;;  %v5902_v1 = vlaneseq }
 0x29f   : > { %v4635_v54 = vpop.f32.mrf.mxu0 }
 0x2a0   : > { %v4650_v28 = vadd.f32 %v4635_v54, %v4460_v23  ;;  %v4880_v22 = vpop.f32.mrf.mxu1 }
 0x2a1   : > { %v8293_v55 = vpop.f32.mrf.mxu0 }
 0x2a2   : > { %v11215_v45 = vadd.f32 %v4880_v22, %v4650_v28  ;;  %v8329_v41 = vpop.f32.mrf.mxu1  ;;  %v11247_v28 = vshrl.u32 %v5902_v1, 7 }
 0x2a3   : > { %v4638_v46 = vpop.f32.mrf.mxu0 }
 0x2a4   : > { %v4651_v43 = vadd.f32 %v4638_v46, %v4461_v17  ;;  %v4883_v57 = vpop.f32.mrf.mxu1 }
 0x2a5   : > { %v8294_v51 = vpop.f32.mrf.mxu0 }
 0x2a6   : > { %v11217_v34 = vadd.f32 %v4883_v57, %v4651_v43  ;;  %v8330_v25 = vpop.f32.mrf.mxu1  ;;  %v5909_v43 = vadd.s32 48, %v11247_v28 }
 0x2a7   : > { %v5006_v14 = vpop.f32.mrf.mxu0  ;;  %v5904_v25 = vadd.s32 8, %v11247_v28 }
 0x2a8   : > { %v5045_v44 = vadd.f32 %v5006_v14, %v4887_v42  ;;  %v5242_v50 = vpop.f32.mrf.mxu1 }
 0x2a9   : > { %v8349_v20 = vpop.f32.mrf.mxu0 }
 0x2aa   : > { %v11219_v13 = vadd.f32 %v5242_v50, %v5045_v44  ;;  %v8385_v16 = vpop.f32.mrf.mxu1  ;;  %v11258_v44 = vmul.u32.u64.low 3435973837, %v11247_v28  ;;  %v11259_v50 = vmul.u32.u64.high 3435973837, %v11247_v28, %v11258_v44 }
 0x2ab   : > { %v5009_v23 = vpop.f32.mrf.mxu0 }
 0x2ac   : > { %v5046_v29 = vadd.f32 %v5009_v23, %v4888_v60  ;;  %v5245_v33 = vpop.f32.mrf.mxu1  ;;  %v11263_v16 = vmul.u32.u64.low 3435973837, %v5909_v43  ;;  %v11264_v23 = vmul.u32.u64.high 3435973837, %v5909_v43, %v11263_v16 }
 0x2ad   : > { %v8350_v62 = vpop.f32.mrf.mxu0 }
 0x2ae   : > { %v11221_v31 = vadd.f32 %v5245_v33, %v5046_v29  ;;  %v8386_v58 = vpop.f32.mrf.mxu1  ;;  %v5910_v33 = vadd.s32 56, %v11247_v28 }
 0x2af   : > { %v5014_v17 = vpop.f32.mrf.mxu0 }
 0x2b0   : > { %v5047_v3 = vadd.f32 %v5014_v17, %v4889_v12  ;;  %v5250_v15 = vpop.f32.mrf.mxu1  ;;  %v11267_v58 = vmul.u32.u64.low 3435973837, %v5904_v25  ;;  %v11268_v17 = vmul.u32.u64.high 3435973837, %v5904_v25, %v11267_v58 }
 0x2b1   : > { %v8353_v5 = vpop.f32.mrf.mxu0 }
 0x2b2   : > { %v11223_v6 = vadd.f32 %v5250_v15, %v5047_v3  ;;  %v8389_v63 = vpop.f32.mrf.mxu1 }
 0x2b3   : > { %v5017_v42 = vpop.f32.mrf.mxu0 }
 0x2b4   : > { %v5048_v2 = vadd.f32 %v5017_v42, %v4890_v26  ;;  %v5253_v21 = vpop.f32.mrf.mxu1  ;;  %v11274_v63 = vmul.u32.u64.low 3435973837, %v5910_v33  ;;  %v11275_v42 = vmul.u32.u64.high 3435973837, %v5910_v33, %v11274_v63 }
 0x2b5   : > { %v8354_v10 = vpop.f32.mrf.mxu0 }
 0x2b6   : > { %v11225_v52 = vadd.f32 %v5253_v21, %v5048_v2  ;;  %v8390_v40 = vpop.f32.mrf.mxu1  ;;  %v11278_v2 = vadd.s32 16, %v11247_v28  ;;  %v11281_v10 = vadd.s32 64, %v11247_v28 }
 0x2b7   : > { %v5022_v60 = vpop.f32.mrf.mxu0 }
 0x2b8   : > { %v5049_v37 = vadd.f32 %v5022_v60, %v4891_v59  ;;  %v5258_v9 = vpop.f32.mrf.mxu1  ;;  %v5919_v60 = vshrl.u32 %v11259_v50, 3 }
 0x2b9   : > { %v8357_v0 = vpop.f32.mrf.mxu0 }
 0x2ba   : > { %v11227_v19 = vadd.f32 %v5258_v9, %v5049_v37  ;;  %v8393_v39 = vpop.f32.mrf.mxu1  ;;  %v11287_v37 = vadd.s32 24, %v11247_v28  ;;  %v5985_v0 = vshrl.u32 %v11264_v23, 3 }
 0x2bb   : > { %v5025_v12 = vpop.f32.mrf.mxu0 }
 0x2bc   : > { %v5050_v7 = vadd.f32 %v5025_v12, %v4892_v27  ;;  %v5261_v8 = vpop.f32.mrf.mxu1 }
 0x2bd   : > { %v8358_v18 = vpop.f32.mrf.mxu0 }
 0x2be   : > { %v11229_v32 = vadd.f32 %v5261_v8, %v5050_v7  ;;  %v8394_v24 = vpop.f32.mrf.mxu1  ;;  %v11293_v12 = vmul.u32.u64.low 3435973837, %v11278_v2  ;;  %v11294_v7 = vmul.u32.u64.high 3435973837, %v11278_v2, %v11293_v12  ;;  %v5930_v18 = vshrl.u32 %v11268_v17, 3 }
 0x2bf   : > { %v11231_v26 = vpop.f32.mrf.mxu0  ;;  %v11327_v17 = vadd.s32 32, %v11247_v28 }
 0x2c0   : > { %v11233_v53 = vpop.f32.mrf.mxu1  ;;  %v5931_v44 = vmul.u32 10, %v5930_v18 }
 0x2c1   : > { %v8361_v30 = vpop.f32.mrf.mxu0 }
 0x2c2   : > { %v8397_v47 = vpop.f32.mrf.mxu1  ;;  %v11298_v24 = vmul.u32.u64.low 3435973837, %v11281_v10  ;;  %v11299_v30 = vmul.u32.u64.high 3435973837, %v11281_v10, %v11298_v24 }
 0x2c3   : > { %v11235_v48 = vpop.f32.mrf.mxu0  ;;  %v11302_v47 = vadd.s32 72, %v11247_v28 }
 0x2c4   : > { %v11237_v59 = vpop.f32.mrf.mxu1 }
 0x2c5   : > { %v8362_v11 = vpop.f32.mrf.mxu0  ;;  %v11314_v50 = vmul.u32.u64.low 3435973837, %v11302_v47  ;;  %v11315_v16 = vmul.u32.u64.high 3435973837, %v11302_v47, %v11314_v50 }
 0x2c6   : > { %v8398_v38 = vpop.f32.mrf.mxu1 }
 0x2c7   : > { %v11239_v56 = vpop.f32.mrf.mxu0  ;;  %v5920_v38 = vmul.u32 10, %v5919_v60  ;;  %v11330_v60 = vsub.s32 %v5904_v25, %v5931_v44 }
 0x2c8   : > { %v11241_v27 = vpop.f32.mrf.mxu1 }
 0x2c9   : > { %v8365_v35 = vpop.f32.mrf.mxu0  ;;  %vm6024_vm11 = vcmp.ne.s32.totalorder %v11330_v60, 0  ;;  %vm6034_vm12 = vcmp.lt.s32.totalorder %v11330_v60, 0 }
 0x2ca   : > { %v8401_v61 = vpop.f32.mrf.mxu1  ;;  %v11307_v1 = vmul.u32.u64.low 3435973837, %v11287_v37  ;;  %v11308_v35 = vmul.u32.u64.high 3435973837, %v11287_v37, %v11307_v1  ;;  %vm11375_vm15 = vmand %vm6034_vm12, %vm6024_vm11 }
 0x2cb   : > { %v11243_v36 = vpop.f32.mrf.mxu0 }
 0x2cc   : > { %v11245_v54 = vpop.f32.mrf.mxu1  ;;  %v5952_v12 = vshrl.u32 %v11308_v35, 3  ;;  %v6018_v35 = vshrl.u32 %v11315_v16, 3  ;;  %v6054_v16 = vadd.s32 10, %v11330_v60 }
 0x2cd   : > { %v8366_v22 = vpop.f32.mrf.mxu0 }
 0x2ce   : > { %v8402_v55 = vpop.f32.mrf.mxu1  ;;  %v5986_v22 = vmul.u32 10, %v5985_v0  ;;  %v6007_v0 = vshrl.u32 %v11299_v30, 3  ;;  %v11347_v30 = vadd.s32 40, %v11247_v28 }
 0x2cf   : > { %v11249_v41 = vpop.f32.mrf.mxu0 }
 0x2d0   : > { %v11251_v46 = vpop.f32.mrf.mxu1  ;;  %v11324_v58 = vsub.s32 %v5909_v43, %v5986_v22  ;;  %v11340_v43 = vmul.u32.u64.low 3435973837, %v11327_v17  ;;  %v11341_v18 = vmul.u32.u64.high 3435973837, %v11327_v17, %v11340_v43  ;;  %v6008_v1 = vmul.u32 10, %v6007_v0 }
 0x2d1   : > { %v8421_v57 = vpop.f32.mrf.mxu0 }
 0x2d2   : > { %v8457_v51 = vpop.f32.mrf.mxu1  ;;  %v5996_v57 = vshrl.u32 %v11275_v42, 3  ;;  %v5941_v42 = vshrl.u32 %v11294_v7, 3  ;;  %vm6029_vm9 = vcmp.ne.s32.totalorder %v11324_v58, 0  ;;  %vm6039_vm10 = vcmp.lt.s32.totalorder %v11324_v58, 0 }
 0x2d3   : > { %v11255_v14 = vpop.f32.mrf.mxu0  ;;  %vm11365_vm14 = vmand %vm6039_vm10, %vm6029_vm9  ;;  %v6059_v50 = vadd.s32 10, %v11324_v58 }
 0x2d4   : > { %v11261_v20 = vpop.f32.mrf.mxu1  ;;  %v5997_v63 = vmul.u32 10, %v5996_v57  ;;  %v5942_v24 = vmul.u32 10, %v5941_v42 }
 0x2d5   : > { %v8422_v29 = vpop.f32.mrf.mxu0  ;;  %v5953_v57 = vmul.u32 10, %v5952_v12  ;;  %v11383_v0 = vmul.u32.u64.low 3435973837, %v11347_v30  ;;  %v11384_v12 = vmul.u32.u64.high 3435973837, %v11347_v30, %v11383_v0 }
 0x2d6   : > { %v8458_v62 = vpop.f32.mrf.mxu1  ;;  %v11320_v29 = vsub.s32 %v11247_v28, %v5920_v38  ;;  %v11344_v25 = vsub.s32 %v5910_v33, %v5997_v63 }
 0x2d7   : > { %v11270_v3 = vpop.f32.mrf.mxu0 }
 0x2d8   : > { %v11272_v15 = vpop.f32.mrf.mxu1  ;;  %vm6023_vm7 = vcmp.ne.s32.totalorder %v11320_v29, 0  ;;  %vm6033_vm8 = vcmp.lt.s32.totalorder %v11320_v29, 0  ;;  %vm6030_vm0 = vcmp.ne.s32.totalorder %v11344_v25, 0  ;;  %vm6040_vm1 = vcmp.lt.s32.totalorder %v11344_v25, 0 }
 0x2d9   : > { %v8425_v5 = vpop.f32.mrf.mxu0  ;;  %vm11356_vm13 = vmand %vm6033_vm8, %vm6023_vm7 }
 0x2da   : > { %v8461_v21 = vpop.f32.mrf.mxu1  ;;  %vm11415_vm2 = vmand %vm6040_vm1, %vm6030_vm0 }
 0x2db   : > { %v11283_v40 = vpop.f32.mrf.mxu0 }
 0x2dc   : > { %v11289_v9 = vpop.f32.mrf.mxu1 }
 0x2dd   : > { %v8426_v39 = vpop.f32.mrf.mxu0 }
 0x2de   : > { %v8462_v8 = vpop.f32.mrf.mxu1 }
 0x2df   : > { %v11304_v11 = vpop.f32.mrf.mxu0 }
 0x2e0   : > { %v11310_v61 = vpop.f32.mrf.mxu1 }
 0x2e1   : > { %v8429_v55 = vpop.f32.mrf.mxu0 }
 0x2e2   : > { %v8465_v51 = vpop.f32.mrf.mxu1  ;;  %v6053_v55 = vadd.s32 10, %v11320_v29 }
 0x2e3   : > { %v11317_v23 = vpop.f32.mrf.mxu0 }
 0x2e4   : > { %v11322_v62 = vpop.f32.mrf.mxu1 }
 0x2e5   : > { %v8430_v5 = vpop.f32.mrf.mxu0 }
 0x2e6   : > { %v8466_v21 = vpop.f32.mrf.mxu1  ;;  %v5051_v5 = vadd.f32 %v11231_v26, %v11211_v4  ;;  %v11390_v4 = vsub.s32 %v11281_v10, %v6008_v1  ;;  %v6019_v26 = vmul.u32 10, %v6018_v35  ;;  %v6064_v10 = vsel %vm11375_vm15, %v6054_v16, %v11330_v60 }
 0x2e7   : > { %v5502_v39 = vpop.f32.mrf.mxu0  ;;  %v11380_v21 = vsub.s32 %v11278_v2, %v5942_v24  ;;  %v6063_v2 = vsel %vm11356_vm13, %v6053_v55, %v11320_v29  ;;  %v11398_v24 = vsub.s32 %v11287_v37, %v5953_v57  ;;  %v6060_v1 = vadd.s32 10, %v11344_v25 }
 0x2e8   : > { %v11335_v8 = vpop.f32.mrf.mxu1  ;;  %v5963_v35 = vshrl.u32 %v11341_v18, 3  ;;  %v5287_v33 = vadd.f32 %v11233_v53, %v5051_v5  ;;  %v5052_v37 = vadd.f32 %v11235_v48, %v11213_v49  ;;  %vm6031_vm5 = vcmp.ne.s32.totalorder %v11390_v4, 0 }
 0x2e9   : > { %v8433_v7 = vpop.f32.mrf.mxu0  ;;  %vm6025_vm3 = vcmp.ne.s32.totalorder %v11380_v21, 0  ;;  %vm6035_vm4 = vcmp.lt.s32.totalorder %v11380_v21, 0  ;;  %vm6041_vm6 = vcmp.lt.s32.totalorder %v11390_v4, 0  ;;  %v11431_v49 = vsub.s32 %v11302_v47, %v6019_v26 }
 0x2ea   : > { %v8469_v38 = vpop.f32.mrf.mxu1  ;;  %v5523_v53 = vadd.f32 %v5502_v39, %v5287_v33  ;;  %v6055_v18 = vadd.s32 10, %v11380_v21  ;;  %vm6026_vm7 = vcmp.ne.s32.totalorder %v11398_v24, 0  ;;  %vm6036_vm8 = vcmp.lt.s32.totalorder %v11398_v24, 0  ;;  %vm11451_vm10 = vmand %vm6035_vm4, %vm6025_vm3 }
 0x2eb   : > { %v11352_v22 = vpop.f32.mrf.mxu0  ;;  %vm11440_vm9 = vcmp.lt.s32.totalorder %v6063_v2, 8  ;;  %v6070_v47 = vsel %vm11415_vm2, %v6060_v1, %v11344_v25  ;;  %v6061_v57 = vadd.s32 10, %v11390_v4  ;;  %v5964_v44 = vmul.u32 10, %v5963_v35  ;;  %vm11472_vm13 = vmand %vm6041_vm6, %vm6031_vm5 }
 0x2ec   : > { %v11361_v51 = vpop.f32.mrf.mxu1  ;;  %v5053_v16 = vadd.f32 %v11239_v56, %v11215_v45  ;;  %vm11464_vm12 = vcmp.lt.s32.totalorder %v6064_v10, 8  ;;  %v6056_v45 = vadd.s32 10, %v11398_v24  ;;  %vm6032_vm15 = vcmp.ne.s32.totalorder %v11431_v49, 0 }
 0x2ed   : > { %v8434_v63 = vpop.f32.mrf.mxu0  ;;  %vm6042_vm0 = vcmp.lt.s32.totalorder %v11431_v49, 0  ;;  %vm11499_vm1 = vcmp.lt.s32.totalorder %v6070_v47, 8  ;;  %v6065_v10 = vsel %vm11451_vm10, %v6055_v18, %v11380_v21  ;;  %v11513_v33 = vsub.s32 %v11327_v17, %v5964_v44 }
 0x2ee   : > { %v8470_v43 = vpop.f32.mrf.mxu1  ;;  %v6069_v63 = vsel %vm11365_vm14, %v6059_v50, %v11324_v58  ;;  %v5517_v58 = vadd.f32 %v11249_v41, %v11219_v13  ;;  %v5288_v50 = vadd.f32 %v11237_v59, %v5052_v37  ;;  %v5974_v59 = vshrl.u32 %v11384_v12, 3  ;;  %vm11486_vm14 = vmand %vm6036_vm8, %vm6026_vm7 }
 0x2ef   : > { %v11392_v7 = vpop.f32.mrf.mxu0  ;;  %vm11459_vm11 = vcmp.lt.s32.totalorder %v6069_v63, 8  ;;  %v5518_v43 = vadd.f32 %v11255_v14, %v11221_v31  ;;  %v5691_v12 = vadd.f32 %v11335_v8, %v5523_v53  ;;  %v11497_v31 = vld [vmem:[%s11675_s4] ss:$0 sm:$0xff]  ;;  %v6071_v8 = vsel %vm11472_vm13, %v6061_v57, %v11390_v4  ;;  %vm11525_vm2 = vmand %vm6042_vm0, %vm6032_vm15 }
 0x2f0   : > { %v11400_v38 = vpop.f32.mrf.mxu1  ;;  %v5685_v56 = vadd.f32 %v11251_v46, %v5517_v58  ;;  %v5524_v46 = vadd.f32 %v11352_v22, %v5288_v50  ;;  %v11510_v22 = vadd.s32 10, %v11431_v49  ;;  %v5289_v37 = vadd.f32 %v11241_v27, %v5053_v16 }
 0x2f1   : > { %v8437_v29 = vpop.f32.mrf.mxu0  ;;  %v6066_v58 = vsel %vm11486_vm14, %v6056_v45, %v11398_v24  ;;  %v5686_v17 = vadd.f32 %v11261_v20, %v5518_v43  ;;  %v5519_v27 = vadd.f32 %v11270_v3, %v11223_v6  ;;  %v5975_v24 = vmul.u32 10, %v5974_v59 }
 0x2f2   : > { %v8473_v60 = vpop.f32.mrf.mxu1  ;;  %v5054_v29 = vadd.f32 %v11243_v36, %v11217_v34  ;;  %v5692_v53 = vadd.f32 %v11361_v51, %v5524_v46  ;;  %v5525_v18 = vadd.f32 %v11392_v7, %v5289_v37  ;;  %vm11541_vm3 = vcmp.lt.s32.totalorder %v6065_v10, 8 }
 0x2f3   : > { %v11433_v48 = vpop.f32.mrf.mxu0  ;;  %v5520_v60 = vadd.f32 %v11283_v40, %v11225_v52  ;;  %v6072_v57 = vsel %vm11525_vm2, %v11510_v22, %v11431_v49  ;;  %vm6027_vm4 = vcmp.ne.s32.totalorder %v11513_v33, 0  ;;  %vm11555_vm5 = vcmp.lt.s32.totalorder %v6071_v8, 8 }
 0x2f4   : > { %v11438_v13 = vpop.f32.mrf.mxu1  ;;  %v5290_v52 = vadd.f32 %v11245_v54, %v5054_v29  ;;  %vm11559_vm6 = vcmp.lt.s32.totalorder %v6066_v58, 8  ;;  %vm6037_vm7 = vcmp.lt.s32.totalorder %v11513_v33, 0  ;;  %v5687_v49 = vadd.f32 %v11272_v15, %v5519_v27 }
 0x2f5   : > { %v8438_v5 = vpop.f32.mrf.mxu0  ;;  %v6057_v41 = vadd.s32 10, %v11513_v33  ;;  %v5688_v0 = vadd.f32 %v11289_v9, %v5520_v60  ;;  %v5693_v45 = vadd.f32 %v11400_v38, %v5525_v18  ;;  %vm11598_vm8 = vmand %vm6037_vm7, %vm6027_vm4  ;;  %vm6205_vm15 = vcmp.eq.s32.totalorder %v11247_v28, 0 }
 0x2f6   : > { %v8474_v26 = vpop.f32.mrf.mxu1  ;;  %v11568_v5 = vsub.s32 %v11347_v30, %v5975_v24  ;;  %v5526_v59 = vadd.f32 %v11433_v48, %v5290_v52 }
 0x2f7   : > { %v5836_v63 = vpop.f32.mrf.mxu0  ;;  %v6067_v27 = vsel %vm11598_vm8, %v6057_v41, %v11513_v33 }
 0x2f8   : > { %v5875_v1 = vadd.f32 %v5836_v63, %v5685_v56  ;;  %v5860_v35 = vpop.f32.mrf.mxu1  ;;  %v5521_v63 = vadd.f32 %v11304_v11, %v11227_v19  ;;  %v5694_v14 = vadd.f32 %v11438_v13, %v5526_v59  ;;  %vm6028_vm10 = vcmp.ne.s32.totalorder %v11568_v5, 0 }
 0x2f9   : > { %v5881_v55 = vadd.f32 %v5860_v35, %v5691_v12  ;;  %v8493_v21 = vpop.f32.mrf.mxu0  ;;  %v6058_v60 = vadd.s32 10, %v11568_v5  ;;  %vm6077_vm13 = vcmp.lt.s32.totalorder %v6067_v27, 8 }
 0x2fa   : > { %v5892_v34 = vadd.f32 %v11497_v31, %v5875_v1  ;;  %v8505_v36 = vpop.f32.mrf.mxu1 }
 0x2fb   : > { %v5839_v47 = vpop.f32.mrf.mxu0  ;;  %v5898_v6 = vadd.f32 %v11497_v31, %v5881_v55  ;;  %v5522_v36 = vadd.f32 %v11317_v23, %v11229_v32 }
 0x2fc   : > { %v5876_v3 = vadd.f32 %v5839_v47, %v5686_v17  ;;  %v5863_v39 = vpop.f32.mrf.mxu1  ;;  %v6103_v40 = vsel %vm11440_vm9, %v5892_v34, 0.0  ;;  %vm11604_vm9 = vcmp.lt.s32.totalorder %v6072_v57, 8  ;;  %v5689_v34 = vadd.f32 %v11310_v61, %v5521_v63 }
 0x2fd   : > { %v5882_v51 = vadd.f32 %v5863_v39, %v5692_v53  ;;  %v8494_v7 = vpop.f32.mrf.mxu0  ;;  %v6179_v26 = vmul.f32 %v6103_v40, %v6103_v40  ;;  %v11576_v15 = vsel %vm11459_vm11, %v5898_v6, 0.0  ;;  %vm6038_vm11 = vcmp.lt.s32.totalorder %v11568_v5, 0 }
 0x2fe   : > { %v5893_v54 = vadd.f32 %v11497_v31, %v5876_v3  ;;  %v8506_v16 = vpop.f32.mrf.mxu1 }
 0x2ff   : > { %v5899_v56 = vadd.f32 %v11497_v31, %v5882_v51  ;;  %v5844_v43 = vpop.f32.mrf.mxu0 }
 0x300   : > { %v6104_v9 = vsel %vm11464_vm12, %v5893_v54, 0.0  ;;  %v5877_v30 = vadd.f32 %v5844_v43, %v5687_v49  ;;  %v5868_v38 = vpop.f32.mrf.mxu1  ;;  %vm11625_vm12 = vmand %vm6038_vm11, %vm6028_vm10 }
 0x301   : > { %v7162_v48 = vpack.c.bf16 %v6104_v9, %v6103_v40  ;;  %v6163_v2 = vadd.f32 %v6104_v9, %v6103_v40  ;;  %v6180_v12 = vmul.f32 %v6104_v9, %v6104_v9  ;;  %v11587_v25 = vsel %vm11499_vm1, %v5899_v56, 0.0  ;;  %v8497_v46 = vpop.f32.mrf.mxu0 }
 0x302   : > { %v7177_v10 = vpack.c.bf16 %v11587_v25, %v11576_v15  ;;  %v5894_v42 = vadd.f32 %v11497_v31, %v5877_v30  ;;  %v5883_v1 = vadd.f32 %v5868_v38, %v5693_v45  ;;  %v8509_v35 = vpop.f32.mrf.mxu1  ;;  %v5690_v40 = vadd.f32 %v11322_v62, %v5522_v36 }
 0x303   : > { %7163 = vst [vmem:[%s11581_s7] sm:$0xff] %v7162_v48   ;;  %v6189_v22 = vadd.f32 %v6180_v12, %v6179_v26  ;;  %v5847_v19 = vpop.f32.mrf.mxu0  ;;  %v6068_v44 = vsel %vm11625_vm12, %v6058_v60, %v11568_v5  ;;  %v6185_v5 = vmul.f32 %v11576_v15, %v11576_v15  ;;  %v6186_v48 = vmul.f32 %v11587_v25, %v11587_v25 }
 0x304   : > { %7186 = vst [vmem:[%s11581_s7 + $0x18] sm:$0xff] %v7177_v10   ;;  %v6105_v37 = vsel %vm11541_vm3, %v5894_v42, 0.0  ;;  %v5900_v29 = vadd.f32 %v11497_v31, %v5883_v1  ;;  %v5878_v55 = vadd.f32 %v5847_v19, %v5688_v0  ;;  %v5871_v21 = vpop.f32.mrf.mxu1  ;;  %vm6078_vm14 = vcmp.lt.s32.totalorder %v6068_v44, 8 }
 0x305   : > { %v6164_v13 = vadd.f32 %v6163_v2, %v6105_v37  ;;  %v6181_v58 = vmul.f32 %v6105_v37, %v6105_v37  ;;  %v5884_v4 = vadd.f32 %v5871_v21, %v5694_v14  ;;  %v8498_v17 = vpop.f32.mrf.mxu0 }
 0x306   : > { %v5895_v24 = vadd.f32 %v11497_v31, %v5878_v55  ;;  %v8510_v53 = vpop.f32.mrf.mxu1  ;;  %v6111_v61 = vsel %vm11555_vm5, %v5900_v29, 0.0 }
 0x307   : > { %v6190_v18 = vadd.f32 %v6189_v22, %v6181_v58  ;;  %v5901_v47 = vadd.f32 %v11497_v31, %v5884_v4  ;;  %v5852_v20 = vpop.f32.mrf.mxu0  ;;  %v6187_v12 = vmul.f32 %v6111_v61, %v6111_v61 }
 0x308   : > { %v6106_v32 = vsel %vm11559_vm6, %v5895_v24, 0.0  ;;  %v5879_v23 = vadd.f32 %v5852_v20, %v5689_v34 }
 0x309   : > { %v7167_v33 = vpack.c.bf16 %v6106_v32, %v6105_v37  ;;  %v6165_v3 = vadd.f32 %v6164_v13, %v6106_v32  ;;  %v6182_v39 = vmul.f32 %v6106_v32, %v6106_v32  ;;  %v6112_v57 = vsel %vm11604_vm9, %v5901_v47, 0.0  ;;  %v8501_v52 = vpop.f32.mrf.mxu0 }
 0x30a   : > { %v7182_v51 = vpack.c.bf16 %v6112_v57, %v6111_v61  ;;  %v5896_v7 = vadd.f32 %v11497_v31, %v5879_v23  ;;  %v6188_v10 = vmul.f32 %v6112_v57, %v6112_v57 }
 0x30b   : > { %7184 = vst [vmem:[%s11581_s7 + $0x8] sm:$0xff] %v7167_v33   ;;  %v6191_v50 = vadd.f32 %v6190_v18, %v6182_v39  ;;  %v5855_v49 = vpop.f32.mrf.mxu0 }
 0x30c   : > { %7187 = vst [vmem:[%s11581_s7 + $0x20] sm:$0xff] %v7182_v51   ;;  %v6107_v54 = vsel %vm6077_vm13, %v5896_v7, 0.0  ;;  %v5880_v16 = vadd.f32 %v5855_v49, %v5690_v40 }
 0x30d   : > { %v6166_v41 = vadd.f32 %v6165_v3, %v6107_v54  ;;  %v6183_v0 = vmul.f32 %v6107_v54, %v6107_v54  ;;  %v8502_v45 = vpop.f32.mrf.mxu0 }
 0x30e   : > { %v5897_v62 = vadd.f32 %v11497_v31, %v5880_v16 }
 0x30f   : > { %v6192_v59 = vadd.f32 %v6191_v50, %v6183_v0 }
 0x310   : > { %v6108_v56 = vsel %vm6078_vm14, %v5897_v62, 0.0 }
 0x311   : > { %v7172_v43 = vpack.c.bf16 %v6108_v56, %v6107_v54  ;;  %v6167_v26 = vadd.f32 %v6166_v41, %v6108_v56  ;;  %v6184_v9 = vmul.f32 %v6108_v56, %v6108_v56 }
 0x313   : > { %7185 = vst [vmem:[%s11581_s7 + $0x10] sm:$0xff] %v7172_v43   ;;  %v6168_v30 = vadd.f32 %v6167_v26, %v11576_v15  ;;  %v6193_v38 = vadd.f32 %v6192_v59, %v6184_v9 }
 0x315   : > { %v6169_v2 = vadd.f32 %v6168_v30, %v11587_v25  ;;  %v6194_v31 = vadd.f32 %v6193_v38, %v6185_v5 }
 0x317   : > { %v6170_v46 = vadd.f32 %v6169_v2, %v6111_v61  ;;  %v6195_v63 = vadd.f32 %v6194_v31, %v6186_v48 }
 0x319   : > { %v6171_v42 = vadd.f32 %v6170_v46, %v6112_v57  ;;  %v6196_v1 = vadd.f32 %v6195_v63, %v6187_v12 }
 0x31b   : > { %v6172_v35 = vrot.slane %v6171_v42, 4  ;;  %v6197_v8 = vadd.f32 %v6196_v1, %v6188_v10 }
 0x31d   : > { %v6173_v14 = vadd.f32 %v6172_v35, %v6171_v42  ;;  %v6198_v22 = vrot.slane %v6197_v8, 4 }
 0x31f   : > { %v6174_v15 = vrot.slane %v6173_v14, 2  ;;  %v6199_v19 = vadd.f32 %v6198_v22, %v6197_v8 }
 0x321   : > { %v6175_v11 = vadd.f32 %v6174_v15, %v6173_v14  ;;  %v6200_v37 = vrot.slane %v6199_v19, 2 }
 0x323   : > { %v6176_v29 = vrot.slane %v6175_v11, 1  ;;  %v6201_v55 = vadd.f32 %v6200_v37, %v6199_v19 }
 0x325   : > { %v6202_v25 = vrot.slane %v6201_v55, 1  ;;  %v6177_v21 = vadd.f32 %v6176_v29, %v6175_v11 }
 0x327   : > { %v6203_v13 = vadd.f32 %v6202_v25, %v6201_v55 }
 0x329   : > { %v6208_v58 = vsel %vm6205_vm15, %v6177_v21, %v6203_v13 }
 0x32a   : > { %6209 = vst [vmem:[%s390_s16] sm:$0x3] %v6208_v58 }
 0x32b PF: > { %s17_s25 = sadd.s32 1, %s8948_s25   ;;  %s11715_s21 = smov %s8940_s23 }
 0x32c   : > { %p14_p10 = scmp.ge.s32.totalorder %s17_s25, 18   ;;  %s11716_s22 = smov %s8944_s24 }
 0x32d   : > { %s11717_s23 = smov %s11720_s26  ;;  %s11718_s24 = smov %s11724_s27 }
 0x32e   :  { %16 = sbr.rel (!%p14_p10) target bundleno = 3 (0x3), region = 114 }

</bundles_post_ra>
